<compile_context>
chip_gen: v7x
topology: tpu7x:2x2x1
jax: 0.10.0
libtpu: 0.0.40
codegen_flags: <defaults>
</compile_context>

<pallas_src>
import functools

import numpy as np
import jax
import jax.numpy as jnp
from jax.experimental import pallas as pl
from jax.experimental.pallas import tpu as pltpu

EPS = 1e-5
# Mosaic dot lowering supports only DEFAULT / HIGHEST; DEFAULT would be 1-pass bf16
# and break fp32 1e-4 parity, so keep HIGHEST (see TODO above).
_PRECISION = jax.lax.Precision.HIGHEST


# ----------------------------------------------------------------------------
# Fused kernel: [1x1 conv + BN1 + ReLU] -> [ConvTranspose2d(3,s2,p1,op1) + BN2 +
# ReLU] -> [1x1 conv + BN3 + ReLU], all on one whole-image(s) block in VMEM.
#
# Sub-pixel decomposition of the stride-2 transpose conv (4 output phases):
#   out[2i  ,2j  ] = y[i,j]   @ W[1,1]
#   out[2i  ,2j+1] = y[i,j+1] @ W[1,0] + y[i,j] @ W[1,2]
#   out[2i+1,2j  ] = y[i+1,j] @ W[0,1] + y[i,j] @ W[2,1]
#   out[2i+1,2j+1] = y[i+1,j+1]@W[0,0] + y[i+1,j]@W[0,2] + y[i,j+1]@W[2,0] + y[i,j]@W[2,2]
# Shifted neighbours are derived in-register with pltpu.roll + precomputed border
# masks (valid because every block holds whole images).
# ----------------------------------------------------------------------------
def _decoder_kernel(x_ref, w1_ref, t1_ref, wt_ref, t2_ref, w2_ref, t3_ref,
                    colm_ref, rowm_ref, o_ref, *, width):
    dot = lambda a, b: jnp.dot(a, b, preferred_element_type=jnp.float32,
                               precision=_PRECISION)

    # stage 1: 1x1 conv (BN1 scale folded) + shift + ReLU, entirely in VMEM
    y = jnp.maximum(dot(x_ref[...], w1_ref[...]) + t1_ref[...], 0.0)   # (T, C)
    T = y.shape[0]

    # shifted neighbours (zeroed at image borders via precomputed masks)
    cm = colm_ref[...]                       # (T, 1): 1.0 where j != W-1
    rm = rowm_ref[...]                       # (T, 1): 1.0 where i != H-1
    crm = cm * rm
    yr = pltpu.roll(y, T - 1, 0) * cm              # y[i, j+1]
    yd = pltpu.roll(y, T - width, 0) * rm          # y[i+1, j]
    ydr = pltpu.roll(y, T - width - 1, 0) * crm    # y[i+1, j+1]

    # stage 2: transpose-conv taps (dense, zero-free) + BN2 shift + ReLU, per phase
    t2 = t2_ref[...]
    p00 = jnp.maximum(dot(y, wt_ref[4]) + t2, 0.0)
    p01 = jnp.maximum(dot(y, wt_ref[5]) + dot(yr, wt_ref[3]) + t2, 0.0)
    p10 = jnp.maximum(dot(y, wt_ref[7]) + dot(yd, wt_ref[1]) + t2, 0.0)
    p11 = jnp.maximum(dot(y, wt_ref[8]) + dot(yr, wt_ref[6])
                      + dot(yd, wt_ref[2]) + dot(ydr, wt_ref[0]) + t2, 0.0)

    # stage 3: 1x1 conv (shared weight, BN3 scale folded) + shift + ReLU per phase,
    # lane-concatenated so the store is a single dense (T, 4*Cout) block.
    w2 = w2_ref[...]
    t3 = t3_ref[...]
    o = jnp.concatenate(
        [jnp.maximum(dot(pk, w2) + t3, 0.0) for pk in (p00, p01, p10, p11)],
        axis=1)
    o_ref[...] = o.astype(o_ref.dtype)


def _pick_batch_tile(n, img, bytes_per_row, row_target=1024, vmem_budget=8 << 20):
    """Largest whole-image batch tile under a VMEM byte budget / row target."""
    cap = max(img, min(row_target, vmem_budget // max(bytes_per_row, 1)))
    bt = 1
    for d in range(1, n + 1):
        if n % d == 0 and d * img <= cap:
            bt = d
    return bt


# ----------------------------------------------------------------------------
# Forward pass (parameter folding in plain JAX, compute in the fused kernel)
# ----------------------------------------------------------------------------
def _fold_scale_shift(bias, gamma, beta, mean, var):
    scale = gamma / jnp.sqrt(var + EPS)
    shift = beta + (bias - mean) * scale
    return scale.astype(jnp.float32), shift.astype(jnp.float32)


def linknet_decoder_forward(x, p):
    N, Cin, H, W = x.shape
    C = p["w1"].shape[0]              # Cmid = in_channel // 4
    Cout = p["w2"].shape[0]
    img, rows = H * W, N * H * W

    # --- fold BN scale into the conv weights, keep per-channel shifts ---
    s1, t1 = _fold_scale_shift(p["b1"], p["g1"], p["be1"], p["m1"], p["v1"])
    s2, t2 = _fold_scale_shift(p["bup"], p["g2"], p["be2"], p["m2"], p["v2"])
    s3, t3 = _fold_scale_shift(p["b2"], p["g3"], p["be3"], p["m3"], p["v3"])

    w1f = jnp.transpose(p["w1"][:, :, 0, 0]) * s1[None, :]                  # (Cin, C)
    wtaps = (jnp.transpose(p["wup"], (2, 3, 0, 1)).reshape(9, C, C)
             * s2[None, None, :])                                           # (9, C, C)
    w2f = jnp.transpose(p["w2"][:, :, 0, 0]) * s3[None, :]                  # (C, Cout)

    x2d = jnp.transpose(x, (0, 2, 3, 1)).reshape(rows, Cin)                 # NHWC rows

    # --- VMEM-budget-aware whole-image row tiling ---
    # per-row f32 live set: x block (+dbl-buf), y, 3 shifted copies, 4 phases,
    # output block (+dbl-buf), masks.
    bytes_per_row = 4 * (3 * Cin + 8 * C + 12 * Cout + 8)
    bt = _pick_batch_tile(N, img, bytes_per_row)
    tile = bt * img
    if tile % 8 != 0 and tile != rows:
        # TODO(synk): halo-based row-band tiling for large / odd-sized images.
        tile = rows
    grid = (rows // tile,)

    # precomputed border masks (identical for every grid step: blocks are whole images)
    ridx = np.arange(tile)
    colm = jnp.asarray(((ridx % W) != (W - 1)).astype(np.float32).reshape(tile, 1))
    rowm = jnp.asarray(((ridx % img) < (img - W)).astype(np.float32).reshape(tile, 1))

    weight_bytes = 4 * (Cin * C + 9 * C * C + C * Cout + 2 * C + Cout)
    vmem_limit = int(min(64 << 20,
                         max(32 << 20, 3 * tile * bytes_per_row + 2 * weight_bytes)))

    kern = functools.partial(_decoder_kernel, width=W)
    out2d = pl.pallas_call(
        kern,
        out_shape=jax.ShapeDtypeStruct((rows, 4 * Cout), jnp.float32),
        grid=grid,
        in_specs=[
            pl.BlockSpec((tile, Cin), lambda i: (i, 0)),
            pl.BlockSpec((Cin, C), lambda i: (0, 0)),
            pl.BlockSpec((1, C), lambda i: (0, 0)),
            pl.BlockSpec((9, C, C), lambda i: (0, 0, 0)),
            pl.BlockSpec((1, C), lambda i: (0, 0)),
            pl.BlockSpec((C, Cout), lambda i: (0, 0)),
            pl.BlockSpec((1, Cout), lambda i: (0, 0)),
            pl.BlockSpec((tile, 1), lambda i: (0, 0)),
            pl.BlockSpec((tile, 1), lambda i: (0, 0)),
        ],
        out_specs=pl.BlockSpec((tile, 4 * Cout), lambda i: (i, 0)),
        compiler_params=pltpu.CompilerParams(
            dimension_semantics=("parallel",),
            vmem_limit_bytes=vmem_limit),
    )(x2d, w1f, t1.reshape(1, -1), wtaps, t2.reshape(1, -1),
      w2f, t3.reshape(1, -1), colm, rowm)

    # Single XLA copy pass: 2x2 sub-pixel interleave + NHWC -> NCHW.
    # out2d[n*H*W + i*W + j, (ph*2+pw)*Cout + c] -> out[n, c, 2i+ph, 2j+pw]
    o = out2d.reshape(N, H, W, 2, 2, Cout)
    o = jnp.transpose(o, (0, 5, 1, 3, 2, 4)).reshape(N, Cout, 2 * H, 2 * W)
    return o


# ----------------------------------------------------------------------------
# Pure-numpy reference (direct transcription of the PyTorch module, eval-mode BN)
# ----------------------------------------------------------------------------
def _bn_ref(x, gamma, beta, mean, var):
    inv = gamma / np.sqrt(var + EPS)
    return x * inv[None, :, None, None] + (beta - mean * inv)[None, :, None, None]


def _conv1x1_ref(x, w, b):
    return np.einsum("nchw,oc->nohw", x, w[:, :, 0, 0]) + b[None, :, None, None]


def _conv_transpose_ref(x, w, b):   # stride=2, pad=1, output_padding=1
    N, Ci, H, W = x.shape
    Co = w.shape[1]
    out = np.zeros((N, Co, 2 * H, 2 * W), np.float32)
    for kh in range(3):
        for kw in range(3):
            for ih in range(H):
                oh = 2 * ih - 1 + kh
                if not (0 <= oh < 2 * H):
                    continue
                for iw in range(W):
                    ow = 2 * iw - 1 + kw
                    if not (0 <= ow < 2 * W):
                        continue
                    out[:, :, oh, ow] += x[:, :, ih, iw] @ w[:, :, kh, kw]
    return out + b[None, :, None, None]


def reference_forward(x, p):
    g = lambda k: np.asarray(p[k], np.float32)
    x = np.asarray(x, np.float32)
    y = np.maximum(_bn_ref(_conv1x1_ref(x, g("w1"), g("b1")),
                           g("g1"), g("be1"), g("m1"), g("v1")), 0.0)
    y = np.maximum(_bn_ref(_conv_transpose_ref(y, g("wup"), g("bup")),
                           g("g2"), g("be2"), g("m2"), g("v2")), 0.0)
    y = np.maximum(_bn_ref(_conv1x1_ref(y, g("w2"), g("b2")),
                           g("g3"), g("be3"), g("m3"), g("v3")), 0.0)
    return y


# ----------------------------------------------------------------------------
# Deterministic parameter init + run
# ----------------------------------------------------------------------------
def init_params(key, in_channel, out_channel):
    Cin, Cmid, Cout = in_channel, in_channel // 4, out_channel
    ks = jax.random.split(key, 20)
    n = lambda k, shape, s=0.1: s * jax.random.normal(k, shape, jnp.float32)
    return {
        "w1": n(ks[0], (Cmid, Cin, 1, 1)), "b1": n(ks[1], (Cmid,), 0.05),
        "g1": 1.0 + n(ks[2], (Cmid,)), "be1": n(ks[3], (Cmid,), 0.05),
        "m1": n(ks[4], (Cmid,)), "v1": 1.0 + 0.1 * jax.random.uniform(ks[5], (Cmid,)),
        "wup": n(ks[6], (Cmid, Cmid, 3, 3)), "bup": n(ks[7], (Cmid,), 0.05),
        "g2": 1.0 + n(ks[8], (Cmid,)), "be2": n(ks[9], (Cmid,), 0.05),
        "m2": n(ks[10], (Cmid,)), "v2": 1.0 + 0.1 * jax.random.uniform(ks[11], (Cmid,)),
        "w2": n(ks[12], (Cout, Cmid, 1, 1)), "b2": n(ks[13], (Cout,), 0.05),
        "g3": 1.0 + n(ks[14], (Cout,)), "be3": n(ks[15], (Cout,), 0.05),
        "m3": n(ks[16], (Cout,)), "v3": 1.0 + 0.1 * jax.random.uniform(ks[17], (Cout,)),
    }


if __name__ == "__main__":
    N, in_channel, out_channel, H, W = 2, 16, 8, 8, 8

    key = jax.random.PRNGKey(0)
    kx, kp = jax.random.split(key)
    x = jax.random.normal(kx, (N, in_channel, H, W), jnp.float32)
    params = init_params(kp, in_channel, out_channel)

    out = linknet_decoder_forward(x, params)
    out = jax.block_until_ready(out)

    ref = reference_forward(x, params)
    assert out.shape == (N, out_channel, 2 * H, 2 * W), out.shape
    np.testing.assert_allclose(np.asarray(out), ref, rtol=1e-4, atol=1e-4)

    print("KERNEL_OK")
</pallas_src>

<mosaic_0001>
module attributes {stable_mosaic.version = 11 : i64} {
  func.func @_decoder_kernel(%arg0: i32, %arg1: memref<128x16xf32, #tpu.memory_space<vmem>>, %arg2: memref<16x4xf32, #tpu.memory_space<vmem>>, %arg3: memref<1x4xf32, #tpu.memory_space<vmem>>, %arg4: memref<9x4x4xf32, #tpu.memory_space<vmem>>, %arg5: memref<1x4xf32, #tpu.memory_space<vmem>>, %arg6: memref<4x8xf32, #tpu.memory_space<vmem>>, %arg7: memref<1x8xf32, #tpu.memory_space<vmem>>, %arg8: memref<128x1xf32, #tpu.memory_space<vmem>>, %arg9: memref<128x1xf32, #tpu.memory_space<vmem>>, %arg10: memref<128x32xf32, #tpu.memory_space<vmem>>) attributes {dimension_semantics = [#tpu.dimension_semantics<parallel>], iteration_bounds = array<i64: 1>, scalar_prefetch = 0 : i64, scratch_operands = 0 : i64, tpu.core_type = #tpu.core_type<tc>, window_params = [{transform_indices = @transform_0, window_bounds = array<i64: 128, 16>}, {pipeline_mode = #tpu.pipeline_mode<synchronous>, transform_indices = @transform_1, window_bounds = array<i64: 16, 4>}, {pipeline_mode = #tpu.pipeline_mode<synchronous>, transform_indices = @transform_2, window_bounds = array<i64: 1, 4>}, {pipeline_mode = #tpu.pipeline_mode<synchronous>, transform_indices = @transform_3, window_bounds = array<i64: 9, 4, 4>}, {pipeline_mode = #tpu.pipeline_mode<synchronous>, transform_indices = @transform_4, window_bounds = array<i64: 1, 4>}, {pipeline_mode = #tpu.pipeline_mode<synchronous>, transform_indices = @transform_5, window_bounds = array<i64: 4, 8>}, {pipeline_mode = #tpu.pipeline_mode<synchronous>, transform_indices = @transform_6, window_bounds = array<i64: 1, 8>}, {pipeline_mode = #tpu.pipeline_mode<synchronous>, transform_indices = @transform_7, window_bounds = array<i64: 128, 1>}, {pipeline_mode = #tpu.pipeline_mode<synchronous>, transform_indices = @transform_8, window_bounds = array<i64: 128, 1>}, {transform_indices = @transform_9, window_bounds = array<i64: 128, 32>}]} {
    %c0 = arith.constant 0 : index
    %c0_0 = arith.constant 0 : index
    %0 = vector.load %arg1[%c0, %c0_0] : memref<128x16xf32, #tpu.memory_space<vmem>>, vector<128x16xf32>
    %c0_1 = arith.constant 0 : index
    %c0_2 = arith.constant 0 : index
    %1 = vector.load %arg2[%c0_1, %c0_2] : memref<16x4xf32, #tpu.memory_space<vmem>>, vector<16x4xf32>
    %cst = arith.constant dense<0.000000e+00> : vector<128x4xf32>
    %2 = tpu.matmul %0, %1, %cst {dimension_numbers = #tpu.dot_dimension_numbers<[1], [0], [0], [1], [0, 0, 1, 1], [], []>, precision = #tpu.contract_precision<fp32>} : vector<128x16xf32>, vector<16x4xf32>, vector<128x4xf32> -> vector<128x4xf32>
    %c0_3 = arith.constant 0 : index
    %c0_4 = arith.constant 0 : index
    %3 = vector.load %arg3[%c0_3, %c0_4] : memref<1x4xf32, #tpu.memory_space<vmem>>, vector<1x4xf32>
    %4 = vector.broadcast %3 : vector<1x4xf32> to vector<128x4xf32>
    %5 = arith.addf %2, %4 : vector<128x4xf32>
    %cst_5 = arith.constant 0.000000e+00 : f32
    %6 = vector.broadcast %cst_5 : f32 to vector<128x4xf32>
    %7 = arith.maximumf %5, %6 : vector<128x4xf32>
    %c0_6 = arith.constant 0 : index
    %c0_7 = arith.constant 0 : index
    %8 = vector.load %arg8[%c0_6, %c0_7] : memref<128x1xf32, #tpu.memory_space<vmem>>, vector<128x1xf32>
    %c0_8 = arith.constant 0 : index
    %c0_9 = arith.constant 0 : index
    %9 = vector.load %arg9[%c0_8, %c0_9] : memref<128x1xf32, #tpu.memory_space<vmem>>, vector<128x1xf32>
    %10 = arith.mulf %8, %9 : vector<128x1xf32>
    %c127_i32 = arith.constant 127 : i32
    %11 = tpu.dynamic_rotate %7 by %c127_i32 dim 0 : vector<128x4xf32>, i32 -> vector<128x4xf32>
    %12 = vector.broadcast %8 : vector<128x1xf32> to vector<128x4xf32>
    %13 = arith.mulf %11, %12 : vector<128x4xf32>
    %c120_i32 = arith.constant 120 : i32
    %14 = tpu.dynamic_rotate %7 by %c120_i32 dim 0 : vector<128x4xf32>, i32 -> vector<128x4xf32>
    %15 = vector.broadcast %9 : vector<128x1xf32> to vector<128x4xf32>
    %16 = arith.mulf %14, %15 : vector<128x4xf32>
    %c119_i32 = arith.constant 119 : i32
    %17 = tpu.dynamic_rotate %7 by %c119_i32 dim 0 : vector<128x4xf32>, i32 -> vector<128x4xf32>
    %18 = vector.broadcast %10 : vector<128x1xf32> to vector<128x4xf32>
    %19 = arith.mulf %17, %18 : vector<128x4xf32>
    %c0_10 = arith.constant 0 : index
    %c0_11 = arith.constant 0 : index
    %20 = vector.load %arg5[%c0_10, %c0_11] : memref<1x4xf32, #tpu.memory_space<vmem>>, vector<1x4xf32>
    %c4 = arith.constant 4 : index
    %c0_12 = arith.constant 0 : index
    %c0_13 = arith.constant 0 : index
    %21 = vector.load %arg4[%c4, %c0_12, %c0_13] : memref<9x4x4xf32, #tpu.memory_space<vmem>>, vector<1x4x4xf32>
    %22 = vector.shape_cast %21 : vector<1x4x4xf32> to vector<4x4xf32>
    %cst_14 = arith.constant dense<0.000000e+00> : vector<128x4xf32>
    %23 = tpu.matmul %7, %22, %cst_14 {dimension_numbers = #tpu.dot_dimension_numbers<[1], [0], [0], [1], [0, 0, 1, 1], [], []>, precision = #tpu.contract_precision<fp32>} : vector<128x4xf32>, vector<4x4xf32>, vector<128x4xf32> -> vector<128x4xf32>
    %24 = vector.broadcast %20 : vector<1x4xf32> to vector<128x4xf32>
    %25 = arith.addf %23, %24 : vector<128x4xf32>
    %cst_15 = arith.constant 0.000000e+00 : f32
    %26 = vector.broadcast %cst_15 : f32 to vector<128x4xf32>
    %27 = arith.maximumf %25, %26 : vector<128x4xf32>
    %c5 = arith.constant 5 : index
    %c0_16 = arith.constant 0 : index
    %c0_17 = arith.constant 0 : index
    %28 = vector.load %arg4[%c5, %c0_16, %c0_17] : memref<9x4x4xf32, #tpu.memory_space<vmem>>, vector<1x4x4xf32>
    %29 = vector.shape_cast %28 : vector<1x4x4xf32> to vector<4x4xf32>
    %cst_18 = arith.constant dense<0.000000e+00> : vector<128x4xf32>
    %30 = tpu.matmul %7, %29, %cst_18 {dimension_numbers = #tpu.dot_dimension_numbers<[1], [0], [0], [1], [0, 0, 1, 1], [], []>, precision = #tpu.contract_precision<fp32>} : vector<128x4xf32>, vector<4x4xf32>, vector<128x4xf32> -> vector<128x4xf32>
    %c3 = arith.constant 3 : index
    %c0_19 = arith.constant 0 : index
    %c0_20 = arith.constant 0 : index
    %31 = vector.load %arg4[%c3, %c0_19, %c0_20] : memref<9x4x4xf32, #tpu.memory_space<vmem>>, vector<1x4x4xf32>
    %32 = vector.shape_cast %31 : vector<1x4x4xf32> to vector<4x4xf32>
    %cst_21 = arith.constant dense<0.000000e+00> : vector<128x4xf32>
    %33 = tpu.matmul %13, %32, %cst_21 {dimension_numbers = #tpu.dot_dimension_numbers<[1], [0], [0], [1], [0, 0, 1, 1], [], []>, precision = #tpu.contract_precision<fp32>} : vector<128x4xf32>, vector<4x4xf32>, vector<128x4xf32> -> vector<128x4xf32>
    %34 = arith.addf %30, %33 : vector<128x4xf32>
    %35 = vector.broadcast %20 : vector<1x4xf32> to vector<128x4xf32>
    %36 = arith.addf %34, %35 : vector<128x4xf32>
    %cst_22 = arith.constant 0.000000e+00 : f32
    %37 = vector.broadcast %cst_22 : f32 to vector<128x4xf32>
    %38 = arith.maximumf %36, %37 : vector<128x4xf32>
    %c7 = arith.constant 7 : index
    %c0_23 = arith.constant 0 : index
    %c0_24 = arith.constant 0 : index
    %39 = vector.load %arg4[%c7, %c0_23, %c0_24] : memref<9x4x4xf32, #tpu.memory_space<vmem>>, vector<1x4x4xf32>
    %40 = vector.shape_cast %39 : vector<1x4x4xf32> to vector<4x4xf32>
    %cst_25 = arith.constant dense<0.000000e+00> : vector<128x4xf32>
    %41 = tpu.matmul %7, %40, %cst_25 {dimension_numbers = #tpu.dot_dimension_numbers<[1], [0], [0], [1], [0, 0, 1, 1], [], []>, precision = #tpu.contract_precision<fp32>} : vector<128x4xf32>, vector<4x4xf32>, vector<128x4xf32> -> vector<128x4xf32>
    %c1 = arith.constant 1 : index
    %c0_26 = arith.constant 0 : index
    %c0_27 = arith.constant 0 : index
    %42 = vector.load %arg4[%c1, %c0_26, %c0_27] : memref<9x4x4xf32, #tpu.memory_space<vmem>>, vector<1x4x4xf32>
    %43 = vector.shape_cast %42 : vector<1x4x4xf32> to vector<4x4xf32>
    %cst_28 = arith.constant dense<0.000000e+00> : vector<128x4xf32>
    %44 = tpu.matmul %16, %43, %cst_28 {dimension_numbers = #tpu.dot_dimension_numbers<[1], [0], [0], [1], [0, 0, 1, 1], [], []>, precision = #tpu.contract_precision<fp32>} : vector<128x4xf32>, vector<4x4xf32>, vector<128x4xf32> -> vector<128x4xf32>
    %45 = arith.addf %41, %44 : vector<128x4xf32>
    %46 = vector.broadcast %20 : vector<1x4xf32> to vector<128x4xf32>
    %47 = arith.addf %45, %46 : vector<128x4xf32>
    %cst_29 = arith.constant 0.000000e+00 : f32
    %48 = vector.broadcast %cst_29 : f32 to vector<128x4xf32>
    %49 = arith.maximumf %47, %48 : vector<128x4xf32>
    %c8 = arith.constant 8 : index
    %c0_30 = arith.constant 0 : index
    %c0_31 = arith.constant 0 : index
    %50 = vector.load %arg4[%c8, %c0_30, %c0_31] : memref<9x4x4xf32, #tpu.memory_space<vmem>>, vector<1x4x4xf32>
    %51 = vector.shape_cast %50 : vector<1x4x4xf32> to vector<4x4xf32>
    %cst_32 = arith.constant dense<0.000000e+00> : vector<128x4xf32>
    %52 = tpu.matmul %7, %51, %cst_32 {dimension_numbers = #tpu.dot_dimension_numbers<[1], [0], [0], [1], [0, 0, 1, 1], [], []>, precision = #tpu.contract_precision<fp32>} : vector<128x4xf32>, vector<4x4xf32>, vector<128x4xf32> -> vector<128x4xf32>
    %c6 = arith.constant 6 : index
    %c0_33 = arith.constant 0 : index
    %c0_34 = arith.constant 0 : index
    %53 = vector.load %arg4[%c6, %c0_33, %c0_34] : memref<9x4x4xf32, #tpu.memory_space<vmem>>, vector<1x4x4xf32>
    %54 = vector.shape_cast %53 : vector<1x4x4xf32> to vector<4x4xf32>
    %cst_35 = arith.constant dense<0.000000e+00> : vector<128x4xf32>
    %55 = tpu.matmul %13, %54, %cst_35 {dimension_numbers = #tpu.dot_dimension_numbers<[1], [0], [0], [1], [0, 0, 1, 1], [], []>, precision = #tpu.contract_precision<fp32>} : vector<128x4xf32>, vector<4x4xf32>, vector<128x4xf32> -> vector<128x4xf32>
    %56 = arith.addf %52, %55 : vector<128x4xf32>
    %c2 = arith.constant 2 : index
    %c0_36 = arith.constant 0 : index
    %c0_37 = arith.constant 0 : index
    %57 = vector.load %arg4[%c2, %c0_36, %c0_37] : memref<9x4x4xf32, #tpu.memory_space<vmem>>, vector<1x4x4xf32>
    %58 = vector.shape_cast %57 : vector<1x4x4xf32> to vector<4x4xf32>
    %cst_38 = arith.constant dense<0.000000e+00> : vector<128x4xf32>
    %59 = tpu.matmul %16, %58, %cst_38 {dimension_numbers = #tpu.dot_dimension_numbers<[1], [0], [0], [1], [0, 0, 1, 1], [], []>, precision = #tpu.contract_precision<fp32>} : vector<128x4xf32>, vector<4x4xf32>, vector<128x4xf32> -> vector<128x4xf32>
    %60 = arith.addf %56, %59 : vector<128x4xf32>
    %c0_39 = arith.constant 0 : index
    %c0_40 = arith.constant 0 : index
    %c0_41 = arith.constant 0 : index
    %61 = vector.load %arg4[%c0_39, %c0_40, %c0_41] : memref<9x4x4xf32, #tpu.memory_space<vmem>>, vector<1x4x4xf32>
    %62 = vector.shape_cast %61 : vector<1x4x4xf32> to vector<4x4xf32>
    %cst_42 = arith.constant dense<0.000000e+00> : vector<128x4xf32>
    %63 = tpu.matmul %19, %62, %cst_42 {dimension_numbers = #tpu.dot_dimension_numbers<[1], [0], [0], [1], [0, 0, 1, 1], [], []>, precision = #tpu.contract_precision<fp32>} : vector<128x4xf32>, vector<4x4xf32>, vector<128x4xf32> -> vector<128x4xf32>
    %64 = arith.addf %60, %63 : vector<128x4xf32>
    %65 = vector.broadcast %20 : vector<1x4xf32> to vector<128x4xf32>
    %66 = arith.addf %64, %65 : vector<128x4xf32>
    %cst_43 = arith.constant 0.000000e+00 : f32
    %67 = vector.broadcast %cst_43 : f32 to vector<128x4xf32>
    %68 = arith.maximumf %66, %67 : vector<128x4xf32>
    %c0_44 = arith.constant 0 : index
    %c0_45 = arith.constant 0 : index
    %69 = vector.load %arg6[%c0_44, %c0_45] : memref<4x8xf32, #tpu.memory_space<vmem>>, vector<4x8xf32>
    %c0_46 = arith.constant 0 : index
    %c0_47 = arith.constant 0 : index
    %70 = vector.load %arg7[%c0_46, %c0_47] : memref<1x8xf32, #tpu.memory_space<vmem>>, vector<1x8xf32>
    %cst_48 = arith.constant dense<0.000000e+00> : vector<128x8xf32>
    %71 = tpu.matmul %27, %69, %cst_48 {dimension_numbers = #tpu.dot_dimension_numbers<[1], [0], [0], [1], [0, 0, 1, 1], [], []>, precision = #tpu.contract_precision<fp32>} : vector<128x4xf32>, vector<4x8xf32>, vector<128x8xf32> -> vector<128x8xf32>
    %72 = vector.broadcast %70 : vector<1x8xf32> to vector<128x8xf32>
    %73 = arith.addf %71, %72 : vector<128x8xf32>
    %cst_49 = arith.constant 0.000000e+00 : f32
    %74 = vector.broadcast %cst_49 : f32 to vector<128x8xf32>
    %75 = arith.maximumf %73, %74 : vector<128x8xf32>
    %cst_50 = arith.constant dense<0.000000e+00> : vector<128x8xf32>
    %76 = tpu.matmul %38, %69, %cst_50 {dimension_numbers = #tpu.dot_dimension_numbers<[1], [0], [0], [1], [0, 0, 1, 1], [], []>, precision = #tpu.contract_precision<fp32>} : vector<128x4xf32>, vector<4x8xf32>, vector<128x8xf32> -> vector<128x8xf32>
    %77 = vector.broadcast %70 : vector<1x8xf32> to vector<128x8xf32>
    %78 = arith.addf %76, %77 : vector<128x8xf32>
    %cst_51 = arith.constant 0.000000e+00 : f32
    %79 = vector.broadcast %cst_51 : f32 to vector<128x8xf32>
    %80 = arith.maximumf %78, %79 : vector<128x8xf32>
    %cst_52 = arith.constant dense<0.000000e+00> : vector<128x8xf32>
    %81 = tpu.matmul %49, %69, %cst_52 {dimension_numbers = #tpu.dot_dimension_numbers<[1], [0], [0], [1], [0, 0, 1, 1], [], []>, precision = #tpu.contract_precision<fp32>} : vector<128x4xf32>, vector<4x8xf32>, vector<128x8xf32> -> vector<128x8xf32>
    %82 = vector.broadcast %70 : vector<1x8xf32> to vector<128x8xf32>
    %83 = arith.addf %81, %82 : vector<128x8xf32>
    %cst_53 = arith.constant 0.000000e+00 : f32
    %84 = vector.broadcast %cst_53 : f32 to vector<128x8xf32>
    %85 = arith.maximumf %83, %84 : vector<128x8xf32>
    %cst_54 = arith.constant dense<0.000000e+00> : vector<128x8xf32>
    %86 = tpu.matmul %68, %69, %cst_54 {dimension_numbers = #tpu.dot_dimension_numbers<[1], [0], [0], [1], [0, 0, 1, 1], [], []>, precision = #tpu.contract_precision<fp32>} : vector<128x4xf32>, vector<4x8xf32>, vector<128x8xf32> -> vector<128x8xf32>
    %87 = vector.broadcast %70 : vector<1x8xf32> to vector<128x8xf32>
    %88 = arith.addf %86, %87 : vector<128x8xf32>
    %cst_55 = arith.constant 0.000000e+00 : f32
    %89 = vector.broadcast %cst_55 : f32 to vector<128x8xf32>
    %90 = arith.maximumf %88, %89 : vector<128x8xf32>
    %91 = tpu.concatenate %75, %80, %85, %90 in 1 : vector<128x8xf32>, vector<128x8xf32>, vector<128x8xf32>, vector<128x8xf32> -> vector<128x32xf32>
    %c0_56 = arith.constant 0 : index
    %c0_57 = arith.constant 0 : index
    %92 = vector.load %arg10[%c0_56, %c0_57] : memref<128x32xf32, #tpu.memory_space<vmem>>, vector<128x32xf32>
    tpu.vector_store %arg10[%c0_56, %c0_57], %91 {strides = array<i32>} : memref<128x32xf32, #tpu.memory_space<vmem>>, vector<128x32xf32>,
    return
  }
  func.func @transform_0(%arg0: i32) -> (i32, i32) {
    %c0_i32 = arith.constant 0 : i32
    %c0_i32_0 = arith.constant 0 : i32
    return %arg0, %c0_i32 : i32, i32
  }
  func.func @transform_1(%arg0: i32) -> (i32, i32) {
    %c0_i32 = arith.constant 0 : i32
    %c0_i32_0 = arith.constant 0 : i32
    %c0_i32_1 = arith.constant 0 : i32
    return %c0_i32, %c0_i32_0 : i32, i32
  }
  func.func @transform_2(%arg0: i32) -> (i32, i32) {
    %c0_i32 = arith.constant 0 : i32
    %c0_i32_0 = arith.constant 0 : i32
    %c0_i32_1 = arith.constant 0 : i32
    return %c0_i32, %c0_i32_0 : i32, i32
  }
  func.func @transform_3(%arg0: i32) -> (i32, i32, i32) {
    %c0_i32 = arith.constant 0 : i32
    %c0_i32_0 = arith.constant 0 : i32
    %c0_i32_1 = arith.constant 0 : i32
    %c0_i32_2 = arith.constant 0 : i32
    return %c0_i32, %c0_i32_0, %c0_i32_1 : i32, i32, i32
  }
  func.func @transform_4(%arg0: i32) -> (i32, i32) {
    %c0_i32 = arith.constant 0 : i32
    %c0_i32_0 = arith.constant 0 : i32
    %c0_i32_1 = arith.constant 0 : i32
    return %c0_i32, %c0_i32_0 : i32, i32
  }
  func.func @transform_5(%arg0: i32) -> (i32, i32) {
    %c0_i32 = arith.constant 0 : i32
    %c0_i32_0 = arith.constant 0 : i32
    %c0_i32_1 = arith.constant 0 : i32
    return %c0_i32, %c0_i32_0 : i32, i32
  }
  func.func @transform_6(%arg0: i32) -> (i32, i32) {
    %c0_i32 = arith.constant 0 : i32
    %c0_i32_0 = arith.constant 0 : i32
    %c0_i32_1 = arith.constant 0 : i32
    return %c0_i32, %c0_i32_0 : i32, i32
  }
  func.func @transform_7(%arg0: i32) -> (i32, i32) {
    %c0_i32 = arith.constant 0 : i32
    %c0_i32_0 = arith.constant 0 : i32
    %c0_i32_1 = arith.constant 0 : i32
    return %c0_i32, %c0_i32_0 : i32, i32
  }
  func.func @transform_8(%arg0: i32) -> (i32, i32) {
    %c0_i32 = arith.constant 0 : i32
    %c0_i32_0 = arith.constant 0 : i32
    %c0_i32_1 = arith.constant 0 : i32
    return %c0_i32, %c0_i32_0 : i32, i32
  }
  func.func @transform_9(%arg0: i32) -> (i32, i32) {
    %c0_i32 = arith.constant 0 : i32
    %c0_i32_0 = arith.constant 0 : i32
    return %arg0, %c0_i32 : i32, i32
  }
}

</mosaic_0001>

<bundles_post_ra>
// kernel: tpu_custom_call.1
= control target key start
LH: loop header
LB: loop body
LE: loop exit
PB: predicated region body
PF: predicated region fallthrough
CT: control target
= control target key end

     0   :  { %vm57_vm0 = vcmask 130048   ;;  %vm1655_vm1 = vcmask 1043456   ;;  %vm1606_vm3 = vcmask 31744   ;;  %s21671_s17 = smov 16   ;;  %vm16628_vm4 = vcmask 64512   ;;  %s25949_s1 = inlined_call_operand.vmem [shape: f32[16,4], index: 1, kind: input, shape index: {}]   ;;  %s25950_s0 = inlined_call_operand.vmem [shape: f32[128,16], index: 0, kind: input, shape index: {}]   ;;  %s25951_s7 = inlined_call_operand.vmem [shape: f32[128,1], index: 7, kind: input, shape index: {}]   ;;  %s25952_s8 = inlined_call_operand.vmem [shape: f32[128,1], index: 8, kind: input, shape index: {}]   ;;  %s25953_s3 = inlined_call_operand.vmem [shape: f32[9,4,4], index: 3, kind: input, shape index: {}]   ;;  %s25954_s2 = inlined_call_operand.vmem [shape: f32[1,4], index: 2, kind: input, shape index: {}]   ;;  %s25955_s5 = inlined_call_operand.vmem [shape: f32[4,8], index: 5, kind: input, shape index: {}]   ;;  %s25956_s4 = inlined_call_operand.vmem [shape: f32[1,4], index: 4, kind: input, shape index: {}]   ;;  %s25957_s6 = inlined_call_operand.vmem [shape: f32[1,8], index: 6, kind: input, shape index: {}]   ;;  %s25958_s9 = inlined_call_operand.vmem [shape: f32[128,32], index: 9, kind: output, shape index: {}]  }
   0x1   :  { %v48_v0 = vld [vmem:[%s25949_s1] sm:$0xff]  ;;  %v49_v1 = vld [vmem:[%s25949_s1 + $0x8] sm:$0xff]  ;;  %v34_v7 = vld [vmem:[%s25950_s0 + $0x10] sm:$0xff]  ;;  %s21672_s1 = smov 24   ;;  %vm16661_vm5 = vcmask 195584   ;;  %vm16678_vm6 = vcmask 261120  }
   0x2   :  { %v32_v2 = vld [vmem:[%s25950_s0] sm:$0xff]  ;;  %v107_v3 = vand.u32 4294901760, %v48_v0  ;;  %v110_v4 = vand.u32 4294901760, %v49_v1  ;;  %v33_v6 = vld [vmem:[%s25950_s0 + $0x8] sm:$0xff]  ;;  %v35_v8 = vld [vmem:[%s25950_s0 + $0x18] sm:$0xff]  ;;  %v65_v11 = vsel %vm57_vm0, %v34_v7, 0 }
   0x3   :  { %v59_v5 = vsel %vm57_vm0, %v32_v2, 0  ;;  %v62_v10 = vsel %vm57_vm0, %v33_v6, 0  ;;  %v68_v12 = vsel %vm57_vm0, %v35_v8, 0  ;;  %v36_v13 = vld [vmem:[%s25950_s0 + $0x20] sm:$0xff]  ;;  %v37_v18 = vld [vmem:[%s25950_s0 + $0x28] sm:$0xff]  ;;  %v21764_v20 = vand.u32 4294901760, %v65_v11 }
   0x4   :  { %v21742_v9 = vand.u32 4294901760, %v59_v5  ;;  %v21750_v14 = vpack.c.bf16 %v110_v4, %v107_v3  ;;  %v21752_v15 = vand.u32 4294901760, %v62_v10  ;;  %v21754_v16 = vsub.f32 %v48_v0, %v107_v3  ;;  %v38_v39 = vld [vmem:[%s25950_s0 + $0x30] sm:$0xff]  ;;  %v39_v48 = vld [vmem:[%s25950_s0 + $0x38] sm:$0xff]  ;;  %v40_v49 = vld [vmem:[%s25950_s0 + $0x40] sm:$0xff] }
   0x5   :  { %v21756_v17 = vsub.f32 %v49_v1, %v110_v4  ;;  %v21766_v21 = vand.u32 4294901760, %v68_v12  ;;  %v71_v22 = vsel %vm57_vm0, %v36_v13, 0  ;;  %v21780_v28 = vsub.f32 %v65_v11, %v21764_v20  ;;  %v41_v50 = vld [vmem:[%s25950_s0 + $0x48] sm:$0xff]  ;;  %v42_v55 = vld [vmem:[%s25950_s0 + $0x50] sm:$0xff]  ;;  %v43_v60 = vld [vmem:[%s25950_s0 + $0x58] sm:$0xff] }
   0x6   :  { %v21762_v19 = vsub.f32 %v59_v5, %v21742_v9  ;;  %20341 = vmatprep.subr.bf16.mxu0 %v21750_v14  ;;  %v21771_v23 = vsub.f32 %v62_v10, %v21752_v15  ;;  %v336_v24 = vand.u32 4294901760, %v21754_v16  ;;  %v21775_v26 = vand.u32 4294901760, %v71_v22  ;;  %v44_v61 = vld [vmem:[%s25950_s0 + $0x60] sm:$0xff]  ;;  %v45_v11 = vld [vmem:[%s25950_s0 + $0x68] sm:$0xff] }
   0x7   :  { %v343_v25 = vand.u32 4294901760, %v21756_v17  ;;  %20343 = vmatpush3.bf16.msra.mxu0 %v21750_v14  ;;  %v21783_v29 = vsub.f32 %v68_v12, %v21766_v21  ;;  %v74_v30 = vsel %vm57_vm0, %v37_v18, 0  ;;  %v25972_v36 = vand.u32 4294901760, %v21780_v28 }
   0x8   :  { %v175_v27 = vand.u32 4294901760, %v21762_v19  ;;  %v25973_v31 = vand.u32 4294901760, %v21771_v23  ;;  %v337_v32 = vsub.f32 %v21754_v16, %v336_v24  ;;  %v21794_v34 = vsub.f32 %v71_v22, %v21775_v26 }
   0x9   :  { %v344_v33 = vsub.f32 %v21756_v17, %v343_v25  ;;  %v25971_v37 = vand.u32 4294901760, %v21783_v29  ;;  %v21801_v38 = vand.u32 4294901760, %v74_v30  ;;  %v196_v45 = vsub.f32 %v21780_v28, %v25972_v36 }
   0xa   :  { %v176_v35 = vsub.f32 %v21762_v19, %v175_v27  ;;  %v186_v40 = vsub.f32 %v21771_v23, %v25973_v31  ;;  %v338_v41 = vand.u32 4294901760, %v337_v32  ;;  %v25970_v43 = vand.u32 4294901760, %v21794_v34  ;;  %v1246_v31 = vld [vmem:[%s25952_s8 + $0x20] sm:$0xff] }
   0xb   :  { %v345_v42 = vand.u32 4294901760, %v344_v33  ;;  %v206_v46 = vsub.f32 %v21783_v29, %v25971_v37  ;;  %v21817_v47 = vsub.f32 %v74_v30, %v21801_v38  ;;  %v77_v54 = vsel %vm57_vm0, %v38_v39, 0 }
   0xc   :  { %v177_v44 = vand.u32 4294901760, %v176_v35  ;;  %v187_v51 = vand.u32 4294901760, %v186_v40  ;;  %v216_v53 = vsub.f32 %v21794_v34, %v25970_v43  ;;  %v197_v56 = vand.u32 4294901760, %v196_v45  ;;  %v1244_v43 = vld [vmem:[%s25952_s8 + $0x10] sm:$0xff] }
   0xd   :  { %v20344_v52 = vpack.c.bf16 %v345_v42, %v338_v41  ;;  %v207_v57 = vand.u32 4294901760, %v206_v46  ;;  %v25969_v58 = vand.u32 4294901760, %v21817_v47  ;;  %v21836_v59 = vand.u32 4294901760, %v77_v54 }
   0xe   :  { %18148 = vmatprep.mubr.f32.mxu0 %v177_v44  ;;  %v217_v62 = vand.u32 4294901760, %v216_v53  ;;  %v80_v63 = vsel %vm57_vm0, %v39_v48, 0  ;;  %v83_v0 = vsel %vm57_vm0, %v40_v49, 0  ;;  %v86_v1 = vsel %vm57_vm0, %v41_v50, 0  ;;  %v46_v49 = vld [vmem:[%s25950_s0 + $0x70] sm:$0xff] }
   0xf   :  { %18149 = vmatmul.mubr.f32.vlgmr.msra.gmra.mrb[0].mxu0 %v187_v51  ;;  %20345 = vmatprep.subr.bf16.mxu0 %v20344_v52  ;;  %v226_v2 = vsub.f32 %v21817_v47, %v25969_v58  ;;  %v21851_v3 = vsub.f32 %v77_v54, %v21836_v59  ;;  %v21853_v4 = vand.u32 4294901760, %v80_v63  ;;  %v21855_v5 = vand.u32 4294901760, %v83_v0  ;;  %v1257_v58 = vld [vmem:[%s25952_s8 + $0x78] sm:$0xff] }
  0x10   :  { %20347 = vmatpush3.bf16.msra.mxu0 %v20344_v52  ;;  %18151 = vmatprep.mubr.f32.mxu0 %v197_v56  ;;  %v21857_v6 = vand.u32 4294901760, %v86_v1  ;;  %v89_v7 = vsel %vm57_vm0, %v42_v55, 0  ;;  %v92_v8 = vsel %vm57_vm0, %v43_v60, 0  ;;  %v95_v10 = vsel %vm57_vm0, %v44_v61, 0  ;;  %v47_v60 = vld [vmem:[%s25950_s0 + $0x78] sm:$0xff] }
  0x11   :  { %v227_v12 = vand.u32 4294901760, %v226_v2  ;;  %v25968_v13 = vand.u32 4294901760, %v21851_v3  ;;  %v21867_v18 = vsub.f32 %v80_v63, %v21853_v4  ;;  %v21870_v22 = vsub.f32 %v83_v0, %v21855_v5 }
  0x12   :  { %v21873_v30 = vsub.f32 %v86_v1, %v21857_v6  ;;  %v21875_v32 = vand.u32 4294901760, %v89_v7  ;;  %v21877_v33 = vand.u32 4294901760, %v92_v8  ;;  %v21879_v35 = vand.u32 4294901760, %v95_v10 }
  0x13   :  { %18152 = vmatmul.mubr.f32.gmra.mrb[2].mxu0 %v207_v57  ;;  %v236_v39 = vsub.f32 %v21851_v3, %v25968_v13  ;;  %v25967_v40 = vand.u32 4294901760, %v21867_v18  ;;  %v25966_v41 = vand.u32 4294901760, %v21870_v22  ;;  %v98_v42 = vsel %vm57_vm0, %v45_v11, 0  ;;  %v1242_v13 = vld [vmem:[%s25952_s8] sm:$0xff] }
  0x14   :  { %18154 = vmatprep.mubr.f32.mxu0 %v217_v62  ;;  %v25965_v44 = vand.u32 4294901760, %v21873_v30  ;;  %v21889_v45 = vsub.f32 %v89_v7, %v21875_v32  ;;  %v21892_v46 = vsub.f32 %v92_v8, %v21877_v33  ;;  %v21895_v48 = vsub.f32 %v95_v10, %v21879_v35 }
  0x15   :  { %v237_v50 = vand.u32 4294901760, %v236_v39  ;;  %v246_v51 = vsub.f32 %v21867_v18, %v25967_v40  ;;  %v256_v52 = vsub.f32 %v21870_v22, %v25966_v41  ;;  %v21906_v53 = vand.u32 4294901760, %v98_v42  ;;  %v22099_v41 = vld [vmem:[%s25951_s7 + $0x70] sm:$0xff]  ;;  %v1255_v40 = vld [vmem:[%s25952_s8 + $0x68] sm:$0xff] }
  0x16   :  { %v266_v54 = vsub.f32 %v21873_v30, %v25965_v44  ;;  %v25964_v55 = vand.u32 4294901760, %v21889_v45  ;;  %v25963_v56 = vand.u32 4294901760, %v21892_v46  ;;  %v25962_v57 = vand.u32 4294901760, %v21895_v48  ;;  %v1253_v44 = vld [vmem:[%s25952_s8 + $0x58] sm:$0xff] }
  0x17   :  { %18155 = vmatmul.mubr.f32.gmra.mrb[4].mxu0 %v227_v12  ;;  %v247_v61 = vand.u32 4294901760, %v246_v51  ;;  %v257_v62 = vand.u32 4294901760, %v256_v52  ;;  %v21918_v63 = vsub.f32 %v98_v42, %v21906_v53  ;;  %v101_v0 = vsel %vm57_vm0, %v46_v49, 0 }
  0x18   :  { %18157 = vmatprep.mubr.f32.mxu0 %v237_v50  ;;  %v276_v1 = vsub.f32 %v21889_v45, %v25964_v55  ;;  %v21924_v2 = vand.u32 4294901760, %v101_v0  ;;  %v104_v7 = vsel %vm57_vm0, %v47_v60, 0  ;;  %v20348_v8 = vpack.c.bf16 %v21756_v17, %v21754_v16  ;;  %v22088_v55 = vld [vmem:[%s25951_s7 + $0x60] sm:$0xff] }
  0x19   :  { %v267_v10 = vand.u32 4294901760, %v266_v54  ;;  %v286_v11 = vsub.f32 %v21892_v46, %v25963_v56  ;;  %v25961_v12 = vand.u32 4294901760, %v21918_v63  ;;  %v21933_v39 = vand.u32 4294901760, %v104_v7  ;;  %v1251_v56 = vld [vmem:[%s25952_s8 + $0x48] sm:$0xff] }
  0x1a   :  { %v277_v42 = vand.u32 4294901760, %v276_v1  ;;  %v296_v49 = vsub.f32 %v21895_v48, %v25962_v57  ;;  %v21939_v50 = vsub.f32 %v101_v0, %v21924_v2  ;;  %20349 = vmatprep.subr.bf16.mxu0 %v20348_v8  ;;  %v21945_v51 = vpack.c.bf16 %v343_v25, %v336_v24  ;;  %v22077_v57 = vld [vmem:[%s25951_s7 + $0x50] sm:$0xff] }
  0x1b   :  { %18158 = vmatmul.mubr.f32.gmra.mrb[6].mxu0 %v247_v61  ;;  %26370 = vst [vmem:[#allocation2_spill] sm:$0xff] %v21933_v39  ;;  %v21948_v52 = vsub.f32 %v104_v7, %v21933_v39  ;;  %v287_v60 = vand.u32 4294901760, %v286_v11  ;;  %v306_v61 = vsub.f32 %v21918_v63, %v25961_v12  ;;  %v21669_v7 = vmov 0   ;;  %v21973_v11 = vld [vmem:[%s25951_s7 + $0x18] sm:$0xff] }
  0x1c   :  { %18160 = vmatprep.mubr.f32.mxu0 %v257_v62  ;;  %v25960_v54 = vand.u32 4294901760, %v21939_v50  ;;  %v297_v0 = vand.u32 4294901760, %v296_v49  ;;  %21665 = vset.pattern.permute.xlu1 %v21669_v7  ;;  %v21998_v49 = vld [vmem:[%s25951_s7 + $0x48] sm:$0xff]  ;;  %v1249_v12 = vld [vmem:[%s25952_s8 + $0x38] sm:$0xff] }
  0x1d   :  { %v25959_v62 = vand.u32 4294901760, %v21948_v52  ;;  %v307_v17 = vand.u32 4294901760, %v306_v61  ;;  %21664 = vset.pattern.permute.xlu0 %v21669_v7  ;;  %v22014_v61 = vld [vmem:[%s25951_s7 + $0x68] sm:$0xff]  ;;  %v22055_v7 = vld [vmem:[%s25951_s7 + $0x30] sm:$0xff] }
  0x1e   :  { %v316_v16 = vsub.f32 %v21939_v50, %v25960_v54  ;;  %v22066_v54 = vld [vmem:[%s25951_s7 + $0x40] sm:$0xff] }
  0x1f   :  { %18161 = vmatmul.mubr.f32.gmra.mrb[8].mxu0 %v267_v10  ;;  %v326_v24 = vsub.f32 %v21948_v52, %v25959_v62  ;;  %v21965_v10 = vld [vmem:[%s25951_s7 + $0x10] sm:$0xff]  ;;  %v1247_v62 = vld [vmem:[%s25952_s8 + $0x28] sm:$0xff] }
  0x20   :  { %18163 = vmatprep.mubr.f32.mxu0 %v277_v42  ;;  %v317_v25 = vand.u32 4294901760, %v316_v16  ;;  %1321 = vperm.xlu1 %21665, %v21965_v10   ;;  %v21982_v42 = vld [vmem:[%s25951_s7 + $0x28] sm:$0xff]  ;;  %v22028_v16 = vld [vmem:[%s25951_s7 + $0x78] sm:$0xff] }
  0x21   :  { %v327_v1 = vand.u32 4294901760, %v326_v24  ;;  %v1243_v24 = vld [vmem:[%s25952_s8 + $0x8] sm:$0xff] }
  0x23   :  { %18164 = vmatmul.mubr.f32.gmra.mrb[10].mxu0 %v287_v60  ;;  %v22006_v60 = vld [vmem:[%s25951_s7 + $0x58] sm:$0xff] }
  0x24   :  { %18166 = vmatprep.mubr.f32.mxu0 %v297_v0  ;;  %1326 = vperm.xlu1 %21665, %v21973_v11   ;;  %v22021_v0 = vld [vmem:[%s25951_s7] sm:$0xff] }
  0x25   :  { %1311 = vperm.xlu0 %21664, %v22021_v0  }
  0x27   :  { %18167 = vmatmul.mubr.f32.gmra.mrb[12].mxu0 %v307_v17  ;;  %v1227_v17 = vld [vmem:[%s25951_s7 + $0x8] sm:$0xff] }
  0x28   :  { %18169 = vmatprep.mubr.f32.mxu0 %v317_v25  ;;  %1336 = vperm.xlu1 %21665, %v21982_v42   ;;  %v22042_v25 = vld [vmem:[%s25951_s7 + $0x20] sm:$0xff]  ;;  %v1259_v37 = vmul.f32 %v1243_v24, %v1227_v17 }
  0x29   :  { %1316 = vperm.xlu0 %21664, %v1227_v17   ;;  %v26372_v17 = vand.u32 4294901760, %v21780_v28 }
  0x2b   :  { %18170 = vmatmul.mubr.f32.gmra.mrb[14].mxu0 %v327_v1  ;;  %v1245_v1 = vld [vmem:[%s25952_s8 + $0x18] sm:$0xff] }
  0x2c   :  { %18176 = vmatprep.mubr.f32.mxu0 %v21742_v9  ;;  %v1261_v36 = vmul.f32 %v1245_v1, %v21973_v11  ;;  %v26380_v11 = vand.u32 4294901760, %v21889_v45 }
  0x2d   :  { %1331 = vperm.xlu0 %21664, %v22042_v25  }
  0x2f   :  { %18177 = vmatmul.mubr.f32.vlgmr.msra.gmra.mrb[0].mxu0 %v21752_v15 }
  0x30   :  { %20351 = vmatpush3.bf16.msra.mxu0 %v20348_v8  ;;  %18179 = vmatprep.mubr.f32.mxu0 %v21764_v20  ;;  %v21990_v8 = vld [vmem:[%s25951_s7 + $0x38] sm:$0xff] }
  0x31   :  { %20353 = vmatprep.subr.bf16.mxu0 %v21750_v14  ;;  %1346 = vperm.xlu1 %21665, %v21990_v8  }
  0x32   :  { %1341 = vperm.xlu0 %21664, %v22055_v7  }
  0x33   :  { %18180 = vmatmul.mubr.f32.gmra.mrb[2].mxu0 %v21766_v21 }
  0x34   :  { %18182 = vmatprep.mubr.f32.mxu0 %v21775_v26 }
  0x35   :  { %1356 = vperm.xlu1 %21665, %v21998_v49  }
  0x36   :  { %1351 = vperm.xlu0 %21664, %v22066_v54  }
  0x37   :  { %18183 = vmatmul.mubr.f32.gmra.mrb[4].mxu0 %v21801_v38 }
  0x38   :  { %18185 = vmatprep.mubr.f32.mxu0 %v21836_v59 }
  0x39   :  { %1366 = vperm.xlu1 %21665, %v22006_v60  }
  0x3a   :  { %1361 = vperm.xlu0 %21664, %v22077_v57  }
  0x3b   :  { %18186 = vmatmul.mubr.f32.gmra.mrb[6].mxu0 %v21853_v4 }
  0x3c   :  { %18188 = vmatprep.mubr.f32.mxu0 %v21855_v5 }
  0x3d   :  { %1376 = vperm.xlu1 %21665, %v22014_v61  }
  0x3e   :  { %1371 = vperm.xlu0 %21664, %v22088_v55  }
  0x3f   :  { %18189 = vmatmul.mubr.f32.gmra.mrb[8].mxu0 %v21857_v6 }
  0x40   :  { %18191 = vmatprep.mubr.f32.mxu0 %v21875_v32 }
  0x41   :  { %1386 = vperm.xlu1 %21665, %v22028_v16  }
  0x42   :  { %1381 = vperm.xlu0 %21664, %v22099_v41  }
  0x43   :  { %18192 = vmatmul.mubr.f32.gmra.mrb[10].mxu0 %v21877_v33 }
  0x44   :  { %18194 = vmatprep.mubr.f32.mxu0 %v21879_v35 }
  0x45   :  { %1412 = vperm.xlu1 %21665, %v1243_v24  }
  0x46   :  { %1407 = vperm.xlu0 %21664, %v1242_v13  }
  0x47   :  { %18195 = vmatmul.mubr.f32.gmra.mrb[12].mxu0 %v21906_v53 }
  0x48   :  { %18197 = vmatprep.mubr.f32.mxu0 %v21924_v2 }
  0x49   :  { %1422 = vperm.xlu1 %21665, %v1245_v1  }
  0x4a   :  { %1417 = vperm.xlu0 %21664, %v1244_v43  }
  0x4b   :  { %18198 = vmatmul.mubr.f32.gmra.mrb[14].mxu0 %v21933_v39  ;;  %v26371_v39 = vand.u32 4294901760, %v21771_v23 }
  0x4c   :  { %18204 = vmatprep.mubr.f32.mxu0 %v21762_v19  ;;  %v1263_v19 = vmul.f32 %v1247_v62, %v21982_v42  ;;  %v26382_v42 = vand.u32 4294901760, %v21895_v48 }
  0x4d   :  { %1432 = vperm.xlu1 %21665, %v1247_v62   ;;  %v26378_v62 = vand.u32 4294901760, %v21870_v22 }
  0x4e   :  { %1427 = vperm.xlu0 %21664, %v1246_v31  }
  0x4f   :  { %18205 = vmatmul.mubr.f32.vlgmr.msra.gmra.mrb[0].mxu0 %v21771_v23  ;;  %v26374_v23 = vand.u32 4294901760, %v21794_v34 }
  0x50   :  { %20355 = vmatpush3.bf16.msra.mxu0 %v21750_v14  ;;  %18207 = vmatprep.mubr.f32.mxu0 %v21780_v28  ;;  %v1265_v28 = vmul.f32 %v1249_v12, %v21990_v8  ;;  %v26383_v8 = vand.u32 4294901760, %v21918_v63 }
  0x51   :  { %20357 = vmatprep.subr.bf16.mxu0 %v21945_v51  ;;  %1442 = vperm.xlu1 %21665, %v1249_v12   ;;  %v26377_v12 = vand.u32 4294901760, %v21867_v18 }
  0x53   :  { %18208 = vmatmul.mubr.f32.gmra.mrb[2].mxu0 %v21783_v29 }
  0x54   :  { %18210 = vmatprep.mubr.f32.mxu0 %v21794_v34  ;;  %v1252_v34 = vld [vmem:[%s25952_s8 + $0x50] sm:$0xff] }
  0x55   :  { %1452 = vperm.xlu1 %21665, %v1251_v56  }
  0x57   :  { %18211 = vmatmul.mubr.f32.gmra.mrb[4].mxu0 %v21817_v47 }
  0x58   :  { %18213 = vmatprep.mubr.f32.mxu0 %v21851_v3 }
  0x59   :  { %1462 = vperm.xlu1 %21665, %v1253_v44  }
  0x5b   :  { %18214 = vmatmul.mubr.f32.gmra.mrb[6].mxu0 %v21867_v18  ;;  %v1271_v18 = vmul.f32 %v1255_v40, %v22014_v61 }
  0x5c   :  { %18216 = vmatprep.mubr.f32.mxu0 %v21870_v22  ;;  %v1256_v22 = vld [vmem:[%s25952_s8 + $0x70] sm:$0xff] }
  0x5d   :  { %1472 = vperm.xlu1 %21665, %v1255_v40   ;;  %v26384_v40 = vand.u32 4294901760, %v21939_v50 }
  0x5f   :  { %18217 = vmatmul.mubr.f32.gmra.mrb[8].mxu0 %v21873_v30 }
  0x60   :  { %18219 = vmatprep.mubr.f32.mxu0 %v21889_v45  ;;  %v1273_v45 = vmul.f32 %v1257_v58, %v22028_v16  ;;  %v1290_v16 = vlaneseq }
  0x61   :  { %1482 = vperm.xlu1 %21665, %v1257_v58  }
  0x63   :  { %18220 = vmatmul.mubr.f32.gmra.mrb[10].mxu0 %v21892_v46 }
  0x64   :  { %18222 = vmatprep.mubr.f32.mxu0 %v21895_v48  ;;  %v1272_v48 = vmul.f32 %v1256_v22, %v22099_v41 }
  0x65   :  { %1508 = vperm.xlu1 %21665, %v1259_v37   ;;  %v26373_v37 = vand.u32 4294901760, %v21783_v29  ;;  %v1267_v29 = vmul.f32 %v1251_v56, %v21998_v49  ;;  %v26379_v56 = vand.u32 4294901760, %v21873_v30  ;;  %v1258_v30 = vmul.f32 %v1242_v13, %v22021_v0 }
  0x66   :  { %v1260_v49 = vmul.f32 %v1244_v43, %v21965_v10  ;;  %v1262_v13 = vmul.f32 %v1246_v31, %v22042_v25  ;;  %v1268_v31 = vmul.f32 %v1252_v34, %v22077_v57  ;;  %v26386_v57 = vld [vmem:[#allocation2_spill] sm:$0xff] }
  0x67   :  { %18223 = vmatmul.mubr.f32.gmra.mrb[12].mxu0 %v21918_v63  ;;  %v22284_v25 = vld [vmem:[%s25954_s2] ss:$0 sm:$0xff] }
  0x68   :  { %18225 = vmatprep.mubr.f32.mxu0 %v21939_v50 }
  0x69   :  { %1518 = vperm.xlu1 %21665, %v1261_v36   ;;  %v26375_v36 = vand.u32 4294901760, %v21817_v47  ;;  %v1269_v47 = vmul.f32 %v1253_v44, %v22006_v60  ;;  %v26381_v44 = vand.u32 4294901760, %v21892_v46  ;;  %v26385_v46 = vand.u32 4294901760, %v21948_v52 }
  0x6b   :  { %18226 = vmatmul.mubr.f32.gmra.mrb[14].mxu0 %v21948_v52 }
  0x6c   :  { %18232 = vmatprep.mubr.f32.mxu0 %v175_v27  ;;  %v1248_v27 = vld [vmem:[%s25952_s8 + $0x30] sm:$0xff] }
  0x6d   :  { %1437 = vperm.xlu0 %21664, %v1248_v27   ;;  %1528 = vperm.xlu1 %21665, %v1263_v19   ;;  %v1264_v58 = vmul.f32 %v1248_v27, %v22055_v7  ;;  %v22289_v27 = vshrl.u32 %v1290_v16, 7 }
  0x6f   :  { %18233 = vmatmul.mubr.f32.vlgmr.msra.gmra.mrb[0].mxu0 %v26371_v39  ;;  %v1250_v39 = vld [vmem:[%s25952_s8 + $0x40] sm:$0xff]  ;;  %vm1292_vm2 = vcmp.lt.s32.totalorder %v22289_v27, 7 }
  0x70   :  { %20359 = vmatpush3.bf16.msra.mxu0 %v21945_v51  ;;  %18235 = vmatprep.mubr.f32.mxu0 %v26372_v17  ;;  %v26376_v51 = vand.u32 4294901760, %v21851_v3  ;;  %v1254_v3 = vld [vmem:[%s25952_s8 + $0x60] sm:$0xff]  ;;  %v1266_v43 = vmul.f32 %v1250_v39, %v22066_v54  ;;  %s21670_s8 = smov 8  }
  0x71   :  { %20361 = vmatprep.subr.bf16.mxu0 %v21750_v14  ;;  %1447 = vperm.xlu0 %21664, %v1250_v39  }
  0x72   :  { %1538 = vperm.xlu1 %21665, %v1265_v28  }
  0x73   :  { %18236 = vmatmul.mubr.f32.gmra.mrb[2].mxu0 %v26373_v37 }
  0x74   :  { %18238 = vmatprep.mubr.f32.mxu0 %v26374_v23 }
  0x75   :  { %1457 = vperm.xlu0 %21664, %v1252_v34  }
  0x76   :  { %1548 = vperm.xlu1 %21665, %v1267_v29  }
  0x77   :  { %18239 = vmatmul.mubr.f32.gmra.mrb[4].mxu0 %v26375_v36 }
  0x78   :  { %18241 = vmatprep.mubr.f32.mxu0 %v26376_v51 }
  0x79   :  { %1467 = vperm.xlu0 %21664, %v1254_v3  }
  0x7a   :  { %1558 = vperm.xlu1 %21665, %v1269_v47  }
  0x7b   :  { %18242 = vmatmul.mubr.f32.gmra.mrb[6].mxu0 %v26377_v12 }
  0x7c   :  { %18244 = vmatprep.mubr.f32.mxu0 %v26378_v62 }
  0x7d   :  { %1477 = vperm.xlu0 %21664, %v1256_v22  }
  0x7e   :  { %1568 = vperm.xlu1 %21665, %v1271_v18  }
  0x7f   :  { %18245 = vmatmul.mubr.f32.gmra.mrb[8].mxu0 %v26379_v56 }
  0x80   :  { %18247 = vmatprep.mubr.f32.mxu0 %v26380_v11 }
  0x81   :  { %1503 = vperm.xlu0 %21664, %v1258_v30  }
  0x82   :  { %1578 = vperm.xlu1 %21665, %v1273_v45  }
  0x83   :  { %18248 = vmatmul.mubr.f32.gmra.mrb[10].mxu0 %v26381_v44 }
  0x84   :  { %18250 = vmatprep.mubr.f32.mxu0 %v26382_v42 }
  0x85   :  { %1513 = vperm.xlu0 %21664, %v1260_v49  }
  0x87   :  { %18251 = vmatmul.mubr.f32.gmra.mrb[12].mxu0 %v26383_v8 }
  0x88   :  { %18253 = vmatprep.mubr.f32.mxu0 %v26384_v40 }
  0x89   :  { %1523 = vperm.xlu0 %21664, %v1262_v13  }
  0x8b   :  { %18254 = vmatmul.mubr.f32.gmra.mrb[14].mxu0 %v26385_v46 }
  0x8c   :  { %18260 = vmatprep.mubr.f32.mxu0 %v21742_v9 }
  0x8d   :  { %1533 = vperm.xlu0 %21664, %v1264_v58  }
  0x8f   :  { %18261 = vmatmul.mubr.f32.vlgmr.msra.gmra.mrb[0].mxu0 %v21752_v15 }
  0x90   :  { %20363 = vmatpush3.bf16.msra.mxu0 %v21750_v14  ;;  %18263 = vmatprep.mubr.f32.mxu0 %v21764_v20  ;;  %v1270_v14 = vmul.f32 %v1254_v3, %v22088_v55 }
  0x91   :  { %1543 = vperm.xlu0 %21664, %v1266_v43  }
  0x93   :  { %18264 = vmatmul.mubr.f32.gmra.mrb[2].mxu0 %v21766_v21 }
  0x94   :  { %18266 = vmatprep.mubr.f32.mxu0 %v21775_v26 }
  0x95   :  { %1553 = vperm.xlu0 %21664, %v1268_v31  }
  0x97   :  { %18267 = vmatmul.mubr.f32.gmra.mrb[4].mxu0 %v21801_v38 }
  0x98   :  { %18269 = vmatprep.mubr.f32.mxu0 %v21836_v59 }
  0x99   :  { %1563 = vperm.xlu0 %21664, %v1270_v14  }
  0x9b   :  { %18270 = vmatmul.mubr.f32.gmra.mrb[6].mxu0 %v21853_v4 }
  0x9c   :  { %18272 = vmatprep.mubr.f32.mxu0 %v21855_v5 }
  0x9d   :  { %1573 = vperm.xlu0 %21664, %v1272_v48  }
  0x9f   :  { %18273 = vmatmul.mubr.f32.gmra.mrb[8].mxu0 %v21857_v6 }
  0xa0   :  { %18275 = vmatprep.mubr.f32.mxu0 %v21875_v32 }
  0xa3   :  { %18276 = vmatmul.mubr.f32.gmra.mrb[10].mxu0 %v21877_v33 }
  0xa4   :  { %18278 = vmatprep.mubr.f32.mxu0 %v21879_v35 }
  0xa7   :  { %18279 = vmatmul.mubr.f32.gmra.mrb[12].mxu0 %v21906_v53 }
  0xa8   :  { %18281 = vmatprep.mubr.f32.mxu0 %v21924_v2 }
  0xab   :  { %18282 = vmatmul.mubr.f32.gmra.mrb[14].mxu0 %v26386_v57 }
  0xac   :  { %18288 = vmatprep.mubr.f32.mxu0 %v21742_v9  ;;  %v16700_v9 = vld [vmem:[%s25953_s3 + $0x10] sm:$0xf] }
  0xaf   :  { %18289 = vmatmul.mubr.f32.vlgmr.msra.gmra.mrb[0].mxu0 %v21752_v15  ;;  %v1657_v15 = vsel %vm1655_vm1, %v16700_v9, 0 }
  0xb0   :  { %18291 = vmatprep.mubr.f32.mxu0 %v21764_v20  ;;  %v22223_v20 = vand.u32 4294901760, %v1657_v15 }
  0xb2   :  { %18312 = vmatprep.subr.mxu1 %v22223_v20 }
  0xb3   :  { %18292 = vmatmul.mubr.f32.gmra.mrb[2].mxu0 %v21766_v21  ;;  %18313 = vmatpush3.msra.mxu1 %v22223_v20  ;;  %v22228_v21 = vsub.f32 %v1657_v15, %v22223_v20 }
  0xb4   :  { %18294 = vmatprep.mubr.f32.mxu0 %v21775_v26 }
  0xb5   :  { %v22231_v26 = vand.u32 4294901760, %v22228_v21 }
  0xb7   :  { %18295 = vmatmul.mubr.f32.gmra.mrb[4].mxu0 %v21801_v38  ;;  %26387 = vst [vmem:[#allocation2_spill] sm:$0xff] %v22231_v26  ;;  %v1889_v38 = vsub.f32 %v22228_v21, %v22231_v26 }
  0xb8   :  { %18297 = vmatprep.mubr.f32.mxu0 %v21836_v59  ;;  %v16705_v59 = vld [vmem:[%s25953_s3 + $0x4] sm:$0xf] }
  0xbb   :  { %18298 = vmatmul.mubr.f32.gmra.mrb[6].mxu0 %v21853_v4  ;;  %v22238_v4 = vand.u32 4294901760, %v1889_v38 }
  0xbc   :  { %18300 = vmatprep.mubr.f32.mxu0 %v21855_v5  ;;  %v5091_v5 = vsel %vm1655_vm1, %v16705_v59, 0 }
  0xbd   :  { %18338 = vmatprep.subr.mxu1 %v22238_v4 }
  0xbf   :  { %18301 = vmatmul.mubr.f32.gmra.mrb[8].mxu0 %v21857_v6  ;;  %v22241_v6 = vand.u32 4294901760, %v5091_v5 }
  0xc0   :  { %18303 = vmatprep.mubr.f32.mxu0 %v21875_v32  ;;  %v22246_v32 = vpop.permute.xlu1 %1321 }
  0xc1   :  { %18780 = vmatprep.subr.mxu0 %v22241_v6  ;;  %26388 = vst [vmem:[#allocation3_spill] sm:$0xff] %v22246_v32  ;;  %v22259_v63 = vsub.f32 %v5091_v5, %v22241_v6 }
  0xc2   :  { %18781 = vmatpush3.msra.mxu0 %v22241_v6 }
  0xc3   :  { %18304 = vmatmul.mubr.f32.gmra.mrb[10].mxu0 %v21877_v33  ;;  %v22264_v50 = vand.u32 4294901760, %v22259_v63 }
  0xc4   :  { %18306 = vmatprep.mubr.f32.mxu0 %v21879_v35  ;;  %v22248_v33 = vpop.permute.xlu1 %1326 }
  0xc5   :  { %26389 = vst [vmem:[#allocation4_spill] sm:$0xff] %v22248_v33  ;;  %26395 = vst [vmem:[#allocation10_spill] sm:$0xff] %v22264_v50  ;;  %v5323_v52 = vsub.f32 %v22259_v63, %v22264_v50 }
  0xc7   :  { %18307 = vmatmul.mubr.f32.gmra.mrb[12].mxu0 %v21906_v53  ;;  %v22270_v10 = vand.u32 4294901760, %v5323_v52 }
  0xc8   :  { %18309 = vmatprep.mubr.f32.mxu0 %v21924_v2  ;;  %v22250_v35 = vpop.permute.xlu1 %1336  ;;  %v22261_v2 = vpop.permute.xlu0 %1311 }
  0xc9   :  { %26390 = vst [vmem:[#allocation5_spill] sm:$0xff] %v22250_v35  ;;  %26394 = vst [vmem:[#allocation9_spill] sm:$0xff] %v22261_v2  ;;  %18806 = vmatprep.subr.mxu0 %v22270_v10 }
  0xcb   :  { %18310 = vmatmul.mubr.f32.gmra.mrb[14].mxu0 %v26386_v57 }
  0xcc   :  { %v22252_v41 = vpop.permute.xlu1 %1346  ;;  %v22272_v60 = vpop.permute.xlu0 %1316 }
  0xcd   :  { %26391 = vst [vmem:[#allocation6_spill] sm:$0xff] %v22252_v41  ;;  %26397 = vst [vmem:[#allocation12_spill] sm:$0xff] %v22272_v60 }
  0xd0   :  { %v22254_v53 = vpop.permute.xlu1 %1356  ;;  %v22277_v0 = vpop.permute.xlu0 %1331 }
  0xd1   :  { %26392 = vst [vmem:[#allocation7_spill] sm:$0xff] %v22254_v53  ;;  %26399 = vst [vmem:[#allocation14_spill] sm:$0xff] %v22277_v0 }
  0xd4   :  { %v22256_v55 = vpop.permute.xlu1 %1366  ;;  %v22286_v1 = vpop.permute.xlu0 %1341 }
  0xd5   :  { %26393 = vst [vmem:[#allocation8_spill] sm:$0xff] %v22256_v55  ;;  %26400 = vst [vmem:[#allocation15_spill] sm:$0xff] %v22286_v1 }
  0xd8   :  { %v22268_v54 = vpop.permute.xlu1 %1376  ;;  %v22296_v51 = vpop.permute.xlu0 %1351 }
  0xd9   :  { %26396 = vst [vmem:[#allocation11_spill] sm:$0xff] %v22268_v54  ;;  %26401 = vst [vmem:[#allocation16_spill] sm:$0xff] %v22296_v51 }
  0xdc   :  { %v22275_v61 = vpop.permute.xlu1 %1386  ;;  %v22313_v30 = vpop.permute.xlu0 %1361 }
  0xdd   :  { %26398 = vst [vmem:[#allocation13_spill] sm:$0xff] %v22275_v61  ;;  %26403 = vst [vmem:[#allocation18_spill] sm:$0xff] %v22313_v30 }
  0xe0   :  { %v22279_v24 = vpop.permute.xlu1 %1412  ;;  %v22325_v43 = vpop.permute.xlu0 %1371 }
  0xe1   :  { %26406 = vst [vmem:[#allocation21_spill] sm:$0xff] %v22325_v43 }
  0xe4   :  { %v22292_v28 = vpop.permute.xlu1 %1422 }
  0xe8   :  { %v22310_v22 = vpop.permute.xlu1 %1432 }
  0xec   :  { %v22323_v13 = vpop.permute.xlu1 %1442 }
  0xf0   :  { %v22337_v5 = vpop.permute.xlu1 %1452 }
 0x182   :  { %v18290_v7 = vpop.f32.mrb[0].mxu0 }
 0x183   :  { %v20364_v17 = vadd.f32 %v18290_v7, %v22284_v25  ;;  %v1116_v19 = vpop.f32.mrb[1].mxu0  ;;  %v22342_v7 = vpop.permute.xlu0 %1381 }
 0x184   :  { %v20365_v37 = vadd.f32 %v22284_v25, %v1116_v19  ;;  %26407 = vst [vmem:[#allocation22_spill] sm:$0xff] %v22342_v7 }
 0x185   :  { %v1211_v23 = vmax.f32 %v20364_v17, 0.0 }
 0x186   :  { %v22294_v39 = vmax.f32 %v20365_v37, 0.0  ;;  %v18293_v36 = vpop.f32.mrb[2].mxu0 }
 0x187   :  { %v1275_v29 = vrot.slane %v1211_v23, 1  ;;  %v20366_v34 = vadd.f32 %v18293_v36, %v22284_v25  ;;  %v1128_v12 = vpop.f32.mrb[3].mxu0 }
 0x188   :  { %v25976_v62 = vrot.slane %v22294_v39, 1  ;;  %v20367_v3 = vadd.f32 %v22284_v25, %v1128_v12 }
 0x189   :  { %v22301_v47 = vmax.f32 %v20366_v34, 0.0 }
 0x18a   :  { %v22308_v56 = vsel %vm1292_vm2, %v25976_v62, %v1275_v29  ;;  %v18296_v11 = vpop.f32.mrb[4].mxu0  ;;  %v1212_v42 = vmax.f32 %v20367_v3, 0.0  ;;  %v1611_v3 = vsel %vm1606_vm3, %v1211_v23, 0 }
 0x18b   :  { %26402 = vst [vmem:[#allocation17_spill] sm:$0xff] %v22308_v56  ;;  %v1140_v18 = vpop.f32.mrb[5].mxu0  ;;  %v1277_v44 = vrot.slane %v22301_v47, 1  ;;  %v20368_v31 = vadd.f32 %v18296_v11, %v22284_v25  ;;  %v1608_v11 = vsel %vm1606_vm3, %v22294_v39, 0 }
 0x18c   :  { %v1276_v45 = vrot.slane %v1212_v42, 1  ;;  %v20369_v57 = vadd.f32 %v22284_v25, %v1140_v18  ;;  %v22364_v18 = vpop.permute.xlu1 %1462  ;;  %v1486_v61 = vmul.f32 %v22279_v24, %v1212_v42  ;;  %v1614_v43 = vsel %vm1606_vm3, %v1212_v42, 0 }
 0x18d   :  { %v22328_v48 = vmax.f32 %v20368_v31, 0.0  ;;  %v1617_v24 = vsel %vm1606_vm3, %v22301_v47, 0  ;;  %v22412_v42 = vand.u32 4294901760, %v1614_v43 }
 0x18e   :  { %v18299_v8 = vpop.f32.mrb[6].mxu0  ;;  %v22317_v49 = vsel %vm1292_vm2, %v1276_v45, %v1277_v44  ;;  %v22321_v46 = vsel %vm1292_vm2, %v1275_v29, %v1276_v45  ;;  %v22340_v16 = vmax.f32 %v20369_v57, 0.0  ;;  %v22415_v51 = vand.u32 4294901760, %v1617_v24 }
 0x18f   :  { %v1152_v40 = vpop.f32.mrb[7].mxu0  ;;  %26404 = vst [vmem:[#allocation19_spill] sm:$0xff] %v22317_v49  ;;  %26405 = vst [vmem:[#allocation20_spill] sm:$0xff] %v22321_v46  ;;  %v20370_v15 = vadd.f32 %v18299_v8, %v22284_v25  ;;  %v1279_v52 = vrot.slane %v22328_v48, 1  ;;  %v22434_v33 = vsub.f32 %v1614_v43, %v22412_v42 }
 0x190   :  { %v20371_v38 = vadd.f32 %v22284_v25, %v1152_v40  ;;  %v1278_v17 = vrot.slane %v22340_v16, 1  ;;  %v1408_v40 = vpop.permute.xlu0 %1407 }
 0x191   :  { %v22345_v19 = vmax.f32 %v20370_v15, 0.0  ;;  %v1485_v15 = vmul.f32 %v1408_v40, %v1211_v23  ;;  %v22392_v40 = vpop.permute.xlu1 %1472  ;;  %26420 = vst [vmem:[#allocation35_spill] sm:$0xff] %v22434_v33 }
 0x192   :  { %v18302_v58 = vpop.f32.mrb[8].mxu0  ;;  %v22349_v36 = vmax.f32 %v20371_v38, 0.0  ;;  %v22355_v34 = vsel %vm1292_vm2, %v1278_v17, %v1279_v52  ;;  %v22359_v12 = vsel %vm1292_vm2, %v1277_v44, %v1278_v17  ;;  %v22372_v38 = vand.u32 4294901760, %v1611_v3 }
 0x193   :  { %v1164_v14 = vpop.f32.mrb[9].mxu0  ;;  %26408 = vst [vmem:[#allocation23_spill] sm:$0xff] %v22355_v34  ;;  %26409 = vst [vmem:[#allocation24_spill] sm:$0xff] %v22359_v12  ;;  %v1281_v45 = vrot.slane %v22345_v19, 1  ;;  %v22374_v44 = vand.u32 4294901760, %v1608_v11  ;;  %v5043_v7 = vsel %vm1606_vm3, %v1485_v15, 0  ;;  %v20372_v55 = vadd.f32 %v18302_v58, %v22284_v25 }
 0x194   :  { %v1280_v31 = vrot.slane %v22349_v36, 1  ;;  %v22386_v54 = vsub.f32 %v1611_v3, %v22372_v38  ;;  %v20373_v30 = vadd.f32 %v22284_v25, %v1164_v14  ;;  %v5046_v3 = vsel %vm1606_vm3, %v1486_v61, 0 }
 0x195   :  { %v22390_v23 = vsub.f32 %v1608_v11, %v22374_v44  ;;  %v22402_v15 = vmax.f32 %v20372_v55, 0.0  ;;  %v22417_v41 = vand.u32 4294901760, %v5046_v3  ;;  %v1483_v55 = vpop.permute.xlu1 %1482  ;;  %v22439_v12 = vsub.f32 %v1617_v24, %v22415_v51 }
 0x196   :  { %v22331_v9 = vpop.f32.mrb[10].mxu0  ;;  %v22378_v17 = vsel %vm1292_vm2, %v1280_v31, %v1281_v45  ;;  %v22382_v62 = vsel %vm1292_vm2, %v1279_v52, %v1280_v31  ;;  %26412 = vst [vmem:[#allocation27_spill] sm:$0xff] %v22386_v54  ;;  %v1418_v52 = vpop.permute.xlu0 %1417  ;;  %v22397_v31 = vand.u32 4294901760, %v5043_v7  ;;  %v22404_v11 = vmax.f32 %v20373_v30, 0.0 }
 0x197   :  { %v22335_v59 = vpop.f32.mrb[11].mxu0  ;;  %26410 = vst [vmem:[#allocation25_spill] sm:$0xff] %v22378_v17  ;;  %26411 = vst [vmem:[#allocation26_spill] sm:$0xff] %v22382_v62  ;;  %v22407_v53 = vand.u32 4294901760, %v22390_v23  ;;  %v22410_v58 = vand.u32 4294901760, %v22386_v54  ;;  %v1283_v14 = vrot.slane %v22402_v15, 1  ;;  %v1500_v35 = vmul.f32 %v1483_v55, %v22294_v39 }
 0x198   :  { %26413 = vst [vmem:[#allocation28_spill] sm:$0xff] %v22390_v23  ;;  %26414 = vst [vmem:[#allocation29_spill] sm:$0xff] %v22397_v31  ;;  %v1282_v61 = vrot.slane %v22404_v11, 1  ;;  %v22421_v30 = vsub.f32 %v5043_v7, %v22397_v31  ;;  %v1487_v62 = vmul.f32 %v1418_v52, %v22301_v47  ;;  %v22442_v32 = vsub.f32 %v5046_v3, %v22417_v41 }
 0x199   :  { %26415 = vst [vmem:[#allocation30_spill] sm:$0xff] %v22407_v53  ;;  %26416 = vst [vmem:[#allocation31_spill] sm:$0xff] %v22410_v58  ;;  %v1728_v1 = vsub.f32 %v22390_v23, %v22407_v53  ;;  %v1738_v17 = vsub.f32 %v22386_v54, %v22410_v58  ;;  %v5088_v43 = vsel %vm1606_vm3, %v1500_v35, 0  ;;  %v1623_v35 = vsel %vm1606_vm3, %v22328_v48, 0 }
 0x19a   :  { %v22347_v37 = vpop.f32.mrb[12].mxu0  ;;  %26417 = vst [vmem:[#allocation32_spill] sm:$0xff] %v22417_v41  ;;  %26418 = vst [vmem:[#allocation33_spill] sm:$0xff] %v22421_v30  ;;  %v22431_v0 = vsel %vm1292_vm2, %v1282_v61, %v1283_v14  ;;  %v1428_v34 = vpop.permute.xlu0 %1427  ;;  %v22448_v47 = vand.u32 4294901760, %v22421_v30  ;;  %v22452_v52 = vsel %vm1292_vm2, %v1281_v45, %v1282_v61  ;;  %v5049_v24 = vsel %vm1606_vm3, %v1487_v62, 0 }
 0x19b   :  { %v22351_v29 = vpop.f32.mrb[13].mxu0  ;;  %26419 = vst [vmem:[#allocation34_spill] sm:$0xff] %v22431_v0  ;;  %v22436_v7 = vand.u32 4294901760, %v1728_v1  ;;  %26422 = vst [vmem:[#allocation37_spill] sm:$0xff] %v22439_v12  ;;  %v22444_v49 = vand.u32 4294901760, %v1738_v17  ;;  %v20374_v1 = vadd.f32 %v22331_v9, %v22284_v25  ;;  %v20375_v45 = vadd.f32 %v22284_v25, %v22335_v59 }
 0x19c   :  { %26423 = vst [vmem:[#allocation38_spill] sm:$0xff] %v22442_v32  ;;  %26425 = vst [vmem:[#allocation40_spill] sm:$0xff] %v22448_v47  ;;  %v5162_v17 = vsub.f32 %v22421_v30, %v22448_v47  ;;  %v22467_v61 = vand.u32 4294901760, %v22434_v33  ;;  %v22470_v9 = vand.u32 4294901760, %v22442_v32  ;;  %v1488_v62 = vmul.f32 %v22292_v28, %v22340_v16 }
 0x19d   :  { %26421 = vst [vmem:[#allocation36_spill] sm:$0xff] %v22436_v7  ;;  %26424 = vst [vmem:[#allocation39_spill] sm:$0xff] %v22444_v49  ;;  %18314 = vmatprep.mubr.f32.mxu1 %v22436_v7  ;;  %v22462_v3 = vmax.f32 %v20374_v1, 0.0  ;;  %v22477_v55 = vand.u32 4294901760, %v22439_v12  ;;  %v22480_v1 = vand.u32 4294901760, %v5049_v24  ;;  %v1620_v59 = vsel %vm1606_vm3, %v22340_v16, 0 }
 0x19e   :  { %v22367_v8 = vpop.f32.mrb[14].mxu0  ;;  %26426 = vst [vmem:[#allocation41_spill] sm:$0xff] %v22452_v52  ;;  %18315 = vmatmul.mubr.f32.vlgmr.msra.gmra.mrb[0].mxu1 %v22444_v49  ;;  %26427 = vst [vmem:[#allocation42_spill] sm:$0xff] %v22467_v61  ;;  %v22484_v49 = vand.u32 4294901760, %v5162_v17  ;;  %v22487_v0 = vmax.f32 %v20375_v45, 0.0  ;;  %v1748_v28 = vsub.f32 %v22434_v33, %v22467_v61  ;;  %v22491_v52 = vand.u32 4294901760, %v5088_v43 }
 0x19f   :  { %v22370_v57 = vpop.f32.mrb[15].mxu0  ;;  %18339 = vmatpush3.msra.mxu1 %v22238_v4  ;;  %26428 = vst [vmem:[#allocation43_spill] sm:$0xff] %v22470_v9  ;;  %26429 = vst [vmem:[#allocation44_spill] sm:$0xff] %v22477_v55  ;;  %v1438_v4 = vpop.permute.xlu0 %1437  ;;  %v1489_v60 = vmul.f32 %v1428_v34, %v22328_v48  ;;  %v22494_v46 = vand.u32 4294901760, %v1623_v35  ;;  %v1758_v16 = vsub.f32 %v22439_v12, %v22477_v55  ;;  %v22499_v17 = vand.u32 4294901760, %v1620_v59 }
 0x1a0   :  { %18364 = vmatprep.subr.mxu1 %v22228_v21  ;;  %26430 = vst [vmem:[#allocation45_spill] sm:$0xff] %v22480_v1  ;;  %26431 = vst [vmem:[#allocation46_spill] sm:$0xff] %v22484_v49  ;;  %18782 = vmatprep.mubr.f32.mxu0 %v22484_v49  ;;  %v5052_v7 = vsel %vm1606_vm3, %v1488_v62, 0  ;;  %v1284_v45 = vrot.slane %v22487_v0, 1  ;;  %v5172_v2 = vsub.f32 %v22442_v32, %v22470_v9  ;;  %v22509_v34 = vand.u32 4294901760, %v1748_v28 }
 0x1a1   :  { %26432 = vst [vmem:[#allocation47_spill] sm:$0xff] %v22491_v52  ;;  %v22506_v56 = vsub.f32 %v5049_v24, %v22480_v1  ;;  %v1491_v48 = vmul.f32 %v1438_v4, %v22345_v19  ;;  %v1490_v49 = vmul.f32 %v22310_v22, %v22349_v36  ;;  %v26435_v55 = vrot.slane %v22462_v3, 1 }
 0x1a2   :  { %26434 = vst [vmem:[#allocation49_spill] sm:$0xff] %v22509_v34  ;;  %v22519_v47 = vand.u32 4294901760, %v1758_v16  ;;  %v22523_v9 = vsel %vm1292_vm2, %v1283_v14, %v1284_v45  ;;  %v22526_v4 = vsub.f32 %v5088_v43, %v22491_v52  ;;  %v5055_v28 = vsel %vm1606_vm3, %v1489_v60, 0  ;;  %18317 = vmatprep.mubr.f32.mxu1 %v22509_v34 }
 0x1a3   :  { %26433 = vst [vmem:[#allocation48_spill] sm:$0xff] %v22506_v56  ;;  %v22517_v62 = vsel %vm1292_vm2, %v1284_v45, %v26435_v55  ;;  %26438 = vst [vmem:[#allocation52_spill] sm:$0xff] %v22523_v9  ;;  %v1448_v24 = vpop.permute.xlu0 %1447  ;;  %v22529_v61 = vand.u32 4294901760, %v5052_v7  ;;  %v1629_v22 = vsel %vm1606_vm3, %v22345_v19, 0  ;;  %v22535_v55 = vsub.f32 %v1623_v35, %v22494_v46 }
 0x1a4   :  { %26436 = vst [vmem:[#allocation50_spill] sm:$0xff] %v22517_v62  ;;  %26437 = vst [vmem:[#allocation51_spill] sm:$0xff] %v22519_v47  ;;  %v22538_v16 = vsub.f32 %v1620_v59, %v22499_v17  ;;  %v1493_v14 = vmul.f32 %v1448_v24, %v22402_v15  ;;  %18318 = vmatmul.mubr.f32.gmra.mrb[2].mxu1 %v22519_v47  ;;  %v22542_v43 = vand.u32 4294901760, %v5172_v2  ;;  %v5061_v60 = vsel %vm1606_vm3, %v1491_v48, 0 }
 0x1a5   :  { %26439 = vst [vmem:[#allocation53_spill] sm:$0xff] %v22526_v4  ;;  %26440 = vst [vmem:[#allocation54_spill] sm:$0xff] %v22529_v61  ;;  %v20376_v45 = vadd.f32 %v22347_v37, %v22284_v25  ;;  %v22548_v19 = vand.u32 4294901760, %v22506_v56  ;;  %v20377_v35 = vadd.f32 %v22284_v25, %v22351_v29  ;;  %v22552_v34 = vand.u32 4294901760, %v5055_v28 }
 0x1a6   :  { %26441 = vst [vmem:[#allocation55_spill] sm:$0xff] %v22535_v55  ;;  %26442 = vst [vmem:[#allocation56_spill] sm:$0xff] %v22538_v16  ;;  %v22554_v59 = vand.u32 4294901760, %v1629_v22  ;;  %v1626_v24 = vsel %vm1606_vm3, %v22349_v36, 0  ;;  %v5058_v2 = vsel %vm1606_vm3, %v1490_v49, 0  ;;  %18783 = vmatmul.mubr.f32.vlgmr.msra.gmra.mrb[16].mxu0 %v22542_v43  ;;  %v22561_v48 = vsub.f32 %v5052_v7, %v22529_v61 }
 0x1a7   :  { %26443 = vst [vmem:[#allocation57_spill] sm:$0xff] %v22542_v43  ;;  %26444 = vst [vmem:[#allocation58_spill] sm:$0xff] %v22548_v19  ;;  %v1635_v37 = vsel %vm1606_vm3, %v22402_v15, 0  ;;  %v22565_v47 = vmax.f32 %v20376_v45, 0.0  ;;  %v5182_v29 = vsub.f32 %v22506_v56, %v22548_v19  ;;  %18807 = vmatpush3.msra.mxu0 %v22270_v10  ;;  %v22570_v62 = vand.u32 4294901760, %v5061_v60  ;;  %v1458_v9 = vpop.permute.xlu0 %1457 }
 0x1a8   :  { %26445 = vst [vmem:[#allocation59_spill] sm:$0xff] %v22552_v34  ;;  %26446 = vst [vmem:[#allocation60_spill] sm:$0xff] %v22561_v48  ;;  %v5067_v36 = vsel %vm1606_vm3, %v1493_v14, 0  ;;  %v22573_v49 = vmax.f32 %v20377_v35, 0.0  ;;  %v22576_v43 = vand.u32 4294901760, %v22538_v16  ;;  %18832 = vmatprep.subr.mxu0 %v22259_v63  ;;  %v22579_v7 = vand.u32 4294901760, %v1626_v24 }
 0x1a9   :  { %26447 = vst [vmem:[#allocation61_spill] sm:$0xff] %v22570_v62  ;;  %v22581_v15 = vand.u32 4294901760, %v5058_v2  ;;  %v1492_v45 = vmul.f32 %v22323_v13, %v22404_v11  ;;  %v22586_v19 = vand.u32 4294901760, %v1635_v37  ;;  %v22588_v14 = vand.u32 4294901760, %v5182_v29 }
 0x1aa   :  { %26448 = vst [vmem:[#allocation62_spill] sm:$0xff] %v22576_v43  ;;  %v1286_v35 = vrot.slane %v22573_v49, 1  ;;  %v22592_v58 = vand.u32 4294901760, %v22535_v55  ;;  %v22595_v53 = vsub.f32 %v5055_v28, %v22552_v34  ;;  %v22597_v50 = vand.u32 4294901760, %v5067_v36 }
 0x1ab   :  { %26449 = vst [vmem:[#allocation63_spill] sm:$0xff] %v22581_v15  ;;  %26450 = vst [vmem:[#allocation64_spill] sm:$0xff] %v22588_v14  ;;  %v1768_v13 = vsub.f32 %v22538_v16, %v22576_v43  ;;  %v22602_v10 = vand.u32 4294901760, %v22561_v48  ;;  %v22605_v56 = vsub.f32 %v1629_v22, %v22554_v59  ;;  %v1632_v29 = vsel %vm1606_vm3, %v22404_v11, 0  ;;  %18785 = vmatprep.mubr.f32.mxu0 %v22588_v14 }
 0x1ac   :  { %26451 = vst [vmem:[#allocation65_spill] sm:$0xff] %v22592_v58  ;;  %26452 = vst [vmem:[#allocation66_spill] sm:$0xff] %v22595_v53  ;;  %v1495_v32 = vmul.f32 %v1458_v9, %v22462_v3  ;;  %v26456_v28 = vrot.slane %v22565_v47, 1  ;;  %v22618_v43 = vsub.f32 %v5061_v60, %v22570_v62  ;;  %v22621_v16 = vsub.f32 %v1626_v24, %v22579_v7 }
 0x1ad   :  { %26453 = vst [vmem:[#allocation67_spill] sm:$0xff] %v22597_v50  ;;  %26454 = vst [vmem:[#allocation68_spill] sm:$0xff] %v22602_v10  ;;  %v5064_v22 = vsel %vm1606_vm3, %v1492_v45, 0  ;;  %v1641_v11 = vsel %vm1606_vm3, %v22462_v3, 0  ;;  %v22627_v9 = vsub.f32 %v5058_v2, %v22581_v15  ;;  %v22630_v14 = vsub.f32 %v1635_v37, %v22586_v19  ;;  %v1468_v37 = vpop.permute.xlu0 %1467 }
 0x1ae   :  { %26455 = vst [vmem:[#allocation69_spill] sm:$0xff] %v22605_v56  ;;  %v22615_v12 = vsel %vm1292_vm2, %v1286_v35, %v26456_v28  ;;  %26458 = vst [vmem:[#allocation71_spill] sm:$0xff] %v22618_v43  ;;  %v22632_v26 = vand.u32 4294901760, %v1768_v13  ;;  %v1778_v60 = vsub.f32 %v22535_v55, %v22592_v58  ;;  %v22637_v28 = vsub.f32 %v5067_v36, %v22597_v50 }
 0x1af   :  { %26457 = vst [vmem:[#allocation70_spill] sm:$0xff] %v22615_v12  ;;  %26459 = vst [vmem:[#allocation72_spill] sm:$0xff] %v22621_v16  ;;  %v22639_v24 = vand.u32 4294901760, %v1632_v29  ;;  %v26464_v45 = vrot.slane %v22462_v3, 1  ;;  %v5192_v2 = vsub.f32 %v22561_v48, %v22602_v10  ;;  %v22649_v13 = vand.u32 4294901760, %v5064_v22 }
 0x1b0   :  { %26460 = vst [vmem:[#allocation73_spill] sm:$0xff] %v22627_v9  ;;  %26461 = vst [vmem:[#allocation74_spill] sm:$0xff] %v22630_v14  ;;  %v22651_v30 = vand.u32 4294901760, %v1641_v11  ;;  %v5073_v58 = vsel %vm1606_vm3, %v1495_v32, 0  ;;  %18320 = vmatprep.mubr.f32.mxu1 %v22632_v26  ;;  %v22655_v36 = vand.u32 4294901760, %v1778_v60  ;;  %v20378_v3 = vadd.f32 %v22367_v8, %v22284_v25 }
 0x1b1   :  { %26462 = vst [vmem:[#allocation75_spill] sm:$0xff] %v22632_v26  ;;  %26463 = vst [vmem:[#allocation76_spill] sm:$0xff] %v22637_v28  ;;  %v22645_v12 = vsel %vm1292_vm2, %v26464_v45, %v1286_v35  ;;  %v22657_v55 = vand.u32 4294901760, %v5192_v2  ;;  %v22662_v35 = vand.u32 4294901760, %v22595_v53  ;;  %v20379_v45 = vadd.f32 %v22284_v25, %v22370_v57  ;;  %v1478_v48 = vpop.permute.xlu0 %1477 }
 0x1b2   :  { %26465 = vst [vmem:[#allocation77_spill] sm:$0xff] %v22645_v12  ;;  %26466 = vst [vmem:[#allocation78_spill] sm:$0xff] %v22649_v13  ;;  %v1494_v12 = vmul.f32 %v22337_v5, %v22487_v0  ;;  %v1638_v32 = vsel %vm1606_vm3, %v22487_v0, 0  ;;  %18321 = vmatmul.mubr.f32.gmra.mrb[4].mxu1 %v22655_v36  ;;  %v22672_v60 = vand.u32 4294901760, %v22621_v16  ;;  %v22675_v2 = vand.u32 4294901760, %v22605_v56 }
 0x1b3   :  { %26467 = vst [vmem:[#allocation79_spill] sm:$0xff] %v22655_v36  ;;  %26468 = vst [vmem:[#allocation80_spill] sm:$0xff] %v22657_v55  ;;  %v22678_v8 = vsub.f32 %v1632_v29, %v22639_v24  ;;  %v1497_v26 = vmul.f32 %v1468_v37, %v22565_v47  ;;  %18786 = vmatmul.mubr.f32.gmra.mrb[18].mxu0 %v22657_v55  ;;  %v1225_v25 = vmax.f32 %v20378_v3, 0.0  ;;  %v1224_v36 = vmax.f32 %v20379_v45, 0.0 }
 0x1b4   :  { %26469 = vst [vmem:[#allocation81_spill] sm:$0xff] %v22662_v35  ;;  %26470 = vst [vmem:[#allocation82_spill] sm:$0xff] %v22672_v60  ;;  %v5202_v5 = vsub.f32 %v22595_v53, %v22662_v35  ;;  %v22685_v0 = vsub.f32 %v5064_v22, %v22649_v13  ;;  %v1496_v57 = vmul.f32 %v22364_v18, %v22573_v49  ;;  %v22694_v37 = vand.u32 4294901760, %v5073_v58 }
 0x1b5   :  { %26471 = vst [vmem:[#allocation83_spill] sm:$0xff] %v22675_v2  ;;  %26472 = vst [vmem:[#allocation84_spill] sm:$0xff] %v22678_v8  ;;  %v1788_v10 = vsub.f32 %v22621_v16, %v22672_v60  ;;  %v22692_v29 = vsub.f32 %v1641_v11, %v22651_v30  ;;  %v22696_v55 = vand.u32 4294901760, %v1638_v32  ;;  %v1289_v3 = vrot.slane %v1225_v25, 1 }
 0x1b6   :  { %26473 = vst [vmem:[#allocation85_spill] sm:$0xff] %v22685_v0  ;;  %26475 = vst [vmem:[#allocation87_spill] sm:$0xff] %v22694_v37  ;;  %v5070_v35 = vsel %vm1606_vm3, %v1494_v12, 0  ;;  %v22699_v22 = vand.u32 4294901760, %v5202_v5  ;;  %v1288_v53 = vrot.slane %v1224_v36, 1  ;;  %v1798_v18 = vsub.f32 %v22605_v56, %v22675_v2 }
 0x1b7   :  { %26474 = vst [vmem:[#allocation86_spill] sm:$0xff] %v22692_v29  ;;  %v1647_v45 = vsel %vm1606_vm3, %v22565_v47, 0  ;;  %v5079_v11 = vsel %vm1606_vm3, %v1497_v26, 0  ;;  %v1499_v60 = vmul.f32 %v1478_v48, %v1225_v25  ;;  %v22706_v16 = vand.u32 4294901760, %v1788_v10 }
 0x1b8   :  { %26476 = vst [vmem:[#allocation88_spill] sm:$0xff] %v22699_v22  ;;  %v1644_v33 = vsel %vm1606_vm3, %v22573_v49, 0  ;;  %v5076_v52 = vsel %vm1606_vm3, %v1496_v57, 0  ;;  %18788 = vmatprep.mubr.f32.mxu0 %v22699_v22  ;;  %v22714_v12 = vsel %vm1292_vm2, %v1288_v53, %v1289_v3  ;;  %v22717_v5 = vand.u32 4294901760, %v22627_v9 }
 0x1b9   :  { %26477 = vst [vmem:[#allocation89_spill] sm:$0xff] %v22706_v16  ;;  %26478 = vst [vmem:[#allocation90_spill] sm:$0xff] %v22714_v12  ;;  %v22720_v2 = vsub.f32 %v5073_v58, %v22694_v37  ;;  %v22723_v26 = vsub.f32 %v1638_v32, %v22696_v55  ;;  %v1653_v48 = vsel %vm1606_vm3, %v1225_v25, 0  ;;  %v1498_v49 = vmul.f32 %v22392_v40, %v1224_v36 }
 0x1ba   :  { %26479 = vst [vmem:[#allocation91_spill] sm:$0xff] %v22717_v5  ;;  %18323 = vmatprep.mubr.f32.mxu1 %v22706_v16  ;;  %v22728_v10 = vand.u32 4294901760, %v5070_v35  ;;  %v22730_v57 = vand.u32 4294901760, %v1647_v45  ;;  %v22732_v22 = vand.u32 4294901760, %v1798_v18  ;;  %v26484_v12 = vrot.slane %v22565_v47, 1 }
 0x1bb   :  { %26480 = vst [vmem:[#allocation92_spill] sm:$0xff] %v22720_v2  ;;  %26481 = vst [vmem:[#allocation93_spill] sm:$0xff] %v22723_v26  ;;  %v22740_v32 = vand.u32 4294901760, %v5079_v11  ;;  %v22742_v56 = vand.u32 4294901760, %v1644_v33  ;;  %v22744_v25 = vand.u32 4294901760, %v5076_v52  ;;  %v5085_v40 = vsel %vm1606_vm3, %v1499_v60, 0 }
 0x1bc   :  { %26482 = vst [vmem:[#allocation94_spill] sm:$0xff] %v22728_v10  ;;  %26483 = vst [vmem:[#allocation95_spill] sm:$0xff] %v22732_v22  ;;  %v22738_v58 = vsel %vm1292_vm2, %v26484_v12, %v1288_v53  ;;  %v22747_v16 = vand.u32 4294901760, %v1653_v48  ;;  %18324 = vmatmul.mubr.f32.gmra.mrb[6].mxu1 %v22732_v22  ;;  %v5212_v18 = vsub.f32 %v22627_v9, %v22717_v5  ;;  %v22753_v47 = vand.u32 4294901760, %v22618_v43 }
 0x1bd   :  { %26485 = vst [vmem:[#allocation96_spill] sm:$0xff] %v22738_v58  ;;  %26486 = vst [vmem:[#allocation97_spill] sm:$0xff] %v22740_v32  ;;  %v22756_v53 = vand.u32 4294901760, %v22678_v8  ;;  %v1650_v12 = vsel %vm1606_vm3, %v1224_v36, 0  ;;  %v5082_v58 = vsel %vm1606_vm3, %v1498_v49, 0  ;;  %v22761_v54 = vand.u32 4294901760, %v22630_v14 }
 0x1be   :  { %26487 = vst [vmem:[#allocation98_spill] sm:$0xff] %v22744_v25  ;;  %26488 = vst [vmem:[#allocation99_spill] sm:$0xff] %v22753_v47  ;;  %v26491_v60 = vrot.slane %v22294_v39, 1  ;;  %v22770_v5 = vsub.f32 %v5070_v35, %v22728_v10  ;;  %v22772_v9 = vand.u32 4294901760, %v5085_v40  ;;  %v22774_v23 = vand.u32 4294901760, %v5212_v18 }
 0x1bf   :  { %26489 = vst [vmem:[#allocation100_spill] sm:$0xff] %v22756_v53  ;;  %26490 = vst [vmem:[#allocation101_spill] sm:$0xff] %v22761_v54  ;;  %v5222_v36 = vsub.f32 %v22618_v43, %v22753_v47  ;;  %v22779_v49 = vsub.f32 %v1647_v45, %v22730_v57  ;;  %v22782_v37 = vsub.f32 %v5079_v11, %v22740_v32  ;;  %v22788_v35 = vand.u32 4294901760, %v1650_v12 }
 0x1c0   :  { %v22767_v22 = vsel %vm1292_vm2, %v1289_v3, %v26491_v60  ;;  %26493 = vst [vmem:[#allocation103_spill] sm:$0xff] %v22770_v5  ;;  %26494 = vst [vmem:[#allocation104_spill] sm:$0xff] %v22772_v9  ;;  %v1808_v27 = vsub.f32 %v22678_v8, %v22756_v53  ;;  %v1818_v39 = vsub.f32 %v22630_v14, %v22761_v54  ;;  %v22790_v3 = vand.u32 4294901760, %v5082_v58 }
 0x1c1   :  { %26492 = vst [vmem:[#allocation102_spill] sm:$0xff] %v22767_v22  ;;  %26495 = vst [vmem:[#allocation105_spill] sm:$0xff] %v22774_v23  ;;  %18789 = vmatmul.mubr.f32.gmra.mrb[20].mxu0 %v22774_v23  ;;  %v22793_v18 = vand.u32 4294901760, %v5222_v36  ;;  %v22796_v45 = vand.u32 4294901760, %v22685_v0  ;;  %v22799_v11 = vsub.f32 %v1644_v33, %v22742_v56  ;;  %v22802_v60 = vsub.f32 %v5076_v52, %v22744_v25 }
 0x1c2   :  { %26496 = vst [vmem:[#allocation106_spill] sm:$0xff] %v22779_v49  ;;  %26497 = vst [vmem:[#allocation107_spill] sm:$0xff] %v22782_v37  ;;  %v22805_v22 = vsub.f32 %v1653_v48, %v22747_v16  ;;  %v22807_v54 = vand.u32 4294901760, %v1808_v27  ;;  %v22810_v47 = vsub.f32 %v5085_v40, %v22772_v9  ;;  %v22813_v36 = vand.u32 4294901760, %v1818_v39 }
 0x1c3   :  { %26498 = vst [vmem:[#allocation108_spill] sm:$0xff] %v22790_v3  ;;  %26499 = vst [vmem:[#allocation109_spill] sm:$0xff] %v22793_v18  ;;  %18791 = vmatprep.mubr.f32.mxu0 %v22793_v18  ;;  %v5232_v23 = vsub.f32 %v22685_v0, %v22796_v45  ;;  %v22818_v33 = vand.u32 4294901760, %v22637_v28  ;;  %v22822_v52 = vand.u32 4294901760, %v22723_v26  ;;  %v22825_v48 = vand.u32 4294901760, %v22692_v29 }
 0x1c4   :  { %26500 = vst [vmem:[#allocation110_spill] sm:$0xff] %v22796_v45  ;;  %26501 = vst [vmem:[#allocation111_spill] sm:$0xff] %v22799_v11  ;;  %18326 = vmatprep.mubr.f32.mxu1 %v22807_v54  ;;  %v22828_v40 = vand.u32 4294901760, %v22770_v5  ;;  %v22831_v27 = vand.u32 4294901760, %v22720_v2  ;;  %v22834_v39 = vsub.f32 %v1650_v12, %v22788_v35  ;;  %v22837_v18 = vsub.f32 %v5082_v58, %v22790_v3 }
 0x1c5   :  { %26502 = vst [vmem:[#allocation112_spill] sm:$0xff] %v22802_v60  ;;  %26503 = vst [vmem:[#allocation113_spill] sm:$0xff] %v22805_v22  ;;  %18327 = vmatmul.mubr.f32.gmra.mrb[8].mxu1 %v22813_v36  ;;  %v5242_v45 = vsub.f32 %v22637_v28, %v22818_v33  ;;  %v1828_v53 = vsub.f32 %v22723_v26, %v22822_v52  ;;  %v1838_v0 = vsub.f32 %v22692_v29, %v22825_v48 }
 0x1c6   :  { %26504 = vst [vmem:[#allocation114_spill] sm:$0xff] %v22807_v54  ;;  %26505 = vst [vmem:[#allocation115_spill] sm:$0xff] %v22810_v47  ;;  %v22840_v54 = vand.u32 4294901760, %v5232_v23  ;;  %v5252_v12 = vsub.f32 %v22770_v5, %v22828_v40  ;;  %v5262_v58 = vsub.f32 %v22720_v2, %v22831_v27  ;;  %v22856_v23 = vand.u32 4294901760, %v22799_v11 }
 0x1c7   :  { %26506 = vst [vmem:[#allocation116_spill] sm:$0xff] %v22813_v36  ;;  %26507 = vst [vmem:[#allocation117_spill] sm:$0xff] %v22818_v33  ;;  %v22853_v36 = vand.u32 4294901760, %v5242_v45  ;;  %v22859_v33 = vand.u32 4294901760, %v22779_v49  ;;  %v22866_v29 = vand.u32 4294901760, %v1838_v0  ;;  %v22884_v0 = vand.u32 4294901760, %v22834_v39 }
 0x1c8   :  { %26508 = vst [vmem:[#allocation118_spill] sm:$0xff] %v22822_v52  ;;  %26509 = vst [vmem:[#allocation119_spill] sm:$0xff] %v22825_v48  ;;  %18792 = vmatmul.mubr.f32.gmra.mrb[22].mxu0 %v22840_v54  ;;  %v22862_v52 = vand.u32 4294901760, %v22802_v60  ;;  %v22864_v48 = vand.u32 4294901760, %v1828_v53  ;;  %v1848_v45 = vsub.f32 %v22799_v11, %v22856_v23  ;;  %v22880_v53 = vand.u32 4294901760, %v22782_v37 }
 0x1c9   :  { %26510 = vst [vmem:[#allocation120_spill] sm:$0xff] %v22828_v40  ;;  %26511 = vst [vmem:[#allocation121_spill] sm:$0xff] %v22831_v27  ;;  %v22868_v40 = vand.u32 4294901760, %v5252_v12  ;;  %v22870_v27 = vand.u32 4294901760, %v5262_v58  ;;  %18794 = vmatprep.mubr.f32.mxu0 %v22853_v36  ;;  %v22887_v12 = vand.u32 4294901760, %v22805_v22  ;;  %v22890_v58 = vand.u32 4294901760, %v22837_v18 }
 0x1ca   :  { %26512 = vst [vmem:[#allocation122_spill] sm:$0xff] %v22834_v39  ;;  %26513 = vst [vmem:[#allocation123_spill] sm:$0xff] %v22837_v18  ;;  %v5272_v2 = vsub.f32 %v22802_v60, %v22862_v52  ;;  %18329 = vmatprep.mubr.f32.mxu1 %v22864_v48 }
 0x1cb   :  { %26514 = vst [vmem:[#allocation124_spill] sm:$0xff] %v22840_v54  ;;  %26515 = vst [vmem:[#allocation125_spill] sm:$0xff] %v22853_v36  ;;  %v1858_v54 = vsub.f32 %v22779_v49, %v22859_v33  ;;  %v22893_v36 = vand.u32 4294901760, %v22810_v47  ;;  %18330 = vmatmul.mubr.f32.gmra.mrb[10].mxu1 %v22866_v29  ;;  %v5292_v60 = vsub.f32 %v22837_v18, %v22890_v58 }
 0x1cc   :  { %26516 = vst [vmem:[#allocation126_spill] sm:$0xff] %v22856_v23  ;;  %26517 = vst [vmem:[#allocation127_spill] sm:$0xff] %v22859_v33  ;;  %18795 = vmatmul.mubr.f32.gmra.mrb[24].mxu0 %v22868_v40  ;;  %v22899_v33 = vand.u32 4294901760, %v5272_v2  ;;  %v1868_v23 = vsub.f32 %v22834_v39, %v22884_v0  ;;  %v22914_v2 = vand.u32 4294901760, %v22526_v4 }
 0x1cd   :  { %26518 = vst [vmem:[#allocation128_spill] sm:$0xff] %v22862_v52  ;;  %26519 = vst [vmem:[#allocation129_spill] sm:$0xff] %v22864_v48  ;;  %v22897_v52 = vand.u32 4294901760, %v1848_v45  ;;  %v5282_v48 = vsub.f32 %v22782_v37, %v22880_v53  ;;  %18797 = vmatprep.mubr.f32.mxu0 %v22870_v27  ;;  %v1878_v45 = vsub.f32 %v22805_v22, %v22887_v12 }
 0x1ce   :  { %26520 = vst [vmem:[#allocation130_spill] sm:$0xff] %v22866_v29  ;;  %26521 = vst [vmem:[#allocation131_spill] sm:$0xff] %v22868_v40  ;;  %v22909_v29 = vand.u32 4294901760, %v1858_v54 }
 0x1cf   :  { %26522 = vst [vmem:[#allocation132_spill] sm:$0xff] %v22870_v27  ;;  %26523 = vst [vmem:[#allocation133_spill] sm:$0xff] %v22880_v53  ;;  %18332 = vmatprep.mubr.f32.mxu1 %v22897_v52  ;;  %v22916_v40 = vand.u32 4294901760, %v5282_v48  ;;  %v22918_v53 = vand.u32 4294901760, %v1868_v23  ;;  %v5302_v27 = vsub.f32 %v22810_v47, %v22893_v36  ;;  %v22928_v54 = vand.u32 4294901760, %v1878_v45  ;;  %v26541_v45 = vld [vmem:[#allocation47_spill] sm:$0xff] }
 0x1d0   :  { %26524 = vst [vmem:[#allocation134_spill] sm:$0xff] %v22884_v0  ;;  %26525 = vst [vmem:[#allocation135_spill] sm:$0xff] %v22887_v12  ;;  %18333 = vmatmul.mubr.f32.gmra.mrb[12].mxu1 %v22909_v29  ;;  %18798 = vmatmul.mubr.f32.gmra.mrb[26].mxu0 %v22899_v33  ;;  %v5312_v48 = vsub.f32 %v22526_v4, %v22914_v2 }
 0x1d1   :  { %26526 = vst [vmem:[#allocation136_spill] sm:$0xff] %v22890_v58  ;;  %26527 = vst [vmem:[#allocation137_spill] sm:$0xff] %v22893_v36  ;;  %18800 = vmatprep.mubr.f32.mxu0 %v22916_v40  ;;  %18335 = vmatprep.mubr.f32.mxu1 %v22918_v53  ;;  %v22932_v23 = vand.u32 4294901760, %v5302_v27  ;;  %v26540_v27 = vld [vmem:[#allocation27_spill] sm:$0xff] }
 0x1d2   :  { %26528 = vst [vmem:[#allocation138_spill] sm:$0xff] %v22897_v52  ;;  %26529 = vst [vmem:[#allocation139_spill] sm:$0xff] %v22899_v33  ;;  %v22924_v52 = vand.u32 4294901760, %v5292_v60  ;;  %v22938_v60 = vand.u32 4294901760, %v5312_v48  ;;  %v26542_v48 = vld [vmem:[#allocation35_spill] sm:$0xff]  ;;  %v26547_v33 = vld [vmem:[#allocation56_spill] sm:$0xff] }
 0x1d3   :  { %26530 = vst [vmem:[#allocation140_spill] sm:$0xff] %v22909_v29  ;;  %26531 = vst [vmem:[#allocation141_spill] sm:$0xff] %v22914_v2  ;;  %v26554_v29 = vld [vmem:[#allocation69_spill] sm:$0xff] }
 0x1d4   :  { %26532 = vst [vmem:[#allocation142_spill] sm:$0xff] %v22916_v40  ;;  %26533 = vst [vmem:[#allocation143_spill] sm:$0xff] %v22918_v53  ;;  %18336 = vmatmul.mubr.f32.gmra.mrb[14].mxu1 %v22928_v54  ;;  %18801 = vmatmul.mubr.f32.gmra.mrb[28].mxu0 %v22924_v52  ;;  %v26546_v40 = vld [vmem:[#allocation38_spill] sm:$0xff]  ;;  %v26552_v53 = vld [vmem:[#allocation72_spill] sm:$0xff] }
 0x1d5   :  { %26534 = vst [vmem:[#allocation144_spill] sm:$0xff] %v22924_v52  ;;  %26535 = vst [vmem:[#allocation145_spill] sm:$0xff] %v22928_v54  ;;  %18340 = vmatprep.mubr.f32.mxu1 %v22374_v44  ;;  %18803 = vmatprep.mubr.f32.mxu0 %v22932_v23  ;;  %v26545_v52 = vld [vmem:[#allocation37_spill] sm:$0xff]  ;;  %v26550_v54 = vld [vmem:[#allocation55_spill] sm:$0xff] }
 0x1d6   :  { %26536 = vst [vmem:[#allocation146_spill] sm:$0xff] %v22932_v23  ;;  %26537 = vst [vmem:[#allocation147_spill] sm:$0xff] %v22938_v60  ;;  %v26544_v23 = vld [vmem:[#allocation2_spill] sm:$0xff] }
 0x1d8   :  { %18341 = vmatmul.mubr.f32.vlgmr.msra.gmra.mrb[0].mxu1 %v22372_v38  ;;  %18804 = vmatmul.mubr.f32.gmra.mrb[30].mxu0 %v22938_v60  ;;  %v26543_v60 = vld [vmem:[#allocation33_spill] sm:$0xff] }
 0x1d9   :  { %18343 = vmatprep.mubr.f32.mxu1 %v22412_v42  ;;  %18365 = vmatpush3.msra.mxu1 %v22228_v21  ;;  %v26538_v21 = vld [vmem:[#allocation87_spill] sm:$0xff] }
 0x1da   :  { %18808 = vmatprep.mubr.f32.mxu0 %v22397_v31  ;;  %18390 = vmatprep.subr.mxu1 %v22223_v20 }
 0x1dc   :  { %18344 = vmatmul.mubr.f32.gmra.mrb[2].mxu1 %v22415_v51  ;;  %18809 = vmatmul.mubr.f32.vlgmr.msra.gmra.mrb[16].mxu0 %v22417_v41 }
 0x1dd   :  { %18346 = vmatprep.mubr.f32.mxu1 %v22499_v17  ;;  %18811 = vmatprep.mubr.f32.mxu0 %v22480_v1 }
 0x1de   :  { %18833 = vmatpush3.msra.mxu0 %v22259_v63  ;;  %v26539_v63 = vld [vmem:[#allocation28_spill] sm:$0xff] }
 0x1df   :  { %18858 = vmatprep.subr.mxu0 %v22241_v6 }
 0x1e0   :  { %18347 = vmatmul.mubr.f32.gmra.mrb[4].mxu1 %v22494_v46  ;;  %18812 = vmatmul.mubr.f32.gmra.mrb[18].mxu0 %v22529_v61 }
 0x1e1   :  { %18349 = vmatprep.mubr.f32.mxu1 %v22579_v7  ;;  %18814 = vmatprep.mubr.f32.mxu0 %v22552_v34 }
 0x1e4   :  { %18350 = vmatmul.mubr.f32.gmra.mrb[6].mxu1 %v22554_v59  ;;  %18815 = vmatmul.mubr.f32.gmra.mrb[20].mxu0 %v22581_v15 }
 0x1e5   :  { %18352 = vmatprep.mubr.f32.mxu1 %v22639_v24  ;;  %18817 = vmatprep.mubr.f32.mxu0 %v22570_v62 }
 0x1e8   :  { %18353 = vmatmul.mubr.f32.gmra.mrb[8].mxu1 %v22586_v19  ;;  %18818 = vmatmul.mubr.f32.gmra.mrb[22].mxu0 %v22649_v13 }
 0x1e9   :  { %18355 = vmatprep.mubr.f32.mxu1 %v22696_v55  ;;  %18820 = vmatprep.mubr.f32.mxu0 %v22597_v50 }
 0x1ec   :  { %18356 = vmatmul.mubr.f32.gmra.mrb[10].mxu1 %v22651_v30  ;;  %18821 = vmatmul.mubr.f32.gmra.mrb[24].mxu0 %v22728_v10 }
 0x1ed   :  { %18358 = vmatprep.mubr.f32.mxu1 %v22742_v56  ;;  %18823 = vmatprep.mubr.f32.mxu0 %v26538_v21 }
 0x1f0   :  { %18359 = vmatmul.mubr.f32.gmra.mrb[12].mxu1 %v22730_v57  ;;  %18824 = vmatmul.mubr.f32.gmra.mrb[26].mxu0 %v22744_v25 }
 0x1f1   :  { %18361 = vmatprep.mubr.f32.mxu1 %v22788_v35  ;;  %18826 = vmatprep.mubr.f32.mxu0 %v22740_v32 }
 0x1f4   :  { %18362 = vmatmul.mubr.f32.gmra.mrb[14].mxu1 %v22747_v16  ;;  %18827 = vmatmul.mubr.f32.gmra.mrb[28].mxu0 %v22790_v3 }
 0x1f5   :  { %18366 = vmatprep.mubr.f32.mxu1 %v26539_v63  ;;  %18829 = vmatprep.mubr.f32.mxu0 %v22772_v9  ;;  %v26548_v63 = vld [vmem:[#allocation48_spill] sm:$0xff] }
 0x1f8   :  { %18367 = vmatmul.mubr.f32.vlgmr.msra.gmra.mrb[0].mxu1 %v26540_v27  ;;  %18830 = vmatmul.mubr.f32.gmra.mrb[30].mxu0 %v26541_v45  ;;  %v26549_v27 = vld [vmem:[#allocation10_spill] sm:$0xff] }
 0x1f9   :  { %18369 = vmatprep.mubr.f32.mxu1 %v26542_v48  ;;  %18391 = vmatpush3.msra.mxu1 %v22223_v20  ;;  %v26551_v48 = vld [vmem:[#allocation60_spill] sm:$0xff] }
 0x1fa   :  { %18834 = vmatprep.mubr.f32.mxu0 %v26543_v60  ;;  %18416 = vmatprep.subr.mxu1 %v26544_v23  ;;  %v26553_v60 = vld [vmem:[#allocation66_spill] sm:$0xff] }
 0x1fc   :  { %18370 = vmatmul.mubr.f32.gmra.mrb[2].mxu1 %v26545_v52  ;;  %18835 = vmatmul.mubr.f32.vlgmr.msra.gmra.mrb[16].mxu0 %v26546_v40  ;;  %v26555_v52 = vld [vmem:[#allocation73_spill] sm:$0xff]  ;;  %v26572_v40 = vld [vmem:[#allocation83_spill] sm:$0xff] }
 0x1fd   :  { %18372 = vmatprep.mubr.f32.mxu1 %v26547_v33  ;;  %18837 = vmatprep.mubr.f32.mxu0 %v26548_v63  ;;  %v26556_v63 = vld [vmem:[#allocation85_spill] sm:$0xff]  ;;  %v26643_v33 = vld [vmem:[#allocation11_spill] sm:$0xff] }
 0x1fe   :  { %18859 = vmatpush3.msra.mxu0 %v22241_v6 }
 0x1ff   :  { %18884 = vmatprep.subr.mxu0 %v26549_v27 }
 0x200   :  { %18373 = vmatmul.mubr.f32.gmra.mrb[4].mxu1 %v26550_v54  ;;  %18838 = vmatmul.mubr.f32.gmra.mrb[18].mxu0 %v26551_v48  ;;  %v26557_v48 = vld [vmem:[#allocation86_spill] sm:$0xff]  ;;  %v26642_v54 = vld [vmem:[#allocation96_spill] sm:$0xff] }
 0x201   :  { %18375 = vmatprep.mubr.f32.mxu1 %v26552_v53  ;;  %18840 = vmatprep.mubr.f32.mxu0 %v26553_v60  ;;  %v26558_v60 = vld [vmem:[#allocation92_spill] sm:$0xff] }
 0x204   :  { %18376 = vmatmul.mubr.f32.gmra.mrb[6].mxu1 %v26554_v29  ;;  %18841 = vmatmul.mubr.f32.gmra.mrb[20].mxu0 %v26555_v52  ;;  %v26559_v52 = vld [vmem:[#allocation112_spill] sm:$0xff] }
 0x205   :  { %18378 = vmatprep.mubr.f32.mxu1 %v22678_v8  ;;  %18843 = vmatprep.mubr.f32.mxu0 %v22618_v43  ;;  %v26567_v43 = vld [vmem:[#allocation58_spill] sm:$0xff]  ;;  %v26632_v8 = vld [vmem:[#allocation8_spill] sm:$0xff] }
 0x208   :  { %18379 = vmatmul.mubr.f32.gmra.mrb[8].mxu1 %v22630_v14  ;;  %18844 = vmatmul.mubr.f32.gmra.mrb[22].mxu0 %v26556_v63  ;;  %v26565_v63 = vld [vmem:[#allocation43_spill] sm:$0xff]  ;;  %v26631_v14 = vld [vmem:[#allocation77_spill] sm:$0xff] }
 0x209   :  { %18381 = vmatprep.mubr.f32.mxu1 %v22723_v26  ;;  %18846 = vmatprep.mubr.f32.mxu0 %v22637_v28  ;;  %v26560_v28 = vld [vmem:[#allocation30_spill] sm:$0xff]  ;;  %v1400_v29 = vmul.f32 %v26632_v8, %v26631_v14 }
 0x20c   :  { %18382 = vmatmul.mubr.f32.gmra.mrb[10].mxu1 %v26557_v48  ;;  %18847 = vmatmul.mubr.f32.gmra.mrb[24].mxu0 %v22770_v5  ;;  %v26561_v5 = vld [vmem:[#allocation31_spill] sm:$0xff] }
 0x20d   :  { %18384 = vmatprep.mubr.f32.mxu1 %v22799_v11  ;;  %18849 = vmatprep.mubr.f32.mxu0 %v26558_v60  ;;  %v26562_v60 = vld [vmem:[#allocation42_spill] sm:$0xff] }
 0x210   :  { %18385 = vmatmul.mubr.f32.gmra.mrb[12].mxu1 %v22779_v49  ;;  %18850 = vmatmul.mubr.f32.gmra.mrb[26].mxu0 %v26559_v52  ;;  %v26563_v52 = vld [vmem:[#allocation40_spill] sm:$0xff]  ;;  %v26622_v49 = vld [vmem:[#allocation18_spill] sm:$0xff] }
 0x211   :  { %18387 = vmatprep.mubr.f32.mxu1 %v22834_v39  ;;  %18852 = vmatprep.mubr.f32.mxu0 %v22782_v37  ;;  %v26564_v37 = vld [vmem:[#allocation44_spill] sm:$0xff] }
 0x214   :  { %18388 = vmatmul.mubr.f32.gmra.mrb[14].mxu1 %v22805_v22  ;;  %18853 = vmatmul.mubr.f32.gmra.mrb[28].mxu0 %v22837_v18  ;;  %v26566_v18 = vld [vmem:[#allocation62_spill] sm:$0xff] }
 0x215   :  { %18392 = vmatprep.mubr.f32.mxu1 %v26560_v28  ;;  %18855 = vmatprep.mubr.f32.mxu0 %v22810_v47  ;;  %v26569_v47 = vld [vmem:[#allocation68_spill] sm:$0xff]  ;;  %v26608_v28 = vld [vmem:[#allocation6_spill] sm:$0xff] }
 0x218   :  { %18393 = vmatmul.mubr.f32.vlgmr.msra.gmra.mrb[0].mxu1 %v26561_v5  ;;  %18856 = vmatmul.mubr.f32.gmra.mrb[30].mxu0 %v22526_v4  ;;  %v26568_v4 = vld [vmem:[#allocation65_spill] sm:$0xff] }
 0x219   :  { %18395 = vmatprep.mubr.f32.mxu1 %v26562_v60  ;;  %18417 = vmatpush3.msra.mxu1 %v26544_v23  ;;  %v26570_v23 = vld [vmem:[#allocation82_spill] sm:$0xff] }
 0x21a   :  { %18860 = vmatprep.mubr.f32.mxu0 %v26563_v52  ;;  %18442 = vmatprep.subr.mxu1 %v22223_v20  ;;  %v26571_v52 = vld [vmem:[#allocation81_spill] sm:$0xff]  ;;  %v26578_v60 = vld [vmem:[#allocation118_spill] sm:$0xff] }
 0x21c   :  { %18396 = vmatmul.mubr.f32.gmra.mrb[2].mxu1 %v26564_v37  ;;  %18861 = vmatmul.mubr.f32.vlgmr.msra.gmra.mrb[16].mxu0 %v26565_v63  ;;  %v26573_v37 = vld [vmem:[#allocation91_spill] sm:$0xff]  ;;  %v26574_v63 = vld [vmem:[#allocation100_spill] sm:$0xff] }
 0x21d   :  { %18398 = vmatprep.mubr.f32.mxu1 %v26566_v18  ;;  %18863 = vmatprep.mubr.f32.mxu0 %v26567_v43  ;;  %v26575_v18 = vld [vmem:[#allocation99_spill] sm:$0xff]  ;;  %v26576_v43 = vld [vmem:[#allocation101_spill] sm:$0xff] }
 0x21e   :  { %18885 = vmatpush3.msra.mxu0 %v26549_v27  ;;  %v26577_v27 = vld [vmem:[#allocation110_spill] sm:$0xff] }
 0x21f   :  { %18910 = vmatprep.subr.mxu0 %v22241_v6 }
 0x220   :  { %18399 = vmatmul.mubr.f32.gmra.mrb[4].mxu1 %v26568_v4  ;;  %18864 = vmatmul.mubr.f32.gmra.mrb[18].mxu0 %v26569_v47  ;;  %v26579_v4 = vld [vmem:[#allocation117_spill] sm:$0xff]  ;;  %v26580_v47 = vld [vmem:[#allocation119_spill] sm:$0xff] }
 0x221   :  { %18401 = vmatprep.mubr.f32.mxu1 %v26570_v23  ;;  %18866 = vmatprep.mubr.f32.mxu0 %v26571_v52  ;;  %v26581_v23 = vld [vmem:[#allocation120_spill] sm:$0xff]  ;;  %v26582_v52 = vld [vmem:[#allocation126_spill] sm:$0xff] }
 0x224   :  { %18402 = vmatmul.mubr.f32.gmra.mrb[6].mxu1 %v26572_v40  ;;  %18867 = vmatmul.mubr.f32.gmra.mrb[20].mxu0 %v26573_v37  ;;  %v26583_v40 = vld [vmem:[#allocation121_spill] sm:$0xff]  ;;  %v26584_v37 = vld [vmem:[#allocation127_spill] sm:$0xff] }
 0x225   :  { %18404 = vmatprep.mubr.f32.mxu1 %v26574_v63  ;;  %18869 = vmatprep.mubr.f32.mxu0 %v26575_v18  ;;  %v26585_v63 = vld [vmem:[#allocation128_spill] sm:$0xff]  ;;  %v26586_v18 = vld [vmem:[#allocation133_spill] sm:$0xff] }
 0x228   :  { %18405 = vmatmul.mubr.f32.gmra.mrb[8].mxu1 %v26576_v43  ;;  %18870 = vmatmul.mubr.f32.gmra.mrb[22].mxu0 %v26577_v27  ;;  %v16703_v27 = vld [vmem:[%s25953_s3 + $0xc] sm:$0xf] }
 0x229   :  { %18407 = vmatprep.mubr.f32.mxu1 %v26578_v60  ;;  %18872 = vmatprep.mubr.f32.mxu0 %v26579_v4  ;;  %v2819_v4 = vsel %vm1655_vm1, %v16703_v27, 0 }
 0x22c   :  { %18408 = vmatmul.mubr.f32.gmra.mrb[10].mxu1 %v26580_v47  ;;  %18873 = vmatmul.mubr.f32.gmra.mrb[24].mxu0 %v26581_v23  ;;  %v26589_v23 = vld [vmem:[#allocation17_spill] sm:$0xff] }
 0x22d   :  { %18410 = vmatprep.mubr.f32.mxu1 %v26582_v52  ;;  %18875 = vmatprep.mubr.f32.mxu0 %v26583_v40  ;;  %v23055_v40 = vand.u32 4294901760, %v2819_v4  ;;  %v26594_v52 = vld [vmem:[#allocation3_spill] sm:$0xff] }
 0x230   :  { %18411 = vmatmul.mubr.f32.gmra.mrb[12].mxu1 %v26584_v37  ;;  %18876 = vmatmul.mubr.f32.gmra.mrb[26].mxu0 %v26585_v63  ;;  %v16704_v63 = vld [vmem:[%s25953_s3 + $0x1c] sm:$0xf]  ;;  %v26592_v37 = vld [vmem:[#allocation12_spill] sm:$0xff] }
 0x231   :  { %18413 = vmatprep.mubr.f32.mxu1 %v22884_v0  ;;  %18878 = vmatprep.mubr.f32.mxu0 %v26586_v18  ;;  %v6185_v27 = vsel %vm1655_vm1, %v16704_v63, 0  ;;  %v26591_v0 = vld [vmem:[#allocation20_spill] sm:$0xff] }
 0x234   :  { %18414 = vmatmul.mubr.f32.gmra.mrb[14].mxu1 %v22887_v12  ;;  %18879 = vmatmul.mubr.f32.gmra.mrb[28].mxu0 %v22890_v58 }
 0x235   :  { %18418 = vmatprep.mubr.f32.mxu1 %v22374_v44  ;;  %18881 = vmatprep.mubr.f32.mxu0 %v22893_v36  ;;  %v23064_v36 = vand.u32 4294901760, %v6185_v27 }
 0x237   :  { %v23095_v63 = vsub.f32 %v6185_v27, %v23064_v36 }
 0x238   :  { %18419 = vmatmul.mubr.f32.vlgmr.msra.gmra.mrb[0].mxu1 %v22372_v38  ;;  %18882 = vmatmul.mubr.f32.gmra.mrb[30].mxu0 %v22914_v2 }
 0x239   :  { %18421 = vmatprep.mubr.f32.mxu1 %v22412_v42  ;;  %18443 = vmatpush3.msra.mxu1 %v22223_v20  ;;  %v23085_v20 = vsub.f32 %v2819_v4, %v23055_v40  ;;  %v23104_v2 = vand.u32 4294901760, %v23095_v63 }
 0x23a   :  { %18886 = vmatprep.mubr.f32.mxu0 %v22397_v31  ;;  %18468 = vmatprep.subr.mxu1 %v23055_v40 }
 0x23b   :  { %26588 = vst [vmem:[#allocation10_spill] sm:$0xff] %v23104_v2  ;;  %v6417_v58 = vsub.f32 %v23095_v63, %v23104_v2 }
 0x23c   :  { %18422 = vmatmul.mubr.f32.gmra.mrb[2].mxu1 %v22415_v51  ;;  %18887 = vmatmul.mubr.f32.vlgmr.msra.gmra.mrb[16].mxu0 %v22417_v41 }
 0x23d   :  { %18424 = vmatprep.mubr.f32.mxu1 %v22499_v17  ;;  %18889 = vmatprep.mubr.f32.mxu0 %v22480_v1  ;;  %v23120_v18 = vand.u32 4294901760, %v6417_v58  ;;  %v26593_v58 = vld [vmem:[#allocation19_spill] sm:$0xff] }
 0x23e   :  { %18911 = vmatpush3.msra.mxu0 %v22241_v6  ;;  %v23092_v6 = vand.u32 4294901760, %v23085_v20  ;;  %v1391_v47 = vmul.f32 %v26594_v52, %v26593_v58  ;;  %v26598_v52 = vld [vmem:[#allocation23_spill] sm:$0xff]  ;;  %v26599_v58 = vld [vmem:[#allocation14_spill] sm:$0xff] }
 0x23f   :  { %18936 = vmatprep.subr.mxu0 %v23064_v36 }
 0x240   :  { %18425 = vmatmul.mubr.f32.gmra.mrb[4].mxu1 %v22494_v46  ;;  %18890 = vmatmul.mubr.f32.gmra.mrb[18].mxu0 %v22529_v61  ;;  %26587 = vst [vmem:[#allocation2_spill] sm:$0xff] %v23092_v6  ;;  %v3051_v4 = vsub.f32 %v23085_v20, %v23092_v6  ;;  %v2777_v60 = vsel %vm1606_vm3, %v1391_v47, 0 }
 0x241   :  { %18427 = vmatprep.mubr.f32.mxu1 %v22579_v7  ;;  %18892 = vmatprep.mubr.f32.mxu0 %v22552_v34  ;;  %v23155_v5 = vand.u32 4294901760, %v2777_v60 }
 0x242   :  { %v23110_v27 = vand.u32 4294901760, %v3051_v4  ;;  %v26590_v4 = vld [vmem:[#allocation9_spill] sm:$0xff] }
 0x243   :  { %v1389_v12 = vmul.f32 %v26590_v4, %v26589_v23  ;;  %26603 = vst [vmem:[#allocation3_spill] sm:$0xff] %v23155_v5 }
 0x244   :  { %18428 = vmatmul.mubr.f32.gmra.mrb[6].mxu1 %v22554_v59  ;;  %18893 = vmatmul.mubr.f32.gmra.mrb[20].mxu0 %v22581_v15 }
 0x245   :  { %18430 = vmatprep.mubr.f32.mxu1 %v22639_v24  ;;  %18895 = vmatprep.mubr.f32.mxu0 %v22570_v62  ;;  %v2771_v4 = vsel %vm1606_vm3, %v1389_v12, 0  ;;  %v1393_v12 = vmul.f32 %v26599_v58, %v26598_v52  ;;  %v26605_v52 = vld [vmem:[#allocation25_spill] sm:$0xff] }
 0x247   :  { %v2783_v58 = vsel %vm1606_vm3, %v1393_v12, 0  ;;  %v26611_v12 = vld [vmem:[#allocation34_spill] sm:$0xff] }
 0x248   :  { %18431 = vmatmul.mubr.f32.gmra.mrb[8].mxu1 %v22586_v19  ;;  %18896 = vmatmul.mubr.f32.gmra.mrb[22].mxu0 %v22649_v13 }
 0x249   :  { %18433 = vmatprep.mubr.f32.mxu1 %v22696_v55  ;;  %18898 = vmatprep.mubr.f32.mxu0 %v22597_v50 }
 0x24c   :  { %18434 = vmatmul.mubr.f32.gmra.mrb[10].mxu1 %v22651_v30  ;;  %18899 = vmatmul.mubr.f32.gmra.mrb[24].mxu0 %v22728_v10 }
 0x24d   :  { %18436 = vmatprep.mubr.f32.mxu1 %v22742_v56  ;;  %18901 = vmatprep.mubr.f32.mxu0 %v26538_v21 }
 0x250   :  { %18437 = vmatmul.mubr.f32.gmra.mrb[12].mxu1 %v22730_v57  ;;  %18902 = vmatmul.mubr.f32.gmra.mrb[26].mxu0 %v22744_v25 }
 0x251   :  { %18439 = vmatprep.mubr.f32.mxu1 %v22788_v35  ;;  %18904 = vmatprep.mubr.f32.mxu0 %v22740_v32 }
 0x254   :  { %18440 = vmatmul.mubr.f32.gmra.mrb[14].mxu1 %v22747_v16  ;;  %18905 = vmatmul.mubr.f32.gmra.mrb[28].mxu0 %v22790_v3 }
 0x255   :  { %18444 = vmatprep.mubr.f32.mxu1 %v22374_v44  ;;  %18907 = vmatprep.mubr.f32.mxu0 %v22772_v9 }
 0x258   :  { %18445 = vmatmul.mubr.f32.vlgmr.msra.gmra.mrb[0].mxu1 %v22372_v38  ;;  %18908 = vmatmul.mubr.f32.gmra.mrb[30].mxu0 %v26541_v45 }
 0x259   :  { %18447 = vmatprep.mubr.f32.mxu1 %v22412_v42  ;;  %18469 = vmatpush3.msra.mxu1 %v23055_v40 }
 0x25a   :  { %18912 = vmatprep.mubr.f32.mxu0 %v22397_v31  ;;  %18494 = vmatprep.subr.mxu1 %v23110_v27  ;;  %v1390_v31 = vmul.f32 %v26592_v37, %v26591_v0  ;;  %v26596_v37 = vld [vmem:[#allocation24_spill] sm:$0xff] }
 0x25b   :  { %v26597_v0 = vld [vmem:[#allocation4_spill] sm:$0xff] }
 0x25c   :  { %18448 = vmatmul.mubr.f32.gmra.mrb[2].mxu1 %v22415_v51  ;;  %18913 = vmatmul.mubr.f32.vlgmr.msra.gmra.mrb[16].mxu0 %v22417_v41  ;;  %v2774_v23 = vsel %vm1606_vm3, %v1390_v31, 0  ;;  %v1392_v41 = vmul.f32 %v26597_v0, %v26596_v37  ;;  %v26601_v31 = vld [vmem:[#allocation26_spill] sm:$0xff]  ;;  %v26606_v37 = vld [vmem:[#allocation15_spill] sm:$0xff] }
 0x25d   :  { %18450 = vmatprep.mubr.f32.mxu1 %v22499_v17  ;;  %18915 = vmatprep.mubr.f32.mxu0 %v22480_v1  ;;  %v23140_v1 = vand.u32 4294901760, %v2771_v4 }
 0x25e   :  { %18937 = vmatpush3.msra.mxu0 %v23064_v36  ;;  %v2780_v0 = vsel %vm1606_vm3, %v1392_v41, 0 }
 0x25f   :  { %18962 = vmatprep.subr.mxu0 %v23120_v18  ;;  %26595 = vst [vmem:[#allocation9_spill] sm:$0xff] %v23140_v1  ;;  %v23158_v47 = vsub.f32 %v2771_v4, %v23140_v1  ;;  %v23173_v41 = vand.u32 4294901760, %v2780_v0 }
 0x260   :  { %18451 = vmatmul.mubr.f32.gmra.mrb[4].mxu1 %v22494_v46  ;;  %18916 = vmatmul.mubr.f32.gmra.mrb[18].mxu0 %v22529_v61  ;;  %v26602_v61 = vld [vmem:[#allocation5_spill] sm:$0xff] }
 0x261   :  { %18453 = vmatprep.mubr.f32.mxu1 %v22579_v7  ;;  %18918 = vmatprep.mubr.f32.mxu0 %v22552_v34  ;;  %v23151_v34 = vand.u32 4294901760, %v2774_v23  ;;  %v1394_v43 = vmul.f32 %v26602_v61, %v26601_v31  ;;  %26604 = vst [vmem:[#allocation4_spill] sm:$0xff] %v23158_v47  ;;  %26610 = vst [vmem:[#allocation5_spill] sm:$0xff] %v23173_v41  ;;  %v23178_v31 = vand.u32 4294901760, %v2783_v58 }
 0x263   :  { %26600 = vst [vmem:[#allocation12_spill] sm:$0xff] %v23151_v34  ;;  %v23171_v61 = vsub.f32 %v2774_v23, %v23151_v34  ;;  %v2786_v4 = vsel %vm1606_vm3, %v1394_v43, 0  ;;  %26613 = vst [vmem:[#allocation15_spill] sm:$0xff] %v23178_v31 }
 0x264   :  { %18454 = vmatmul.mubr.f32.gmra.mrb[6].mxu1 %v22554_v59  ;;  %18919 = vmatmul.mubr.f32.gmra.mrb[20].mxu0 %v22581_v15  ;;  %v1395_v15 = vmul.f32 %v26606_v37, %v26605_v52  ;;  %v26612_v37 = vld [vmem:[#allocation16_spill] sm:$0xff]  ;;  %v23189_v23 = vand.u32 4294901760, %v2786_v4 }
 0x265   :  { %18456 = vmatprep.mubr.f32.mxu1 %v22639_v24  ;;  %18921 = vmatprep.mubr.f32.mxu0 %v22570_v62  ;;  %v26607_v62 = vld [vmem:[#allocation41_spill] sm:$0xff]  ;;  %26609 = vst [vmem:[#allocation14_spill] sm:$0xff] %v23171_v61  ;;  %v1397_v52 = vmul.f32 %v26612_v37, %v26611_v12  ;;  %v26618_v37 = vld [vmem:[#allocation7_spill] sm:$0xff] }
 0x266   :  { %v1396_v22 = vmul.f32 %v26608_v28, %v26607_v62  ;;  %v23184_v28 = vsub.f32 %v2777_v60, %v23155_v5  ;;  %v2789_v62 = vsel %vm1606_vm3, %v1395_v15, 0  ;;  %26616 = vst [vmem:[#allocation148_spill] sm:$0xff] %v23189_v23  ;;  %v23197_v60 = vand.u32 4294901760, %v23171_v61 }
 0x267   :  { %v23200_v15 = vsub.f32 %v2780_v0, %v23173_v41  ;;  %v2795_v39 = vsel %vm1606_vm3, %v1397_v52, 0  ;;  %v23205_v48 = vand.u32 4294901760, %v2789_v62  ;;  %v23220_v52 = vsub.f32 %v2786_v4, %v23189_v23 }
 0x268   :  { %18457 = vmatmul.mubr.f32.gmra.mrb[8].mxu1 %v22586_v19  ;;  %18922 = vmatmul.mubr.f32.gmra.mrb[22].mxu0 %v22649_v13  ;;  %v23181_v13 = vand.u32 4294901760, %v23158_v47  ;;  %26615 = vst [vmem:[#allocation16_spill] sm:$0xff] %v23184_v28  ;;  %v2792_v43 = vsel %vm1606_vm3, %v1396_v22, 0  ;;  %26619 = vst [vmem:[#allocation7_spill] sm:$0xff] %v23197_v60  ;;  %v2900_v4 = vsub.f32 %v23171_v61, %v23197_v60 }
 0x269   :  { %18459 = vmatprep.mubr.f32.mxu1 %v22696_v55  ;;  %18924 = vmatprep.mubr.f32.mxu0 %v22597_v50  ;;  %v26617_v50 = vld [vmem:[#allocation52_spill] sm:$0xff]  ;;  %26620 = vst [vmem:[#allocation149_spill] sm:$0xff] %v23200_v15  ;;  %26623 = vst [vmem:[#allocation18_spill] sm:$0xff] %v23205_v48  ;;  %v23269_v6 = vand.u32 4294901760, %v23220_v52 }
 0x26a   :  { %26614 = vst [vmem:[#allocation6_spill] sm:$0xff] %v23181_v13  ;;  %v1398_v12 = vmul.f32 %v26618_v37, %v26617_v50  ;;  %v2890_v22 = vsub.f32 %v23158_v47, %v23181_v13  ;;  %v23210_v37 = vand.u32 4294901760, %v23184_v28  ;;  %v23213_v50 = vsub.f32 %v2783_v58, %v23178_v31  ;;  %26627 = vst [vmem:[#allocation153_spill] sm:$0xff] %v23220_v52  ;;  %v26630_v13 = vld [vmem:[#allocation21_spill] sm:$0xff] }
 0x26b   :  { %v23264_v2 = vand.u32 4294901760, %v2900_v4  ;;  %26645 = vst [vmem:[#allocation11_spill] sm:$0xff] %v23269_v6 }
 0x26c   :  { %18460 = vmatmul.mubr.f32.gmra.mrb[10].mxu1 %v22651_v30  ;;  %18925 = vmatmul.mubr.f32.gmra.mrb[24].mxu0 %v22728_v10  ;;  %v26621_v10 = vld [vmem:[#allocation50_spill] sm:$0xff]  ;;  %26624 = vst [vmem:[#allocation150_spill] sm:$0xff] %v23210_v37  ;;  %26625 = vst [vmem:[#allocation151_spill] sm:$0xff] %v23213_v50  ;;  %v2798_v0 = vsel %vm1606_vm3, %v1398_v12, 0  ;;  %v23237_v53 = vand.u32 4294901760, %v2890_v22  ;;  %v23242_v12 = vand.u32 4294901760, %v23213_v50 }
 0x26d   :  { %18462 = vmatprep.mubr.f32.mxu1 %v22742_v56  ;;  %18927 = vmatprep.mubr.f32.mxu0 %v26538_v21  ;;  %v1399_v11 = vmul.f32 %v26622_v49, %v26621_v10  ;;  %v23215_v21 = vand.u32 4294901760, %v2792_v43  ;;  %v23222_v49 = vand.u32 4294901760, %v2795_v39  ;;  %v26629_v10 = vld [vmem:[#allocation70_spill] sm:$0xff]  ;;  %v23250_v8 = vand.u32 4294901760, %v2798_v0 }
 0x26e   :  { %v1401_v26 = vmul.f32 %v26630_v13, %v26629_v10  ;;  %26634 = vst [vmem:[#allocation8_spill] sm:$0xff] %v23237_v53  ;;  %v2910_v13 = vsub.f32 %v23184_v28, %v23210_v37  ;;  %26635 = vst [vmem:[#allocation155_spill] sm:$0xff] %v23242_v12  ;;  %v23245_v10 = vsub.f32 %v2789_v62, %v23205_v48  ;;  %v26641_v37 = vld [vmem:[#allocation22_spill] sm:$0xff] }
 0x26f   :  { %26626 = vst [vmem:[#allocation152_spill] sm:$0xff] %v23215_v21  ;;  %26628 = vst [vmem:[#allocation154_spill] sm:$0xff] %v23222_v49  ;;  %v2801_v58 = vsel %vm1606_vm3, %v1399_v11, 0  ;;  %v23248_v11 = vsub.f32 %v2792_v43, %v23215_v21  ;;  %v1402_v62 = vmul.f32 %v26643_v33, %v26642_v54  ;;  %v2804_v43 = vsel %vm1606_vm3, %v1400_v29, 0 }
 0x270   :  { %18463 = vmatmul.mubr.f32.gmra.mrb[12].mxu1 %v22730_v57  ;;  %18928 = vmatmul.mubr.f32.gmra.mrb[26].mxu0 %v22744_v25  ;;  %v23235_v25 = vand.u32 4294901760, %v23200_v15  ;;  %26636 = vst [vmem:[#allocation156_spill] sm:$0xff] %v23245_v10  ;;  %26638 = vst [vmem:[#allocation158_spill] sm:$0xff] %v23250_v8  ;;  %v23254_v22 = vand.u32 4294901760, %v2801_v58  ;;  %v2807_v14 = vsel %vm1606_vm3, %v1401_v26, 0  ;;  %v23271_v26 = vand.u32 4294901760, %v2910_v13 }
 0x271   :  { %18465 = vmatprep.mubr.f32.mxu1 %v22788_v35  ;;  %18930 = vmatprep.mubr.f32.mxu0 %v22740_v32  ;;  %26637 = vst [vmem:[#allocation157_spill] sm:$0xff] %v23248_v11  ;;  %v26640_v32 = vld [vmem:[#allocation90_spill] sm:$0xff]  ;;  %26644 = vst [vmem:[#allocation22_spill] sm:$0xff] %v23264_v2  ;;  %v23276_v33 = vand.u32 4294901760, %v23245_v10  ;;  %v23282_v29 = vsub.f32 %v2798_v0, %v23250_v8  ;;  %v23286_v4 = vand.u32 4294901760, %v2807_v14  ;;  %v23288_v13 = vand.u32 4294901760, %v2804_v43 }
 0x272   :  { %26633 = vst [vmem:[#allocation21_spill] sm:$0xff] %v23235_v25  ;;  %26639 = vst [vmem:[#allocation159_spill] sm:$0xff] %v23254_v22  ;;  %v1403_v60 = vmul.f32 %v26641_v37, %v26640_v32  ;;  %v2930_v37 = vsub.f32 %v23213_v50, %v23242_v12  ;;  %v23279_v32 = vsub.f32 %v2795_v39, %v23222_v49  ;;  %v26652_v39 = vld [vmem:[#allocation102_spill] sm:$0xff]  ;;  %v26654_v12 = vld [vmem:[#allocation36_spill] sm:$0xff] }
 0x273   :  { %26646 = vst [vmem:[#allocation160_spill] sm:$0xff] %v23271_v26  ;;  %26647 = vst [vmem:[#allocation161_spill] sm:$0xff] %v23276_v33 }
 0x274   :  { %18466 = vmatmul.mubr.f32.gmra.mrb[14].mxu1 %v22747_v16  ;;  %18931 = vmatmul.mubr.f32.gmra.mrb[28].mxu0 %v22790_v3  ;;  %v2920_v3 = vsub.f32 %v23200_v15, %v23235_v25  ;;  %26648 = vst [vmem:[#allocation162_spill] sm:$0xff] %v23279_v32  ;;  %26649 = vst [vmem:[#allocation163_spill] sm:$0xff] %v23282_v29  ;;  %v2813_v54 = vsel %vm1606_vm3, %v1403_v60, 0  ;;  %v23302_v25 = vand.u32 4294901760, %v23248_v11  ;;  %v23305_v60 = vand.u32 4294901760, %v2930_v37 }
 0x275   :  { %18470 = vmatprep.mubr.f32.mxu1 %v23237_v53  ;;  %18933 = vmatprep.mubr.f32.mxu0 %v22772_v9  ;;  %26650 = vst [vmem:[#allocation164_spill] sm:$0xff] %v23286_v4  ;;  %26651 = vst [vmem:[#allocation165_spill] sm:$0xff] %v23288_v13  ;;  %v2810_v9 = vsel %vm1606_vm3, %v1402_v62, 0  ;;  %v26653_v53 = vld [vmem:[#allocation13_spill] sm:$0xff]  ;;  %v23310_v62 = vand.u32 4294901760, %v23279_v32 }
 0x276   :  { %v1404_v0 = vmul.f32 %v26653_v53, %v26652_v39  ;;  %26656 = vst [vmem:[#allocation166_spill] sm:$0xff] %v23302_v25  ;;  %26657 = vst [vmem:[#allocation167_spill] sm:$0xff] %v23305_v60  ;;  %v23313_v53 = vsub.f32 %v2801_v58, %v23254_v22  ;;  %v23318_v39 = vsub.f32 %v2804_v43, %v23288_v13  ;;  %v23322_v37 = vand.u32 4294901760, %v2810_v9 }
 0x277   :  { %26658 = vst [vmem:[#allocation168_spill] sm:$0xff] %v23310_v62  ;;  %v2960_v58 = vsub.f32 %v23248_v11, %v23302_v25 }
 0x278   :  { %18471 = vmatmul.mubr.f32.vlgmr.msra.gmra.mrb[16].mxu1 %v23264_v2  ;;  %18934 = vmatmul.mubr.f32.gmra.mrb[30].mxu0 %v26541_v45  ;;  %v23297_v2 = vand.u32 4294901760, %v2920_v3  ;;  %v2940_v45 = vsub.f32 %v23220_v52, %v23269_v6  ;;  %26659 = vst [vmem:[#allocation169_spill] sm:$0xff] %v23313_v53  ;;  %v26660_v3 = vld [vmem:[#allocation39_spill] sm:$0xff]  ;;  %26661 = vst [vmem:[#allocation170_spill] sm:$0xff] %v23318_v39  ;;  %v23360_v25 = vand.u32 4294901760, %v23318_v39 }
 0x279   :  { %18473 = vmatprep.mubr.f32.mxu1 %v23271_v26  ;;  %18495 = vmatpush3.msra.mxu1 %v23110_v27  ;;  %v2950_v27 = vsub.f32 %v23245_v10, %v23276_v33  ;;  %v23320_v26 = vand.u32 4294901760, %v2813_v54  ;;  %26663 = vst [vmem:[#allocation172_spill] sm:$0xff] %v23322_v37  ;;  %v2816_v33 = vsel %vm1606_vm3, %v1404_v0, 0  ;;  %v23343_v0 = vsub.f32 %v2807_v14, %v23286_v4 }
 0x27a   :  { %18938 = vmatprep.mubr.f32.mxu0 %v26654_v12  ;;  %26655 = vst [vmem:[#allocation13_spill] sm:$0xff] %v23297_v2  ;;  %18520 = vmatprep.subr.mxu1 %v23085_v20  ;;  %v26664_v12 = vld [vmem:[#allocation49_spill] sm:$0xff]  ;;  %v23327_v6 = vand.u32 4294901760, %v2940_v45  ;;  %v26670_v45 = vld [vmem:[#allocation51_spill] sm:$0xff]  ;;  %26675 = vst [vmem:[#allocation181_spill] sm:$0xff] %v23360_v25 }
 0x27b   :  { %26662 = vst [vmem:[#allocation171_spill] sm:$0xff] %v23320_v26  ;;  %v23335_v43 = vand.u32 4294901760, %v2950_v27  ;;  %26669 = vst [vmem:[#allocation177_spill] sm:$0xff] %v23343_v0  ;;  %v23353_v27 = vand.u32 4294901760, %v2816_v33 }
 0x27c   :  { %18474 = vmatmul.mubr.f32.gmra.mrb[18].mxu1 %v23297_v2  ;;  %18939 = vmatmul.mubr.f32.vlgmr.msra.gmra.mrb[16].mxu0 %v26660_v3  ;;  %26665 = vst [vmem:[#allocation173_spill] sm:$0xff] %v23327_v6  ;;  %v23332_v2 = vand.u32 4294901760, %v23282_v29  ;;  %v2970_v3 = vsub.f32 %v23279_v32, %v23310_v62  ;;  %v23355_v62 = vand.u32 4294901760, %v2960_v58  ;;  %v26679_v58 = vld [vmem:[#allocation79_spill] sm:$0xff] }
 0x27d   :  { %18476 = vmatprep.mubr.f32.mxu1 %v23305_v60  ;;  %18941 = vmatprep.mubr.f32.mxu0 %v26664_v12  ;;  %26667 = vst [vmem:[#allocation175_spill] sm:$0xff] %v23335_v43  ;;  %v23340_v60 = vand.u32 4294901760, %v23313_v53  ;;  %v23349_v12 = vsub.f32 %v2810_v9, %v23322_v37  ;;  %26673 = vst [vmem:[#allocation179_spill] sm:$0xff] %v23353_v27 }
 0x27e   :  { %26666 = vst [vmem:[#allocation174_spill] sm:$0xff] %v23332_v2  ;;  %18963 = vmatpush3.msra.mxu0 %v23120_v18  ;;  %v26672_v18 = vld [vmem:[#allocation75_spill] sm:$0xff]  ;;  %26674 = vst [vmem:[#allocation180_spill] sm:$0xff] %v23355_v62  ;;  %v2980_v14 = vsub.f32 %v23282_v29, %v23332_v2 }
 0x27f   :  { %26668 = vst [vmem:[#allocation176_spill] sm:$0xff] %v23340_v60  ;;  %18988 = vmatprep.subr.mxu0 %v23095_v63  ;;  %26671 = vst [vmem:[#allocation178_spill] sm:$0xff] %v23349_v12  ;;  %v2990_v9 = vsub.f32 %v23313_v53, %v23340_v60  ;;  %v3000_v60 = vsub.f32 %v23318_v39, %v23360_v25  ;;  %v23384_v53 = vand.u32 4294901760, %v23349_v12 }
 0x280   :  { %18477 = vmatmul.mubr.f32.gmra.mrb[20].mxu1 %v23327_v6  ;;  %18942 = vmatmul.mubr.f32.gmra.mrb[18].mxu0 %v26670_v45  ;;  %v23362_v6 = vand.u32 4294901760, %v2970_v3  ;;  %v23367_v45 = vand.u32 4294901760, %v23343_v0  ;;  %v23377_v3 = vsub.f32 %v2816_v33, %v23353_v27  ;;  %v23379_v2 = vand.u32 4294901760, %v2980_v14  ;;  %v26686_v33 = vld [vmem:[#allocation95_spill] sm:$0xff]  ;;  %v26687_v14 = vld [vmem:[#allocation114_spill] sm:$0xff] }
 0x281   :  { %18479 = vmatprep.mubr.f32.mxu1 %v23335_v43  ;;  %18944 = vmatprep.mubr.f32.mxu0 %v26672_v18  ;;  %v23370_v43 = vsub.f32 %v2813_v54, %v23320_v26  ;;  %v26680_v18 = vld [vmem:[#allocation89_spill] sm:$0xff]  ;;  %26683 = vst [vmem:[#allocation187_spill] sm:$0xff] %v23384_v53  ;;  %v23386_v54 = vand.u32 4294901760, %v2990_v9  ;;  %v3020_v9 = vsub.f32 %v23349_v12, %v23384_v53 }
 0x282   :  { %26676 = vst [vmem:[#allocation182_spill] sm:$0xff] %v23362_v6  ;;  %26677 = vst [vmem:[#allocation183_spill] sm:$0xff] %v23367_v45 }
 0x283   :  { %26678 = vst [vmem:[#allocation184_spill] sm:$0xff] %v23370_v43  ;;  %26681 = vst [vmem:[#allocation185_spill] sm:$0xff] %v23377_v3 }
 0x284   :  { %18480 = vmatmul.mubr.f32.gmra.mrb[22].mxu1 %v23355_v62  ;;  %18945 = vmatmul.mubr.f32.gmra.mrb[20].mxu0 %v26679_v58  ;;  %26682 = vst [vmem:[#allocation186_spill] sm:$0xff] %v23379_v2  ;;  %26684 = vst [vmem:[#allocation188_spill] sm:$0xff] %v23386_v54  ;;  %v3010_v62 = vsub.f32 %v23343_v0, %v23367_v45  ;;  %v23402_v58 = vand.u32 4294901760, %v23377_v3 }
 0x285   :  { %18482 = vmatprep.mubr.f32.mxu1 %v23362_v6  ;;  %18947 = vmatprep.mubr.f32.mxu0 %v26680_v18  ;;  %v23391_v6 = vand.u32 4294901760, %v23370_v43  ;;  %v23397_v18 = vand.u32 4294901760, %v3000_v60  ;;  %v23412_v60 = vand.u32 4294901760, %v3020_v9  ;;  %v26699_v9 = vld [vmem:[#allocation143_spill] sm:$0xff] }
 0x286   :  { %26689 = vst [vmem:[#allocation191_spill] sm:$0xff] %v23402_v58  ;;  %v23404_v45 = vand.u32 4294901760, %v3010_v62  ;;  %v26695_v62 = vld [vmem:[#allocation130_spill] sm:$0xff] }
 0x287   :  { %26685 = vst [vmem:[#allocation189_spill] sm:$0xff] %v23391_v6  ;;  %26688 = vst [vmem:[#allocation190_spill] sm:$0xff] %v23397_v18  ;;  %v3030_v25 = vsub.f32 %v23370_v43, %v23391_v6 }
 0x288   :  { %18483 = vmatmul.mubr.f32.gmra.mrb[24].mxu1 %v23379_v2  ;;  %18948 = vmatmul.mubr.f32.gmra.mrb[22].mxu0 %v26686_v33  ;;  %26690 = vst [vmem:[#allocation192_spill] sm:$0xff] %v23404_v45  ;;  %v26691_v2 = vld [vmem:[#allocation116_spill] sm:$0xff]  ;;  %26693 = vst [vmem:[#allocation193_spill] sm:$0xff] %v23412_v60 }
 0x289   :  { %18485 = vmatprep.mubr.f32.mxu1 %v23386_v54  ;;  %18950 = vmatprep.mubr.f32.mxu0 %v26687_v14  ;;  %v26692_v54 = vld [vmem:[#allocation129_spill] sm:$0xff]  ;;  %v3040_v14 = vsub.f32 %v23377_v3, %v23402_v58  ;;  %v23416_v33 = vand.u32 4294901760, %v3030_v25 }
 0x28a   :  { %v26700_v25 = vld [vmem:[#allocation145_spill] sm:$0xff] }
 0x28b   :  { %26694 = vst [vmem:[#allocation194_spill] sm:$0xff] %v23416_v33 }
 0x28c   :  { %18486 = vmatmul.mubr.f32.gmra.mrb[26].mxu1 %v23397_v18  ;;  %18951 = vmatmul.mubr.f32.gmra.mrb[24].mxu0 %v26691_v2  ;;  %v26696_v18 = vld [vmem:[#allocation138_spill] sm:$0xff]  ;;  %v23422_v2 = vand.u32 4294901760, %v3040_v14  ;;  %v26703_v14 = vld [vmem:[#allocation27_spill] sm:$0xff] }
 0x28d   :  { %18488 = vmatprep.mubr.f32.mxu1 %v23404_v45  ;;  %18953 = vmatprep.mubr.f32.mxu0 %v26692_v54  ;;  %v26698_v45 = vld [vmem:[#allocation140_spill] sm:$0xff] }
 0x28e   :  { %26697 = vst [vmem:[#allocation130_spill] sm:$0xff] %v23422_v2 }
 0x290   :  { %18489 = vmatmul.mubr.f32.gmra.mrb[28].mxu1 %v23412_v60  ;;  %18954 = vmatmul.mubr.f32.gmra.mrb[26].mxu0 %v26695_v62  ;;  %v26711_v60 = vld [vmem:[#allocation169_spill] sm:$0xff] }
 0x291   :  { %18491 = vmatprep.mubr.f32.mxu1 %v23416_v33  ;;  %18956 = vmatprep.mubr.f32.mxu0 %v26696_v18  ;;  %v26710_v33 = vld [vmem:[#allocation69_spill] sm:$0xff] }
 0x294   :  { %18492 = vmatmul.mubr.f32.gmra.mrb[30].mxu1 %v23422_v2  ;;  %18957 = vmatmul.mubr.f32.gmra.mrb[28].mxu0 %v26698_v45  ;;  %v26707_v2 = vld [vmem:[#allocation56_spill] sm:$0xff] }
 0x295   :  { %18496 = vmatprep.mubr.f32.mxu1 %v23140_v1  ;;  %18959 = vmatprep.mubr.f32.mxu0 %v26699_v9 }
 0x298   :  { %18497 = vmatmul.mubr.f32.vlgmr.msra.gmra.mrb[16].mxu1 %v23151_v34  ;;  %18960 = vmatmul.mubr.f32.gmra.mrb[30].mxu0 %v26700_v25 }
 0x299   :  { %18499 = vmatprep.mubr.f32.mxu1 %v23155_v5  ;;  %18521 = vmatpush3.msra.mxu1 %v23085_v20  ;;  %v26701_v20 = vld [vmem:[#allocation28_spill] sm:$0xff] }
 0x29a   :  { %18964 = vmatprep.mubr.f32.mxu0 %v22374_v44  ;;  %18546 = vmatprep.subr.mxu1 %v23055_v40 }
 0x29c   :  { %18500 = vmatmul.mubr.f32.gmra.mrb[18].mxu1 %v23173_v41  ;;  %18965 = vmatmul.mubr.f32.vlgmr.msra.gmra.mrb[16].mxu0 %v22372_v38 }
 0x29d   :  { %18502 = vmatprep.mubr.f32.mxu1 %v23178_v31  ;;  %18967 = vmatprep.mubr.f32.mxu0 %v22412_v42 }
 0x29e   :  { %18989 = vmatpush3.msra.mxu0 %v23095_v63  ;;  %v26702_v63 = vld [vmem:[#allocation2_spill] sm:$0xff] }
 0x29f   :  { %19014 = vmatprep.subr.mxu0 %v23064_v36 }
 0x2a0   :  { %18503 = vmatmul.mubr.f32.gmra.mrb[20].mxu1 %v23189_v23  ;;  %18968 = vmatmul.mubr.f32.gmra.mrb[18].mxu0 %v22415_v51 }
 0x2a1   :  { %18505 = vmatprep.mubr.f32.mxu1 %v23205_v48  ;;  %18970 = vmatprep.mubr.f32.mxu0 %v22499_v17 }
 0x2a4   :  { %18506 = vmatmul.mubr.f32.gmra.mrb[22].mxu1 %v23215_v21  ;;  %18971 = vmatmul.mubr.f32.gmra.mrb[20].mxu0 %v22494_v46 }
 0x2a5   :  { %18508 = vmatprep.mubr.f32.mxu1 %v23222_v49  ;;  %18973 = vmatprep.mubr.f32.mxu0 %v22579_v7 }
 0x2a8   :  { %18509 = vmatmul.mubr.f32.gmra.mrb[24].mxu1 %v23250_v8  ;;  %18974 = vmatmul.mubr.f32.gmra.mrb[22].mxu0 %v22554_v59 }
 0x2a9   :  { %18511 = vmatprep.mubr.f32.mxu1 %v23254_v22  ;;  %18976 = vmatprep.mubr.f32.mxu0 %v22639_v24 }
 0x2ac   :  { %18512 = vmatmul.mubr.f32.gmra.mrb[26].mxu1 %v23288_v13  ;;  %18977 = vmatmul.mubr.f32.gmra.mrb[24].mxu0 %v22586_v19 }
 0x2ad   :  { %18514 = vmatprep.mubr.f32.mxu1 %v23286_v4  ;;  %18979 = vmatprep.mubr.f32.mxu0 %v22696_v55 }
 0x2b0   :  { %18515 = vmatmul.mubr.f32.gmra.mrb[28].mxu1 %v23322_v37  ;;  %18980 = vmatmul.mubr.f32.gmra.mrb[26].mxu0 %v22651_v30 }
 0x2b1   :  { %18517 = vmatprep.mubr.f32.mxu1 %v23320_v26  ;;  %18982 = vmatprep.mubr.f32.mxu0 %v22742_v56 }
 0x2b4   :  { %18518 = vmatmul.mubr.f32.gmra.mrb[30].mxu1 %v23353_v27  ;;  %18983 = vmatmul.mubr.f32.gmra.mrb[28].mxu0 %v22730_v57 }
 0x2b5   :  { %18522 = vmatprep.mubr.f32.mxu1 %v23158_v47  ;;  %18985 = vmatprep.mubr.f32.mxu0 %v22788_v35  ;;  %v26704_v47 = vld [vmem:[#allocation35_spill] sm:$0xff] }
 0x2b8   :  { %18523 = vmatmul.mubr.f32.vlgmr.msra.gmra.mrb[16].mxu1 %v23171_v61  ;;  %18986 = vmatmul.mubr.f32.gmra.mrb[30].mxu0 %v22747_v16  ;;  %v26705_v61 = vld [vmem:[#allocation10_spill] sm:$0xff] }
 0x2b9   :  { %18525 = vmatprep.mubr.f32.mxu1 %v23184_v28  ;;  %18547 = vmatpush3.msra.mxu1 %v23055_v40  ;;  %v26706_v28 = vld [vmem:[#allocation37_spill] sm:$0xff] }
 0x2ba   :  { %18990 = vmatprep.mubr.f32.mxu0 %v26701_v20  ;;  %18572 = vmatprep.subr.mxu1 %v26702_v63 }
 0x2bc   :  { %18526 = vmatmul.mubr.f32.gmra.mrb[18].mxu1 %v23200_v15  ;;  %18991 = vmatmul.mubr.f32.vlgmr.msra.gmra.mrb[16].mxu0 %v26703_v14  ;;  %v26708_v15 = vld [vmem:[#allocation55_spill] sm:$0xff] }
 0x2bd   :  { %18528 = vmatprep.mubr.f32.mxu1 %v23213_v50  ;;  %18993 = vmatprep.mubr.f32.mxu0 %v26704_v47  ;;  %v26709_v50 = vld [vmem:[#allocation72_spill] sm:$0xff] }
 0x2be   :  { %19015 = vmatpush3.msra.mxu0 %v23064_v36 }
 0x2bf   :  { %19040 = vmatprep.subr.mxu0 %v26705_v61 }
 0x2c0   :  { %18529 = vmatmul.mubr.f32.gmra.mrb[20].mxu1 %v23220_v52  ;;  %18994 = vmatmul.mubr.f32.gmra.mrb[18].mxu0 %v26706_v28  ;;  %v26712_v52 = vld [vmem:[#allocation84_spill] sm:$0xff] }
 0x2c1   :  { %18531 = vmatprep.mubr.f32.mxu1 %v23245_v10  ;;  %18996 = vmatprep.mubr.f32.mxu0 %v26707_v2  ;;  %v26713_v10 = vld [vmem:[#allocation74_spill] sm:$0xff] }
 0x2c4   :  { %18532 = vmatmul.mubr.f32.gmra.mrb[22].mxu1 %v23248_v11  ;;  %18997 = vmatmul.mubr.f32.gmra.mrb[20].mxu0 %v26708_v15  ;;  %v26714_v11 = vld [vmem:[#allocation93_spill] sm:$0xff] }
 0x2c5   :  { %18534 = vmatprep.mubr.f32.mxu1 %v23279_v32  ;;  %18999 = vmatprep.mubr.f32.mxu0 %v26709_v50  ;;  %v26715_v32 = vld [vmem:[#allocation86_spill] sm:$0xff] }
 0x2c8   :  { %18535 = vmatmul.mubr.f32.gmra.mrb[24].mxu1 %v23282_v29  ;;  %19000 = vmatmul.mubr.f32.gmra.mrb[22].mxu0 %v26710_v33  ;;  %v26716_v29 = vld [vmem:[#allocation111_spill] sm:$0xff] }
 0x2c9   :  { %18537 = vmatprep.mubr.f32.mxu1 %v26711_v60  ;;  %19002 = vmatprep.mubr.f32.mxu0 %v26712_v52  ;;  %v26717_v60 = vld [vmem:[#allocation106_spill] sm:$0xff]  ;;  %v26759_v33 = vld [vmem:[#allocation51_spill] sm:$0xff] }
 0x2ca   :  { %v26718_v52 = vld [vmem:[#allocation6_spill] sm:$0xff] }
 0x2cc   :  { %18538 = vmatmul.mubr.f32.gmra.mrb[26].mxu1 %v23318_v39  ;;  %19003 = vmatmul.mubr.f32.gmra.mrb[24].mxu0 %v26713_v10  ;;  %v26719_v39 = vld [vmem:[#allocation122_spill] sm:$0xff]  ;;  %v26720_v10 = vld [vmem:[#allocation7_spill] sm:$0xff] }
 0x2cd   :  { %18540 = vmatprep.mubr.f32.mxu1 %v23343_v0  ;;  %19005 = vmatprep.mubr.f32.mxu0 %v26714_v11  ;;  %v26721_v0 = vld [vmem:[#allocation113_spill] sm:$0xff]  ;;  %v26722_v11 = vld [vmem:[#allocation150_spill] sm:$0xff] }
 0x2d0   :  { %18541 = vmatmul.mubr.f32.gmra.mrb[28].mxu1 %v23349_v12  ;;  %19006 = vmatmul.mubr.f32.gmra.mrb[26].mxu0 %v26715_v32  ;;  %v26723_v12 = vld [vmem:[#allocation30_spill] sm:$0xff] }
 0x2d1   :  { %18543 = vmatprep.mubr.f32.mxu1 %v23370_v43  ;;  %19008 = vmatprep.mubr.f32.mxu0 %v26716_v29  ;;  %v26724_v43 = vld [vmem:[#allocation21_spill] sm:$0xff] }
 0x2d4   :  { %18544 = vmatmul.mubr.f32.gmra.mrb[30].mxu1 %v23377_v3  ;;  %19009 = vmatmul.mubr.f32.gmra.mrb[28].mxu0 %v26717_v60  ;;  %v26725_v3 = vld [vmem:[#allocation31_spill] sm:$0xff] }
 0x2d5   :  { %18548 = vmatprep.mubr.f32.mxu1 %v26718_v52  ;;  %19011 = vmatprep.mubr.f32.mxu0 %v26719_v39  ;;  %v26726_v60 = vld [vmem:[#allocation155_spill] sm:$0xff]  ;;  %v26727_v52 = vld [vmem:[#allocation42_spill] sm:$0xff]  ;;  %v26738_v39 = vld [vmem:[#allocation176_spill] sm:$0xff] }
 0x2d8   :  { %18549 = vmatmul.mubr.f32.vlgmr.msra.gmra.mrb[16].mxu1 %v26720_v10  ;;  %19012 = vmatmul.mubr.f32.gmra.mrb[30].mxu0 %v26721_v0  ;;  %v26728_v10 = vld [vmem:[#allocation11_spill] sm:$0xff]  ;;  %v26732_v0 = vld [vmem:[#allocation166_spill] sm:$0xff] }
 0x2d9   :  { %18551 = vmatprep.mubr.f32.mxu1 %v26722_v11  ;;  %18573 = vmatpush3.msra.mxu1 %v26702_v63  ;;  %v26729_v11 = vld [vmem:[#allocation44_spill] sm:$0xff]  ;;  %v26730_v63 = vld [vmem:[#allocation161_spill] sm:$0xff] }
 0x2da   :  { %19016 = vmatprep.mubr.f32.mxu0 %v26723_v12  ;;  %18598 = vmatprep.subr.mxu1 %v23055_v40  ;;  %v26731_v12 = vld [vmem:[#allocation62_spill] sm:$0xff] }
 0x2dc   :  { %18552 = vmatmul.mubr.f32.gmra.mrb[18].mxu1 %v26724_v43  ;;  %19017 = vmatmul.mubr.f32.vlgmr.msra.gmra.mrb[16].mxu0 %v26725_v3  ;;  %v26733_v43 = vld [vmem:[#allocation65_spill] sm:$0xff]  ;;  %v26734_v3 = vld [vmem:[#allocation168_spill] sm:$0xff] }
 0x2dd   :  { %18554 = vmatprep.mubr.f32.mxu1 %v26726_v60  ;;  %19019 = vmatprep.mubr.f32.mxu0 %v26727_v52  ;;  %v26735_v60 = vld [vmem:[#allocation82_spill] sm:$0xff] }
 0x2de   :  { %19041 = vmatpush3.msra.mxu0 %v26705_v61  ;;  %v26736_v52 = vld [vmem:[#allocation174_spill] sm:$0xff]  ;;  %v26737_v61 = vld [vmem:[#allocation83_spill] sm:$0xff] }
 0x2df   :  { %19066 = vmatprep.subr.mxu0 %v23064_v36 }
 0x2e0   :  { %18555 = vmatmul.mubr.f32.gmra.mrb[20].mxu1 %v26728_v10  ;;  %19020 = vmatmul.mubr.f32.gmra.mrb[18].mxu0 %v26729_v11  ;;  %v26739_v10 = vld [vmem:[#allocation100_spill] sm:$0xff]  ;;  %v26740_v11 = vld [vmem:[#allocation181_spill] sm:$0xff] }
 0x2e1   :  { %18557 = vmatprep.mubr.f32.mxu1 %v26730_v63  ;;  %19022 = vmatprep.mubr.f32.mxu0 %v26731_v12  ;;  %v26741_v63 = vld [vmem:[#allocation101_spill] sm:$0xff]  ;;  %v26742_v12 = vld [vmem:[#allocation183_spill] sm:$0xff] }
 0x2e4   :  { %18558 = vmatmul.mubr.f32.gmra.mrb[22].mxu1 %v26732_v0  ;;  %19023 = vmatmul.mubr.f32.gmra.mrb[20].mxu0 %v26733_v43  ;;  %v26743_v0 = vld [vmem:[#allocation118_spill] sm:$0xff] }
 0x2e5   :  { %18560 = vmatprep.mubr.f32.mxu1 %v26734_v3  ;;  %19025 = vmatprep.mubr.f32.mxu0 %v26735_v60  ;;  %v26744_v3 = vld [vmem:[#allocation119_spill] sm:$0xff]  ;;  %v26756_v60 = vld [vmem:[#allocation49_spill] sm:$0xff] }
 0x2e8   :  { %18561 = vmatmul.mubr.f32.gmra.mrb[24].mxu1 %v26736_v52  ;;  %19026 = vmatmul.mubr.f32.gmra.mrb[22].mxu0 %v26737_v61  ;;  %v16702_v52 = vld [vmem:[%s25953_s3 + $0x14] sm:$0xf] }
 0x2e9   :  { %18563 = vmatprep.mubr.f32.mxu1 %v26738_v39  ;;  %19028 = vmatprep.mubr.f32.mxu0 %v26739_v10  ;;  %v26745_v39 = vld [vmem:[#allocation126_spill] sm:$0xff] }
 0x2ec   :  { %18564 = vmatmul.mubr.f32.gmra.mrb[26].mxu1 %v26740_v11  ;;  %19029 = vmatmul.mubr.f32.gmra.mrb[24].mxu0 %v26741_v63  ;;  %v3913_v11 = vsel %vm1655_vm1, %v16702_v52, 0  ;;  %v26746_v63 = vld [vmem:[#allocation127_spill] sm:$0xff] }
 0x2ed   :  { %18566 = vmatprep.mubr.f32.mxu1 %v26742_v12  ;;  %19031 = vmatprep.mubr.f32.mxu0 %v26743_v0  ;;  %v26747_v12 = vld [vmem:[#allocation134_spill] sm:$0xff] }
 0x2f0   :  { %18567 = vmatmul.mubr.f32.gmra.mrb[28].mxu1 %v23384_v53  ;;  %19032 = vmatmul.mubr.f32.gmra.mrb[26].mxu0 %v26744_v3  ;;  %v11805_v53 = vld [vmem:[%s25955_s5] sm:$0xf]  ;;  %v23543_v3 = vand.u32 4294901760, %v3913_v11 }
 0x2f1   :  { %18569 = vmatprep.mubr.f32.mxu1 %v23391_v6  ;;  %19034 = vmatprep.mubr.f32.mxu0 %v26745_v39  ;;  %v11862_v6 = vsel %vm1655_vm1, %v11805_v53, 0  ;;  %v26748_v39 = vld [vmem:[#allocation135_spill] sm:$0xff] }
 0x2f2   :  { %v23552_v52 = vand.u32 4294901760, %v11862_v6 }
 0x2f4   :  { %18570 = vmatmul.mubr.f32.gmra.mrb[30].mxu1 %v23402_v58  ;;  %19035 = vmatmul.mubr.f32.gmra.mrb[28].mxu0 %v26746_v63  ;;  %v23583_v53 = vsub.f32 %v11862_v6, %v23552_v52 }
 0x2f5   :  { %18574 = vmatprep.mubr.f32.mxu1 %v23140_v1  ;;  %19037 = vmatprep.mubr.f32.mxu0 %v26747_v12  ;;  %v26752_v12 = vld [vmem:[#allocation36_spill] sm:$0xff] }
 0x2f6   :  { %v23592_v58 = vand.u32 4294901760, %v23583_v53 }
 0x2f8   :  { %18575 = vmatmul.mubr.f32.vlgmr.msra.gmra.mrb[16].mxu1 %v23151_v34  ;;  %19038 = vmatmul.mubr.f32.gmra.mrb[30].mxu0 %v26748_v39  ;;  %26749 = vst [vmem:[#allocation140_spill] sm:$0xff] %v23592_v58  ;;  %v12094_v39 = vsub.f32 %v23583_v53, %v23592_v58 }
 0x2f9   :  { %18577 = vmatprep.mubr.f32.mxu1 %v23155_v5  ;;  %18599 = vmatpush3.msra.mxu1 %v23055_v40 }
 0x2fa   :  { %19042 = vmatprep.mubr.f32.mxu0 %v22374_v44  ;;  %18624 = vmatprep.subr.mxu1 %v23543_v3 }
 0x2fc   :  { %18578 = vmatmul.mubr.f32.gmra.mrb[18].mxu1 %v23173_v41  ;;  %19043 = vmatmul.mubr.f32.vlgmr.msra.gmra.mrb[16].mxu0 %v22372_v38 }
 0x2fd   :  { %18580 = vmatprep.mubr.f32.mxu1 %v23178_v31  ;;  %19045 = vmatprep.mubr.f32.mxu0 %v22412_v42 }
 0x2fe   :  { %19067 = vmatpush3.msra.mxu0 %v23064_v36  ;;  %v23573_v36 = vsub.f32 %v3913_v11, %v23543_v3 }
 0x2ff   :  { %19716 = vmatprep.subr.mxu0 %v23552_v52 }
 0x300   :  { %18581 = vmatmul.mubr.f32.gmra.mrb[20].mxu1 %v23189_v23  ;;  %19046 = vmatmul.mubr.f32.gmra.mrb[18].mxu0 %v22415_v51  ;;  %v23580_v40 = vand.u32 4294901760, %v23573_v36 }
 0x301   :  { %18583 = vmatprep.mubr.f32.mxu1 %v23205_v48  ;;  %19048 = vmatprep.mubr.f32.mxu0 %v22499_v17 }
 0x302   :  { %v4145_v11 = vsub.f32 %v23573_v36, %v23580_v40 }
 0x304   :  { %18584 = vmatmul.mubr.f32.gmra.mrb[22].mxu1 %v23215_v21  ;;  %19049 = vmatmul.mubr.f32.gmra.mrb[20].mxu0 %v22494_v46  ;;  %v23598_v6 = vand.u32 4294901760, %v4145_v11 }
 0x305   :  { %18586 = vmatprep.mubr.f32.mxu1 %v23222_v49  ;;  %19051 = vmatprep.mubr.f32.mxu0 %v22579_v7 }
 0x308   :  { %18587 = vmatmul.mubr.f32.gmra.mrb[24].mxu1 %v23250_v8  ;;  %19052 = vmatmul.mubr.f32.gmra.mrb[22].mxu0 %v22554_v59 }
 0x309   :  { %18589 = vmatprep.mubr.f32.mxu1 %v23254_v22  ;;  %19054 = vmatprep.mubr.f32.mxu0 %v22639_v24 }
 0x30c   :  { %18590 = vmatmul.mubr.f32.gmra.mrb[26].mxu1 %v23288_v13  ;;  %19055 = vmatmul.mubr.f32.gmra.mrb[24].mxu0 %v22586_v19 }
 0x30d   :  { %18592 = vmatprep.mubr.f32.mxu1 %v23286_v4  ;;  %19057 = vmatprep.mubr.f32.mxu0 %v22696_v55 }
 0x310   :  { %18593 = vmatmul.mubr.f32.gmra.mrb[28].mxu1 %v23322_v37  ;;  %19058 = vmatmul.mubr.f32.gmra.mrb[26].mxu0 %v22651_v30 }
 0x311   :  { %18595 = vmatprep.mubr.f32.mxu1 %v23320_v26  ;;  %19060 = vmatprep.mubr.f32.mxu0 %v22742_v56 }
 0x314   :  { %18596 = vmatmul.mubr.f32.gmra.mrb[30].mxu1 %v23353_v27  ;;  %19061 = vmatmul.mubr.f32.gmra.mrb[28].mxu0 %v22730_v57 }
 0x315   :  { %18600 = vmatprep.mubr.f32.mxu1 %v23140_v1  ;;  %19063 = vmatprep.mubr.f32.mxu0 %v22788_v35  ;;  %v23608_v1 = vand.u32 4294901760, %v12094_v39  ;;  %v23631_v39 = vld [vmem:[%s25956_s4] ss:$0 sm:$0xff] }
 0x317   :  { %26750 = vst [vmem:[#allocation143_spill] sm:$0xff] %v23608_v1 }
 0x318   :  { %18601 = vmatmul.mubr.f32.vlgmr.msra.gmra.mrb[16].mxu1 %v23151_v34  ;;  %19064 = vmatmul.mubr.f32.gmra.mrb[30].mxu0 %v22747_v16 }
 0x319   :  { %18603 = vmatprep.mubr.f32.mxu1 %v23155_v5  ;;  %18625 = vmatpush3.msra.mxu1 %v23543_v3 }
 0x31a   :  { %19068 = vmatprep.mubr.f32.mxu0 %v22374_v44  ;;  %18650 = vmatprep.subr.mxu1 %v23598_v6 }
 0x31c   :  { %18604 = vmatmul.mubr.f32.gmra.mrb[18].mxu1 %v23173_v41  ;;  %19069 = vmatmul.mubr.f32.vlgmr.msra.gmra.mrb[16].mxu0 %v22372_v38 }
 0x31d   :  { %18606 = vmatprep.mubr.f32.mxu1 %v23178_v31  ;;  %19071 = vmatprep.mubr.f32.mxu0 %v22412_v42 }
 0x31e   :  { %19717 = vmatpush3.msra.mxu0 %v23552_v52 }
 0x31f   :  { %19742 = vmatprep.subr.mxu0 %v23608_v1 }
 0x320   :  { %18607 = vmatmul.mubr.f32.gmra.mrb[20].mxu1 %v23189_v23  ;;  %19072 = vmatmul.mubr.f32.gmra.mrb[18].mxu0 %v22415_v51 }
 0x321   :  { %18609 = vmatprep.mubr.f32.mxu1 %v23205_v48  ;;  %19074 = vmatprep.mubr.f32.mxu0 %v22499_v17 }
 0x324   :  { %18610 = vmatmul.mubr.f32.gmra.mrb[22].mxu1 %v23215_v21  ;;  %19075 = vmatmul.mubr.f32.gmra.mrb[20].mxu0 %v22494_v46 }
 0x325   :  { %18612 = vmatprep.mubr.f32.mxu1 %v23222_v49  ;;  %19077 = vmatprep.mubr.f32.mxu0 %v22579_v7 }
 0x328   :  { %18613 = vmatmul.mubr.f32.gmra.mrb[24].mxu1 %v23250_v8  ;;  %19078 = vmatmul.mubr.f32.gmra.mrb[22].mxu0 %v22554_v59 }
 0x329   :  { %18615 = vmatprep.mubr.f32.mxu1 %v23254_v22  ;;  %19080 = vmatprep.mubr.f32.mxu0 %v22639_v24 }
 0x32b   :  { %v18446_v11 = vpop.f32.mrb[0].mxu1 }
 0x32c   :  { %v20380_v21 = vadd.f32 %v18446_v11, %v23631_v39  ;;  %v2656_v48 = vpop.f32.mrb[1].mxu1  ;;  %18616 = vmatmul.mubr.f32.gmra.mrb[26].mxu1 %v23288_v13  ;;  %19081 = vmatmul.mubr.f32.gmra.mrb[24].mxu0 %v22586_v19 }
 0x32d   :  { %v20381_v8 = vadd.f32 %v23631_v39, %v2656_v48  ;;  %18618 = vmatprep.mubr.f32.mxu1 %v23286_v4  ;;  %19083 = vmatprep.mubr.f32.mxu0 %v22696_v55 }
 0x32e   :  { %v2751_v22 = vmax.f32 %v20380_v21, 0.0 }
 0x32f   :  { %v2750_v49 = vmax.f32 %v20381_v8, 0.0  ;;  %v18449_v23 = vpop.f32.mrb[2].mxu1 }
 0x330   :  { %v11817_v31 = vsel %vm1606_vm3, %v2751_v22, 0  ;;  %v20382_v41 = vadd.f32 %v18449_v23, %v23631_v39  ;;  %v2668_v5 = vpop.f32.mrb[3].mxu1  ;;  %18619 = vmatmul.mubr.f32.gmra.mrb[28].mxu1 %v23322_v37  ;;  %19084 = vmatmul.mubr.f32.gmra.mrb[26].mxu0 %v22651_v30 }
 0x331   :  { %v23643_v11 = vand.u32 4294901760, %v11817_v31  ;;  %v11814_v48 = vsel %vm1606_vm3, %v2750_v49, 0  ;;  %v20383_v4 = vadd.f32 %v23631_v39, %v2668_v5  ;;  %18621 = vmatprep.mubr.f32.mxu1 %v23320_v26  ;;  %19086 = vmatprep.mubr.f32.mxu0 %v22742_v56 }
 0x332   :  { %v23649_v21 = vand.u32 4294901760, %v11814_v48  ;;  %v2753_v8 = vmax.f32 %v20382_v41, 0.0 }
 0x333   :  { %v23652_v23 = vsub.f32 %v11817_v31, %v23643_v11  ;;  %v2752_v22 = vmax.f32 %v20383_v4, 0.0  ;;  %v18452_v37 = vpop.f32.mrb[4].mxu1 }
 0x334   :  { %v23655_v13 = vsub.f32 %v11814_v48, %v23649_v21  ;;  %v11823_v34 = vsel %vm1606_vm3, %v2753_v8, 0  ;;  %v20384_v49 = vadd.f32 %v18452_v37, %v23631_v39  ;;  %v2680_v5 = vpop.f32.mrb[5].mxu1  ;;  %18622 = vmatmul.mubr.f32.gmra.mrb[30].mxu1 %v23353_v27  ;;  %19087 = vmatmul.mubr.f32.gmra.mrb[28].mxu0 %v22730_v57 }
 0x335   :  { %26751 = vst [vmem:[#allocation145_spill] sm:$0xff] %v23652_v23  ;;  %v26295_v26 = vand.u32 4294901760, %v23652_v23  ;;  %v23662_v41 = vand.u32 4294901760, %v11823_v34  ;;  %v11820_v31 = vsel %vm1606_vm3, %v2752_v22, 0  ;;  %v20385_v4 = vadd.f32 %v23631_v39, %v2680_v5  ;;  %18626 = vmatprep.mubr.f32.mxu1 %v26752_v12  ;;  %19089 = vmatprep.mubr.f32.mxu0 %v22788_v35 }
 0x336   :  { %v23668_v48 = vand.u32 4294901760, %v11820_v31  ;;  %v2755_v37 = vmax.f32 %v20384_v49, 0.0  ;;  %v26296_v8 = vand.u32 4294901760, %v23655_v13  ;;  %v26755_v49 = vld [vmem:[#allocation39_spill] sm:$0xff] }
 0x337   :  { %v11943_v27 = vsub.f32 %v23652_v23, %v26295_v26  ;;  %v23675_v63 = vsub.f32 %v11823_v34, %v23662_v41  ;;  %v2754_v0 = vmax.f32 %v20385_v4, 0.0  ;;  %v18455_v22 = vpop.f32.mrb[6].mxu1 }
 0x338   :  { %v23678_v5 = vsub.f32 %v11820_v31, %v23668_v48  ;;  %v11829_v12 = vsel %vm1606_vm3, %v2755_v37, 0  ;;  %v20386_v10 = vadd.f32 %v18455_v22, %v23631_v39  ;;  %v2692_v61 = vpop.f32.mrb[7].mxu1  ;;  %18627 = vmatmul.mubr.f32.vlgmr.msra.gmra.mrb[16].mxu1 %v26755_v49  ;;  %19090 = vmatmul.mubr.f32.gmra.mrb[30].mxu0 %v22747_v16  ;;  %v11933_v26 = vsub.f32 %v23655_v13, %v26296_v8 }
 0x339   :  { %26753 = vst [vmem:[#allocation2_spill] sm:$0xff] %v23675_v63  ;;  %v23687_v34 = vand.u32 4294901760, %v11829_v12  ;;  %v11826_v4 = vsel %vm1606_vm3, %v2754_v0, 0  ;;  %v20387_v31 = vadd.f32 %v23631_v39, %v2692_v61  ;;  %18629 = vmatprep.mubr.f32.mxu1 %v26756_v60  ;;  %18651 = vmatpush3.msra.mxu1 %v23598_v6  ;;  %v11944_v29 = vand.u32 4294901760, %v11943_v27 }
 0x33a   :  { %26754 = vst [vmem:[#allocation10_spill] sm:$0xff] %v23678_v5  ;;  %v23693_v37 = vand.u32 4294901760, %v11826_v4  ;;  %v2757_v22 = vmax.f32 %v20386_v10, 0.0  ;;  %v11934_v49 = vand.u32 4294901760, %v11933_v26  ;;  %v26299_v43 = vand.u32 4294901760, %v23678_v5  ;;  %18676 = vmatprep.subr.mxu1 %v23573_v36 }
 0x33b   :  { %v23698_v8 = vsub.f32 %v11829_v12, %v23687_v34  ;;  %v2756_v32 = vmax.f32 %v20387_v31, 0.0  ;;  %v18458_v0 = vpop.f32.mrb[8].mxu1 }
 0x33c   :  { %v23702_v60 = vsub.f32 %v11826_v4, %v23693_v37  ;;  %v11835_v6 = vsel %vm1606_vm3, %v2757_v22, 0  ;;  %v20388_v10 = vadd.f32 %v18458_v0, %v23631_v39  ;;  %v2704_v26 = vpop.f32.mrb[9].mxu1  ;;  %18630 = vmatmul.mubr.f32.gmra.mrb[18].mxu1 %v26759_v33  ;;  %19718 = vmatprep.mubr.f32.mxu0 %v11934_v49  ;;  %v11953_v12 = vsub.f32 %v23678_v5, %v26299_v43  ;;  %v26760_v4 = vld [vmem:[#allocation75_spill] sm:$0xff] }
 0x33d   :  { %26757 = vst [vmem:[#allocation195_spill] sm:$0xff] %v23698_v8  ;;  %v23710_v27 = vand.u32 4294901760, %v11835_v6  ;;  %v11832_v31 = vsel %vm1606_vm3, %v2756_v32, 0  ;;  %v20389_v61 = vadd.f32 %v23631_v39, %v2704_v26  ;;  %18632 = vmatprep.mubr.f32.mxu1 %v26760_v4  ;;  %19719 = vmatmul.mubr.f32.vlgmr.msra.gmra.mrb[32].mxu0 %v11944_v29  ;;  %v26761_v22 = vand.u32 4294901760, %v23675_v63  ;;  %v26764_v4 = vld [vmem:[#allocation79_spill] sm:$0xff] }
 0x33e   :  { %26758 = vst [vmem:[#allocation196_spill] sm:$0xff] %v23702_v60  ;;  %v23718_v50 = vand.u32 4294901760, %v11832_v31  ;;  %v2759_v49 = vmax.f32 %v20388_v10, 0.0  ;;  %v11954_v33 = vand.u32 4294901760, %v11953_v12  ;;  %19743 = vmatpush3.msra.mxu0 %v23608_v1 }
 0x33f   :  { %v11963_v0 = vsub.f32 %v23675_v63, %v26761_v22  ;;  %v23723_v43 = vsub.f32 %v11835_v6, %v23710_v27  ;;  %v2758_v32 = vmax.f32 %v20389_v61, 0.0  ;;  %v18461_v26 = vpop.f32.mrb[10].mxu1  ;;  %19768 = vmatprep.subr.mxu0 %v23583_v53  ;;  %v26765_v6 = vand.u32 4294901760, %v23702_v60 }
 0x340   :  { %v23728_v22 = vsub.f32 %v11832_v31, %v23718_v50  ;;  %v11841_v10 = vsel %vm1606_vm3, %v2759_v49, 0  ;;  %v20390_v12 = vadd.f32 %v18461_v26, %v23631_v39  ;;  %v2716_v58 = vpop.f32.mrb[11].mxu1  ;;  %18633 = vmatmul.mubr.f32.gmra.mrb[20].mxu1 %v26764_v4  ;;  %19721 = vmatprep.mubr.f32.mxu0 %v11954_v33  ;;  %v26766_v31 = vld [vmem:[#allocation89_spill] sm:$0xff]  ;;  %v26767_v49 = vand.u32 4294901760, %v23698_v8 }
 0x341   :  { %26762 = vst [vmem:[#allocation197_spill] sm:$0xff] %v23723_v43  ;;  %v11964_v15 = vand.u32 4294901760, %v11963_v0  ;;  %v11973_v61 = vsub.f32 %v23702_v60, %v26765_v6  ;;  %v23736_v0 = vand.u32 4294901760, %v11841_v10  ;;  %v11838_v29 = vsel %vm1606_vm3, %v2758_v32, 0  ;;  %18635 = vmatprep.mubr.f32.mxu1 %v26766_v31 }
 0x342   :  { %26763 = vst [vmem:[#allocation198_spill] sm:$0xff] %v23728_v22  ;;  %v20391_v1 = vadd.f32 %v23631_v39, %v2716_v58  ;;  %v11983_v26 = vsub.f32 %v23698_v8, %v26767_v49  ;;  %v23744_v63 = vand.u32 4294901760, %v11838_v29  ;;  %v2761_v33 = vmax.f32 %v20390_v12, 0.0  ;;  %v26769_v12 = vld [vmem:[#allocation95_spill] sm:$0xff] }
 0x343   :  { %19722 = vmatmul.mubr.f32.gmra.mrb[34].mxu0 %v11964_v15  ;;  %v11974_v4 = vand.u32 4294901760, %v11973_v61  ;;  %v26312_v5 = vand.u32 4294901760, %v23728_v22  ;;  %v23748_v6 = vsub.f32 %v11841_v10, %v23736_v0  ;;  %v18464_v32 = vpop.f32.mrb[12].mxu1  ;;  %v26315_v58 = vand.u32 4294901760, %v23723_v43 }
 0x344   :  { %v2760_v60 = vmax.f32 %v20391_v1, 0.0  ;;  %v11984_v23 = vand.u32 4294901760, %v11983_v26  ;;  %v23752_v15 = vsub.f32 %v11838_v29, %v23744_v63  ;;  %v11847_v31 = vsel %vm1606_vm3, %v2761_v33, 0  ;;  %v2728_v8 = vpop.f32.mrb[13].mxu1  ;;  %18636 = vmatmul.mubr.f32.gmra.mrb[22].mxu1 %v26769_v12  ;;  %v26770_v29 = vld [vmem:[#allocation114_spill] sm:$0xff] }
 0x345   :  { %v20392_v49 = vadd.f32 %v18464_v32, %v23631_v39  ;;  %19724 = vmatprep.mubr.f32.mxu0 %v11974_v4  ;;  %v11993_v10 = vsub.f32 %v23728_v22, %v26312_v5  ;;  %v23760_v1 = vand.u32 4294901760, %v11847_v31  ;;  %v20393_v26 = vadd.f32 %v23631_v39, %v2728_v8  ;;  %18638 = vmatprep.mubr.f32.mxu1 %v26770_v29 }
 0x346   :  { %26768 = vst [vmem:[#allocation199_spill] sm:$0xff] %v23752_v15  ;;  %v11844_v61 = vsel %vm1606_vm3, %v2760_v60, 0  ;;  %v12003_v33 = vsub.f32 %v23723_v43, %v26315_v58  ;;  %v26318_v2 = vand.u32 4294901760, %v23752_v15  ;;  %v26323_v8 = vand.u32 4294901760, %v23748_v6 }
 0x347   :  { %19725 = vmatmul.mubr.f32.gmra.mrb[36].mxu0 %v11984_v23  ;;  %v23768_v32 = vand.u32 4294901760, %v11844_v61  ;;  %v2763_v4 = vmax.f32 %v20392_v49, 0.0  ;;  %v11994_v12 = vand.u32 4294901760, %v11993_v10  ;;  %v23772_v5 = vsub.f32 %v11847_v31, %v23760_v1  ;;  %v18467_v60 = vpop.f32.mrb[14].mxu1  ;;  %v26771_v49 = vld [vmem:[#allocation116_spill] sm:$0xff] }
 0x348   :  { %v2762_v22 = vmax.f32 %v20393_v26, 0.0  ;;  %v12004_v28 = vand.u32 4294901760, %v12003_v33  ;;  %v20394_v58 = vadd.f32 %v18467_v60, %v23631_v39  ;;  %v2740_v43 = vpop.f32.mrb[15].mxu1  ;;  %18639 = vmatmul.mubr.f32.gmra.mrb[24].mxu1 %v26771_v49  ;;  %v12013_v31 = vsub.f32 %v23752_v15, %v26318_v2 }
 0x349   :  { %v23776_v23 = vsub.f32 %v11844_v61, %v23768_v32  ;;  %v11853_v29 = vsel %vm1606_vm3, %v2763_v4, 0  ;;  %19727 = vmatprep.mubr.f32.mxu0 %v11994_v12  ;;  %v20395_v33 = vadd.f32 %v23631_v39, %v2740_v43  ;;  %18641 = vmatprep.mubr.f32.mxu1 %v26692_v54  ;;  %v12023_v61 = vsub.f32 %v23748_v6, %v26323_v8 }
 0x34a   :  { %v23784_v10 = vand.u32 4294901760, %v11853_v29  ;;  %v11850_v26 = vsel %vm1606_vm3, %v2762_v22, 0  ;;  %v2765_v12 = vmax.f32 %v20394_v58, 0.0  ;;  %v12014_v60 = vand.u32 4294901760, %v12013_v31 }
 0x34b   :  { %19728 = vmatmul.mubr.f32.gmra.mrb[38].mxu0 %v12004_v28  ;;  %v23792_v4 = vand.u32 4294901760, %v11850_v26  ;;  %v26322_v49 = vand.u32 4294901760, %v23776_v23  ;;  %v2764_v15 = vmax.f32 %v20395_v33, 0.0  ;;  %v12024_v22 = vand.u32 4294901760, %v12023_v61 }
 0x34c   :  { %v23796_v2 = vsub.f32 %v11853_v29, %v23784_v10  ;;  %v26324_v43 = vand.u32 4294901760, %v23772_v5  ;;  %v11859_v28 = vsel %vm1606_vm3, %v2765_v12, 0  ;;  %18642 = vmatmul.mubr.f32.gmra.mrb[26].mxu1 %v26695_v62  ;;  %19730 = vmatprep.mubr.f32.mxu0 %v12014_v60 }
 0x34d   :  { %v23800_v54 = vsub.f32 %v11850_v26, %v23792_v4  ;;  %v12033_v58 = vsub.f32 %v23776_v23, %v26322_v49  ;;  %v23807_v31 = vand.u32 4294901760, %v11859_v28  ;;  %v11856_v29 = vsel %vm1606_vm3, %v2764_v15, 0  ;;  %18644 = vmatprep.mubr.f32.mxu1 %v26696_v18 }
 0x34e   :  { %v12043_v26 = vsub.f32 %v23772_v5, %v26324_v43  ;;  %v26328_v33 = vand.u32 4294901760, %v23796_v2  ;;  %v23815_v61 = vand.u32 4294901760, %v11856_v29 }
 0x34f   :  { %19731 = vmatmul.mubr.f32.gmra.mrb[40].mxu0 %v12024_v22  ;;  %v12034_v12 = vand.u32 4294901760, %v12033_v58  ;;  %v26329_v60 = vand.u32 4294901760, %v23800_v54  ;;  %v23819_v49 = vsub.f32 %v11859_v28, %v23807_v31 }
 0x350   :  { %v12044_v8 = vand.u32 4294901760, %v12043_v26  ;;  %v12063_v15 = vsub.f32 %v23796_v2, %v26328_v33  ;;  %v23825_v22 = vsub.f32 %v11856_v29, %v23815_v61  ;;  %18645 = vmatmul.mubr.f32.gmra.mrb[28].mxu1 %v26698_v45  ;;  %v26782_v33 = vld [vmem:[#allocation84_spill] sm:$0xff] }
 0x351   :  { %19733 = vmatprep.mubr.f32.mxu0 %v12034_v12  ;;  %v12053_v58 = vsub.f32 %v23800_v54, %v26329_v60  ;;  %18647 = vmatprep.mubr.f32.mxu1 %v26699_v9  ;;  %v26326_v28 = vand.u32 4294901760, %v23819_v49  ;;  %v26783_v60 = vld [vmem:[#allocation195_spill] sm:$0xff] }
 0x352   :  { %v26327_v43 = vand.u32 4294901760, %v23825_v22  ;;  %v12064_v18 = vand.u32 4294901760, %v12063_v15  ;;  %v26774_v15 = vld [vmem:[#allocation145_spill] sm:$0xff] }
 0x353   :  { %19734 = vmatmul.mubr.f32.gmra.mrb[42].mxu0 %v12044_v8  ;;  %v12054_v26 = vand.u32 4294901760, %v12053_v58  ;;  %v12083_v12 = vsub.f32 %v23819_v49, %v26326_v28  ;;  %v26780_v28 = vld [vmem:[#allocation196_spill] sm:$0xff] }
 0x354   :  { %18648 = vmatmul.mubr.f32.gmra.mrb[30].mxu1 %v26700_v25  ;;  %v12073_v29 = vsub.f32 %v23825_v22, %v26327_v43  ;;  %v26781_v43 = vld [vmem:[#allocation69_spill] sm:$0xff] }
 0x355   :  { %19736 = vmatprep.mubr.f32.mxu0 %v12054_v26  ;;  %18652 = vmatprep.mubr.f32.mxu1 %v22374_v44  ;;  %v12084_v58 = vand.u32 4294901760, %v12083_v12  ;;  %v26775_v26 = vld [vmem:[#allocation10_spill] sm:$0xff]  ;;  %v26777_v12 = vld [vmem:[#allocation140_spill] sm:$0xff] }
 0x356   :  { %v12074_v8 = vand.u32 4294901760, %v12073_v29  ;;  %v26776_v29 = vld [vmem:[#allocation55_spill] sm:$0xff] }
 0x357   :  { %19737 = vmatmul.mubr.f32.gmra.mrb[44].mxu0 %v12064_v18  ;;  %v26772_v18 = vld [vmem:[#allocation37_spill] sm:$0xff] }
 0x358   :  { %18653 = vmatmul.mubr.f32.vlgmr.msra.gmra.mrb[16].mxu1 %v22372_v38  ;;  %19739 = vmatprep.mubr.f32.mxu0 %v12074_v8  ;;  %v26778_v8 = vld [vmem:[#allocation72_spill] sm:$0xff] }
 0x359   :  { %18655 = vmatprep.mubr.f32.mxu1 %v22412_v42  ;;  %18677 = vmatpush3.msra.mxu1 %v23573_v36  ;;  %v26773_v36 = vld [vmem:[#allocation56_spill] sm:$0xff] }
 0x35a   :  { %18702 = vmatprep.subr.mxu1 %v23543_v3 }
 0x35b   :  { %19740 = vmatmul.mubr.f32.gmra.mrb[46].mxu0 %v12084_v58  ;;  %v26779_v58 = vld [vmem:[#allocation2_spill] sm:$0xff] }
 0x35c   :  { %19744 = vmatprep.mubr.f32.mxu0 %v23649_v21  ;;  %18656 = vmatmul.mubr.f32.gmra.mrb[18].mxu1 %v22415_v51 }
 0x35d   :  { %18658 = vmatprep.mubr.f32.mxu1 %v22499_v17 }
 0x35f   :  { %19745 = vmatmul.mubr.f32.vlgmr.msra.gmra.mrb[32].mxu0 %v23643_v11 }
 0x360   :  { %19747 = vmatprep.mubr.f32.mxu0 %v23668_v48  ;;  %19769 = vmatpush3.msra.mxu0 %v23583_v53 }
 0x361   :  { %18659 = vmatmul.mubr.f32.gmra.mrb[20].mxu1 %v22494_v46  ;;  %19794 = vmatprep.subr.mxu0 %v23552_v52 }
 0x362   :  { %18661 = vmatprep.mubr.f32.mxu1 %v22579_v7 }
 0x363   :  { %19748 = vmatmul.mubr.f32.gmra.mrb[34].mxu0 %v23662_v41 }
 0x364   :  { %19750 = vmatprep.mubr.f32.mxu0 %v23693_v37 }
 0x365   :  { %18662 = vmatmul.mubr.f32.gmra.mrb[22].mxu1 %v22554_v59 }
 0x366   :  { %18664 = vmatprep.mubr.f32.mxu1 %v22639_v24 }
 0x367   :  { %19751 = vmatmul.mubr.f32.gmra.mrb[36].mxu0 %v23687_v34 }
 0x368   :  { %19753 = vmatprep.mubr.f32.mxu0 %v23718_v50 }
 0x369   :  { %18665 = vmatmul.mubr.f32.gmra.mrb[24].mxu1 %v22586_v19 }
 0x36a   :  { %18667 = vmatprep.mubr.f32.mxu1 %v22696_v55 }
 0x36b   :  { %19754 = vmatmul.mubr.f32.gmra.mrb[38].mxu0 %v23710_v27 }
 0x36c   :  { %19756 = vmatprep.mubr.f32.mxu0 %v23744_v63 }
 0x36d   :  { %18668 = vmatmul.mubr.f32.gmra.mrb[26].mxu1 %v22651_v30 }
 0x36e   :  { %18670 = vmatprep.mubr.f32.mxu1 %v22742_v56 }
 0x36f   :  { %19757 = vmatmul.mubr.f32.gmra.mrb[40].mxu0 %v23736_v0 }
 0x370   :  { %19759 = vmatprep.mubr.f32.mxu0 %v23768_v32 }
 0x371   :  { %18671 = vmatmul.mubr.f32.gmra.mrb[28].mxu1 %v22730_v57 }
 0x372   :  { %18673 = vmatprep.mubr.f32.mxu1 %v22788_v35 }
 0x373   :  { %19760 = vmatmul.mubr.f32.gmra.mrb[42].mxu0 %v23760_v1 }
 0x374   :  { %19762 = vmatprep.mubr.f32.mxu0 %v23792_v4 }
 0x375   :  { %18674 = vmatmul.mubr.f32.gmra.mrb[30].mxu1 %v22747_v16 }
 0x376   :  { %18678 = vmatprep.mubr.f32.mxu1 %v26701_v20  ;;  %v26790_v20 = vld [vmem:[#allocation111_spill] sm:$0xff] }
 0x377   :  { %19763 = vmatmul.mubr.f32.gmra.mrb[44].mxu0 %v23784_v10 }
 0x378   :  { %19765 = vmatprep.mubr.f32.mxu0 %v23815_v61 }
 0x379   :  { %18679 = vmatmul.mubr.f32.vlgmr.msra.gmra.mrb[16].mxu1 %v26703_v14  ;;  %v26788_v14 = vld [vmem:[#allocation199_spill] sm:$0xff] }
 0x37a   :  { %18681 = vmatprep.mubr.f32.mxu1 %v26704_v47  ;;  %18703 = vmatpush3.msra.mxu1 %v23543_v3  ;;  %v26786_v47 = vld [vmem:[#allocation93_spill] sm:$0xff] }
 0x37b   :  { %19766 = vmatmul.mubr.f32.gmra.mrb[46].mxu0 %v23807_v31  ;;  %18728 = vmatprep.subr.mxu1 %v23580_v40 }
 0x37c   :  { %19770 = vmatprep.mubr.f32.mxu0 %v23655_v13 }
 0x37d   :  { %18682 = vmatmul.mubr.f32.gmra.mrb[18].mxu1 %v26772_v18  ;;  %v26785_v18 = vld [vmem:[#allocation74_spill] sm:$0xff] }
 0x37e   :  { %18684 = vmatprep.mubr.f32.mxu1 %v26773_v36  ;;  %v26784_v36 = vld [vmem:[#allocation198_spill] sm:$0xff] }
 0x37f   :  { %19771 = vmatmul.mubr.f32.vlgmr.msra.gmra.mrb[32].mxu0 %v26774_v15 }
 0x380   :  { %19773 = vmatprep.mubr.f32.mxu0 %v26775_v26  ;;  %19795 = vmatpush3.msra.mxu0 %v23552_v52 }
 0x381   :  { %18685 = vmatmul.mubr.f32.gmra.mrb[20].mxu1 %v26776_v29  ;;  %19820 = vmatprep.subr.mxu0 %v26777_v12  ;;  %v26787_v29 = vld [vmem:[#allocation197_spill] sm:$0xff] }
 0x382   :  { %18687 = vmatprep.mubr.f32.mxu1 %v26778_v8  ;;  %v26789_v8 = vld [vmem:[#allocation86_spill] sm:$0xff] }
 0x383   :  { %19774 = vmatmul.mubr.f32.gmra.mrb[34].mxu0 %v26779_v58 }
 0x384   :  { %19776 = vmatprep.mubr.f32.mxu0 %v26780_v28 }
 0x385   :  { %18688 = vmatmul.mubr.f32.gmra.mrb[22].mxu1 %v26781_v43  ;;  %v26792_v43 = vld [vmem:[#allocation122_spill] sm:$0xff] }
 0x386   :  { %18690 = vmatprep.mubr.f32.mxu1 %v26782_v33  ;;  %v26791_v33 = vld [vmem:[#allocation106_spill] sm:$0xff] }
 0x387   :  { %19777 = vmatmul.mubr.f32.gmra.mrb[36].mxu0 %v26783_v60 }
 0x388   :  { %19779 = vmatprep.mubr.f32.mxu0 %v26784_v36 }
 0x389   :  { %18691 = vmatmul.mubr.f32.gmra.mrb[24].mxu1 %v26785_v18  ;;  %v26794_v18 = vld [vmem:[#allocation30_spill] sm:$0xff] }
 0x38a   :  { %18693 = vmatprep.mubr.f32.mxu1 %v26786_v47  ;;  %v26793_v47 = vld [vmem:[#allocation113_spill] sm:$0xff] }
 0x38b   :  { %19780 = vmatmul.mubr.f32.gmra.mrb[38].mxu0 %v26787_v29 }
 0x38c   :  { %19782 = vmatprep.mubr.f32.mxu0 %v26788_v14 }
 0x38d   :  { %18694 = vmatmul.mubr.f32.gmra.mrb[26].mxu1 %v26789_v8  ;;  %v26796_v8 = vld [vmem:[#allocation42_spill] sm:$0xff] }
 0x38e   :  { %18696 = vmatprep.mubr.f32.mxu1 %v26790_v20  ;;  %v26795_v20 = vld [vmem:[#allocation31_spill] sm:$0xff] }
 0x38f   :  { %19783 = vmatmul.mubr.f32.gmra.mrb[40].mxu0 %v23748_v6 }
 0x390   :  { %19785 = vmatprep.mubr.f32.mxu0 %v23776_v23 }
 0x391   :  { %18697 = vmatmul.mubr.f32.gmra.mrb[28].mxu1 %v26791_v33  ;;  %v26800_v33 = vand.u32 4294901760, %v26774_v15  ;;  %v26809_v15 = vand.u32 4294901760, %v26784_v36  ;;  %v26817_v36 = vand.u32 4294901760, %v23776_v23  ;;  %v26823_v23 = vand.u32 4294901760, %v23796_v2 }
 0x392   :  { %18699 = vmatprep.mubr.f32.mxu1 %v26792_v43  ;;  %v26797_v43 = vand.u32 4294901760, %v23655_v13  ;;  %v26804_v13 = vand.u32 4294901760, %v26779_v58  ;;  %v26812_v58 = vand.u32 4294901760, %v26787_v29  ;;  %v16707_v29 = vld [vmem:[%s25953_s3 + $0x18] sm:$0xf] }
 0x393   :  { %19786 = vmatmul.mubr.f32.gmra.mrb[42].mxu0 %v23772_v5 }
 0x394   :  { %19788 = vmatprep.mubr.f32.mxu0 %v23800_v54 }
 0x395   :  { %18700 = vmatmul.mubr.f32.gmra.mrb[30].mxu1 %v26793_v47  ;;  %v26798_v47 = vld [vmem:[#allocation44_spill] sm:$0xff] }
 0x396   :  { %18704 = vmatprep.mubr.f32.mxu1 %v26794_v18  ;;  %v26799_v18 = vld [vmem:[#allocation62_spill] sm:$0xff] }
 0x397   :  { %19789 = vmatmul.mubr.f32.gmra.mrb[44].mxu0 %v23796_v2 }
 0x398   :  { %19791 = vmatprep.mubr.f32.mxu0 %v23825_v22 }
 0x399   :  { %18705 = vmatmul.mubr.f32.vlgmr.msra.gmra.mrb[16].mxu1 %v26795_v20  ;;  %v26801_v20 = vand.u32 4294901760, %v26775_v26  ;;  %v26810_v26 = vld [vmem:[#allocation101_spill] sm:$0xff] }
 0x39a   :  { %18707 = vmatprep.mubr.f32.mxu1 %v26796_v8  ;;  %18729 = vmatpush3.msra.mxu1 %v23580_v40  ;;  %v26802_v40 = vld [vmem:[#allocation65_spill] sm:$0xff]  ;;  %v26803_v8 = vld [vmem:[#allocation82_spill] sm:$0xff] }
 0x39b   :  { %19792 = vmatmul.mubr.f32.gmra.mrb[46].mxu0 %v23819_v49  ;;  %18754 = vmatprep.subr.mxu1 %v23543_v3 }
 0x39c   :  { %19796 = vmatprep.mubr.f32.mxu0 %v26797_v43  ;;  %v26805_v43 = vand.u32 4294901760, %v26780_v28  ;;  %v26813_v28 = vand.u32 4294901760, %v26788_v14  ;;  %v26820_v14 = vand.u32 4294901760, %v23772_v5 }
 0x39d   :  { %18708 = vmatmul.mubr.f32.gmra.mrb[18].mxu1 %v26798_v47  ;;  %v26934_v47 = vld [vmem:[#allocation129_spill] sm:$0xff] }
 0x39e   :  { %18710 = vmatprep.mubr.f32.mxu1 %v26799_v18  ;;  %v26806_v18 = vld [vmem:[#allocation83_spill] sm:$0xff] }
 0x39f   :  { %19797 = vmatmul.mubr.f32.vlgmr.msra.gmra.mrb[32].mxu0 %v26800_v33  ;;  %v26807_v33 = vld [vmem:[#allocation100_spill] sm:$0xff] }
 0x3a0   :  { %19799 = vmatprep.mubr.f32.mxu0 %v26801_v20  ;;  %19821 = vmatpush3.msra.mxu0 %v26777_v12  ;;  %v26808_v20 = vand.u32 4294901760, %v26783_v60  ;;  %v26816_v60 = vand.u32 4294901760, %v23748_v6  ;;  %v7315_v6 = vsel %vm1655_vm1, %v16707_v29, 0 }
 0x3a1   :  { %18711 = vmatmul.mubr.f32.gmra.mrb[20].mxu1 %v26802_v40  ;;  %19846 = vmatprep.subr.mxu0 %v23552_v52  ;;  %v26811_v40 = vld [vmem:[#allocation118_spill] sm:$0xff] }
 0x3a2   :  { %18713 = vmatprep.mubr.f32.mxu1 %v26803_v8 }
 0x3a3   :  { %19800 = vmatmul.mubr.f32.gmra.mrb[34].mxu0 %v26804_v13  ;;  %v26814_v13 = vld [vmem:[#allocation119_spill] sm:$0xff] }
 0x3a4   :  { %19802 = vmatprep.mubr.f32.mxu0 %v26805_v43  ;;  %v26815_v43 = vld [vmem:[#allocation126_spill] sm:$0xff] }
 0x3a5   :  { %18714 = vmatmul.mubr.f32.gmra.mrb[22].mxu1 %v26806_v18 }
 0x3a6   :  { %18716 = vmatprep.mubr.f32.mxu1 %v26807_v33 }
 0x3a7   :  { %19803 = vmatmul.mubr.f32.gmra.mrb[36].mxu0 %v26808_v20  ;;  %v26818_v20 = vld [vmem:[#allocation127_spill] sm:$0xff] }
 0x3a8   :  { %19805 = vmatprep.mubr.f32.mxu0 %v26809_v15  ;;  %v26819_v15 = vld [vmem:[#allocation134_spill] sm:$0xff] }
 0x3a9   :  { %18717 = vmatmul.mubr.f32.gmra.mrb[24].mxu1 %v26810_v26 }
 0x3aa   :  { %18719 = vmatprep.mubr.f32.mxu1 %v26811_v40  ;;  %v26930_v40 = vld [vmem:[#allocation114_spill] sm:$0xff] }
 0x3ab   :  { %19806 = vmatmul.mubr.f32.gmra.mrb[38].mxu0 %v26812_v58  ;;  %v26821_v58 = vand.u32 4294901760, %v23800_v54  ;;  %v26825_v54 = vand.u32 4294901760, %v23819_v49 }
 0x3ac   :  { %19808 = vmatprep.mubr.f32.mxu0 %v26813_v28  ;;  %v26822_v28 = vld [vmem:[#allocation135_spill] sm:$0xff] }
 0x3ad   :  { %18720 = vmatmul.mubr.f32.gmra.mrb[26].mxu1 %v26814_v13 }
 0x3ae   :  { %18722 = vmatprep.mubr.f32.mxu1 %v26815_v43  ;;  %v26928_v43 = vld [vmem:[#allocation95_spill] sm:$0xff] }
 0x3af   :  { %19809 = vmatmul.mubr.f32.gmra.mrb[40].mxu0 %v26816_v60  ;;  %v23966_v60 = vand.u32 4294901760, %v7315_v6 }
 0x3b0   :  { %19811 = vmatprep.mubr.f32.mxu0 %v26817_v36  ;;  %v26824_v36 = vand.u32 4294901760, %v23825_v22  ;;  %v26826_v22 = vld [vmem:[#allocation143_spill] sm:$0xff] }
 0x3b1   :  { %18723 = vmatmul.mubr.f32.gmra.mrb[28].mxu1 %v26818_v20  ;;  %v23995_v2 = vsub.f32 %v7315_v6, %v23966_v60 }
 0x3b2   :  { %18725 = vmatprep.mubr.f32.mxu1 %v26819_v15 }
 0x3b3   :  { %19812 = vmatmul.mubr.f32.gmra.mrb[42].mxu0 %v26820_v14  ;;  %v26843_v14 = vld [vmem:[#allocation175_spill] sm:$0xff] }
 0x3b4   :  { %19814 = vmatprep.mubr.f32.mxu0 %v26821_v58 }
 0x3b5   :  { %18726 = vmatmul.mubr.f32.gmra.mrb[30].mxu1 %v26822_v28  ;;  %v26888_v28 = vld [vmem:[#allocation178_spill] sm:$0xff] }
 0x3b6   :  { %18730 = vmatprep.mubr.f32.mxu1 %v22374_v44 }
 0x3b7   :  { %19815 = vmatmul.mubr.f32.gmra.mrb[44].mxu0 %v26823_v23  ;;  %v26847_v23 = vld [vmem:[#allocation182_spill] sm:$0xff] }
 0x3b8   :  { %19817 = vmatprep.mubr.f32.mxu0 %v26824_v36 }
 0x3b9   :  { %18731 = vmatmul.mubr.f32.vlgmr.msra.gmra.mrb[16].mxu1 %v22372_v38 }
 0x3ba   :  { %18733 = vmatprep.mubr.f32.mxu1 %v22412_v42  ;;  %18755 = vmatpush3.msra.mxu1 %v23543_v3  ;;  %v24002_v3 = vand.u32 4294901760, %v23995_v2 }
 0x3bb   :  { %19818 = vmatmul.mubr.f32.gmra.mrb[46].mxu0 %v26825_v54  ;;  %19092 = vmatprep.subr.mxu1 %v23966_v60  ;;  %v26849_v54 = vld [vmem:[#allocation186_spill] sm:$0xff] }
 0x3bc   :  { %19822 = vmatprep.mubr.f32.mxu0 %v23649_v21  ;;  %v7547_v5 = vsub.f32 %v23995_v2, %v24002_v3 }
 0x3bd   :  { %18734 = vmatmul.mubr.f32.gmra.mrb[18].mxu1 %v22415_v51 }
 0x3be   :  { %18736 = vmatprep.mubr.f32.mxu1 %v22499_v17  ;;  %v7548_v49 = vand.u32 4294901760, %v7547_v5 }
 0x3bf   :  { %19823 = vmatmul.mubr.f32.vlgmr.msra.gmra.mrb[32].mxu0 %v23643_v11 }
 0x3c0   :  { %19825 = vmatprep.mubr.f32.mxu0 %v23668_v48  ;;  %19847 = vmatpush3.msra.mxu0 %v23552_v52 }
 0x3c1   :  { %18737 = vmatmul.mubr.f32.gmra.mrb[20].mxu1 %v22494_v46  ;;  %19872 = vmatprep.subr.mxu0 %v23552_v52 }
 0x3c2   :  { %18739 = vmatprep.mubr.f32.mxu1 %v22579_v7 }
 0x3c3   :  { %19826 = vmatmul.mubr.f32.gmra.mrb[34].mxu0 %v23662_v41 }
 0x3c4   :  { %19828 = vmatprep.mubr.f32.mxu0 %v23693_v37 }
 0x3c5   :  { %18740 = vmatmul.mubr.f32.gmra.mrb[22].mxu1 %v22554_v59 }
 0x3c6   :  { %18742 = vmatprep.mubr.f32.mxu1 %v22639_v24 }
 0x3c7   :  { %19829 = vmatmul.mubr.f32.gmra.mrb[36].mxu0 %v23687_v34 }
 0x3c8   :  { %19831 = vmatprep.mubr.f32.mxu0 %v23718_v50 }
 0x3c9   :  { %18743 = vmatmul.mubr.f32.gmra.mrb[24].mxu1 %v22586_v19 }
 0x3ca   :  { %18745 = vmatprep.mubr.f32.mxu1 %v22696_v55 }
 0x3cb   :  { %19832 = vmatmul.mubr.f32.gmra.mrb[38].mxu0 %v23710_v27 }
 0x3cc   :  { %19834 = vmatprep.mubr.f32.mxu0 %v23744_v63 }
 0x3cd   :  { %18746 = vmatmul.mubr.f32.gmra.mrb[26].mxu1 %v22651_v30 }
 0x3ce   :  { %18748 = vmatprep.mubr.f32.mxu1 %v22742_v56 }
 0x3cf   :  { %19835 = vmatmul.mubr.f32.gmra.mrb[40].mxu0 %v23736_v0 }
 0x3d0   :  { %19837 = vmatprep.mubr.f32.mxu0 %v23768_v32 }
 0x3d1   :  { %18749 = vmatmul.mubr.f32.gmra.mrb[28].mxu1 %v22730_v57 }
 0x3d2   :  { %18751 = vmatprep.mubr.f32.mxu1 %v22788_v35 }
 0x3d3   :  { %19838 = vmatmul.mubr.f32.gmra.mrb[42].mxu0 %v23760_v1 }
 0x3d4   :  { %19840 = vmatprep.mubr.f32.mxu0 %v23792_v4 }
 0x3d5   :  { %18752 = vmatmul.mubr.f32.gmra.mrb[30].mxu1 %v22747_v16 }
 0x3d6   :  { %18756 = vmatprep.mubr.f32.mxu1 %v22374_v44 }
 0x3d7   :  { %19841 = vmatmul.mubr.f32.gmra.mrb[44].mxu0 %v23784_v10 }
 0x3d8   :  { %19843 = vmatprep.mubr.f32.mxu0 %v23815_v61 }
 0x3d9   :  { %18757 = vmatmul.mubr.f32.vlgmr.msra.gmra.mrb[16].mxu1 %v22372_v38 }
 0x3da   :  { %18759 = vmatprep.mubr.f32.mxu1 %v22412_v42  ;;  %19093 = vmatpush3.msra.mxu1 %v23966_v60 }
 0x3db   :  { %19844 = vmatmul.mubr.f32.gmra.mrb[46].mxu0 %v23807_v31  ;;  %19118 = vmatprep.subr.mxu1 %v7548_v49 }
 0x3dc   :  { %19848 = vmatprep.mubr.f32.mxu0 %v23649_v21 }
 0x3dd   :  { %18760 = vmatmul.mubr.f32.gmra.mrb[18].mxu1 %v22415_v51 }
 0x3de   :  { %18762 = vmatprep.mubr.f32.mxu1 %v22499_v17 }
 0x3df   :  { %19849 = vmatmul.mubr.f32.vlgmr.msra.gmra.mrb[32].mxu0 %v23643_v11 }
 0x3e0   :  { %19851 = vmatprep.mubr.f32.mxu0 %v23668_v48  ;;  %19873 = vmatpush3.msra.mxu0 %v23552_v52 }
 0x3e1   :  { %18763 = vmatmul.mubr.f32.gmra.mrb[20].mxu1 %v22494_v46  ;;  %19898 = vmatprep.subr.mxu0 %v26826_v22 }
 0x3e2   :  { %18765 = vmatprep.mubr.f32.mxu1 %v22579_v7 }
 0x3e3   :  { %19852 = vmatmul.mubr.f32.gmra.mrb[34].mxu0 %v23662_v41  ;;  %v26831_v41 = vld [vmem:[#allocation8_spill] sm:$0xff] }
 0x3e4   :  { %19854 = vmatprep.mubr.f32.mxu0 %v23693_v37 }
 0x3e5   :  { %18766 = vmatmul.mubr.f32.gmra.mrb[22].mxu1 %v22554_v59 }
 0x3e6   :  { %18768 = vmatprep.mubr.f32.mxu1 %v22639_v24 }
 0x3e7   :  { %19855 = vmatmul.mubr.f32.gmra.mrb[36].mxu0 %v23687_v34  ;;  %v26833_v34 = vld [vmem:[#allocation22_spill] sm:$0xff] }
 0x3e8   :  { %19857 = vmatprep.mubr.f32.mxu0 %v23718_v50 }
 0x3e9   :  { %18769 = vmatmul.mubr.f32.gmra.mrb[24].mxu1 %v22586_v19 }
 0x3ea   :  { %18771 = vmatprep.mubr.f32.mxu1 %v22696_v55 }
 0x3eb   :  { %19858 = vmatmul.mubr.f32.gmra.mrb[38].mxu0 %v23710_v27  ;;  %v26835_v27 = vld [vmem:[#allocation160_spill] sm:$0xff] }
 0x3ec   :  { %19860 = vmatprep.mubr.f32.mxu0 %v23744_v63 }
 0x3ed   :  { %18772 = vmatmul.mubr.f32.gmra.mrb[26].mxu1 %v22651_v30 }
 0x3ee   :  { %18774 = vmatprep.mubr.f32.mxu1 %v22742_v56 }
 0x3ef   :  { %19861 = vmatmul.mubr.f32.gmra.mrb[40].mxu0 %v23736_v0  ;;  %v24042_v11 = vpop.f32.mrb[16].mxu0 }
 0x3f0   :  { %19863 = vmatprep.mubr.f32.mxu0 %v23768_v32  ;;  %26827 = vst [vmem:[#allocation145_spill] sm:$0xff] %v24042_v11  ;;  %v24045_v50 = vpop.f32.mrb[17].mxu0  ;;  %v26883_v11 = vld [vmem:[#allocation162_spill] sm:$0xff] }
 0x3f1   :  { %18775 = vmatmul.mubr.f32.gmra.mrb[28].mxu1 %v22730_v57  ;;  %26828 = vst [vmem:[#allocation10_spill] sm:$0xff] %v24045_v50  ;;  %v26887_v50 = vld [vmem:[#allocation177_spill] sm:$0xff] }
 0x3f2   :  { %18777 = vmatprep.mubr.f32.mxu1 %v22788_v35 }
 0x3f3   :  { %19864 = vmatmul.mubr.f32.gmra.mrb[42].mxu0 %v23760_v1  ;;  %v24050_v63 = vpop.f32.mrb[18].mxu0  ;;  %v26837_v1 = vld [vmem:[#allocation13_spill] sm:$0xff] }
 0x3f4   :  { %19866 = vmatprep.mubr.f32.mxu0 %v23792_v4  ;;  %26829 = vst [vmem:[#allocation2_spill] sm:$0xff] %v24050_v63  ;;  %v24053_v21 = vpop.f32.mrb[19].mxu0  ;;  %v26881_v63 = vld [vmem:[#allocation156_spill] sm:$0xff] }
 0x3f5   :  { %18778 = vmatmul.mubr.f32.gmra.mrb[30].mxu1 %v22747_v16  ;;  %26830 = vst [vmem:[#allocation196_spill] sm:$0xff] %v24053_v21  ;;  %v26882_v21 = vld [vmem:[#allocation157_spill] sm:$0xff] }
 0x3f6   :  { %19094 = vmatprep.mubr.f32.mxu1 %v26831_v41 }
 0x3f7   :  { %19867 = vmatmul.mubr.f32.gmra.mrb[44].mxu0 %v23784_v10  ;;  %v24058_v48 = vpop.f32.mrb[20].mxu0  ;;  %v26839_v10 = vld [vmem:[#allocation167_spill] sm:$0xff] }
 0x3f8   :  { %19869 = vmatprep.mubr.f32.mxu0 %v23815_v61  ;;  %26832 = vst [vmem:[#allocation195_spill] sm:$0xff] %v24058_v48  ;;  %v24061_v37 = vpop.f32.mrb[21].mxu0  ;;  %v26841_v61 = vld [vmem:[#allocation173_spill] sm:$0xff]  ;;  %v26879_v48 = vld [vmem:[#allocation151_spill] sm:$0xff] }
 0x3f9   :  { %19095 = vmatmul.mubr.f32.vlgmr.msra.gmra.mrb[32].mxu1 %v26833_v34  ;;  %26834 = vst [vmem:[#allocation198_spill] sm:$0xff] %v24061_v37  ;;  %v26853_v34 = vld [vmem:[#allocation190_spill] sm:$0xff]  ;;  %v26880_v37 = vld [vmem:[#allocation153_spill] sm:$0xff] }
 0x3fa   :  { %19097 = vmatprep.mubr.f32.mxu1 %v26835_v27  ;;  %19119 = vmatpush3.msra.mxu1 %v7548_v49  ;;  %v26851_v49 = vld [vmem:[#allocation188_spill] sm:$0xff] }
 0x3fb   :  { %19870 = vmatmul.mubr.f32.gmra.mrb[46].mxu0 %v23807_v31  ;;  %19144 = vmatprep.subr.mxu1 %v23995_v2  ;;  %v24066_v0 = vpop.f32.mrb[22].mxu0  ;;  %v26845_v31 = vld [vmem:[#allocation180_spill] sm:$0xff] }
 0x3fc   :  { %26836 = vst [vmem:[#allocation197_spill] sm:$0xff] %v24066_v0  ;;  %v24069_v32 = vpop.f32.mrb[23].mxu0  ;;  %v26877_v0 = vld [vmem:[#allocation16_spill] sm:$0xff] }
 0x3fd   :  { %19098 = vmatmul.mubr.f32.gmra.mrb[34].mxu1 %v26837_v1  ;;  %26838 = vst [vmem:[#allocation199_spill] sm:$0xff] %v24069_v32  ;;  %v26855_v1 = vld [vmem:[#allocation192_spill] sm:$0xff]  ;;  %v26878_v32 = vld [vmem:[#allocation149_spill] sm:$0xff] }
 0x3fe   :  { %19100 = vmatprep.mubr.f32.mxu1 %v26839_v10  ;;  %v26856_v10 = vld [vmem:[#allocation193_spill] sm:$0xff] }
 0x3ff   :  { %v24072_v4 = vpop.f32.mrb[24].mxu0 }
 0x400   :  { %26840 = vst [vmem:[#allocation8_spill] sm:$0xff] %v24072_v4  ;;  %v24075_v29 = vpop.f32.mrb[25].mxu0  ;;  %v26875_v4 = vld [vmem:[#allocation4_spill] sm:$0xff] }
 0x401   :  { %19101 = vmatmul.mubr.f32.gmra.mrb[36].mxu1 %v26841_v61  ;;  %26842 = vst [vmem:[#allocation22_spill] sm:$0xff] %v24075_v29  ;;  %v26857_v61 = vld [vmem:[#allocation194_spill] sm:$0xff] }
 0x402   :  { %19103 = vmatprep.mubr.f32.mxu1 %v26843_v14  ;;  %v26858_v14 = vld [vmem:[#allocation130_spill] sm:$0xff] }
 0x403   :  { %v24078_v58 = vpop.f32.mrb[26].mxu0  ;;  %v26876_v29 = vld [vmem:[#allocation14_spill] sm:$0xff] }
 0x404   :  { %26844 = vst [vmem:[#allocation160_spill] sm:$0xff] %v24078_v58  ;;  %v24081_v6 = vpop.f32.mrb[27].mxu0  ;;  %v26873_v58 = vld [vmem:[#allocation171_spill] sm:$0xff] }
 0x405   :  { %19104 = vmatmul.mubr.f32.gmra.mrb[38].mxu1 %v26845_v31  ;;  %26846 = vst [vmem:[#allocation13_spill] sm:$0xff] %v24081_v6  ;;  %v26859_v31 = vld [vmem:[#allocation9_spill] sm:$0xff]  ;;  %v26874_v6 = vld [vmem:[#allocation179_spill] sm:$0xff] }
 0x406   :  { %19106 = vmatprep.mubr.f32.mxu1 %v26847_v23  ;;  %v26860_v23 = vld [vmem:[#allocation12_spill] sm:$0xff] }
 0x407   :  { %v24084_v36 = vpop.f32.mrb[28].mxu0 }
 0x408   :  { %26848 = vst [vmem:[#allocation167_spill] sm:$0xff] %v24084_v36  ;;  %v24087_v5 = vpop.f32.mrb[29].mxu0  ;;  %v26870_v36 = vld [vmem:[#allocation165_spill] sm:$0xff] }
 0x409   :  { %19107 = vmatmul.mubr.f32.gmra.mrb[40].mxu1 %v26849_v54  ;;  %26850 = vst [vmem:[#allocation173_spill] sm:$0xff] %v24087_v5  ;;  %v26861_v54 = vld [vmem:[#allocation3_spill] sm:$0xff]  ;;  %v26872_v5 = vld [vmem:[#allocation172_spill] sm:$0xff] }
 0x40a   :  { %19109 = vmatprep.mubr.f32.mxu1 %v26851_v49  ;;  %v26862_v49 = vld [vmem:[#allocation5_spill] sm:$0xff] }
 0x40b   :  { %v24090_v41 = vpop.f32.mrb[30].mxu0 }
 0x40c   :  { %26852 = vst [vmem:[#allocation175_spill] sm:$0xff] %v24090_v41  ;;  %v24093_v27 = vpop.f32.mrb[31].mxu0  ;;  %v26868_v41 = vld [vmem:[#allocation158_spill] sm:$0xff] }
 0x40d   :  { %19110 = vmatmul.mubr.f32.gmra.mrb[42].mxu1 %v26853_v34  ;;  %26854 = vst [vmem:[#allocation180_spill] sm:$0xff] %v24093_v27  ;;  %v26863_v34 = vld [vmem:[#allocation15_spill] sm:$0xff] }
 0x40e   :  { %19112 = vmatprep.mubr.f32.mxu1 %v26855_v1  ;;  %v26864_v1 = vld [vmem:[#allocation148_spill] sm:$0xff]  ;;  %v26869_v27 = vld [vmem:[#allocation159_spill] sm:$0xff] }
 0x411   :  { %19113 = vmatmul.mubr.f32.gmra.mrb[44].mxu1 %v26856_v10  ;;  %v26865_v10 = vld [vmem:[#allocation18_spill] sm:$0xff] }
 0x412   :  { %19115 = vmatprep.mubr.f32.mxu1 %v26857_v61  ;;  %v26866_v61 = vld [vmem:[#allocation152_spill] sm:$0xff] }
 0x415   :  { %19116 = vmatmul.mubr.f32.gmra.mrb[46].mxu1 %v26858_v14  ;;  %v26867_v14 = vld [vmem:[#allocation154_spill] sm:$0xff] }
 0x416   :  { %19120 = vmatprep.mubr.f32.mxu1 %v26859_v31 }
 0x419   :  { %19121 = vmatmul.mubr.f32.vlgmr.msra.gmra.mrb[32].mxu1 %v26860_v23 }
 0x41a   :  { %19123 = vmatprep.mubr.f32.mxu1 %v26861_v54  ;;  %19145 = vmatpush3.msra.mxu1 %v23995_v2  ;;  %v26871_v2 = vld [vmem:[#allocation164_spill] sm:$0xff] }
 0x41b   :  { %19170 = vmatprep.subr.mxu1 %v23966_v60 }
 0x41d   :  { %19124 = vmatmul.mubr.f32.gmra.mrb[34].mxu1 %v26862_v49 }
 0x41e   :  { %19126 = vmatprep.mubr.f32.mxu1 %v26863_v34 }
 0x421   :  { %19127 = vmatmul.mubr.f32.gmra.mrb[36].mxu1 %v26864_v1 }
 0x422   :  { %19129 = vmatprep.mubr.f32.mxu1 %v26865_v10 }
 0x425   :  { %19130 = vmatmul.mubr.f32.gmra.mrb[38].mxu1 %v26866_v61 }
 0x426   :  { %19132 = vmatprep.mubr.f32.mxu1 %v26867_v14 }
 0x429   :  { %19133 = vmatmul.mubr.f32.gmra.mrb[40].mxu1 %v26868_v41 }
 0x42a   :  { %19135 = vmatprep.mubr.f32.mxu1 %v26869_v27 }
 0x42d   :  { %19136 = vmatmul.mubr.f32.gmra.mrb[42].mxu1 %v26870_v36 }
 0x42e   :  { %19138 = vmatprep.mubr.f32.mxu1 %v26871_v2 }
 0x431   :  { %19139 = vmatmul.mubr.f32.gmra.mrb[44].mxu1 %v26872_v5 }
 0x432   :  { %19141 = vmatprep.mubr.f32.mxu1 %v26873_v58 }
 0x435   :  { %19142 = vmatmul.mubr.f32.gmra.mrb[46].mxu1 %v26874_v6 }
 0x436   :  { %19146 = vmatprep.mubr.f32.mxu1 %v26875_v4  ;;  %v26884_v4 = vld [vmem:[#allocation163_spill] sm:$0xff] }
 0x439   :  { %19147 = vmatmul.mubr.f32.vlgmr.msra.gmra.mrb[32].mxu1 %v26876_v29  ;;  %v26885_v29 = vld [vmem:[#allocation169_spill] sm:$0xff] }
 0x43a   :  { %19149 = vmatprep.mubr.f32.mxu1 %v26877_v0  ;;  %19171 = vmatpush3.msra.mxu1 %v23966_v60  ;;  %v26886_v0 = vld [vmem:[#allocation170_spill] sm:$0xff] }
 0x43b   :  { %19196 = vmatprep.subr.mxu1 %v24002_v3 }
 0x43d   :  { %19150 = vmatmul.mubr.f32.gmra.mrb[34].mxu1 %v26878_v32  ;;  %v26889_v32 = vld [vmem:[#allocation184_spill] sm:$0xff] }
 0x43e   :  { %19152 = vmatprep.mubr.f32.mxu1 %v26879_v48  ;;  %v26890_v48 = vld [vmem:[#allocation185_spill] sm:$0xff] }
 0x441   :  { %19153 = vmatmul.mubr.f32.gmra.mrb[36].mxu1 %v26880_v37  ;;  %v26891_v37 = vld [vmem:[#allocation6_spill] sm:$0xff] }
 0x442   :  { %19155 = vmatprep.mubr.f32.mxu1 %v26881_v63  ;;  %v26892_v63 = vld [vmem:[#allocation7_spill] sm:$0xff] }
 0x445   :  { %19156 = vmatmul.mubr.f32.gmra.mrb[38].mxu1 %v26882_v21  ;;  %v26893_v21 = vld [vmem:[#allocation150_spill] sm:$0xff] }
 0x446   :  { %19158 = vmatprep.mubr.f32.mxu1 %v26883_v11  ;;  %v26894_v11 = vld [vmem:[#allocation21_spill] sm:$0xff] }
 0x449   :  { %19159 = vmatmul.mubr.f32.gmra.mrb[40].mxu1 %v26884_v4  ;;  %v26895_v4 = vld [vmem:[#allocation155_spill] sm:$0xff] }
 0x44a   :  { %19161 = vmatprep.mubr.f32.mxu1 %v26885_v29  ;;  %v26898_v29 = vld [vmem:[#allocation166_spill] sm:$0xff] }
 0x44d   :  { %19162 = vmatmul.mubr.f32.gmra.mrb[42].mxu1 %v26886_v0  ;;  %v26899_v0 = vld [vmem:[#allocation168_spill] sm:$0xff] }
 0x44e   :  { %19164 = vmatprep.mubr.f32.mxu1 %v26887_v50  ;;  %v26896_v50 = vld [vmem:[#allocation11_spill] sm:$0xff] }
 0x451   :  { %19165 = vmatmul.mubr.f32.gmra.mrb[44].mxu1 %v26888_v28  ;;  %v26897_v28 = vld [vmem:[#allocation161_spill] sm:$0xff] }
 0x452   :  { %19167 = vmatprep.mubr.f32.mxu1 %v26889_v32  ;;  %v26900_v32 = vld [vmem:[#allocation174_spill] sm:$0xff] }
 0x455   :  { %19168 = vmatmul.mubr.f32.gmra.mrb[46].mxu1 %v26890_v48  ;;  %v26901_v48 = vld [vmem:[#allocation176_spill] sm:$0xff] }
 0x456   :  { %19172 = vmatprep.mubr.f32.mxu1 %v26891_v37  ;;  %v26902_v37 = vld [vmem:[#allocation181_spill] sm:$0xff] }
 0x459   :  { %19173 = vmatmul.mubr.f32.vlgmr.msra.gmra.mrb[32].mxu1 %v26892_v63  ;;  %v26904_v63 = vld [vmem:[#allocation187_spill] sm:$0xff] }
 0x45a   :  { %19175 = vmatprep.mubr.f32.mxu1 %v26893_v21  ;;  %19197 = vmatpush3.msra.mxu1 %v24002_v3  ;;  %v26903_v3 = vld [vmem:[#allocation183_spill] sm:$0xff]  ;;  %v16706_v21 = vld [vmem:[%s25953_s3 + $0x20] sm:$0xf] }
 0x45b   :  { %19222 = vmatprep.subr.mxu1 %v23966_v60 }
 0x45d   :  { %19176 = vmatmul.mubr.f32.gmra.mrb[34].mxu1 %v26894_v11  ;;  %v26905_v11 = vld [vmem:[#allocation189_spill] sm:$0xff] }
 0x45e   :  { %19178 = vmatprep.mubr.f32.mxu1 %v26895_v4  ;;  %v8409_v4 = vsel %vm1655_vm1, %v16706_v21, 0 }
 0x461   :  { %19179 = vmatmul.mubr.f32.gmra.mrb[36].mxu1 %v26896_v50  ;;  %v26906_v50 = vld [vmem:[#allocation191_spill] sm:$0xff] }
 0x462   :  { %19181 = vmatprep.mubr.f32.mxu1 %v26897_v28  ;;  %v24158_v28 = vand.u32 4294901760, %v8409_v4 }
 0x465   :  { %19182 = vmatmul.mubr.f32.gmra.mrb[38].mxu1 %v26898_v29 }
 0x466   :  { %19184 = vmatprep.mubr.f32.mxu1 %v26899_v0 }
 0x469   :  { %19185 = vmatmul.mubr.f32.gmra.mrb[40].mxu1 %v26900_v32 }
 0x46a   :  { %19187 = vmatprep.mubr.f32.mxu1 %v26901_v48 }
 0x46d   :  { %19188 = vmatmul.mubr.f32.gmra.mrb[42].mxu1 %v26902_v37 }
 0x46e   :  { %19190 = vmatprep.mubr.f32.mxu1 %v26903_v3 }
 0x471   :  { %19191 = vmatmul.mubr.f32.gmra.mrb[44].mxu1 %v26904_v63 }
 0x472   :  { %19193 = vmatprep.mubr.f32.mxu1 %v26905_v11 }
 0x475   :  { %19194 = vmatmul.mubr.f32.gmra.mrb[46].mxu1 %v26906_v50 }
 0x476   :  { %19198 = vmatprep.mubr.f32.mxu1 %v26859_v31 }
 0x479   :  { %19199 = vmatmul.mubr.f32.vlgmr.msra.gmra.mrb[32].mxu1 %v26860_v23 }
 0x47a   :  { %19201 = vmatprep.mubr.f32.mxu1 %v26861_v54  ;;  %19223 = vmatpush3.msra.mxu1 %v23966_v60  ;;  %v24173_v60 = vsub.f32 %v8409_v4, %v24158_v28 }
 0x47b   :  { %19248 = vmatprep.subr.mxu1 %v24158_v28 }
 0x47c   :  { %v24178_v29 = vand.u32 4294901760, %v24173_v60 }
 0x47d   :  { %19202 = vmatmul.mubr.f32.gmra.mrb[34].mxu1 %v26862_v49 }
 0x47e   :  { %19204 = vmatprep.mubr.f32.mxu1 %v26863_v34  ;;  %v8641_v0 = vsub.f32 %v24173_v60, %v24178_v29 }
 0x480   :  { %v8642_v32 = vand.u32 4294901760, %v8641_v0 }
 0x481   :  { %19205 = vmatmul.mubr.f32.gmra.mrb[36].mxu1 %v26864_v1 }
 0x482   :  { %19207 = vmatprep.mubr.f32.mxu1 %v26865_v10 }
 0x485   :  { %19208 = vmatmul.mubr.f32.gmra.mrb[38].mxu1 %v26866_v61 }
 0x486   :  { %19210 = vmatprep.mubr.f32.mxu1 %v26867_v14 }
 0x489   :  { %19211 = vmatmul.mubr.f32.gmra.mrb[40].mxu1 %v26868_v41 }
 0x48a   :  { %19213 = vmatprep.mubr.f32.mxu1 %v26869_v27 }
 0x48d   :  { %19214 = vmatmul.mubr.f32.gmra.mrb[42].mxu1 %v26870_v36 }
 0x48e   :  { %19216 = vmatprep.mubr.f32.mxu1 %v26871_v2 }
 0x491   :  { %19217 = vmatmul.mubr.f32.gmra.mrb[44].mxu1 %v26872_v5 }
 0x492   :  { %19219 = vmatprep.mubr.f32.mxu1 %v26873_v58 }
 0x495   :  { %19220 = vmatmul.mubr.f32.gmra.mrb[46].mxu1 %v26874_v6 }
 0x496   :  { %19224 = vmatprep.mubr.f32.mxu1 %v26859_v31 }
 0x499   :  { %19225 = vmatmul.mubr.f32.vlgmr.msra.gmra.mrb[32].mxu1 %v26860_v23 }
 0x49a   :  { %19227 = vmatprep.mubr.f32.mxu1 %v26861_v54  ;;  %19249 = vmatpush3.msra.mxu1 %v24158_v28 }
 0x49b   :  { %19274 = vmatprep.subr.mxu1 %v8642_v32 }
 0x49d   :  { %19228 = vmatmul.mubr.f32.gmra.mrb[34].mxu1 %v26862_v49 }
 0x49e   :  { %19230 = vmatprep.mubr.f32.mxu1 %v26863_v34 }
 0x4a1   :  { %19231 = vmatmul.mubr.f32.gmra.mrb[36].mxu1 %v26864_v1 }
 0x4a2   :  { %19233 = vmatprep.mubr.f32.mxu1 %v26865_v10 }
 0x4a5   :  { %19234 = vmatmul.mubr.f32.gmra.mrb[38].mxu1 %v26866_v61 }
 0x4a6   :  { %19236 = vmatprep.mubr.f32.mxu1 %v26867_v14 }
 0x4a9   :  { %19237 = vmatmul.mubr.f32.gmra.mrb[40].mxu1 %v26868_v41  ;;  %v24205_v41 = vld [vmem:[%s25956_s4] ss:$0 sm:$0xff] }
 0x4aa   :  { %19239 = vmatprep.mubr.f32.mxu1 %v26869_v27  ;;  %26907 = vst [vmem:[#allocation182_spill] sm:$0xff] %v24205_v41 }
 0x4ac   :  { %v18758_v31 = vpop.f32.mrb[16].mxu1 }
 0x4ad   :  { %v5007_v23 = vadd.f32 %v18758_v31, %v23631_v39  ;;  %v4912_v54 = vpop.f32.mrb[17].mxu1  ;;  %19240 = vmatmul.mubr.f32.gmra.mrb[42].mxu1 %v26870_v36 }
 0x4ae   :  { %v5006_v49 = vadd.f32 %v23631_v39, %v4912_v54  ;;  %19242 = vmatprep.mubr.f32.mxu1 %v26871_v2  ;;  %v26911_v54 = vld [vmem:[#allocation36_spill] sm:$0xff] }
 0x4af   :  { %v5023_v34 = vmax.f32 %v5007_v23, 0.0 }
 0x4b0   :  { %v5022_v1 = vmax.f32 %v5006_v49, 0.0  ;;  %v18761_v10 = vpop.f32.mrb[18].mxu1 }
 0x4b1   :  { %v12975_v61 = vsel %vm1606_vm3, %v5023_v34, 0  ;;  %v5009_v27 = vadd.f32 %v24205_v41, %v18761_v10  ;;  %v4924_v14 = vpop.f32.mrb[19].mxu1  ;;  %19243 = vmatmul.mubr.f32.gmra.mrb[44].mxu1 %v26872_v5 }
 0x4b2   :  { %v24209_v36 = vand.u32 4294901760, %v12975_v61  ;;  %v12972_v39 = vsel %vm1606_vm3, %v5022_v1, 0  ;;  %v5008_v2 = vadd.f32 %v24205_v41, %v4924_v14  ;;  %v24213_v48 = vpop.f32.mrb[32].mxu0  ;;  %19245 = vmatprep.mubr.f32.mxu1 %v26873_v58 }
 0x4b3   :  { %26908 = vst [vmem:[#allocation186_spill] sm:$0xff] %v24213_v48  ;;  %v24216_v37 = vand.u32 4294901760, %v12972_v39  ;;  %v24218_v3 = vpop.f32.mrb[33].mxu0  ;;  %v5025_v4 = vmax.f32 %v5009_v27, 0.0 }
 0x4b4   :  { %26909 = vst [vmem:[#allocation188_spill] sm:$0xff] %v24218_v3  ;;  %v24221_v63 = vsub.f32 %v12975_v61, %v24209_v36  ;;  %v5024_v21 = vmax.f32 %v5008_v2, 0.0  ;;  %v18764_v11 = vpop.f32.mrb[20].mxu1 }
 0x4b5   :  { %v24224_v5 = vsub.f32 %v12972_v39, %v24216_v37  ;;  %v4936_v50 = vpop.f32.mrb[21].mxu1  ;;  %19246 = vmatmul.mubr.f32.gmra.mrb[46].mxu1 %v26874_v6  ;;  %v5011_v31 = vadd.f32 %v24205_v41, %v18764_v11  ;;  %v12981_v6 = vsel %vm1606_vm3, %v5025_v4, 0  ;;  %v26913_v39 = vld [vmem:[#allocation39_spill] sm:$0xff] }
 0x4b6   :  { %v26333_v0 = vand.u32 4294901760, %v24221_v63  ;;  %v12978_v58 = vsel %vm1606_vm3, %v5024_v21, 0  ;;  %v24230_v23 = vpop.f32.mrb[34].mxu0  ;;  %19250 = vmatprep.mubr.f32.mxu1 %v26911_v54  ;;  %v5010_v49 = vadd.f32 %v24205_v41, %v4936_v50  ;;  %v26915_v50 = vld [vmem:[#allocation49_spill] sm:$0xff] }
 0x4b7   :  { %26910 = vst [vmem:[#allocation190_spill] sm:$0xff] %v24230_v23  ;;  %v24234_v34 = vpop.f32.mrb[35].mxu0  ;;  %v24236_v1 = vand.u32 4294901760, %v12978_v58  ;;  %v26334_v61 = vand.u32 4294901760, %v24224_v5  ;;  %v5027_v21 = vmax.f32 %v5011_v31, 0.0 }
 0x4b8   :  { %26912 = vst [vmem:[#allocation192_spill] sm:$0xff] %v24234_v34  ;;  %v18767_v10 = vpop.f32.mrb[22].mxu1  ;;  %v5026_v27 = vmax.f32 %v5010_v49, 0.0  ;;  %v13098_v2 = vsub.f32 %v24221_v63, %v26333_v0  ;;  %v24254_v49 = vand.u32 4294901760, %v12981_v6 }
 0x4b9   :  { %v4948_v14 = vpop.f32.mrb[23].mxu1  ;;  %19251 = vmatmul.mubr.f32.vlgmr.msra.gmra.mrb[32].mxu1 %v26913_v39  ;;  %v13088_v4 = vsub.f32 %v24224_v5, %v26334_v61  ;;  %v24257_v39 = vsub.f32 %v12978_v58, %v24236_v1  ;;  %v12987_v61 = vsel %vm1606_vm3, %v5027_v21, 0  ;;  %v26919_v58 = vld [vmem:[#allocation75_spill] sm:$0xff] }
 0x4ba   :  { %v24244_v11 = vpop.f32.mrb[36].mxu0  ;;  %19253 = vmatprep.mubr.f32.mxu1 %v26915_v50  ;;  %19275 = vmatpush3.msra.mxu1 %v8642_v32  ;;  %v5012_v54 = vadd.f32 %v24205_v41, %v4948_v14  ;;  %v12984_v31 = vsel %vm1606_vm3, %v5026_v27, 0  ;;  %v5013_v50 = vadd.f32 %v24205_v41, %v18767_v10  ;;  %v13099_v23 = vand.u32 4294901760, %v13098_v2 }
 0x4bb   :  { %26914 = vst [vmem:[#allocation193_spill] sm:$0xff] %v24244_v11  ;;  %v24248_v34 = vpop.f32.mrb[37].mxu0  ;;  %19300 = vmatprep.subr.mxu1 %v24173_v60  ;;  %v26917_v11 = vld [vmem:[#allocation51_spill] sm:$0xff]  ;;  %v24268_v27 = vand.u32 4294901760, %v12984_v31 }
 0x4bc   :  { %26916 = vst [vmem:[#allocation194_spill] sm:$0xff] %v24248_v34  ;;  %v18770_v32 = vpop.f32.mrb[24].mxu1  ;;  %v5028_v0 = vmax.f32 %v5012_v54, 0.0  ;;  %v13089_v34 = vand.u32 4294901760, %v13088_v4  ;;  %v24273_v54 = vsub.f32 %v12981_v6, %v24254_v49  ;;  %v24276_v4 = vand.u32 4294901760, %v12987_v61 }
 0x4bd   :  { %v4960_v14 = vpop.f32.mrb[25].mxu1  ;;  %19254 = vmatmul.mubr.f32.gmra.mrb[34].mxu1 %v26917_v11  ;;  %v5015_v3 = vadd.f32 %v24205_v41, %v18770_v32  ;;  %v5029_v11 = vmax.f32 %v5013_v50, 0.0  ;;  %v26924_v50 = vld [vmem:[#allocation89_spill] sm:$0xff] }
 0x4be   :  { %v5014_v48 = vadd.f32 %v24205_v41, %v4960_v14  ;;  %v24265_v15 = vpop.f32.mrb[38].mxu0  ;;  %19256 = vmatprep.mubr.f32.mxu1 %v26919_v58  ;;  %19874 = vmatprep.mubr.f32.mxu0 %v13089_v34  ;;  %26921 = vst [vmem:[#allocation12_spill] sm:$0xff] %v24273_v54  ;;  %v12990_v32 = vsel %vm1606_vm3, %v5028_v0, 0 }
 0x4bf   :  { %26918 = vst [vmem:[#allocation130_spill] sm:$0xff] %v24265_v15  ;;  %v24270_v10 = vpop.f32.mrb[39].mxu0  ;;  %19875 = vmatmul.mubr.f32.vlgmr.msra.gmra.mrb[48].mxu0 %v13099_v23  ;;  %v26922_v15 = vld [vmem:[#allocation79_spill] sm:$0xff]  ;;  %v5031_v34 = vmax.f32 %v5015_v3, 0.0  ;;  %v24287_v23 = vsub.f32 %v12984_v31, %v24268_v27  ;;  %v24293_v20 = vand.u32 4294901760, %v12990_v32 }
 0x4c0   :  { %26920 = vst [vmem:[#allocation9_spill] sm:$0xff] %v24270_v10  ;;  %v18773_v2 = vpop.f32.mrb[26].mxu1  ;;  %19899 = vmatpush3.msra.mxu0 %v26826_v22  ;;  %v5030_v10 = vmax.f32 %v5014_v48, 0.0  ;;  %v26927_v48 = vand.u32 4294901760, %v24257_v39  ;;  %v24300_v22 = vsub.f32 %v12987_v61, %v24276_v4 }
 0x4c1   :  { %v5017_v14 = vadd.f32 %v24205_v41, %v18773_v2  ;;  %v4972_v58 = vpop.f32.mrb[27].mxu1  ;;  %19257 = vmatmul.mubr.f32.gmra.mrb[36].mxu1 %v26922_v15  ;;  %19924 = vmatprep.subr.mxu0 %v23583_v53  ;;  %26925 = vst [vmem:[#allocation5_spill] sm:$0xff] %v24287_v23  ;;  %v12993_v15 = vsel %vm1606_vm3, %v5029_v11, 0 }
 0x4c2   :  { %v24282_v6 = vpop.f32.mrb[40].mxu0  ;;  %19259 = vmatprep.mubr.f32.mxu1 %v26924_v50  ;;  %v5016_v0 = vadd.f32 %v24205_v41, %v4972_v58  ;;  %v13108_v3 = vsub.f32 %v24257_v39, %v26927_v48  ;;  %v26336_v50 = vand.u32 4294901760, %v24273_v54  ;;  %v12999_v58 = vsel %vm1606_vm3, %v5031_v34, 0 }
 0x4c3   :  { %26923 = vst [vmem:[#allocation3_spill] sm:$0xff] %v24282_v6  ;;  %v5033_v21 = vmax.f32 %v5017_v14, 0.0  ;;  %v24290_v2 = vpop.f32.mrb[41].mxu0  ;;  %v12996_v11 = vsel %vm1606_vm3, %v5030_v10, 0  ;;  %v24311_v26 = vand.u32 4294901760, %v12993_v15  ;;  %v24319_v10 = vsub.f32 %v12990_v32, %v24293_v20 }
 0x4c4   :  { %26926 = vst [vmem:[#allocation15_spill] sm:$0xff] %v24290_v2  ;;  %v18776_v6 = vpop.f32.mrb[28].mxu1  ;;  %v5032_v31 = vmax.f32 %v5016_v0, 0.0  ;;  %v13109_v2 = vand.u32 4294901760, %v13108_v3  ;;  %v13118_v13 = vsub.f32 %v24273_v54, %v26336_v50  ;;  %v24323_v33 = vand.u32 4294901760, %v12999_v58 }
 0x4c5   :  { %v4984_v14 = vpop.f32.mrb[29].mxu1  ;;  %19260 = vmatmul.mubr.f32.gmra.mrb[38].mxu1 %v26928_v43  ;;  %v13005_v61 = vsel %vm1606_vm3, %v5033_v21, 0  ;;  %v5019_v0 = vadd.f32 %v24205_v41, %v18776_v6  ;;  %v24325_v18 = vand.u32 4294901760, %v12996_v11 }
 0x4c6   :  { %v24308_v48 = vpop.f32.mrb[42].mxu0  ;;  %19262 = vmatprep.mubr.f32.mxu1 %v26930_v40  ;;  %v5018_v43 = vadd.f32 %v24205_v41, %v4984_v14  ;;  %v13002_v3 = vsel %vm1606_vm3, %v5032_v31, 0  ;;  %19877 = vmatprep.mubr.f32.mxu0 %v13109_v2  ;;  %v13119_v50 = vand.u32 4294901760, %v13118_v13  ;;  %v26932_v14 = vld [vmem:[#allocation116_spill] sm:$0xff] }
 0x4c7   :  { %26929 = vst [vmem:[#allocation148_spill] sm:$0xff] %v24308_v48  ;;  %v24316_v34 = vpop.f32.mrb[43].mxu0  ;;  %v26339_v48 = vand.u32 4294901760, %v24287_v23  ;;  %v5035_v21 = vmax.f32 %v5019_v0, 0.0  ;;  %v24338_v0 = vand.u32 4294901760, %v13002_v3 }
 0x4c8   :  { %26931 = vst [vmem:[#allocation18_spill] sm:$0xff] %v24316_v34  ;;  %v18779_v40 = vpop.f32.mrb[30].mxu1  ;;  %v5034_v6 = vmax.f32 %v5018_v43, 0.0  ;;  %v24328_v34 = vand.u32 4294901760, %v13005_v61  ;;  %19878 = vmatmul.mubr.f32.gmra.mrb[50].mxu0 %v13119_v50 }
 0x4c9   :  { %v4996_v8 = vpop.f32.mrb[31].mxu1  ;;  %19263 = vmatmul.mubr.f32.gmra.mrb[40].mxu1 %v26932_v14  ;;  %v13128_v32 = vsub.f32 %v24287_v23, %v26339_v48  ;;  %v5021_v2 = vadd.f32 %v24205_v41, %v18779_v40  ;;  %v13011_v43 = vsel %vm1606_vm3, %v5035_v21, 0  ;;  %v24346_v48 = vsub.f32 %v12993_v15, %v24311_v26 }
 0x4ca   :  { %v24335_v31 = vpop.f32.mrb[44].mxu0  ;;  %19265 = vmatprep.mubr.f32.mxu1 %v26934_v47  ;;  %v13008_v14 = vsel %vm1606_vm3, %v5034_v6, 0  ;;  %v5020_v50 = vadd.f32 %v24205_v41, %v4996_v8  ;;  %v24354_v23 = vsub.f32 %v12996_v11, %v24325_v18  ;;  %v26345_v6 = vand.u32 4294901760, %v24319_v10  ;;  %v26938_v41 = vld [vmem:[#allocation138_spill] sm:$0xff] }
 0x4cb   :  { %26933 = vst [vmem:[#allocation152_spill] sm:$0xff] %v24335_v31  ;;  %v24343_v54 = vpop.f32.mrb[45].mxu0  ;;  %v24348_v13 = vand.u32 4294901760, %v13008_v14  ;;  %v13129_v40 = vand.u32 4294901760, %v13128_v32  ;;  %v26936_v31 = vand.u32 4294901760, %v24300_v22  ;;  %v5037_v21 = vmax.f32 %v5021_v2, 0.0 }
 0x4cc   :  { %26935 = vst [vmem:[#allocation154_spill] sm:$0xff] %v24343_v54  ;;  %v5036_v12 = vmax.f32 %v5020_v50, 0.0  ;;  %v24359_v8 = vsub.f32 %v12999_v58, %v24323_v33  ;;  %v24361_v15 = vand.u32 4294901760, %v13011_v43  ;;  %v24367_v11 = vsub.f32 %v13005_v61, %v24328_v34 }
 0x4cd   :  { %v13138_v47 = vsub.f32 %v24300_v22, %v26936_v31  ;;  %19266 = vmatmul.mubr.f32.gmra.mrb[42].mxu1 %v26695_v62  ;;  %19880 = vmatprep.mubr.f32.mxu0 %v13129_v40  ;;  %v24370_v2 = vsub.f32 %v13002_v3, %v24338_v0  ;;  %v13148_v62 = vsub.f32 %v24319_v10, %v26345_v6  ;;  %v26346_v61 = vand.u32 4294901760, %v24346_v48 }
 0x4ce   :  { %v24363_v54 = vpop.f32.mrb[46].mxu0  ;;  %19268 = vmatprep.mubr.f32.mxu1 %v26938_v41  ;;  %v13014_v31 = vsel %vm1606_vm3, %v5036_v12, 0  ;;  %v24379_v50 = vsub.f32 %v13008_v14, %v24348_v13  ;;  %v13017_v41 = vsel %vm1606_vm3, %v5037_v21, 0  ;;  %v24388_v12 = vsub.f32 %v13011_v43, %v24361_v15 }
 0x4cf   :  { %v13139_v32 = vand.u32 4294901760, %v13138_v47  ;;  %26937 = vst [vmem:[#allocation158_spill] sm:$0xff] %v24363_v54  ;;  %v24376_v58 = vpop.f32.mrb[47].mxu0  ;;  %v24382_v40 = vand.u32 4294901760, %v13014_v31  ;;  %v13149_v3 = vand.u32 4294901760, %v13148_v62  ;;  %v26348_v47 = vand.u32 4294901760, %v24354_v23 }
 0x4d0   :  { %26939 = vst [vmem:[#allocation159_spill] sm:$0xff] %v24376_v58  ;;  %v13158_v14 = vsub.f32 %v24346_v48, %v26346_v61  ;;  %v24395_v21 = vand.u32 4294901760, %v13017_v41  ;;  %v26349_v43 = vand.u32 4294901760, %v24370_v2  ;;  %v13197_v58 = vand.u32 4294901760, %v24367_v11 }
 0x4d1   :  { %19881 = vmatmul.mubr.f32.gmra.mrb[52].mxu0 %v13139_v32  ;;  %19269 = vmatmul.mubr.f32.gmra.mrb[44].mxu1 %v26698_v45  ;;  %v26347_v32 = vand.u32 4294901760, %v24359_v8  ;;  %v24398_v6 = vsub.f32 %v13014_v31, %v24382_v40  ;;  %v13168_v45 = vsub.f32 %v24354_v23, %v26348_v47 }
 0x4d2   :  { %19271 = vmatprep.mubr.f32.mxu1 %v26699_v9  ;;  %19883 = vmatprep.mubr.f32.mxu0 %v13149_v3  ;;  %v13159_v62 = vand.u32 4294901760, %v13158_v14  ;;  %v13207_v9 = vand.u32 4294901760, %v24379_v50  ;;  %v13188_v31 = vsub.f32 %v24370_v2, %v26349_v43  ;;  %v24419_v47 = vsub.f32 %v13017_v41, %v24395_v21 }
 0x4d3   :  { %v13178_v61 = vsub.f32 %v24359_v8, %v26347_v32  ;;  %v13169_v54 = vand.u32 4294901760, %v13168_v45  ;;  %v13227_v32 = vand.u32 4294901760, %v24398_v6  ;;  %v13198_v43 = vsub.f32 %v24367_v11, %v13197_v58 }
 0x4d4   :  { %v13189_v3 = vand.u32 4294901760, %v13188_v31  ;;  %v13208_v14 = vsub.f32 %v24379_v50, %v13207_v9  ;;  %v13237_v31 = vand.u32 4294901760, %v24419_v47 }
 0x4d5   :  { %19272 = vmatmul.mubr.f32.gmra.mrb[46].mxu1 %v26700_v25  ;;  %19884 = vmatmul.mubr.f32.gmra.mrb[54].mxu0 %v13159_v62  ;;  %v13179_v45 = vand.u32 4294901760, %v13178_v61  ;;  %v13217_v25 = vand.u32 4294901760, %v24388_v12  ;;  %v13228_v62 = vsub.f32 %v24398_v6, %v13227_v32  ;;  %v13199_v41 = vand.u32 4294901760, %v13198_v43 }
 0x4d6   :  { %19276 = vmatprep.mubr.f32.mxu1 %v22374_v44  ;;  %19886 = vmatprep.mubr.f32.mxu0 %v13169_v54  ;;  %v13209_v54 = vand.u32 4294901760, %v13208_v14 }
 0x4d7   :  { %v13218_v61 = vsub.f32 %v24388_v12, %v13217_v25 }
 0x4d9   :  { %19277 = vmatmul.mubr.f32.vlgmr.msra.gmra.mrb[32].mxu1 %v22372_v38  ;;  %19887 = vmatmul.mubr.f32.gmra.mrb[56].mxu0 %v13179_v45  ;;  %v13219_v14 = vand.u32 4294901760, %v13218_v61  ;;  %v26940_v45 = vld [vmem:[#allocation28_spill] sm:$0xff] }
 0x4da   :  { %19279 = vmatprep.mubr.f32.mxu1 %v22412_v42  ;;  %19889 = vmatprep.mubr.f32.mxu0 %v13189_v3  ;;  %v13229_v3 = vand.u32 4294901760, %v13228_v62  ;;  %v26942_v62 = vld [vmem:[#allocation35_spill] sm:$0xff]  ;;  %v26944_v61 = vld [vmem:[#allocation56_spill] sm:$0xff] }
 0x4db   :  { %19301 = vmatpush3.msra.mxu1 %v24173_v60  ;;  %v13238_v60 = vsub.f32 %v24419_v47, %v13237_v31 }
 0x4dc   :  { %19326 = vmatprep.subr.mxu1 %v24158_v28 }
 0x4dd   :  { %19280 = vmatmul.mubr.f32.gmra.mrb[34].mxu1 %v22415_v51  ;;  %19890 = vmatmul.mubr.f32.gmra.mrb[58].mxu0 %v13199_v41  ;;  %v13239_v43 = vand.u32 4294901760, %v13238_v60  ;;  %v26943_v41 = vld [vmem:[#allocation37_spill] sm:$0xff] }
 0x4de   :  { %19282 = vmatprep.mubr.f32.mxu1 %v22499_v17  ;;  %19892 = vmatprep.mubr.f32.mxu0 %v13209_v54  ;;  %v26941_v54 = vld [vmem:[#allocation27_spill] sm:$0xff]  ;;  %v26947_v60 = vld [vmem:[#allocation69_spill] sm:$0xff] }
 0x4e1   :  { %19283 = vmatmul.mubr.f32.gmra.mrb[36].mxu1 %v22494_v46  ;;  %19893 = vmatmul.mubr.f32.gmra.mrb[60].mxu0 %v13219_v14  ;;  %v26946_v14 = vld [vmem:[#allocation72_spill] sm:$0xff] }
 0x4e2   :  { %19285 = vmatprep.mubr.f32.mxu1 %v22579_v7  ;;  %19895 = vmatprep.mubr.f32.mxu0 %v13229_v3  ;;  %v26945_v3 = vld [vmem:[#allocation55_spill] sm:$0xff] }
 0x4e5   :  { %19286 = vmatmul.mubr.f32.gmra.mrb[38].mxu1 %v22554_v59  ;;  %19896 = vmatmul.mubr.f32.gmra.mrb[62].mxu0 %v13239_v43  ;;  %v26948_v43 = vld [vmem:[#allocation84_spill] sm:$0xff] }
 0x4e6   :  { %19288 = vmatprep.mubr.f32.mxu1 %v22639_v24  ;;  %19900 = vmatprep.mubr.f32.mxu0 %v24216_v37 }
 0x4e9   :  { %19289 = vmatmul.mubr.f32.gmra.mrb[40].mxu1 %v22586_v19  ;;  %19901 = vmatmul.mubr.f32.vlgmr.msra.gmra.mrb[48].mxu0 %v24209_v36 }
 0x4ea   :  { %19291 = vmatprep.mubr.f32.mxu1 %v22696_v55  ;;  %19903 = vmatprep.mubr.f32.mxu0 %v24236_v1 }
 0x4eb   :  { %19925 = vmatpush3.msra.mxu0 %v23583_v53 }
 0x4ec   :  { %19950 = vmatprep.subr.mxu0 %v23552_v52 }
 0x4ed   :  { %19292 = vmatmul.mubr.f32.gmra.mrb[42].mxu1 %v22651_v30  ;;  %19904 = vmatmul.mubr.f32.gmra.mrb[50].mxu0 %v24254_v49 }
 0x4ee   :  { %19294 = vmatprep.mubr.f32.mxu1 %v22742_v56  ;;  %19906 = vmatprep.mubr.f32.mxu0 %v24268_v27 }
 0x4f1   :  { %19295 = vmatmul.mubr.f32.gmra.mrb[44].mxu1 %v22730_v57  ;;  %19907 = vmatmul.mubr.f32.gmra.mrb[52].mxu0 %v24276_v4 }
 0x4f2   :  { %19297 = vmatprep.mubr.f32.mxu1 %v22788_v35  ;;  %19909 = vmatprep.mubr.f32.mxu0 %v24293_v20 }
 0x4f5   :  { %19298 = vmatmul.mubr.f32.gmra.mrb[46].mxu1 %v22747_v16  ;;  %19910 = vmatmul.mubr.f32.gmra.mrb[54].mxu0 %v24311_v26 }
 0x4f6   :  { %19302 = vmatprep.mubr.f32.mxu1 %v26940_v45  ;;  %19912 = vmatprep.mubr.f32.mxu0 %v24325_v18  ;;  %v26949_v45 = vld [vmem:[#allocation74_spill] sm:$0xff] }
 0x4f9   :  { %19303 = vmatmul.mubr.f32.vlgmr.msra.gmra.mrb[32].mxu1 %v26941_v54  ;;  %19913 = vmatmul.mubr.f32.gmra.mrb[56].mxu0 %v24323_v33  ;;  %v26950_v54 = vld [vmem:[#allocation93_spill] sm:$0xff] }
 0x4fa   :  { %19305 = vmatprep.mubr.f32.mxu1 %v26942_v62  ;;  %19915 = vmatprep.mubr.f32.mxu0 %v24338_v0  ;;  %v26951_v62 = vld [vmem:[#allocation140_spill] sm:$0xff] }
 0x4fb   :  { %19327 = vmatpush3.msra.mxu1 %v24158_v28 }
 0x4fc   :  { %19352 = vmatprep.subr.mxu1 %v24178_v29 }
 0x4fd   :  { %19306 = vmatmul.mubr.f32.gmra.mrb[34].mxu1 %v26943_v41  ;;  %19916 = vmatmul.mubr.f32.gmra.mrb[58].mxu0 %v24328_v34  ;;  %v26952_v41 = vld [vmem:[#allocation86_spill] sm:$0xff] }
 0x4fe   :  { %19308 = vmatprep.mubr.f32.mxu1 %v26944_v61  ;;  %19918 = vmatprep.mubr.f32.mxu0 %v24348_v13  ;;  %v26953_v61 = vld [vmem:[#allocation12_spill] sm:$0xff] }
 0x501   :  { %19309 = vmatmul.mubr.f32.gmra.mrb[36].mxu1 %v26945_v3  ;;  %19919 = vmatmul.mubr.f32.gmra.mrb[60].mxu0 %v24361_v15  ;;  %v26954_v3 = vld [vmem:[#allocation111_spill] sm:$0xff] }
 0x502   :  { %19311 = vmatprep.mubr.f32.mxu1 %v26946_v14  ;;  %19921 = vmatprep.mubr.f32.mxu0 %v24382_v40  ;;  %v26955_v14 = vld [vmem:[#allocation5_spill] sm:$0xff] }
 0x505   :  { %19312 = vmatmul.mubr.f32.gmra.mrb[38].mxu1 %v26947_v60  ;;  %19922 = vmatmul.mubr.f32.gmra.mrb[62].mxu0 %v24395_v21  ;;  %v26956_v60 = vld [vmem:[#allocation106_spill] sm:$0xff] }
 0x506   :  { %19314 = vmatprep.mubr.f32.mxu1 %v26948_v43  ;;  %19926 = vmatprep.mubr.f32.mxu0 %v24224_v5  ;;  %v26957_v43 = vld [vmem:[#allocation122_spill] sm:$0xff] }
 0x509   :  { %19315 = vmatmul.mubr.f32.gmra.mrb[40].mxu1 %v26949_v45  ;;  %19927 = vmatmul.mubr.f32.vlgmr.msra.gmra.mrb[48].mxu0 %v24221_v63  ;;  %v26958_v45 = vld [vmem:[#allocation113_spill] sm:$0xff] }
 0x50a   :  { %19317 = vmatprep.mubr.f32.mxu1 %v26950_v54  ;;  %19929 = vmatprep.mubr.f32.mxu0 %v24257_v39  ;;  %v26959_v54 = vld [vmem:[#allocation30_spill] sm:$0xff] }
 0x50b   :  { %19951 = vmatpush3.msra.mxu0 %v23552_v52 }
 0x50c   :  { %19976 = vmatprep.subr.mxu0 %v26951_v62 }
 0x50d   :  { %19318 = vmatmul.mubr.f32.gmra.mrb[42].mxu1 %v26952_v41  ;;  %19930 = vmatmul.mubr.f32.gmra.mrb[50].mxu0 %v26953_v61  ;;  %v26960_v41 = vld [vmem:[#allocation31_spill] sm:$0xff] }
 0x50e   :  { %19320 = vmatprep.mubr.f32.mxu1 %v26954_v3  ;;  %19932 = vmatprep.mubr.f32.mxu0 %v26955_v14  ;;  %v26961_v3 = vld [vmem:[#allocation42_spill] sm:$0xff] }
 0x511   :  { %19321 = vmatmul.mubr.f32.gmra.mrb[44].mxu1 %v26956_v60  ;;  %19933 = vmatmul.mubr.f32.gmra.mrb[52].mxu0 %v24300_v22  ;;  %v26962_v60 = vld [vmem:[#allocation44_spill] sm:$0xff] }
 0x512   :  { %19323 = vmatprep.mubr.f32.mxu1 %v26957_v43  ;;  %19935 = vmatprep.mubr.f32.mxu0 %v24319_v10  ;;  %v26963_v43 = vld [vmem:[#allocation62_spill] sm:$0xff] }
 0x515   :  { %19324 = vmatmul.mubr.f32.gmra.mrb[46].mxu1 %v26958_v45  ;;  %19936 = vmatmul.mubr.f32.gmra.mrb[54].mxu0 %v24346_v48  ;;  %v26964_v45 = vld [vmem:[#allocation65_spill] sm:$0xff] }
 0x516   :  { %19328 = vmatprep.mubr.f32.mxu1 %v26959_v54  ;;  %19938 = vmatprep.mubr.f32.mxu0 %v24354_v23  ;;  %v26965_v54 = vld [vmem:[#allocation82_spill] sm:$0xff] }
 0x519   :  { %19329 = vmatmul.mubr.f32.vlgmr.msra.gmra.mrb[32].mxu1 %v26960_v41  ;;  %19939 = vmatmul.mubr.f32.gmra.mrb[56].mxu0 %v24359_v8  ;;  %v26966_v41 = vld [vmem:[#allocation83_spill] sm:$0xff] }
 0x51a   :  { %19331 = vmatprep.mubr.f32.mxu1 %v26961_v3  ;;  %19941 = vmatprep.mubr.f32.mxu0 %v24370_v2  ;;  %v26968_v3 = vand.u32 4294901760, %v24224_v5  ;;  %v26975_v5 = vld [vmem:[#allocation126_spill] sm:$0xff] }
 0x51b   :  { %19353 = vmatpush3.msra.mxu1 %v24178_v29  ;;  %v26967_v29 = vld [vmem:[#allocation100_spill] sm:$0xff] }
 0x51c   :  { %19378 = vmatprep.subr.mxu1 %v24158_v28 }
 0x51d   :  { %19332 = vmatmul.mubr.f32.gmra.mrb[34].mxu1 %v26962_v60  ;;  %19942 = vmatmul.mubr.f32.gmra.mrb[58].mxu0 %v24367_v11  ;;  %v26969_v60 = vld [vmem:[#allocation101_spill] sm:$0xff] }
 0x51e   :  { %19334 = vmatprep.mubr.f32.mxu1 %v26963_v43  ;;  %19944 = vmatprep.mubr.f32.mxu0 %v24379_v50  ;;  %v26970_v43 = vand.u32 4294901760, %v24221_v63  ;;  %v26977_v63 = vld [vmem:[#allocation127_spill] sm:$0xff] }
 0x521   :  { %19335 = vmatmul.mubr.f32.gmra.mrb[36].mxu1 %v26964_v45  ;;  %19945 = vmatmul.mubr.f32.gmra.mrb[60].mxu0 %v24388_v12  ;;  %v26971_v45 = vld [vmem:[#allocation118_spill] sm:$0xff] }
 0x522   :  { %19337 = vmatprep.mubr.f32.mxu1 %v26965_v54  ;;  %19947 = vmatprep.mubr.f32.mxu0 %v24398_v6  ;;  %v26972_v54 = vand.u32 4294901760, %v24257_v39  ;;  %v26979_v39 = vld [vmem:[#allocation134_spill] sm:$0xff] }
 0x525   :  { %19338 = vmatmul.mubr.f32.gmra.mrb[38].mxu1 %v26966_v41  ;;  %19948 = vmatmul.mubr.f32.gmra.mrb[62].mxu0 %v24419_v47  ;;  %v26973_v41 = vld [vmem:[#allocation119_spill] sm:$0xff] }
 0x526   :  { %19340 = vmatprep.mubr.f32.mxu1 %v26967_v29  ;;  %19952 = vmatprep.mubr.f32.mxu0 %v26968_v3  ;;  %v26974_v29 = vand.u32 4294901760, %v26953_v61  ;;  %v26976_v3 = vand.u32 4294901760, %v26955_v14  ;;  %v26981_v61 = vld [vmem:[#allocation135_spill] sm:$0xff]  ;;  %v26982_v14 = vand.u32 4294901760, %v24346_v48 }
 0x529   :  { %19341 = vmatmul.mubr.f32.gmra.mrb[40].mxu1 %v26969_v60  ;;  %19953 = vmatmul.mubr.f32.vlgmr.msra.gmra.mrb[48].mxu0 %v26970_v43  ;;  %v26978_v60 = vand.u32 4294901760, %v24300_v22  ;;  %v16708_v43 = vld [vmem:[%s25953_s3 + $0x8] sm:$0xf]  ;;  %v26983_v22 = vand.u32 4294901760, %v24354_v23 }
 0x52a   :  { %19343 = vmatprep.mubr.f32.mxu1 %v26971_v45  ;;  %19955 = vmatprep.mubr.f32.mxu0 %v26972_v54  ;;  %v26980_v45 = vand.u32 4294901760, %v24319_v10  ;;  %v9505_v54 = vsel %vm1655_vm1, %v16708_v43, 0  ;;  %v26985_v10 = vand.u32 4294901760, %v24370_v2 }
 0x52b   :  { %19977 = vmatpush3.msra.mxu0 %v26951_v62 }
 0x52c   :  { %20002 = vmatprep.subr.mxu0 %v23552_v52 }
 0x52d   :  { %19344 = vmatmul.mubr.f32.gmra.mrb[42].mxu1 %v26973_v41  ;;  %19956 = vmatmul.mubr.f32.gmra.mrb[50].mxu0 %v26974_v29  ;;  %v24549_v41 = vand.u32 4294901760, %v9505_v54  ;;  %v26984_v29 = vand.u32 4294901760, %v24359_v8 }
 0x52e   :  { %19346 = vmatprep.mubr.f32.mxu1 %v26975_v5  ;;  %19958 = vmatprep.mubr.f32.mxu0 %v26976_v3  ;;  %v26997_v3 = vld [vmem:[#allocation22_spill] sm:$0xff] }
 0x531   :  { %19347 = vmatmul.mubr.f32.gmra.mrb[44].mxu1 %v26977_v63  ;;  %19959 = vmatmul.mubr.f32.gmra.mrb[52].mxu0 %v26978_v60  ;;  %v26998_v63 = vld [vmem:[#allocation57_spill] sm:$0xff] }
 0x532   :  { %19349 = vmatprep.mubr.f32.mxu1 %v26979_v39  ;;  %19961 = vmatprep.mubr.f32.mxu0 %v26980_v45 }
 0x535   :  { %19350 = vmatmul.mubr.f32.gmra.mrb[46].mxu1 %v26981_v61  ;;  %19962 = vmatmul.mubr.f32.gmra.mrb[54].mxu0 %v26982_v14 }
 0x536   :  { %19354 = vmatprep.mubr.f32.mxu1 %v22374_v44  ;;  %19964 = vmatprep.mubr.f32.mxu0 %v26983_v22 }
 0x539   :  { %19355 = vmatmul.mubr.f32.vlgmr.msra.gmra.mrb[32].mxu1 %v22372_v38  ;;  %19965 = vmatmul.mubr.f32.gmra.mrb[56].mxu0 %v26984_v29 }
 0x53a   :  { %19357 = vmatprep.mubr.f32.mxu1 %v22412_v42  ;;  %19967 = vmatprep.mubr.f32.mxu0 %v26985_v10 }
 0x53b   :  { %19379 = vmatpush3.msra.mxu1 %v24158_v28  ;;  %v24582_v28 = vsub.f32 %v9505_v54, %v24549_v41 }
 0x53c   :  { %19404 = vmatprep.subr.mxu1 %v24549_v41 }
 0x53d   :  { %19358 = vmatmul.mubr.f32.gmra.mrb[34].mxu1 %v22415_v51  ;;  %19968 = vmatmul.mubr.f32.gmra.mrb[58].mxu0 %v13197_v58  ;;  %v24590_v23 = vand.u32 4294901760, %v24582_v28  ;;  %v26994_v58 = vld [vmem:[#allocation199_spill] sm:$0xff] }
 0x53e   :  { %19360 = vmatprep.mubr.f32.mxu1 %v22499_v17  ;;  %19970 = vmatprep.mubr.f32.mxu0 %v13207_v9  ;;  %v26996_v9 = vld [vmem:[#allocation197_spill] sm:$0xff] }
 0x53f   :  { %v9737_v48 = vsub.f32 %v24582_v28, %v24590_v23 }
 0x541   :  { %19361 = vmatmul.mubr.f32.gmra.mrb[36].mxu1 %v22494_v46  ;;  %19971 = vmatmul.mubr.f32.gmra.mrb[60].mxu0 %v13217_v25  ;;  %v24602_v6 = vand.u32 4294901760, %v9737_v48  ;;  %v27001_v48 = vld [vmem:[#allocation80_spill] sm:$0xff] }
 0x542   :  { %19363 = vmatprep.mubr.f32.mxu1 %v22579_v7  ;;  %19973 = vmatprep.mubr.f32.mxu0 %v13227_v32 }
 0x545   :  { %19364 = vmatmul.mubr.f32.gmra.mrb[38].mxu1 %v22554_v59  ;;  %19974 = vmatmul.mubr.f32.gmra.mrb[62].mxu0 %v13237_v31 }
 0x546   :  { %19366 = vmatprep.mubr.f32.mxu1 %v22639_v24  ;;  %19978 = vmatprep.mubr.f32.mxu0 %v24216_v37 }
 0x549   :  { %19367 = vmatmul.mubr.f32.gmra.mrb[40].mxu1 %v22586_v19  ;;  %19979 = vmatmul.mubr.f32.vlgmr.msra.gmra.mrb[48].mxu0 %v24209_v36 }
 0x54a   :  { %19369 = vmatprep.mubr.f32.mxu1 %v22696_v55  ;;  %19981 = vmatprep.mubr.f32.mxu0 %v24236_v1 }
 0x54b   :  { %20003 = vmatpush3.msra.mxu0 %v23552_v52 }
 0x54c   :  { %20028 = vmatprep.subr.mxu0 %v23552_v52 }
 0x54d   :  { %19370 = vmatmul.mubr.f32.gmra.mrb[42].mxu1 %v22651_v30  ;;  %19982 = vmatmul.mubr.f32.gmra.mrb[50].mxu0 %v24254_v49 }
 0x54e   :  { %19372 = vmatprep.mubr.f32.mxu1 %v22742_v56  ;;  %19984 = vmatprep.mubr.f32.mxu0 %v24268_v27 }
 0x551   :  { %19373 = vmatmul.mubr.f32.gmra.mrb[44].mxu1 %v22730_v57  ;;  %19985 = vmatmul.mubr.f32.gmra.mrb[52].mxu0 %v24276_v4 }
 0x552   :  { %19375 = vmatprep.mubr.f32.mxu1 %v22788_v35  ;;  %19987 = vmatprep.mubr.f32.mxu0 %v24293_v20 }
 0x555   :  { %19376 = vmatmul.mubr.f32.gmra.mrb[46].mxu1 %v22747_v16  ;;  %19988 = vmatmul.mubr.f32.gmra.mrb[54].mxu0 %v24311_v26 }
 0x556   :  { %19380 = vmatprep.mubr.f32.mxu1 %v22374_v44  ;;  %19990 = vmatprep.mubr.f32.mxu0 %v24325_v18 }
 0x559   :  { %19381 = vmatmul.mubr.f32.vlgmr.msra.gmra.mrb[32].mxu1 %v22372_v38  ;;  %19991 = vmatmul.mubr.f32.gmra.mrb[56].mxu0 %v24323_v33  ;;  %v26987_v38 = vld [vmem:[#allocation182_spill] sm:$0xff] }
 0x55a   :  { %19383 = vmatprep.mubr.f32.mxu1 %v22412_v42  ;;  %19993 = vmatprep.mubr.f32.mxu0 %v24338_v0  ;;  %v7284_v50 = vadd.f32 %v26987_v38, %v26994_v58  ;;  %v7285_v25 = vadd.f32 %v26987_v38, %v26996_v9  ;;  %v27008_v9 = vld [vmem:[#allocation167_spill] sm:$0xff] }
 0x55b   :  { %19405 = vmatpush3.msra.mxu1 %v24549_v41 }
 0x55c   :  { %19430 = vmatprep.subr.mxu1 %v24602_v6  ;;  %v7300_v31 = vmax.f32 %v7284_v50, 0.0  ;;  %v7301_v54 = vmax.f32 %v7285_v25, 0.0  ;;  %v7291_v25 = vadd.f32 %v26987_v38, %v27008_v9 }
 0x55d   :  { %19384 = vmatmul.mubr.f32.gmra.mrb[34].mxu1 %v22415_v51  ;;  %19994 = vmatmul.mubr.f32.gmra.mrb[58].mxu0 %v24328_v34  ;;  %v26986_v51 = vld [vmem:[#allocation10_spill] sm:$0xff] }
 0x55e   :  { %19386 = vmatprep.mubr.f32.mxu1 %v22499_v17  ;;  %19996 = vmatprep.mubr.f32.mxu0 %v24348_v13  ;;  %v7278_v44 = vadd.f32 %v26987_v38, %v26986_v51  ;;  %v26989_v17 = vld [vmem:[#allocation196_spill] sm:$0xff]  ;;  %v14145_v14 = vsel %vm1606_vm3, %v7300_v31, 0 }
 0x561   :  { %19387 = vmatmul.mubr.f32.gmra.mrb[36].mxu1 %v22494_v46  ;;  %19997 = vmatmul.mubr.f32.gmra.mrb[60].mxu0 %v24361_v15  ;;  %v26988_v46 = vld [vmem:[#allocation145_spill] sm:$0xff] }
 0x562   :  { %19389 = vmatprep.mubr.f32.mxu1 %v22579_v7  ;;  %19999 = vmatprep.mubr.f32.mxu0 %v24382_v40  ;;  %v7279_v42 = vadd.f32 %v26987_v38, %v26988_v46  ;;  %v26990_v7 = vld [vmem:[#allocation143_spill] sm:$0xff] }
 0x565   :  { %19390 = vmatmul.mubr.f32.gmra.mrb[38].mxu1 %v22554_v59  ;;  %20000 = vmatmul.mubr.f32.gmra.mrb[62].mxu0 %v24395_v21  ;;  %v7280_v59 = vadd.f32 %v26987_v38, %v26989_v17  ;;  %v24704_v17 = vand.u32 4294901760, %v14145_v14 }
 0x566   :  { %19392 = vmatprep.mubr.f32.mxu1 %v22639_v24  ;;  %20004 = vmatprep.mubr.f32.mxu0 %v24216_v37  ;;  %v26991_v24 = vld [vmem:[#allocation2_spill] sm:$0xff] }
 0x567   :  { %v7296_v37 = vmax.f32 %v7280_v59, 0.0  ;;  %v24732_v58 = vsub.f32 %v14145_v14, %v24704_v17 }
 0x569   :  { %19393 = vmatmul.mubr.f32.gmra.mrb[40].mxu1 %v22586_v19  ;;  %20005 = vmatmul.mubr.f32.vlgmr.msra.gmra.mrb[48].mxu0 %v24209_v36  ;;  %v7294_v19 = vmax.f32 %v7278_v44, 0.0  ;;  %v7281_v36 = vadd.f32 %v26987_v38, %v26991_v24  ;;  %v27003_v44 = vld [vmem:[#allocation88_spill] sm:$0xff] }
 0x56a   :  { %19395 = vmatprep.mubr.f32.mxu1 %v22696_v55  ;;  %20007 = vmatprep.mubr.f32.mxu0 %v24236_v1  ;;  %v7295_v55 = vmax.f32 %v7279_v42, 0.0  ;;  %v26992_v1 = vld [vmem:[#allocation198_spill] sm:$0xff] }
 0x56b   :  { %20029 = vmatpush3.msra.mxu0 %v23552_v52  ;;  %v7282_v8 = vadd.f32 %v26987_v38, %v26992_v1  ;;  %v14127_v11 = vsel %vm1606_vm3, %v7294_v19, 0  ;;  %v14148_v19 = vsel %vm1606_vm3, %v7301_v54, 0 }
 0x56c   :  { %20054 = vmatprep.subr.mxu0 %v26990_v7 }
 0x56d   :  { %19396 = vmatmul.mubr.f32.gmra.mrb[42].mxu1 %v22651_v30  ;;  %20008 = vmatmul.mubr.f32.gmra.mrb[50].mxu0 %v24254_v49  ;;  %v7297_v30 = vmax.f32 %v7281_v36, 0.0  ;;  %v14133_v49 = vsel %vm1606_vm3, %v7296_v37, 0  ;;  %v7298_v47 = vmax.f32 %v7282_v8, 0.0  ;;  %v27004_v36 = vld [vmem:[#allocation160_spill] sm:$0xff]  ;;  %v27005_v8 = vld [vmem:[#allocation105_spill] sm:$0xff] }
 0x56e   :  { %19398 = vmatprep.mubr.f32.mxu1 %v22742_v56  ;;  %20010 = vmatprep.mubr.f32.mxu0 %v24268_v27  ;;  %v14130_v56 = vsel %vm1606_vm3, %v7295_v55, 0  ;;  %v26993_v27 = vld [vmem:[#allocation195_spill] sm:$0xff]  ;;  %v7289_v37 = vadd.f32 %v26987_v38, %v27004_v36 }
 0x56f   :  { %v7283_v2 = vadd.f32 %v26987_v38, %v26993_v27  ;;  %v14136_v12 = vsel %vm1606_vm3, %v7297_v30, 0 }
 0x570   :  { %v24678_v39 = vand.u32 4294901760, %v14136_v12 }
 0x571   :  { %19399 = vmatmul.mubr.f32.gmra.mrb[44].mxu1 %v22730_v57  ;;  %20011 = vmatmul.mubr.f32.gmra.mrb[52].mxu0 %v24276_v4  ;;  %v24653_v57 = vand.u32 4294901760, %v14127_v11  ;;  %v24656_v4 = vand.u32 4294901760, %v14130_v56  ;;  %v7299_v32 = vmax.f32 %v7283_v2, 0.0  ;;  %v24729_v2 = vand.u32 4294901760, %v14148_v19 }
 0x572   :  { %19401 = vmatprep.mubr.f32.mxu1 %v22788_v35  ;;  %20013 = vmatprep.mubr.f32.mxu0 %v24293_v20  ;;  %v26995_v35 = vld [vmem:[#allocation46_spill] sm:$0xff]  ;;  %v24660_v20 = vand.u32 4294901760, %v14133_v49  ;;  %v24700_v46 = vsub.f32 %v14136_v12, %v24678_v39 }
 0x573   :  { %v24667_v5 = vsub.f32 %v14127_v11, %v24653_v57  ;;  %v24674_v60 = vsub.f32 %v14130_v56, %v24656_v4  ;;  %v14142_v45 = vsel %vm1606_vm3, %v7299_v32, 0  ;;  %v27006_v56 = vld [vmem:[#allocation173_spill] sm:$0xff]  ;;  %v7305_v32 = vmax.f32 %v7289_v37, 0.0  ;;  %v27013_v37 = vld [vmem:[#allocation131_spill] sm:$0xff] }
 0x574   :  { %v24681_v43 = vsub.f32 %v14133_v49, %v24660_v20  ;;  %v24702_v42 = vand.u32 4294901760, %v14142_v45  ;;  %v7290_v30 = vadd.f32 %v26987_v38, %v27006_v56  ;;  %v27007_v49 = vld [vmem:[#allocation109_spill] sm:$0xff]  ;;  %v14272_v50 = vand.u32 4294901760, %v24700_v46 }
 0x575   :  { %19402 = vmatmul.mubr.f32.gmra.mrb[46].mxu1 %v22747_v16  ;;  %20014 = vmatmul.mubr.f32.gmra.mrb[54].mxu0 %v24311_v26  ;;  %v14139_v16 = vsel %vm1606_vm3, %v7298_v47, 0  ;;  %v7286_v26 = vadd.f32 %v26987_v38, %v26997_v3  ;;  %v14242_v10 = vand.u32 4294901760, %v24667_v5  ;;  %v24752_v54 = vsub.f32 %v14148_v19, %v24729_v2 }
 0x576   :  { %19406 = vmatprep.mubr.f32.mxu1 %v26995_v35  ;;  %20016 = vmatprep.mubr.f32.mxu0 %v24325_v18  ;;  %v26999_v18 = vld [vmem:[#allocation64_spill] sm:$0xff]  ;;  %v24686_v61 = vand.u32 4294901760, %v14139_v16  ;;  %v14262_v55 = vand.u32 4294901760, %v24681_v43  ;;  %v24727_v27 = vsub.f32 %v14142_v45, %v24702_v42  ;;  %v27011_v45 = vld [vmem:[#allocation125_spill] sm:$0xff]  ;;  %v14273_v14 = vsub.f32 %v24700_v46, %v14272_v50 }
 0x577   :  { %v7302_v29 = vmax.f32 %v7286_v26, 0.0  ;;  %v14243_v1 = vsub.f32 %v24667_v5, %v14242_v10  ;;  %v7306_v26 = vmax.f32 %v7290_v30, 0.0  ;;  %v7307_v19 = vmax.f32 %v7291_v25, 0.0 }
 0x578   :  { %v24708_v59 = vsub.f32 %v14139_v16, %v24686_v61  ;;  %v27009_v16 = vld [vmem:[#allocation124_spill] sm:$0xff] }
 0x579   :  { %19407 = vmatmul.mubr.f32.vlgmr.msra.gmra.mrb[32].mxu1 %v26998_v63  ;;  %20017 = vmatmul.mubr.f32.gmra.mrb[56].mxu0 %v24323_v33  ;;  %v27000_v33 = vld [vmem:[#allocation8_spill] sm:$0xff]  ;;  %v14244_v31 = vand.u32 4294901760, %v14243_v1  ;;  %v14163_v1 = vsel %vm1606_vm3, %v7306_v26, 0  ;;  %v14166_v25 = vsel %vm1606_vm3, %v7307_v19, 0  ;;  %v27016_v26 = vld [vmem:[#allocation142_spill] sm:$0xff] }
 0x57a   :  { %19409 = vmatprep.mubr.f32.mxu1 %v26999_v18  ;;  %20019 = vmatprep.mubr.f32.mxu0 %v24338_v0  ;;  %v7287_v22 = vadd.f32 %v26987_v38, %v27000_v33  ;;  %v14252_v0 = vand.u32 4294901760, %v24674_v60  ;;  %v26361_v35 = vand.u32 4294901760, %v24708_v59  ;;  %v27010_v63 = vld [vmem:[#allocation180_spill] sm:$0xff]  ;;  %v26360_v33 = vand.u32 4294901760, %v24727_v27 }
 0x57b   :  { %19431 = vmatpush3.msra.mxu1 %v24602_v6  ;;  %v27002_v6 = vld [vmem:[#allocation13_spill] sm:$0xff]  ;;  %v7292_v18 = vadd.f32 %v26987_v38, %v27010_v63 }
 0x57c   :  { %19456 = vmatprep.subr.mxu1 %v24582_v28  ;;  %v7288_v51 = vadd.f32 %v26987_v38, %v27002_v6  ;;  %v7303_v24 = vmax.f32 %v7287_v22, 0.0  ;;  %v26359_v22 = vand.u32 4294901760, %v24732_v58  ;;  %v14283_v6 = vsub.f32 %v24708_v59, %v26361_v35  ;;  %v27044_v35 = vld [vmem:[#allocation76_spill] sm:$0xff] }
 0x57d   :  { %19410 = vmatmul.mubr.f32.gmra.mrb[34].mxu1 %v27001_v48  ;;  %20020 = vmatmul.mubr.f32.gmra.mrb[58].mxu0 %v24328_v34  ;;  %v14151_v34 = vsel %vm1606_vm3, %v7302_v29, 0 }
 0x57e   :  { %19412 = vmatprep.mubr.f32.mxu1 %v27003_v44  ;;  %20022 = vmatprep.mubr.f32.mxu0 %v24348_v13  ;;  %v14253_v13 = vsub.f32 %v24674_v60, %v14252_v0  ;;  %v7304_v11 = vmax.f32 %v7288_v51, 0.0  ;;  %v24736_v47 = vand.u32 4294901760, %v14151_v34  ;;  %v14154_v12 = vsel %vm1606_vm3, %v7303_v24, 0  ;;  %v27012_v24 = vld [vmem:[#allocation175_spill] sm:$0xff] }
 0x57f   :  { %v24759_v29 = vand.u32 4294901760, %v14154_v12  ;;  %v14160_v51 = vsel %vm1606_vm3, %v7305_v32, 0  ;;  %v7293_v36 = vadd.f32 %v26987_v38, %v27012_v24  ;;  %v14303_v56 = vsub.f32 %v24732_v58, %v26359_v22  ;;  %v27039_v22 = vld [vmem:[#allocation60_spill] sm:$0xff] }
 0x580   :  { %v14157_v3 = vsel %vm1606_vm3, %v7304_v11, 0  ;;  %v24762_v48 = vsub.f32 %v14151_v34, %v24736_v47  ;;  %v27014_v34 = vld [vmem:[#allocation132_spill] sm:$0xff]  ;;  %v14293_v11 = vsub.f32 %v24727_v27, %v26360_v33  ;;  %v26358_v38 = vand.u32 4294901760, %v24752_v54  ;;  %v27040_v33 = vld [vmem:[#allocation66_spill] sm:$0xff] }
 0x581   :  { %19413 = vmatmul.mubr.f32.gmra.mrb[36].mxu1 %v27005_v8  ;;  %20023 = vmatmul.mubr.f32.gmra.mrb[60].mxu0 %v24361_v15  ;;  %v14263_v15 = vsub.f32 %v24681_v43, %v14262_v55  ;;  %v24768_v44 = vand.u32 4294901760, %v14157_v3  ;;  %v7308_v8 = vmax.f32 %v7292_v18, 0.0  ;;  %v24784_v30 = vsub.f32 %v14154_v12, %v24759_v29 }
 0x582   :  { %19415 = vmatprep.mubr.f32.mxu1 %v27007_v49  ;;  %20025 = vmatprep.mubr.f32.mxu0 %v24382_v40  ;;  %v14254_v40 = vand.u32 4294901760, %v14253_v13  ;;  %v14274_v13 = vand.u32 4294901760, %v14273_v14  ;;  %v24786_v49 = vand.u32 4294901760, %v14160_v51  ;;  %v26357_v32 = vand.u32 4294901760, %v24762_v48 }
 0x583   :  { %v24791_v9 = vsub.f32 %v14157_v3, %v24768_v44  ;;  %v14169_v12 = vsel %vm1606_vm3, %v7308_v8, 0  ;;  %v14294_v63 = vand.u32 4294901760, %v14293_v11  ;;  %v14304_v18 = vand.u32 4294901760, %v14303_v56  ;;  %v27017_v8 = vld [vmem:[#allocation144_spill] sm:$0xff] }
 0x584   :  { %v14313_v3 = vsub.f32 %v24752_v54, %v26358_v38  ;;  %v24805_v14 = vand.u32 4294901760, %v14166_v25  ;;  %v27038_v38 = vld [vmem:[#allocation48_spill] sm:$0xff] }
 0x585   :  { %19416 = vmatmul.mubr.f32.gmra.mrb[38].mxu1 %v27009_v16  ;;  %20026 = vmatmul.mubr.f32.gmra.mrb[62].mxu0 %v24395_v21  ;;  %v14264_v21 = vand.u32 4294901760, %v14263_v15  ;;  %v14284_v15 = vand.u32 4294901760, %v14283_v6  ;;  %v7309_v16 = vmax.f32 %v7293_v36, 0.0  ;;  %v26354_v6 = vand.u32 4294901760, %v24784_v30 }
 0x586   :  { %19418 = vmatprep.mubr.f32.mxu1 %v27011_v45  ;;  %20030 = vmatprep.mubr.f32.mxu0 %v14244_v31  ;;  %v24794_v31 = vand.u32 4294901760, %v14163_v1  ;;  %v24803_v45 = vsub.f32 %v14160_v51, %v24786_v49  ;;  %v24815_v36 = vand.u32 4294901760, %v14169_v12  ;;  %v27018_v51 = vld [vmem:[#allocation146_spill] sm:$0xff] }
 0x587   :  { %v14172_v24 = vsel %vm1606_vm3, %v7309_v16, 0 }
 0x588   :  { %v24812_v19 = vsub.f32 %v14163_v1, %v24794_v31  ;;  %v24823_v11 = vand.u32 4294901760, %v14172_v24  ;;  %v14333_v1 = vsub.f32 %v24784_v30, %v26354_v6  ;;  %v26351_v56 = vand.u32 4294901760, %v24803_v45 }
 0x589   :  { %19419 = vmatmul.mubr.f32.gmra.mrb[40].mxu1 %v27013_v37  ;;  %20031 = vmatmul.mubr.f32.vlgmr.msra.gmra.mrb[64].mxu0 %v14254_v40  ;;  %v27015_v40 = vld [vmem:[#allocation139_spill] sm:$0xff]  ;;  %v26353_v37 = vand.u32 4294901760, %v24791_v9 }
 0x58a   :  { %19421 = vmatprep.mubr.f32.mxu1 %v27014_v34  ;;  %20033 = vmatprep.mubr.f32.mxu0 %v14264_v21  ;;  %v14323_v21 = vsub.f32 %v24762_v48, %v26357_v32  ;;  %v14314_v34 = vand.u32 4294901760, %v14313_v3  ;;  %v14334_v3 = vand.u32 4294901760, %v14333_v1  ;;  %v27037_v32 = vld [vmem:[#allocation38_spill] sm:$0xff] }
 0x58b   :  { %20055 = vmatpush3.msra.mxu0 %v26990_v7 }
 0x58c   :  { %20080 = vmatprep.subr.mxu0 %v23583_v53  ;;  %v14324_v16 = vand.u32 4294901760, %v14323_v21 }
 0x58d   :  { %19422 = vmatmul.mubr.f32.gmra.mrb[42].mxu1 %v27015_v40  ;;  %20034 = vmatmul.mubr.f32.gmra.mrb[66].mxu0 %v14274_v13  ;;  %v24821_v13 = vsub.f32 %v14166_v25, %v24805_v14  ;;  %v14343_v40 = vsub.f32 %v24791_v9, %v26353_v37  ;;  %v27019_v25 = vld [vmem:[#allocation147_spill] sm:$0xff] }
 0x58e   :  { %19424 = vmatprep.mubr.f32.mxu1 %v27016_v26  ;;  %20036 = vmatprep.mubr.f32.mxu0 %v14284_v15  ;;  %v24830_v15 = vsub.f32 %v14169_v12, %v24815_v36  ;;  %v26350_v26 = vand.u32 4294901760, %v24812_v19  ;;  %v14353_v12 = vsub.f32 %v24803_v45, %v26351_v56  ;;  %v27025_v37 = vld [vmem:[#allocation63_spill] sm:$0xff] }
 0x58f   :  { %v26352_v21 = vand.u32 4294901760, %v24821_v13 }
 0x591   :  { %19425 = vmatmul.mubr.f32.gmra.mrb[44].mxu1 %v27017_v8  ;;  %20037 = vmatmul.mubr.f32.gmra.mrb[68].mxu0 %v14294_v63  ;;  %v27020_v63 = vld [vmem:[#allocation29_spill] sm:$0xff]  ;;  %v14344_v8 = vand.u32 4294901760, %v14343_v40  ;;  %v14373_v1 = vsub.f32 %v24821_v13, %v26352_v21 }
 0x592   :  { %19427 = vmatprep.mubr.f32.mxu1 %v27018_v51  ;;  %20039 = vmatprep.mubr.f32.mxu0 %v14304_v18  ;;  %v24839_v18 = vsub.f32 %v14172_v24, %v24823_v11  ;;  %v14363_v51 = vsub.f32 %v24812_v19, %v26350_v26  ;;  %v14354_v24 = vand.u32 4294901760, %v14353_v12 }
 0x594   :  { %v26356_v40 = vand.u32 4294901760, %v24839_v18  ;;  %v14364_v26 = vand.u32 4294901760, %v14363_v51  ;;  %v27026_v51 = vld [vmem:[#allocation61_spill] sm:$0xff] }
 0x595   :  { %19428 = vmatmul.mubr.f32.gmra.mrb[46].mxu1 %v27019_v25  ;;  %20040 = vmatmul.mubr.f32.gmra.mrb[70].mxu0 %v14314_v34  ;;  %v26355_v34 = vand.u32 4294901760, %v24830_v15  ;;  %v27021_v25 = vld [vmem:[#allocation32_spill] sm:$0xff] }
 0x596   :  { %19432 = vmatprep.mubr.f32.mxu1 %v27020_v63  ;;  %20042 = vmatprep.mubr.f32.mxu0 %v14324_v16  ;;  %v27022_v16 = vld [vmem:[#allocation45_spill] sm:$0xff]  ;;  %v14393_v12 = vsub.f32 %v24839_v18, %v26356_v40 }
 0x597   :  { %v14383_v56 = vsub.f32 %v24830_v15, %v26355_v34  ;;  %v27027_v34 = vld [vmem:[#allocation78_spill] sm:$0xff]  ;;  %v27036_v40 = vld [vmem:[#allocation33_spill] sm:$0xff] }
 0x598   :  { %v14394_v6 = vand.u32 4294901760, %v14393_v12  ;;  %v27035_v12 = vld [vmem:[#allocation47_spill] sm:$0xff] }
 0x599   :  { %19433 = vmatmul.mubr.f32.vlgmr.msra.gmra.mrb[32].mxu1 %v27021_v25  ;;  %20043 = vmatmul.mubr.f32.gmra.mrb[72].mxu0 %v14334_v3  ;;  %v27023_v3 = vld [vmem:[#allocation54_spill] sm:$0xff]  ;;  %v14384_v21 = vand.u32 4294901760, %v14383_v56 }
 0x59a   :  { %19435 = vmatprep.mubr.f32.mxu1 %v27022_v16  ;;  %20045 = vmatprep.mubr.f32.mxu0 %v14344_v8  ;;  %v27024_v8 = vld [vmem:[#allocation59_spill] sm:$0xff]  ;;  %v27031_v56 = vld [vmem:[#allocation98_spill] sm:$0xff] }
 0x59b   :  { %19457 = vmatpush3.msra.mxu1 %v24582_v28  ;;  %v14374_v28 = vand.u32 4294901760, %v14373_v1  ;;  %v27030_v1 = vld [vmem:[#allocation87_spill] sm:$0xff] }
 0x59c   :  { %19482 = vmatprep.subr.mxu1 %v24549_v41 }
 0x59d   :  { %19436 = vmatmul.mubr.f32.gmra.mrb[34].mxu1 %v27023_v3  ;;  %20046 = vmatmul.mubr.f32.gmra.mrb[74].mxu0 %v14354_v24  ;;  %v27028_v24 = vld [vmem:[#allocation67_spill] sm:$0xff] }
 0x59e   :  { %19438 = vmatprep.mubr.f32.mxu1 %v27024_v8  ;;  %20048 = vmatprep.mubr.f32.mxu0 %v14364_v26  ;;  %v27029_v26 = vld [vmem:[#allocation94_spill] sm:$0xff] }
 0x5a1   :  { %19439 = vmatmul.mubr.f32.gmra.mrb[36].mxu1 %v27025_v37  ;;  %20049 = vmatmul.mubr.f32.gmra.mrb[76].mxu0 %v14374_v28  ;;  %v27034_v28 = vld [vmem:[#allocation104_spill] sm:$0xff] }
 0x5a2   :  { %19441 = vmatprep.mubr.f32.mxu1 %v27026_v51  ;;  %20051 = vmatprep.mubr.f32.mxu0 %v14384_v21  ;;  %v27033_v21 = vld [vmem:[#allocation108_spill] sm:$0xff] }
 0x5a5   :  { %19442 = vmatmul.mubr.f32.gmra.mrb[38].mxu1 %v27027_v34  ;;  %20052 = vmatmul.mubr.f32.gmra.mrb[78].mxu0 %v14394_v6  ;;  %v27032_v6 = vld [vmem:[#allocation97_spill] sm:$0xff] }
 0x5a6   :  { %19444 = vmatprep.mubr.f32.mxu1 %v27028_v24  ;;  %20056 = vmatprep.mubr.f32.mxu0 %v24653_v57 }
 0x5a9   :  { %19445 = vmatmul.mubr.f32.gmra.mrb[40].mxu1 %v27029_v26  ;;  %20057 = vmatmul.mubr.f32.vlgmr.msra.gmra.mrb[64].mxu0 %v24656_v4 }
 0x5aa   :  { %19447 = vmatprep.mubr.f32.mxu1 %v27030_v1  ;;  %20059 = vmatprep.mubr.f32.mxu0 %v24660_v20 }
 0x5ab   :  { %20081 = vmatpush3.msra.mxu0 %v23583_v53 }
 0x5ac   :  { %20106 = vmatprep.subr.mxu0 %v23552_v52 }
 0x5ad   :  { %19448 = vmatmul.mubr.f32.gmra.mrb[42].mxu1 %v27031_v56  ;;  %20060 = vmatmul.mubr.f32.gmra.mrb[66].mxu0 %v24678_v39 }
 0x5ae   :  { %19450 = vmatprep.mubr.f32.mxu1 %v27032_v6  ;;  %20062 = vmatprep.mubr.f32.mxu0 %v24686_v61 }
 0x5b1   :  { %19451 = vmatmul.mubr.f32.gmra.mrb[44].mxu1 %v27033_v21  ;;  %20063 = vmatmul.mubr.f32.gmra.mrb[68].mxu0 %v24702_v42 }
 0x5b2   :  { %19453 = vmatprep.mubr.f32.mxu1 %v27034_v28  ;;  %20065 = vmatprep.mubr.f32.mxu0 %v24704_v17 }
 0x5b5   :  { %19454 = vmatmul.mubr.f32.gmra.mrb[46].mxu1 %v27035_v12  ;;  %20066 = vmatmul.mubr.f32.gmra.mrb[70].mxu0 %v24729_v2 }
 0x5b6   :  { %19458 = vmatprep.mubr.f32.mxu1 %v27036_v40  ;;  %20068 = vmatprep.mubr.f32.mxu0 %v24736_v47  ;;  %v27041_v40 = vld [vmem:[#allocation73_spill] sm:$0xff] }
 0x5b9   :  { %19459 = vmatmul.mubr.f32.vlgmr.msra.gmra.mrb[32].mxu1 %v27037_v32  ;;  %20069 = vmatmul.mubr.f32.gmra.mrb[72].mxu0 %v24759_v29  ;;  %v27042_v32 = vld [vmem:[#allocation71_spill] sm:$0xff] }
 0x5ba   :  { %19461 = vmatprep.mubr.f32.mxu1 %v27038_v38  ;;  %20071 = vmatprep.mubr.f32.mxu0 %v24768_v44  ;;  %v27043_v38 = vld [vmem:[#allocation85_spill] sm:$0xff] }
 0x5bb   :  { %19483 = vmatpush3.msra.mxu1 %v24549_v41 }
 0x5bc   :  { %19508 = vmatprep.subr.mxu1 %v24590_v23 }
 0x5bd   :  { %19462 = vmatmul.mubr.f32.gmra.mrb[34].mxu1 %v27039_v22  ;;  %20072 = vmatmul.mubr.f32.gmra.mrb[74].mxu0 %v24786_v49  ;;  %v27045_v22 = vld [vmem:[#allocation103_spill] sm:$0xff] }
 0x5be   :  { %19464 = vmatprep.mubr.f32.mxu1 %v27040_v33  ;;  %20074 = vmatprep.mubr.f32.mxu0 %v24794_v31  ;;  %v27046_v33 = vld [vmem:[#allocation92_spill] sm:$0xff] }
 0x5c1   :  { %19465 = vmatmul.mubr.f32.gmra.mrb[36].mxu1 %v27041_v40  ;;  %20075 = vmatmul.mubr.f32.gmra.mrb[76].mxu0 %v24805_v14  ;;  %v27047_v40 = vld [vmem:[#allocation112_spill] sm:$0xff] }
 0x5c2   :  { %19467 = vmatprep.mubr.f32.mxu1 %v27042_v32  ;;  %20077 = vmatprep.mubr.f32.mxu0 %v24815_v36  ;;  %v27048_v32 = vld [vmem:[#allocation107_spill] sm:$0xff] }
 0x5c5   :  { %19468 = vmatmul.mubr.f32.gmra.mrb[38].mxu1 %v27043_v38  ;;  %20078 = vmatmul.mubr.f32.gmra.mrb[78].mxu0 %v24823_v11  ;;  %v27050_v38 = vld [vmem:[#allocation115_spill] sm:$0xff] }
 0x5c6   :  { %19470 = vmatprep.mubr.f32.mxu1 %v27044_v35  ;;  %20082 = vmatprep.mubr.f32.mxu0 %v24667_v5  ;;  %v27049_v35 = vld [vmem:[#allocation123_spill] sm:$0xff]  ;;  %v27064_v5 = vld [vmem:[#allocation133_spill] sm:$0xff] }
 0x5c9   :  { %19471 = vmatmul.mubr.f32.gmra.mrb[40].mxu1 %v27045_v22  ;;  %20083 = vmatmul.mubr.f32.vlgmr.msra.gmra.mrb[64].mxu0 %v24674_v60  ;;  %v27051_v22 = vld [vmem:[#allocation53_spill] sm:$0xff]  ;;  %v27066_v60 = vld [vmem:[#allocation136_spill] sm:$0xff] }
 0x5ca   :  { %19473 = vmatprep.mubr.f32.mxu1 %v27046_v33  ;;  %20085 = vmatprep.mubr.f32.mxu0 %v24681_v43  ;;  %v27052_v33 = vld [vmem:[#allocation40_spill] sm:$0xff]  ;;  %v27068_v43 = vld [vmem:[#allocation137_spill] sm:$0xff] }
 0x5cb   :  { %20107 = vmatpush3.msra.mxu0 %v23552_v52 }
 0x5cc   :  { %20132 = vmatprep.subr.mxu0 %v26951_v62 }
 0x5cd   :  { %19474 = vmatmul.mubr.f32.gmra.mrb[42].mxu1 %v27047_v40  ;;  %20086 = vmatmul.mubr.f32.gmra.mrb[66].mxu0 %v24700_v46  ;;  %v27053_v40 = vld [vmem:[#allocation43_spill] sm:$0xff]  ;;  %v27070_v46 = vld [vmem:[#allocation141_spill] sm:$0xff] }
 0x5ce   :  { %19476 = vmatprep.mubr.f32.mxu1 %v27048_v32  ;;  %20088 = vmatprep.mubr.f32.mxu0 %v24708_v59  ;;  %v27054_v32 = vld [vmem:[#allocation58_spill] sm:$0xff] }
 0x5d1   :  { %19477 = vmatmul.mubr.f32.gmra.mrb[44].mxu1 %v27049_v35  ;;  %20089 = vmatmul.mubr.f32.gmra.mrb[68].mxu0 %v24727_v27  ;;  %v27055_v35 = vld [vmem:[#allocation68_spill] sm:$0xff] }
 0x5d2   :  { %19479 = vmatprep.mubr.f32.mxu1 %v27050_v38  ;;  %20091 = vmatprep.mubr.f32.mxu0 %v24732_v58  ;;  %v27056_v38 = vld [vmem:[#allocation81_spill] sm:$0xff] }
 0x5d5   :  { %19480 = vmatmul.mubr.f32.gmra.mrb[46].mxu1 %v27051_v22  ;;  %20092 = vmatmul.mubr.f32.gmra.mrb[70].mxu0 %v24752_v54  ;;  %v27057_v22 = vld [vmem:[#allocation91_spill] sm:$0xff] }
 0x5d6   :  { %19484 = vmatprep.mubr.f32.mxu1 %v27052_v33  ;;  %20094 = vmatprep.mubr.f32.mxu0 %v24762_v48  ;;  %v27058_v33 = vld [vmem:[#allocation99_spill] sm:$0xff] }
 0x5d9   :  { %19485 = vmatmul.mubr.f32.vlgmr.msra.gmra.mrb[32].mxu1 %v27053_v40  ;;  %20095 = vmatmul.mubr.f32.gmra.mrb[72].mxu0 %v24784_v30  ;;  %v27059_v40 = vld [vmem:[#allocation110_spill] sm:$0xff] }
 0x5da   :  { %19487 = vmatprep.mubr.f32.mxu1 %v27054_v32  ;;  %20097 = vmatprep.mubr.f32.mxu0 %v24791_v9  ;;  %v27061_v32 = vld [vmem:[#allocation120_spill] sm:$0xff] }
 0x5db   :  { %19509 = vmatpush3.msra.mxu1 %v24590_v23  ;;  %v27060_v23 = vld [vmem:[#allocation117_spill] sm:$0xff] }
 0x5dc   :  { %19534 = vmatprep.subr.mxu1 %v24549_v41 }
 0x5dd   :  { %19488 = vmatmul.mubr.f32.gmra.mrb[34].mxu1 %v27055_v35  ;;  %20098 = vmatmul.mubr.f32.gmra.mrb[74].mxu0 %v24803_v45  ;;  %v27062_v35 = vld [vmem:[#allocation121_spill] sm:$0xff] }
 0x5de   :  { %19490 = vmatprep.mubr.f32.mxu1 %v27056_v38  ;;  %20100 = vmatprep.mubr.f32.mxu0 %v24812_v19  ;;  %v27063_v38 = vld [vmem:[#allocation128_spill] sm:$0xff] }
 0x5e1   :  { %19491 = vmatmul.mubr.f32.gmra.mrb[36].mxu1 %v27057_v22  ;;  %20101 = vmatmul.mubr.f32.gmra.mrb[76].mxu0 %v24821_v13  ;;  %v27069_v22 = vand.u32 4294901760, %v24732_v58  ;;  %v27074_v58 = vand.u32 4294901760, %v24791_v9  ;;  %v27079_v9 = vand.u32 4294901760, %v24839_v18 }
 0x5e2   :  { %19493 = vmatprep.mubr.f32.mxu1 %v27058_v33  ;;  %20103 = vmatprep.mubr.f32.mxu0 %v24830_v15 }
 0x5e5   :  { %19494 = vmatmul.mubr.f32.gmra.mrb[38].mxu1 %v27059_v40  ;;  %20104 = vmatmul.mubr.f32.gmra.mrb[78].mxu0 %v24839_v18  ;;  %v27073_v40 = vand.u32 4294901760, %v24784_v30  ;;  %v27077_v30 = vand.u32 4294901760, %v24821_v13 }
 0x5e6   :  { %19496 = vmatprep.mubr.f32.mxu1 %v27060_v23  ;;  %20108 = vmatprep.mubr.f32.mxu0 %v14242_v10  ;;  %v27065_v10 = vand.u32 4294901760, %v24708_v59  ;;  %v27071_v59 = vand.u32 4294901760, %v24752_v54  ;;  %v27075_v54 = vand.u32 4294901760, %v24803_v45  ;;  %v1509_v45 = vpop.permute.xlu1 %1508 }
 0x5e9   :  { %19497 = vmatmul.mubr.f32.gmra.mrb[40].mxu1 %v27061_v32  ;;  %20109 = vmatmul.mubr.f32.vlgmr.msra.gmra.mrb[64].mxu0 %v14252_v0  ;;  %v27067_v0 = vand.u32 4294901760, %v24727_v27  ;;  %v27072_v27 = vand.u32 4294901760, %v24762_v48  ;;  %v27076_v48 = vand.u32 4294901760, %v24812_v19  ;;  %v1504_v19 = vpop.permute.xlu0 %1503 }
 0x5ea   :  { %19499 = vmatprep.mubr.f32.mxu1 %v27062_v35  ;;  %20111 = vmatprep.mubr.f32.mxu0 %v14262_v55  ;;  %v10614_v55 = vld [vmem:[%s25953_s3] sm:$0xf]  ;;  %v1519_v18 = vpop.permute.xlu1 %1518 }
 0x5eb   :  { %20133 = vmatpush3.msra.mxu0 %v26951_v62 }
 0x5ec   :  { %20158 = vmatprep.subr.mxu0 %v23552_v52 }
 0x5ed   :  { %19500 = vmatmul.mubr.f32.gmra.mrb[42].mxu1 %v27063_v38  ;;  %20112 = vmatmul.mubr.f32.gmra.mrb[66].mxu0 %v14272_v50  ;;  %v10664_v50 = vsel %vm1655_vm1, %v10614_v55, 0  ;;  %v1514_v23 = vpop.permute.xlu0 %1513  ;;  %v27082_v55 = vld [vmem:[#allocation24_spill] sm:$0xff] }
 0x5ee   :  { %19502 = vmatprep.mubr.f32.mxu1 %v27064_v5  ;;  %20114 = vmatprep.mubr.f32.mxu0 %v27065_v10  ;;  %v24973_v33 = vand.u32 4294901760, %v10664_v50  ;;  %v1529_v35 = vpop.permute.xlu1 %1528  ;;  %v27080_v10 = vld [vmem:[#allocation20_spill] sm:$0xff] }
 0x5f0   :  { %v25006_v13 = vsub.f32 %v10664_v50, %v24973_v33 }
 0x5f1   :  { %19503 = vmatmul.mubr.f32.gmra.mrb[44].mxu1 %v27066_v60  ;;  %20115 = vmatmul.mubr.f32.gmra.mrb[68].mxu0 %v27067_v0  ;;  %v1524_v38 = vpop.permute.xlu0 %1523 }
 0x5f2   :  { %19505 = vmatprep.mubr.f32.mxu1 %v27068_v43  ;;  %20117 = vmatprep.mubr.f32.mxu0 %v27069_v22  ;;  %v1539_v60 = vpop.permute.xlu1 %1538  ;;  %v1583_v22 = vmul.f32 %v1514_v23, %v27082_v55 }
 0x5f5   :  { %19506 = vmatmul.mubr.f32.gmra.mrb[46].mxu1 %v27070_v46  ;;  %20118 = vmatmul.mubr.f32.gmra.mrb[70].mxu0 %v27071_v59  ;;  %v1534_v0 = vpop.permute.xlu0 %1533 }
 0x5f6   :  { %19510 = vmatprep.mubr.f32.mxu1 %v27020_v63  ;;  %20120 = vmatprep.mubr.f32.mxu0 %v27072_v27  ;;  %v1549_v50 = vpop.permute.xlu1 %1548  ;;  %v27084_v27 = vld [vmem:[#allocation23_spill] sm:$0xff] }
 0x5f9   :  { %19511 = vmatmul.mubr.f32.vlgmr.msra.gmra.mrb[32].mxu1 %v27021_v25  ;;  %20121 = vmatmul.mubr.f32.gmra.mrb[72].mxu0 %v27073_v40  ;;  %v1584_v40 = vmul.f32 %v1519_v18, %v27084_v27  ;;  %v27091_v27 = vld [vmem:[#allocation70_spill] sm:$0xff] }
 0x5fa   :  { %19513 = vmatprep.mubr.f32.mxu1 %v27022_v16  ;;  %20123 = vmatprep.mubr.f32.mxu0 %v27074_v58  ;;  %v1544_v58 = vpop.permute.xlu0 %1543 }
 0x5fb   :  { %19535 = vmatpush3.msra.mxu1 %v24549_v41  ;;  %v27078_v41 = vand.u32 4294901760, %v24830_v15  ;;  %v25014_v15 = vand.u32 4294901760, %v25006_v13 }
 0x5fc   :  { %19560 = vmatprep.subr.mxu1 %v24973_v33 }
 0x5fd   :  { %19514 = vmatmul.mubr.f32.gmra.mrb[34].mxu1 %v27023_v3  ;;  %20124 = vmatmul.mubr.f32.gmra.mrb[74].mxu0 %v27075_v54  ;;  %v10896_v32 = vsub.f32 %v25006_v13, %v25014_v15  ;;  %v10622_v54 = vsel %vm1606_vm3, %v1583_v22, 0  ;;  %v27090_v22 = vld [vmem:[#allocation77_spill] sm:$0xff] }
 0x5fe   :  { %19516 = vmatprep.mubr.f32.mxu1 %v27024_v8  ;;  %20126 = vmatprep.mubr.f32.mxu0 %v27076_v48 }
 0x5ff   :  { %v25026_v5 = vand.u32 4294901760, %v10896_v32 }
 0x601   :  { %19517 = vmatmul.mubr.f32.gmra.mrb[36].mxu1 %v27025_v37  ;;  %20127 = vmatmul.mubr.f32.gmra.mrb[76].mxu0 %v27077_v30 }
 0x602   :  { %19519 = vmatprep.mubr.f32.mxu1 %v27026_v51  ;;  %20129 = vmatprep.mubr.f32.mxu0 %v27078_v41 }
 0x605   :  { %19520 = vmatmul.mubr.f32.gmra.mrb[38].mxu1 %v27027_v34  ;;  %20130 = vmatmul.mubr.f32.gmra.mrb[78].mxu0 %v27079_v9  ;;  %v25063_v9 = vand.u32 4294901760, %v10622_v54 }
 0x606   :  { %19522 = vmatprep.mubr.f32.mxu1 %v27028_v24  ;;  %20134 = vmatprep.mubr.f32.mxu0 %v24653_v57 }
 0x609   :  { %19523 = vmatmul.mubr.f32.gmra.mrb[40].mxu1 %v27029_v26  ;;  %20135 = vmatmul.mubr.f32.vlgmr.msra.gmra.mrb[64].mxu0 %v24656_v4 }
 0x60a   :  { %19525 = vmatprep.mubr.f32.mxu1 %v27030_v1  ;;  %20137 = vmatprep.mubr.f32.mxu0 %v24660_v20 }
 0x60b   :  { %20159 = vmatpush3.msra.mxu0 %v23552_v52 }
 0x60c   :  { %20184 = vmatprep.subr.mxu0 %v23552_v52 }
 0x60d   :  { %19526 = vmatmul.mubr.f32.gmra.mrb[42].mxu1 %v27031_v56  ;;  %20138 = vmatmul.mubr.f32.gmra.mrb[66].mxu0 %v24678_v39 }
 0x60e   :  { %19528 = vmatprep.mubr.f32.mxu1 %v27032_v6  ;;  %20140 = vmatprep.mubr.f32.mxu0 %v24686_v61 }
 0x611   :  { %19529 = vmatmul.mubr.f32.gmra.mrb[44].mxu1 %v27033_v21  ;;  %20141 = vmatmul.mubr.f32.gmra.mrb[68].mxu0 %v24702_v42 }
 0x612   :  { %19531 = vmatprep.mubr.f32.mxu1 %v27034_v28  ;;  %20143 = vmatprep.mubr.f32.mxu0 %v24704_v17 }
 0x615   :  { %19532 = vmatmul.mubr.f32.gmra.mrb[46].mxu1 %v27035_v12  ;;  %20144 = vmatmul.mubr.f32.gmra.mrb[70].mxu0 %v24729_v2 }
 0x616   :  { %19536 = vmatprep.mubr.f32.mxu1 %v27020_v63  ;;  %20146 = vmatprep.mubr.f32.mxu0 %v24736_v47  ;;  %v1581_v63 = vmul.f32 %v1504_v19, %v27080_v10 }
 0x618   :  { %v10616_v43 = vsel %vm1606_vm3, %v1581_v63, 0 }
 0x619   :  { %19537 = vmatmul.mubr.f32.vlgmr.msra.gmra.mrb[32].mxu1 %v27021_v25  ;;  %20147 = vmatmul.mubr.f32.gmra.mrb[72].mxu0 %v24759_v29  ;;  %v27081_v25 = vld [vmem:[#allocation19_spill] sm:$0xff]  ;;  %v25048_v59 = vand.u32 4294901760, %v10616_v43 }
 0x61a   :  { %19539 = vmatprep.mubr.f32.mxu1 %v27022_v16  ;;  %20149 = vmatprep.mubr.f32.mxu0 %v24768_v44  ;;  %v1582_v16 = vmul.f32 %v1509_v45, %v27081_v25  ;;  %v10625_v45 = vsel %vm1606_vm3, %v1584_v40, 0 }
 0x61b   :  { %19561 = vmatpush3.msra.mxu1 %v24973_v33  ;;  %v25061_v41 = vsub.f32 %v10616_v43, %v25048_v59  ;;  %v25076_v32 = vand.u32 4294901760, %v10625_v45 }
 0x61c   :  { %19586 = vmatprep.subr.mxu1 %v25026_v5 }
 0x61d   :  { %19540 = vmatmul.mubr.f32.gmra.mrb[34].mxu1 %v27023_v3  ;;  %20150 = vmatmul.mubr.f32.gmra.mrb[74].mxu0 %v24786_v49  ;;  %v27083_v3 = vld [vmem:[#allocation26_spill] sm:$0xff] }
 0x61e   :  { %19542 = vmatprep.mubr.f32.mxu1 %v27024_v8  ;;  %20152 = vmatprep.mubr.f32.mxu0 %v24794_v31  ;;  %v1585_v46 = vmul.f32 %v1524_v38, %v27083_v3  ;;  %v10619_v8 = vsel %vm1606_vm3, %v1582_v16, 0  ;;  %v27087_v38 = vld [vmem:[#allocation34_spill] sm:$0xff] }
 0x620   :  { %v10628_v30 = vsel %vm1606_vm3, %v1585_v46, 0 }
 0x621   :  { %19543 = vmatmul.mubr.f32.gmra.mrb[36].mxu1 %v27025_v37  ;;  %20153 = vmatmul.mubr.f32.gmra.mrb[76].mxu0 %v24805_v14  ;;  %v25055_v37 = vand.u32 4294901760, %v10619_v8  ;;  %v25067_v19 = vand.u32 4294901760, %v10628_v30 }
 0x622   :  { %19545 = vmatprep.mubr.f32.mxu1 %v27026_v51  ;;  %20155 = vmatprep.mubr.f32.mxu0 %v24815_v36  ;;  %v27085_v51 = vld [vmem:[#allocation25_spill] sm:$0xff] }
 0x623   :  { %v1586_v48 = vmul.f32 %v1529_v35, %v27085_v51  ;;  %v25072_v18 = vsub.f32 %v10619_v8, %v25055_v37  ;;  %v25088_v10 = vsub.f32 %v10628_v30, %v25067_v19 }
 0x625   :  { %19546 = vmatmul.mubr.f32.gmra.mrb[38].mxu1 %v27027_v34  ;;  %20156 = vmatmul.mubr.f32.gmra.mrb[78].mxu0 %v24823_v11  ;;  %v1559_v34 = vpop.permute.xlu1 %1558  ;;  %v10631_v35 = vsel %vm1606_vm3, %v1586_v48, 0  ;;  %v10744_v43 = vand.u32 4294901760, %v25072_v18 }
 0x626   :  { %19548 = vmatprep.mubr.f32.mxu1 %v27028_v24  ;;  %20160 = vmatprep.mubr.f32.mxu0 %v24653_v57  ;;  %v1554_v24 = vpop.permute.xlu0 %1553  ;;  %v27086_v57 = vld [vmem:[#allocation41_spill] sm:$0xff]  ;;  %v1592_v40 = vmul.f32 %v1559_v34, %v27091_v27  ;;  %v27092_v34 = vld [vmem:[#allocation96_spill] sm:$0xff] }
 0x627   :  { %v1587_v23 = vmul.f32 %v1534_v0, %v27086_v57  ;;  %v25093_v0 = vand.u32 4294901760, %v10631_v35  ;;  %v1591_v3 = vmul.f32 %v1554_v24, %v27090_v22 }
 0x629   :  { %19549 = vmatmul.mubr.f32.gmra.mrb[40].mxu1 %v27029_v26  ;;  %20161 = vmatmul.mubr.f32.vlgmr.msra.gmra.mrb[64].mxu0 %v24656_v4  ;;  %v25081_v26 = vsub.f32 %v10622_v54, %v25063_v9  ;;  %v1588_v4 = vmul.f32 %v1539_v60, %v27087_v38  ;;  %v10634_v25 = vsel %vm1606_vm3, %v1587_v23, 0  ;;  %v27089_v60 = vld [vmem:[#allocation50_spill] sm:$0xff]  ;;  %v1569_v55 = vpop.permute.xlu1 %1568  ;;  %v10745_v54 = vsub.f32 %v25072_v18, %v10744_v43 }
 0x62a   :  { %19551 = vmatprep.mubr.f32.mxu1 %v27030_v1  ;;  %20163 = vmatprep.mubr.f32.mxu0 %v24660_v20  ;;  %v10734_v1 = vand.u32 4294901760, %v25061_v41  ;;  %v27088_v20 = vld [vmem:[#allocation52_spill] sm:$0xff]  ;;  %v1590_v16 = vmul.f32 %v1549_v50, %v27089_v60  ;;  %v1564_v46 = vpop.permute.xlu0 %1563  ;;  %v10646_v30 = vsel %vm1606_vm3, %v1591_v3, 0  ;;  %v27093_v60 = vld [vmem:[#allocation90_spill] sm:$0xff]  ;;  %v10649_v3 = vsel %vm1606_vm3, %v1592_v40, 0 }
 0x62b   :  { %20185 = vmatpush3.msra.mxu0 %v23552_v52  ;;  %v1589_v63 = vmul.f32 %v1544_v58, %v27088_v20  ;;  %v10637_v8 = vsel %vm1606_vm3, %v1588_v4, 0  ;;  %v25116_v58 = vsub.f32 %v10631_v35, %v25093_v0  ;;  %v1593_v24 = vmul.f32 %v1564_v46, %v27092_v34  ;;  %v27094_v46 = vld [vmem:[#allocation17_spill] sm:$0xff] }
 0x62c   :  { %20210 = vmatprep.subr.mxu0 %v26990_v7  ;;  %v25123_v51 = vand.u32 4294901760, %v10637_v8  ;;  %v10643_v48 = vsel %vm1606_vm3, %v1590_v16, 0  ;;  %v25142_v20 = vand.u32 4294901760, %v10646_v30  ;;  %v1594_v16 = vmul.f32 %v1569_v55, %v27093_v60 }
 0x62d   :  { %19552 = vmatmul.mubr.f32.gmra.mrb[42].mxu1 %v27031_v56  ;;  %20164 = vmatmul.mubr.f32.gmra.mrb[66].mxu0 %v24678_v39  ;;  %v25100_v56 = vsub.f32 %v10625_v45, %v25076_v32  ;;  %v10735_v39 = vsub.f32 %v25061_v41, %v10734_v1  ;;  %v10640_v50 = vsel %vm1606_vm3, %v1589_v63, 0  ;;  %v10774_v45 = vand.u32 4294901760, %v25088_v10  ;;  %v1579_v57 = vpop.permute.xlu1 %1578 }
 0x62e   :  { %19554 = vmatprep.mubr.f32.mxu1 %v27032_v6  ;;  %20166 = vmatprep.mubr.f32.mxu0 %v24686_v61  ;;  %v10754_v6 = vand.u32 4294901760, %v25081_v26  ;;  %v25109_v61 = vand.u32 4294901760, %v10634_v25  ;;  %v1574_v35 = vpop.permute.xlu0 %1573  ;;  %v10784_v38 = vand.u32 4294901760, %v25116_v58  ;;  %v25140_v4 = vand.u32 4294901760, %v10643_v48 }
 0x62f   :  { %v10746_v63 = vand.u32 4294901760, %v10745_v54  ;;  %v10775_v22 = vsub.f32 %v25088_v10, %v10774_v45  ;;  %v10652_v27 = vsel %vm1606_vm3, %v1593_v24, 0  ;;  %v27095_v54 = vld [vmem:[#allocation102_spill] sm:$0xff]  ;;  %v25173_v34 = vand.u32 4294901760, %v10649_v3 }
 0x630   :  { %v25136_v23 = vsub.f32 %v10634_v25, %v25109_v61  ;;  %v25149_v25 = vsub.f32 %v10637_v8, %v25123_v51  ;;  %v10785_v55 = vsub.f32 %v25116_v58, %v10784_v38  ;;  %v25168_v40 = vsub.f32 %v10643_v48, %v25140_v4 }
 0x631   :  { %19555 = vmatmul.mubr.f32.gmra.mrb[44].mxu1 %v27033_v21  ;;  %20167 = vmatmul.mubr.f32.gmra.mrb[68].mxu0 %v24702_v42  ;;  %v10764_v21 = vand.u32 4294901760, %v25100_v56  ;;  %v10736_v42 = vand.u32 4294901760, %v10735_v39  ;;  %v1596_v39 = vmul.f32 %v1579_v57, %v27094_v46  ;;  %v25178_v24 = vand.u32 4294901760, %v10652_v27 }
 0x632   :  { %19557 = vmatprep.mubr.f32.mxu1 %v27034_v28  ;;  %20169 = vmatprep.mubr.f32.mxu0 %v24704_v17  ;;  %v10755_v28 = vsub.f32 %v25081_v26, %v10754_v6  ;;  %v25131_v17 = vand.u32 4294901760, %v10640_v50  ;;  %v26365_v8 = vand.u32 4294901760, %v25136_v23  ;;  %v10776_v57 = vand.u32 4294901760, %v10775_v22 }
 0x633   :  { %v10661_v48 = vsel %vm1606_vm3, %v1596_v39, 0  ;;  %v26364_v22 = vand.u32 4294901760, %v25168_v40 }
 0x635   :  { %19558 = vmatmul.mubr.f32.gmra.mrb[46].mxu1 %v27035_v12  ;;  %20170 = vmatmul.mubr.f32.gmra.mrb[70].mxu0 %v24729_v2  ;;  %v10765_v12 = vsub.f32 %v25100_v56, %v10764_v21  ;;  %v10756_v2 = vand.u32 4294901760, %v10755_v28  ;;  %v26362_v28 = vand.u32 4294901760, %v25149_v25 }
 0x636   :  { %19562 = vmatprep.mubr.f32.mxu1 %v10736_v42  ;;  %20172 = vmatprep.mubr.f32.mxu0 %v24736_v47  ;;  %v25158_v47 = vsub.f32 %v10640_v50, %v25131_v17  ;;  %v1595_v42 = vmul.f32 %v1574_v35, %v27095_v54  ;;  %v10655_v35 = vsel %vm1606_vm3, %v1594_v16, 0  ;;  %v10786_v16 = vand.u32 4294901760, %v10785_v55 }
 0x637   :  { %v10766_v50 = vand.u32 4294901760, %v10765_v12  ;;  %v10805_v39 = vsub.f32 %v25149_v25, %v26362_v28  ;;  %v25202_v54 = vsub.f32 %v10649_v3, %v25173_v34  ;;  %v25215_v28 = vand.u32 4294901760, %v10661_v48 }
 0x639   :  { %19563 = vmatmul.mubr.f32.vlgmr.msra.gmra.mrb[32].mxu1 %v10746_v63  ;;  %20173 = vmatmul.mubr.f32.gmra.mrb[72].mxu0 %v24759_v29  ;;  %v25176_v29 = vsub.f32 %v10646_v30, %v25142_v20  ;;  %v26363_v30 = vand.u32 4294901760, %v25158_v47 }
 0x63a   :  { %19565 = vmatprep.mubr.f32.mxu1 %v10756_v2  ;;  %20175 = vmatprep.mubr.f32.mxu0 %v24768_v44  ;;  %v10658_v44 = vsel %vm1606_vm3, %v1595_v42, 0  ;;  %v10795_v2 = vsub.f32 %v25136_v23, %v26365_v8  ;;  %v25207_v42 = vsub.f32 %v10652_v27, %v25178_v24 }
 0x63b   :  { %19587 = vmatpush3.msra.mxu1 %v25026_v5  ;;  %v25187_v5 = vld [vmem:[%s25957_s6] ss:$0 sm:$0xff]  ;;  %v25209_v55 = vand.u32 4294901760, %v10658_v44 }
 0x63c   :  { %19612 = vmatprep.subr.mxu1 %v25006_v13  ;;  %v20006_v63 = vpop.f32.mrb[48].mxu0 }
 0x63d   :  { %19566 = vmatmul.mubr.f32.gmra.mrb[34].mxu1 %v10766_v50  ;;  %v20412_v12 = vadd.f32 %v20006_v63, %v25187_v5  ;;  %v14016_v60 = vpop.f32.mrb[49].mxu0  ;;  %20176 = vmatmul.mubr.f32.gmra.mrb[74].mxu0 %v24786_v49  ;;  %v25204_v49 = vand.u32 4294901760, %v10655_v35 }
 0x63e   :  { %19568 = vmatprep.mubr.f32.mxu1 %v10776_v57  ;;  %v20413_v46 = vadd.f32 %v25187_v5, %v14016_v60  ;;  %20178 = vmatprep.mubr.f32.mxu0 %v24794_v31  ;;  %v10834_v57 = vand.u32 4294901760, %v25176_v29  ;;  %v10815_v31 = vsub.f32 %v25158_v47, %v26363_v30  ;;  %v10806_v30 = vand.u32 4294901760, %v10805_v39 }
 0x63f   :  { %v14111_v50 = vmax.f32 %v20412_v12, 0.0  ;;  %v10796_v12 = vand.u32 4294901760, %v10795_v2 }
 0x640   :  { %v14110_v63 = vmax.f32 %v20413_v46, 0.0  ;;  %v20009_v60 = vpop.f32.mrb[50].mxu0  ;;  %v10825_v46 = vsub.f32 %v25168_v40, %v26364_v22  ;;  %v10835_v22 = vsub.f32 %v25176_v29, %v10834_v57  ;;  %v10816_v39 = vand.u32 4294901760, %v10815_v31 }
 0x641   :  { %19569 = vmatmul.mubr.f32.gmra.mrb[36].mxu1 %v10786_v16  ;;  %v20414_v3 = vadd.f32 %v20009_v60, %v25187_v5  ;;  %20179 = vmatmul.mubr.f32.gmra.mrb[76].mxu0 %v24805_v14  ;;  %v14028_v27 = vpop.f32.mrb[51].mxu0  ;;  %v26367_v60 = vand.u32 4294901760, %v25202_v54  ;;  %v25228_v14 = vsub.f32 %v10655_v35, %v25204_v49 }
 0x642   :  { %16454 = vrot.lane.b32.xlu1 %v14111_v50, %s21670_s8  ;;  %v20415_v16 = vadd.f32 %v25187_v5, %v14028_v27  ;;  %20181 = vmatprep.mubr.f32.mxu0 %v24815_v36  ;;  %v25231_v50 = vsub.f32 %v10658_v44, %v25209_v55  ;;  %v26366_v27 = vand.u32 4294901760, %v25207_v42 }
 0x643   :  { %16452 = vrot.lane.b32.xlu0 %v14110_v63, %s21670_s8  ;;  %v14113_v2 = vmax.f32 %v20414_v3, 0.0  ;;  %19571 = vmatprep.mubr.f32.mxu1 %v10796_v12  ;;  %v25238_v63 = vsub.f32 %v10661_v48, %v25215_v28  ;;  %v10826_v12 = vand.u32 4294901760, %v10825_v46  ;;  %v26369_v48 = vand.u32 4294901760, %v25228_v14 }
 0x644   :  { %v14112_v36 = vmax.f32 %v20415_v16, 0.0  ;;  %v20012_v8 = vpop.f32.mrb[52].mxu0  ;;  %v10836_v16 = vand.u32 4294901760, %v10835_v22 }
 0x645   :  { %19572 = vmatmul.mubr.f32.gmra.mrb[38].mxu1 %v10806_v30  ;;  %v20416_v35 = vadd.f32 %v20012_v8, %v25187_v5  ;;  %20182 = vmatmul.mubr.f32.gmra.mrb[78].mxu0 %v24823_v11  ;;  %v14040_v44 = vpop.f32.mrb[53].mxu0  ;;  %v10845_v30 = vsub.f32 %v25202_v54, %v26367_v60  ;;  %v10855_v11 = vsub.f32 %v25207_v42, %v26366_v27  ;;  %v26368_v8 = vand.u32 4294901760, %v25231_v50 }
 0x646   :  { %16458 = vrot.lane.b32.xlu1 %v14113_v2, %s21670_s8  ;;  %v20417_v3 = vadd.f32 %v25187_v5, %v14040_v44  ;;  %19574 = vmatprep.mubr.f32.mxu1 %v10816_v39  ;;  %v10884_v27 = vand.u32 4294901760, %v25238_v63 }
 0x647   :  { %16456 = vrot.lane.b32.xlu0 %v14112_v36, %s21670_s8  ;;  %v14115_v31 = vmax.f32 %v20416_v35, 0.0  ;;  %v10846_v22 = vand.u32 4294901760, %v10845_v30  ;;  %v10865_v35 = vsub.f32 %v25228_v14, %v26369_v48  ;;  %v10856_v60 = vand.u32 4294901760, %v10855_v11 }
 0x648   :  { %v14114_v2 = vmax.f32 %v20417_v3, 0.0  ;;  %v20015_v44 = vpop.f32.mrb[54].mxu0  ;;  %v10885_v11 = vsub.f32 %v25238_v63, %v10884_v27 }
 0x649   :  { %19575 = vmatmul.mubr.f32.gmra.mrb[40].mxu1 %v10826_v12  ;;  %v20418_v36 = vadd.f32 %v20015_v44, %v25187_v5  ;;  %v14052_v46 = vpop.f32.mrb[55].mxu0  ;;  %v10875_v12 = vsub.f32 %v25231_v50, %v26368_v8 }
 0x64a   :  { %16462 = vrot.lane.b32.xlu1 %v14115_v31, %s21670_s8  ;;  %19577 = vmatprep.mubr.f32.mxu1 %v10836_v16  ;;  %v20419_v39 = vadd.f32 %v25187_v5, %v14052_v46  ;;  %v10866_v46 = vand.u32 4294901760, %v10865_v35  ;;  %v10886_v35 = vand.u32 4294901760, %v10885_v11 }
 0x64b   :  { %16460 = vrot.lane.b32.xlu0 %v14114_v2, %s21670_s8  ;;  %v14117_v3 = vmax.f32 %v20418_v36, 0.0  ;;  %v10876_v8 = vand.u32 4294901760, %v10875_v12 }
 0x64c   :  { %v14116_v31 = vmax.f32 %v20419_v39, 0.0  ;;  %v20018_v44 = vpop.f32.mrb[56].mxu0 }
 0x64d   :  { %19578 = vmatmul.mubr.f32.gmra.mrb[42].mxu1 %v10846_v22  ;;  %v20420_v16 = vadd.f32 %v20018_v44, %v25187_v5  ;;  %v14064_v30 = vpop.f32.mrb[57].mxu0 }
 0x64e   :  { %16466 = vrot.lane.b32.xlu1 %v14117_v3, %s21670_s8  ;;  %19580 = vmatprep.mubr.f32.mxu1 %v10856_v60  ;;  %v20421_v2 = vadd.f32 %v25187_v5, %v14064_v30 }
 0x64f   :  { %16464 = vrot.lane.b32.xlu0 %v14116_v31, %s21670_s8  ;;  %v14119_v36 = vmax.f32 %v20420_v16, 0.0 }
 0x650   :  { %v14118_v39 = vmax.f32 %v20421_v2, 0.0  ;;  %v20021_v48 = vpop.f32.mrb[58].mxu0 }
 0x651   :  { %19581 = vmatmul.mubr.f32.gmra.mrb[44].mxu1 %v10866_v46  ;;  %v20422_v22 = vadd.f32 %v20021_v48, %v25187_v5  ;;  %v14076_v3 = vpop.f32.mrb[59].mxu0 }
 0x652   :  { %16470 = vrot.lane.b32.xlu1 %v14119_v36, %s21670_s8  ;;  %19583 = vmatprep.mubr.f32.mxu1 %v10876_v8  ;;  %v20423_v60 = vadd.f32 %v25187_v5, %v14076_v3 }
 0x653   :  { %16468 = vrot.lane.b32.xlu0 %v14118_v39, %s21670_s8  ;;  %v14121_v31 = vmax.f32 %v20422_v22, 0.0 }
 0x654   :  { %v14120_v44 = vmax.f32 %v20423_v60, 0.0  ;;  %v20024_v30 = vpop.f32.mrb[60].mxu0 }
 0x655   :  { %19584 = vmatmul.mubr.f32.gmra.mrb[46].mxu1 %v10886_v35  ;;  %v20424_v12 = vadd.f32 %v20024_v30, %v25187_v5  ;;  %v14088_v16 = vpop.f32.mrb[61].mxu0 }
 0x656   :  { %16474 = vrot.lane.b32.xlu1 %v14121_v31, %s21670_s8  ;;  %19588 = vmatprep.mubr.f32.mxu1 %v25048_v59  ;;  %v20425_v48 = vadd.f32 %v25187_v5, %v14088_v16 }
 0x657   :  { %16472 = vrot.lane.b32.xlu0 %v14120_v44, %s21670_s8  ;;  %v14123_v8 = vmax.f32 %v20424_v12, 0.0 }
 0x658   :  { %v14122_v2 = vmax.f32 %v20425_v48, 0.0  ;;  %v20027_v46 = vpop.f32.mrb[62].mxu0 }
 0x659   :  { %19589 = vmatmul.mubr.f32.vlgmr.msra.gmra.mrb[32].mxu1 %v25055_v37  ;;  %v20426_v11 = vadd.f32 %v20027_v46, %v25187_v5  ;;  %v14100_v36 = vpop.f32.mrb[63].mxu0 }
 0x65a   :  { %16478 = vrot.lane.b32.xlu1 %v14123_v8, %s21670_s8  ;;  %19591 = vmatprep.mubr.f32.mxu1 %v25063_v9  ;;  %v20427_v39 = vadd.f32 %v25187_v5, %v14100_v36 }
 0x65b   :  { %16476 = vrot.lane.b32.xlu0 %v14122_v2, %s21670_s8  ;;  %19613 = vmatpush3.msra.mxu1 %v25006_v13  ;;  %v14125_v22 = vmax.f32 %v20426_v11, 0.0  ;;  %v27096_v13 = vand.u32 4294901760, %v25136_v23 }
 0x65c   :  { %19638 = vmatprep.subr.mxu1 %v24973_v33  ;;  %v14124_v3 = vmax.f32 %v20427_v39, 0.0 }
 0x65d   :  { %19592 = vmatmul.mubr.f32.gmra.mrb[34].mxu1 %v25076_v32 }
 0x65e   :  { %16482 = vrot.lane.b32.xlu1 %v14125_v22, %s21670_s8  ;;  %19594 = vmatprep.mubr.f32.mxu1 %v25067_v19  ;;  %v25423_v22 = vld [vmem:[%s25956_s4] ss:$0 sm:$0xff] }
 0x65f   :  { %16480 = vrot.lane.b32.xlu0 %v14124_v3, %s21670_s8 }
 0x661   :  { %19595 = vmatmul.mubr.f32.gmra.mrb[36].mxu1 %v25093_v0 }
 0x662   :  { %19597 = vmatprep.mubr.f32.mxu1 %v25109_v61 }
 0x665   :  { %19598 = vmatmul.mubr.f32.gmra.mrb[38].mxu1 %v25123_v51 }
 0x666   :  { %19600 = vmatprep.mubr.f32.mxu1 %v25131_v17 }
 0x669   :  { %19601 = vmatmul.mubr.f32.gmra.mrb[40].mxu1 %v25140_v4 }
 0x66a   :  { %19603 = vmatprep.mubr.f32.mxu1 %v25142_v20 }
 0x66d   :  { %19604 = vmatmul.mubr.f32.gmra.mrb[42].mxu1 %v25173_v34 }
 0x66e   :  { %19606 = vmatprep.mubr.f32.mxu1 %v25178_v24 }
 0x671   :  { %19607 = vmatmul.mubr.f32.gmra.mrb[44].mxu1 %v25204_v49 }
 0x672   :  { %19609 = vmatprep.mubr.f32.mxu1 %v25209_v55 }
 0x675   :  { %19610 = vmatmul.mubr.f32.gmra.mrb[46].mxu1 %v25215_v28 }
 0x676   :  { %19614 = vmatprep.mubr.f32.mxu1 %v25061_v41  ;;  %v27097_v41 = vand.u32 4294901760, %v25149_v25 }
 0x679   :  { %19615 = vmatmul.mubr.f32.vlgmr.msra.gmra.mrb[32].mxu1 %v25072_v18  ;;  %v27098_v18 = vand.u32 4294901760, %v25158_v47 }
 0x67a   :  { %19617 = vmatprep.mubr.f32.mxu1 %v25081_v26  ;;  %19639 = vmatpush3.msra.mxu1 %v24973_v33  ;;  %v27100_v26 = vand.u32 4294901760, %v25202_v54 }
 0x67b   :  { %19664 = vmatprep.subr.mxu1 %v25014_v15 }
 0x67d   :  { %19618 = vmatmul.mubr.f32.gmra.mrb[34].mxu1 %v25100_v56 }
 0x67e   :  { %19620 = vmatprep.mubr.f32.mxu1 %v25088_v10  ;;  %v27102_v10 = vand.u32 4294901760, %v25228_v14 }
 0x681   :  { %19621 = vmatmul.mubr.f32.gmra.mrb[36].mxu1 %v25116_v58 }
 0x682   :  { %19623 = vmatprep.mubr.f32.mxu1 %v25136_v23 }
 0x685   :  { %19624 = vmatmul.mubr.f32.gmra.mrb[38].mxu1 %v25149_v25 }
 0x686   :  { %19626 = vmatprep.mubr.f32.mxu1 %v25158_v47 }
 0x689   :  { %19627 = vmatmul.mubr.f32.gmra.mrb[40].mxu1 %v25168_v40 }
 0x68a   :  { %19629 = vmatprep.mubr.f32.mxu1 %v25176_v29 }
 0x68d   :  { %19630 = vmatmul.mubr.f32.gmra.mrb[42].mxu1 %v25202_v54 }
 0x68e   :  { %19632 = vmatprep.mubr.f32.mxu1 %v25207_v42 }
 0x691   :  { %19633 = vmatmul.mubr.f32.gmra.mrb[44].mxu1 %v25228_v14 }
 0x692   :  { %19635 = vmatprep.mubr.f32.mxu1 %v25231_v50 }
 0x695   :  { %19636 = vmatmul.mubr.f32.gmra.mrb[46].mxu1 %v25238_v63 }
 0x696   :  { %19640 = vmatprep.mubr.f32.mxu1 %v10734_v1  ;;  %v27101_v1 = vand.u32 4294901760, %v25207_v42 }
 0x699   :  { %19641 = vmatmul.mubr.f32.vlgmr.msra.gmra.mrb[32].mxu1 %v10744_v43  ;;  %v27103_v43 = vand.u32 4294901760, %v25231_v50 }
 0x69a   :  { %19643 = vmatprep.mubr.f32.mxu1 %v10754_v6  ;;  %19665 = vmatpush3.msra.mxu1 %v25014_v15  ;;  %v27099_v15 = vand.u32 4294901760, %v25168_v40 }
 0x69b   :  { %19690 = vmatprep.subr.mxu1 %v24973_v33 }
 0x69d   :  { %19644 = vmatmul.mubr.f32.gmra.mrb[34].mxu1 %v10764_v21 }
 0x69e   :  { %19646 = vmatprep.mubr.f32.mxu1 %v10774_v45 }
 0x6a1   :  { %19647 = vmatmul.mubr.f32.gmra.mrb[36].mxu1 %v10784_v38 }
 0x6a2   :  { %19649 = vmatprep.mubr.f32.mxu1 %v27096_v13 }
 0x6a5   :  { %19650 = vmatmul.mubr.f32.gmra.mrb[38].mxu1 %v27097_v41 }
 0x6a6   :  { %19652 = vmatprep.mubr.f32.mxu1 %v27098_v18 }
 0x6a9   :  { %19653 = vmatmul.mubr.f32.gmra.mrb[40].mxu1 %v27099_v15 }
 0x6aa   :  { %19655 = vmatprep.mubr.f32.mxu1 %v10834_v57 }
 0x6ad   :  { %19656 = vmatmul.mubr.f32.gmra.mrb[42].mxu1 %v27100_v26 }
 0x6ae   :  { %19658 = vmatprep.mubr.f32.mxu1 %v27101_v1 }
 0x6b1   :  { %19659 = vmatmul.mubr.f32.gmra.mrb[44].mxu1 %v27102_v10 }
 0x6b2   :  { %19661 = vmatprep.mubr.f32.mxu1 %v27103_v43 }
 0x6b5   :  { %19662 = vmatmul.mubr.f32.gmra.mrb[46].mxu1 %v10884_v27 }
 0x6b6   :  { %19666 = vmatprep.mubr.f32.mxu1 %v25048_v59 }
 0x6b9   :  { %19667 = vmatmul.mubr.f32.vlgmr.msra.gmra.mrb[32].mxu1 %v25055_v37 }
 0x6ba   :  { %19669 = vmatprep.mubr.f32.mxu1 %v25063_v9  ;;  %19691 = vmatpush3.msra.mxu1 %v24973_v33 }
 0x6bd   :  { %19670 = vmatmul.mubr.f32.gmra.mrb[34].mxu1 %v25076_v32 }
 0x6be   :  { %19672 = vmatprep.mubr.f32.mxu1 %v25067_v19 }
 0x6c1   :  { %19673 = vmatmul.mubr.f32.gmra.mrb[36].mxu1 %v25093_v0 }
 0x6c2   :  { %19675 = vmatprep.mubr.f32.mxu1 %v25109_v61 }
 0x6c5   :  { %19676 = vmatmul.mubr.f32.gmra.mrb[38].mxu1 %v25123_v51 }
 0x6c6   :  { %19678 = vmatprep.mubr.f32.mxu1 %v25131_v17 }
 0x6c9   :  { %19679 = vmatmul.mubr.f32.gmra.mrb[40].mxu1 %v25140_v4 }
 0x6ca   :  { %19681 = vmatprep.mubr.f32.mxu1 %v25142_v20 }
 0x6cd   :  { %19682 = vmatmul.mubr.f32.gmra.mrb[42].mxu1 %v25173_v34 }
 0x6ce   :  { %19684 = vmatprep.mubr.f32.mxu1 %v25178_v24 }
 0x6d1   :  { %19685 = vmatmul.mubr.f32.gmra.mrb[44].mxu1 %v25204_v49 }
 0x6d2   :  { %19687 = vmatprep.mubr.f32.mxu1 %v25209_v55 }
 0x6d5   :  { %19688 = vmatmul.mubr.f32.gmra.mrb[46].mxu1 %v25215_v28 }
 0x6d6   :  { %19692 = vmatprep.mubr.f32.mxu1 %v25048_v59 }
 0x6d9   :  { %19693 = vmatmul.mubr.f32.vlgmr.msra.gmra.mrb[32].mxu1 %v25055_v37 }
 0x6da   :  { %19695 = vmatprep.mubr.f32.mxu1 %v25063_v9 }
 0x6dd   :  { %19696 = vmatmul.mubr.f32.gmra.mrb[34].mxu1 %v25076_v32 }
 0x6de   :  { %19698 = vmatprep.mubr.f32.mxu1 %v25067_v19 }
 0x6e1   :  { %19699 = vmatmul.mubr.f32.gmra.mrb[36].mxu1 %v25093_v0 }
 0x6e2   :  { %19701 = vmatprep.mubr.f32.mxu1 %v25109_v61 }
 0x6e5   :  { %19702 = vmatmul.mubr.f32.gmra.mrb[38].mxu1 %v25123_v51 }
 0x6e6   :  { %19704 = vmatprep.mubr.f32.mxu1 %v25131_v17 }
 0x6e9   :  { %19705 = vmatmul.mubr.f32.gmra.mrb[40].mxu1 %v25140_v4 }
 0x6ea   :  { %19707 = vmatprep.mubr.f32.mxu1 %v25142_v20 }
 0x6ed   :  { %19708 = vmatmul.mubr.f32.gmra.mrb[42].mxu1 %v25173_v34 }
 0x6ee   :  { %19710 = vmatprep.mubr.f32.mxu1 %v25178_v24 }
 0x6f1   :  { %19711 = vmatmul.mubr.f32.gmra.mrb[44].mxu1 %v25204_v49 }
 0x6f2   :  { %19713 = vmatprep.mubr.f32.mxu1 %v25209_v55 }
 0x6f5   :  { %19714 = vmatmul.mubr.f32.gmra.mrb[46].mxu1 %v25215_v28 }
 0x6fc   :  { %v20162_v33 = vpop.f32.mrb[64].mxu0 }
 0x6fd   :  { %v20428_v59 = vadd.f32 %v20162_v33, %v25187_v5  ;;  %v15171_v37 = vpop.f32.mrb[65].mxu0 }
 0x6fe   :  { %v20429_v9 = vadd.f32 %v25187_v5, %v15171_v37 }
 0x6ff   :  { %v15266_v19 = vmax.f32 %v20428_v59, 0.0 }
 0x700   :  { %v15265_v32 = vmax.f32 %v20429_v9, 0.0  ;;  %v20165_v0 = vpop.f32.mrb[66].mxu0 }
 0x701   :  { %v20430_v56 = vadd.f32 %v20165_v0, %v25187_v5  ;;  %16518 = vrot.lane.b32.xlu1 %v15266_v19, %s21671_s17  ;;  %v15183_v6 = vpop.f32.mrb[67].mxu0 }
 0x702   :  { %v20431_v61 = vadd.f32 %v25187_v5, %v15183_v6  ;;  %16516 = vrot.lane.b32.xlu0 %v15265_v32, %s21671_s17 }
 0x703   :  { %v15268_v58 = vmax.f32 %v20430_v56, 0.0 }
 0x704   :  { %v15267_v21 = vmax.f32 %v20431_v61, 0.0  ;;  %v20168_v51 = vpop.f32.mrb[68].mxu0 }
 0x705   :  { %v20432_v45 = vadd.f32 %v20168_v51, %v25187_v5  ;;  %16522 = vrot.lane.b32.xlu1 %v15268_v58, %s21671_s17  ;;  %v15195_v17 = vpop.f32.mrb[69].mxu0 }
 0x706   :  { %v20433_v23 = vadd.f32 %v25187_v5, %v15195_v17  ;;  %16520 = vrot.lane.b32.xlu0 %v15267_v21, %s21671_s17 }
 0x707   :  { %v15270_v38 = vmax.f32 %v20432_v45, 0.0 }
 0x708   :  { %v15269_v4 = vmax.f32 %v20433_v23, 0.0  ;;  %v20171_v20 = vpop.f32.mrb[70].mxu0 }
 0x709   :  { %v20434_v25 = vadd.f32 %v20171_v20, %v25187_v5  ;;  %16526 = vrot.lane.b32.xlu1 %v15270_v38, %s21671_s17  ;;  %v15207_v47 = vpop.f32.mrb[71].mxu0 }
 0x70a   :  { %v20435_v40 = vadd.f32 %v25187_v5, %v15207_v47  ;;  %16524 = vrot.lane.b32.xlu0 %v15269_v4, %s21671_s17 }
 0x70b   :  { %v15272_v28 = vmax.f32 %v20434_v25, 0.0 }
 0x70c   :  { %v15271_v34 = vmax.f32 %v20435_v40, 0.0  ;;  %v20174_v29 = vpop.f32.mrb[72].mxu0 }
 0x70d   :  { %v20436_v24 = vadd.f32 %v20174_v29, %v25187_v5  ;;  %16530 = vrot.lane.b32.xlu1 %v15272_v28, %s21671_s17  ;;  %v15219_v54 = vpop.f32.mrb[73].mxu0 }
 0x70e   :  { %v20437_v49 = vadd.f32 %v25187_v5, %v15219_v54  ;;  %16528 = vrot.lane.b32.xlu0 %v15271_v34, %s21671_s17 }
 0x70f   :  { %v15274_v42 = vmax.f32 %v20436_v24, 0.0 }
 0x710   :  { %v15273_v55 = vmax.f32 %v20437_v49, 0.0  ;;  %v20177_v57 = vpop.f32.mrb[74].mxu0 }
 0x711   :  { %v20438_v14 = vadd.f32 %v20177_v57, %v25187_v5  ;;  %16534 = vrot.lane.b32.xlu1 %v15274_v42, %s21671_s17  ;;  %v15231_v50 = vpop.f32.mrb[75].mxu0 }
 0x712   :  { %v20439_v27 = vadd.f32 %v25187_v5, %v15231_v50  ;;  %16532 = vrot.lane.b32.xlu0 %v15273_v55, %s21671_s17 }
 0x713   :  { %v15276_v63 = vmax.f32 %v20438_v14, 0.0 }
 0x714   :  { %v15275_v60 = vmax.f32 %v20439_v27, 0.0  ;;  %v20180_v35 = vpop.f32.mrb[76].mxu0 }
 0x715   :  { %v20440_v31 = vadd.f32 %v20180_v35, %v25187_v5  ;;  %16538 = vrot.lane.b32.xlu1 %v15276_v63, %s21671_s17  ;;  %v15243_v44 = vpop.f32.mrb[77].mxu0 }
 0x716   :  { %v20441_v30 = vadd.f32 %v25187_v5, %v15243_v44  ;;  %16536 = vrot.lane.b32.xlu0 %v15275_v60, %s21671_s17 }
 0x717   :  { %v15278_v12 = vmax.f32 %v20440_v31, 0.0 }
 0x718   :  { %v15277_v16 = vmax.f32 %v20441_v30, 0.0  ;;  %v20183_v48 = vpop.f32.mrb[78].mxu0 }
 0x719   :  { %v20442_v8 = vadd.f32 %v20183_v48, %v25187_v5  ;;  %16542 = vrot.lane.b32.xlu1 %v15278_v12, %s21671_s17  ;;  %v15255_v2 = vpop.f32.mrb[79].mxu0 }
 0x71a   :  { %v20443_v46 = vadd.f32 %v25187_v5, %v15255_v2  ;;  %16540 = vrot.lane.b32.xlu0 %v15277_v16, %s21671_s17 }
 0x71b   :  { %v15280_v11 = vmax.f32 %v20442_v8, 0.0 }
 0x71c   :  { %v15279_v36 = vmax.f32 %v20443_v46, 0.0 }
 0x71d   :  { %16546 = vrot.lane.b32.xlu1 %v15280_v11, %s21671_s17 }
 0x71e   :  { %16544 = vrot.lane.b32.xlu0 %v15279_v36, %s21671_s17 }
 0x7ac   :  { %v19694_v39 = vpop.f32.mrb[32].mxu1 }
 0x7ad   :  { %v11774_v3 = vadd.f32 %v25423_v22, %v19694_v39  ;;  %v11663_v13 = vpop.f32.mrb[33].mxu1 }
 0x7ae   :  { %v11773_v41 = vadd.f32 %v25423_v22, %v11663_v13 }
 0x7af   :  { %v11790_v5 = vmax.f32 %v11774_v3, 0.0 }
 0x7b0   :  { %v11789_v18 = vmax.f32 %v11773_v41, 0.0  ;;  %v19697_v15 = vpop.f32.mrb[34].mxu1 }
 0x7b1   :  { %v15285_v26 = vsel %vm1606_vm3, %v11790_v5, 0  ;;  %v11776_v1 = vadd.f32 %v25423_v22, %v19697_v15  ;;  %v11675_v10 = vpop.f32.mrb[35].mxu1 }
 0x7b2   :  { %v25429_v43 = vand.u32 4294901760, %v15285_v26  ;;  %v15282_v33 = vsel %vm1606_vm3, %v11789_v18, 0  ;;  %v11775_v59 = vadd.f32 %v25423_v22, %v11675_v10 }
 0x7b3   :  { %v25433_v37 = vand.u32 4294901760, %v15282_v33  ;;  %v11792_v9 = vmax.f32 %v11776_v1, 0.0 }
 0x7b4   :  { %v25436_v19 = vsub.f32 %v15285_v26, %v25429_v43  ;;  %v11791_v32 = vmax.f32 %v11775_v59, 0.0  ;;  %v19700_v0 = vpop.f32.mrb[36].mxu1 }
 0x7b5   :  { %v25439_v56 = vsub.f32 %v15282_v33, %v25433_v37  ;;  %v15291_v6 = vsel %vm1606_vm3, %v11792_v9, 0  ;;  %v11778_v61 = vadd.f32 %v25423_v22, %v19700_v0  ;;  %v11687_v58 = vpop.f32.mrb[37].mxu1 }
 0x7b6   :  { %v15407_v21 = vand.u32 4294901760, %v25436_v19  ;;  %v25444_v51 = vand.u32 4294901760, %v15291_v6  ;;  %v15288_v45 = vsel %vm1606_vm3, %v11791_v32, 0  ;;  %v11777_v17 = vadd.f32 %v25423_v22, %v11687_v58 }
 0x7b7   :  { %v25448_v23 = vand.u32 4294901760, %v15288_v45  ;;  %v11794_v38 = vmax.f32 %v11778_v61, 0.0  ;;  %v15397_v4 = vand.u32 4294901760, %v25439_v56 }
 0x7b8   :  { %v15408_v20 = vsub.f32 %v25436_v19, %v15407_v21  ;;  %v25455_v25 = vsub.f32 %v15291_v6, %v25444_v51  ;;  %v11793_v47 = vmax.f32 %v11777_v17, 0.0  ;;  %v19703_v40 = vpop.f32.mrb[38].mxu1 }
 0x7b9   :  { %v25458_v28 = vsub.f32 %v15288_v45, %v25448_v23  ;;  %v15297_v34 = vsel %vm1606_vm3, %v11794_v38, 0  ;;  %v11780_v29 = vadd.f32 %v25423_v22, %v19703_v40  ;;  %v11699_v24 = vpop.f32.mrb[39].mxu1  ;;  %v15398_v54 = vsub.f32 %v25439_v56, %v15397_v4 }
 0x7ba   :  { %v25465_v49 = vand.u32 4294901760, %v15297_v34  ;;  %v15294_v42 = vsel %vm1606_vm3, %v11793_v47, 0  ;;  %v11779_v55 = vadd.f32 %v25423_v22, %v11699_v24  ;;  %v15409_v63 = vand.u32 4294901760, %v15408_v20 }
 0x7bb   :  { %v25469_v57 = vand.u32 4294901760, %v15294_v42  ;;  %v11796_v14 = vmax.f32 %v11780_v29, 0.0  ;;  %v15399_v50 = vand.u32 4294901760, %v15398_v54  ;;  %v15417_v27 = vand.u32 4294901760, %v25458_v28 }
 0x7bc   :  { %v25473_v60 = vsub.f32 %v15297_v34, %v25465_v49  ;;  %v11795_v35 = vmax.f32 %v11779_v55, 0.0  ;;  %v19706_v31 = vpop.f32.mrb[40].mxu1  ;;  %v15427_v44 = vand.u32 4294901760, %v25455_v25 }
 0x7bd   :  { %v25477_v30 = vsub.f32 %v15294_v42, %v25469_v57  ;;  %v15303_v12 = vsel %vm1606_vm3, %v11796_v14, 0  ;;  %v11782_v16 = vadd.f32 %v25423_v22, %v19706_v31  ;;  %v11711_v48 = vpop.f32.mrb[41].mxu1  ;;  %20186 = vmatprep.mubr.f32.mxu0 %v15399_v50  ;;  %v15418_v8 = vsub.f32 %v25458_v28, %v15417_v27 }
 0x7be   :  { %v25484_v2 = vand.u32 4294901760, %v15303_v12  ;;  %v15300_v46 = vsel %vm1606_vm3, %v11795_v35, 0  ;;  %v11781_v11 = vadd.f32 %v25423_v22, %v11711_v48  ;;  %20187 = vmatmul.mubr.f32.vlgmr.msra.gmra.mrb[80].mxu0 %v15409_v63  ;;  %v15428_v36 = vsub.f32 %v25455_v25, %v15427_v44 }
 0x7bf   :  { %v25491_v39 = vand.u32 4294901760, %v15300_v46  ;;  %v11798_v3 = vmax.f32 %v11782_v16, 0.0  ;;  %20211 = vmatpush3.msra.mxu0 %v26990_v7  ;;  %v15419_v13 = vand.u32 4294901760, %v15418_v8  ;;  %v15437_v41 = vand.u32 4294901760, %v25477_v30 }
 0x7c0   :  { %v25496_v5 = vsub.f32 %v15303_v12, %v25484_v2  ;;  %v11797_v18 = vmax.f32 %v11781_v11, 0.0  ;;  %v19709_v15 = vpop.f32.mrb[42].mxu1  ;;  %v15429_v26 = vand.u32 4294901760, %v15428_v36  ;;  %v15447_v1 = vand.u32 4294901760, %v25473_v60  ;;  %20236 = vmatprep.subr.mxu0 %v23583_v53 }
 0x7c1   :  { %v25501_v10 = vsub.f32 %v15300_v46, %v25491_v39  ;;  %v15309_v33 = vsel %vm1606_vm3, %v11798_v3, 0  ;;  %v11784_v7 = vadd.f32 %v25423_v22, %v19709_v15  ;;  %v11723_v59 = vpop.f32.mrb[43].mxu1  ;;  %20189 = vmatprep.mubr.f32.mxu0 %v15419_v13  ;;  %v15438_v9 = vsub.f32 %v25477_v30, %v15437_v41 }
 0x7c2   :  { %v25508_v32 = vand.u32 4294901760, %v15309_v33  ;;  %v15306_v0 = vsel %vm1606_vm3, %v11797_v18, 0  ;;  %v11783_v6 = vadd.f32 %v25423_v22, %v11723_v59  ;;  %20190 = vmatmul.mubr.f32.gmra.mrb[82].mxu0 %v15429_v26  ;;  %v15448_v61 = vsub.f32 %v25473_v60, %v15447_v1 }
 0x7c3   :  { %v25515_v58 = vand.u32 4294901760, %v15306_v0  ;;  %v11800_v45 = vmax.f32 %v11784_v7, 0.0  ;;  %v15439_v17 = vand.u32 4294901760, %v15438_v9  ;;  %v15457_v38 = vand.u32 4294901760, %v25501_v10 }
 0x7c4   :  { %v25519_v20 = vsub.f32 %v15309_v33, %v25508_v32  ;;  %v11799_v47 = vmax.f32 %v11783_v6, 0.0  ;;  %v19712_v40 = vpop.f32.mrb[44].mxu1  ;;  %v15449_v34 = vand.u32 4294901760, %v15448_v61  ;;  %v15467_v29 = vand.u32 4294901760, %v25496_v5 }
 0x7c5   :  { %v25523_v24 = vsub.f32 %v15306_v0, %v25515_v58  ;;  %v15315_v54 = vsel %vm1606_vm3, %v11800_v45, 0  ;;  %v11786_v42 = vadd.f32 %v25423_v22, %v19712_v40  ;;  %v11735_v55 = vpop.f32.mrb[45].mxu1  ;;  %20192 = vmatprep.mubr.f32.mxu0 %v15439_v17  ;;  %v15458_v14 = vsub.f32 %v25501_v10, %v15457_v38 }
 0x7c6   :  { %v25530_v50 = vand.u32 4294901760, %v15315_v54  ;;  %v15312_v63 = vsel %vm1606_vm3, %v11799_v47, 0  ;;  %v11785_v35 = vadd.f32 %v25423_v22, %v11735_v55  ;;  %20193 = vmatmul.mubr.f32.gmra.mrb[84].mxu0 %v15449_v34  ;;  %v15468_v31 = vsub.f32 %v25496_v5, %v15467_v29 }
 0x7c7   :  { %v25537_v12 = vand.u32 4294901760, %v15312_v63  ;;  %v11802_v16 = vmax.f32 %v11786_v42, 0.0  ;;  %v15459_v48 = vand.u32 4294901760, %v15458_v14  ;;  %v15477_v8 = vand.u32 4294901760, %v25523_v24 }
 0x7c8   :  { %v25541_v46 = vsub.f32 %v15315_v54, %v25530_v50  ;;  %v11801_v11 = vmax.f32 %v11785_v35, 0.0  ;;  %v19715_v36 = vpop.f32.mrb[46].mxu1  ;;  %v15469_v3 = vand.u32 4294901760, %v15468_v31  ;;  %v15487_v13 = vand.u32 4294901760, %v25519_v20 }
 0x7c9   :  { %v25545_v18 = vsub.f32 %v15312_v63, %v25537_v12  ;;  %v15321_v15 = vsel %vm1606_vm3, %v11802_v16, 0  ;;  %v11788_v26 = vadd.f32 %v25423_v22, %v19715_v36  ;;  %v11747_v33 = vpop.f32.mrb[47].mxu1  ;;  %20195 = vmatprep.mubr.f32.mxu0 %v15459_v48  ;;  %v15478_v7 = vsub.f32 %v25523_v24, %v15477_v8 }
 0x7ca   :  { %v25552_v59 = vand.u32 4294901760, %v15321_v15  ;;  %v15318_v9 = vsel %vm1606_vm3, %v11801_v11, 0  ;;  %v11787_v0 = vadd.f32 %v25423_v22, %v11747_v33  ;;  %20196 = vmatmul.mubr.f32.gmra.mrb[86].mxu0 %v15469_v3  ;;  %v15488_v6 = vsub.f32 %v25519_v20, %v15487_v13 }
 0x7cb   :  { %v25559_v61 = vand.u32 4294901760, %v15318_v9  ;;  %v11804_v45 = vmax.f32 %v11788_v26, 0.0  ;;  %v15479_v17 = vand.u32 4294901760, %v15478_v7  ;;  %v15497_v47 = vand.u32 4294901760, %v25545_v18 }
 0x7cc   :  { %v25563_v40 = vsub.f32 %v15321_v15, %v25552_v59  ;;  %v11803_v34 = vmax.f32 %v11787_v0, 0.0  ;;  %v15489_v54 = vand.u32 4294901760, %v15488_v6  ;;  %v15507_v42 = vand.u32 4294901760, %v25541_v46 }
 0x7cd   :  { %v25567_v22 = vsub.f32 %v15318_v9, %v25559_v61  ;;  %v15327_v55 = vsel %vm1606_vm3, %v11804_v45, 0  ;;  %20198 = vmatprep.mubr.f32.mxu0 %v15479_v17  ;;  %v15498_v14 = vsub.f32 %v25545_v18, %v15497_v47 }
 0x7ce   :  { %v25573_v63 = vand.u32 4294901760, %v15327_v55  ;;  %v15324_v35 = vsel %vm1606_vm3, %v11803_v34, 0  ;;  %20199 = vmatmul.mubr.f32.gmra.mrb[88].mxu0 %v15489_v54  ;;  %v15508_v31 = vsub.f32 %v25541_v46, %v15507_v42  ;;  %v15527_v16 = vand.u32 4294901760, %v25563_v40 }
 0x7cf   :  { %v25580_v48 = vand.u32 4294901760, %v15324_v35  ;;  %v15499_v11 = vand.u32 4294901760, %v15498_v14  ;;  %v15517_v36 = vand.u32 4294901760, %v25567_v22  ;;  %v16453_v14 = vpop.permute.xlu0 %16452 }
 0x7d0   :  { %v25584_v3 = vsub.f32 %v15327_v55, %v25573_v63  ;;  %v15509_v15 = vand.u32 4294901760, %v15508_v31  ;;  %v15528_v26 = vsub.f32 %v25563_v40, %v15527_v16 }
 0x7d1   :  { %v25590_v33 = vsub.f32 %v15324_v35, %v25580_v48  ;;  %20201 = vmatprep.mubr.f32.mxu0 %v15499_v11  ;;  %v15518_v7 = vsub.f32 %v25567_v22, %v15517_v36 }
 0x7d2   :  { %20202 = vmatmul.mubr.f32.gmra.mrb[90].mxu0 %v15509_v15  ;;  %v15547_v9 = vand.u32 4294901760, %v25584_v3  ;;  %v15529_v45 = vand.u32 4294901760, %v15528_v26 }
 0x7d3   :  { %v15519_v0 = vand.u32 4294901760, %v15518_v7  ;;  %v15537_v6 = vand.u32 4294901760, %v25590_v33  ;;  %v16457_v15 = vpop.permute.xlu0 %16456 }
 0x7d4   :  { %v15548_v17 = vsub.f32 %v25584_v3, %v15547_v9 }
 0x7d5   :  { %20204 = vmatprep.mubr.f32.mxu0 %v15519_v0  ;;  %v15538_v34 = vsub.f32 %v25590_v33, %v15537_v6 }
 0x7d6   :  { %20205 = vmatmul.mubr.f32.gmra.mrb[92].mxu0 %v15529_v45  ;;  %v15549_v55 = vand.u32 4294901760, %v15548_v17 }
 0x7d7   :  { %v15539_v54 = vand.u32 4294901760, %v15538_v34 }
 0x7d9   :  { %20207 = vmatprep.mubr.f32.mxu0 %v15539_v54 }
 0x7da   :  { %20208 = vmatmul.mubr.f32.gmra.mrb[94].mxu0 %v15549_v55 }
 0x7db   :  { %20212 = vmatprep.mubr.f32.mxu0 %v25433_v37 }
 0x7de   :  { %20213 = vmatmul.mubr.f32.vlgmr.msra.gmra.mrb[80].mxu0 %v25429_v43 }
 0x7df   :  { %20215 = vmatprep.mubr.f32.mxu0 %v25448_v23  ;;  %20237 = vmatpush3.msra.mxu0 %v23583_v53  ;;  %v25705_v53 = vld [vmem:[%s25957_s6] ss:$0 sm:$0xff] }
 0x7e0   :  { %20262 = vmatprep.subr.mxu0 %v23552_v52 }
 0x7e2   :  { %20216 = vmatmul.mubr.f32.gmra.mrb[82].mxu0 %v25444_v51 }
 0x7e3   :  { %20218 = vmatprep.mubr.f32.mxu0 %v25469_v57 }
 0x7e6   :  { %20219 = vmatmul.mubr.f32.gmra.mrb[84].mxu0 %v25465_v49 }
 0x7e7   :  { %20221 = vmatprep.mubr.f32.mxu0 %v25491_v39 }
 0x7ea   :  { %20222 = vmatmul.mubr.f32.gmra.mrb[86].mxu0 %v25484_v2 }
 0x7eb   :  { %20224 = vmatprep.mubr.f32.mxu0 %v25515_v58 }
 0x7ee   :  { %20225 = vmatmul.mubr.f32.gmra.mrb[88].mxu0 %v25508_v32 }
 0x7ef   :  { %20227 = vmatprep.mubr.f32.mxu0 %v25537_v12 }
 0x7f2   :  { %20228 = vmatmul.mubr.f32.gmra.mrb[90].mxu0 %v25530_v50 }
 0x7f3   :  { %20230 = vmatprep.mubr.f32.mxu0 %v25559_v61 }
 0x7f6   :  { %20231 = vmatmul.mubr.f32.gmra.mrb[92].mxu0 %v25552_v59 }
 0x7f7   :  { %20233 = vmatprep.mubr.f32.mxu0 %v25580_v48 }
 0x7fa   :  { %20234 = vmatmul.mubr.f32.gmra.mrb[94].mxu0 %v25573_v63 }
 0x7fb   :  { %20238 = vmatprep.mubr.f32.mxu0 %v25439_v56 }
 0x7fe   :  { %20239 = vmatmul.mubr.f32.vlgmr.msra.gmra.mrb[80].mxu0 %v25436_v19 }
 0x7ff   :  { %20241 = vmatprep.mubr.f32.mxu0 %v25458_v28  ;;  %20263 = vmatpush3.msra.mxu0 %v23552_v52 }
 0x800   :  { %20288 = vmatprep.subr.mxu0 %v26951_v62 }
 0x802   :  { %20242 = vmatmul.mubr.f32.gmra.mrb[82].mxu0 %v25455_v25 }
 0x803   :  { %20244 = vmatprep.mubr.f32.mxu0 %v25477_v30 }
 0x806   :  { %20245 = vmatmul.mubr.f32.gmra.mrb[84].mxu0 %v25473_v60 }
 0x807   :  { %20247 = vmatprep.mubr.f32.mxu0 %v25501_v10 }
 0x80a   :  { %20248 = vmatmul.mubr.f32.gmra.mrb[86].mxu0 %v25496_v5 }
 0x80b   :  { %20250 = vmatprep.mubr.f32.mxu0 %v25523_v24 }
 0x80e   :  { %20251 = vmatmul.mubr.f32.gmra.mrb[88].mxu0 %v25519_v20 }
 0x80f   :  { %20253 = vmatprep.mubr.f32.mxu0 %v25545_v18 }
 0x812   :  { %20254 = vmatmul.mubr.f32.gmra.mrb[90].mxu0 %v25541_v46 }
 0x813   :  { %20256 = vmatprep.mubr.f32.mxu0 %v25567_v22 }
 0x816   :  { %20257 = vmatmul.mubr.f32.gmra.mrb[92].mxu0 %v25563_v40 }
 0x817   :  { %20259 = vmatprep.mubr.f32.mxu0 %v25590_v33  ;;  %v25741_v33 = vpop.permute.xlu0 %16460 }
 0x81a   :  { %20260 = vmatmul.mubr.f32.gmra.mrb[94].mxu0 %v25584_v3 }
 0x81b   :  { %20264 = vmatprep.mubr.f32.mxu0 %v15397_v4 }
 0x81e   :  { %20265 = vmatmul.mubr.f32.vlgmr.msra.gmra.mrb[80].mxu0 %v15407_v21 }
 0x81f   :  { %20267 = vmatprep.mubr.f32.mxu0 %v15417_v27  ;;  %20289 = vmatpush3.msra.mxu0 %v26951_v62 }
 0x820   :  { %20314 = vmatprep.subr.mxu0 %v23552_v52 }
 0x822   :  { %20268 = vmatmul.mubr.f32.gmra.mrb[82].mxu0 %v15427_v44 }
 0x823   :  { %20270 = vmatprep.mubr.f32.mxu0 %v15437_v41 }
 0x826   :  { %20271 = vmatmul.mubr.f32.gmra.mrb[84].mxu0 %v15447_v1 }
 0x827   :  { %20273 = vmatprep.mubr.f32.mxu0 %v15457_v38 }
 0x82a   :  { %20274 = vmatmul.mubr.f32.gmra.mrb[86].mxu0 %v15467_v29 }
 0x82b   :  { %20276 = vmatprep.mubr.f32.mxu0 %v15477_v8 }
 0x82e   :  { %20277 = vmatmul.mubr.f32.gmra.mrb[88].mxu0 %v15487_v13 }
 0x82f   :  { %20279 = vmatprep.mubr.f32.mxu0 %v15497_v47 }
 0x832   :  { %20280 = vmatmul.mubr.f32.gmra.mrb[90].mxu0 %v15507_v42  ;;  %v16455_v42 = vpop.permute.xlu1 %16454 }
 0x833   :  { %20282 = vmatprep.mubr.f32.mxu0 %v15517_v36 }
 0x836   :  { %20283 = vmatmul.mubr.f32.gmra.mrb[92].mxu0 %v15527_v16  ;;  %v16459_v3 = vpop.permute.xlu1 %16458 }
 0x837   :  { %20285 = vmatprep.mubr.f32.mxu0 %v15537_v6 }
 0x83a   :  { %20286 = vmatmul.mubr.f32.gmra.mrb[94].mxu0 %v15547_v9  ;;  %v25739_v26 = vpop.permute.xlu1 %16462  ;;  %v25745_v9 = vpop.permute.xlu0 %16464 }
 0x83b   :  { %20290 = vmatprep.mubr.f32.mxu0 %v25433_v37 }
 0x83e   :  { %20291 = vmatmul.mubr.f32.vlgmr.msra.gmra.mrb[80].mxu0 %v25429_v43  ;;  %v25743_v7 = vpop.permute.xlu1 %16466  ;;  %v25749_v6 = vpop.permute.xlu0 %16468 }
 0x83f   :  { %20293 = vmatprep.mubr.f32.mxu0 %v25448_v23  ;;  %20315 = vmatpush3.msra.mxu0 %v23552_v52 }
 0x842   :  { %20294 = vmatmul.mubr.f32.gmra.mrb[82].mxu0 %v25444_v51  ;;  %v25747_v0 = vpop.permute.xlu1 %16470  ;;  %v25753_v17 = vpop.permute.xlu0 %16472 }
 0x843   :  { %20296 = vmatprep.mubr.f32.mxu0 %v25469_v57 }
 0x846   :  { %20297 = vmatmul.mubr.f32.gmra.mrb[84].mxu0 %v25465_v49  ;;  %v25751_v45 = vpop.permute.xlu1 %16474  ;;  %v25757_v54 = vpop.permute.xlu0 %16476 }
 0x847   :  { %20299 = vmatprep.mubr.f32.mxu0 %v25491_v39 }
 0x84a   :  { %20300 = vmatmul.mubr.f32.gmra.mrb[86].mxu0 %v25484_v2  ;;  %v25755_v34 = vpop.permute.xlu1 %16478 }
 0x84b   :  { %20302 = vmatprep.mubr.f32.mxu0 %v25515_v58 }
 0x84e   :  { %20303 = vmatmul.mubr.f32.gmra.mrb[88].mxu0 %v25508_v32  ;;  %v25759_v55 = vpop.permute.xlu1 %16482 }
 0x84f   :  { %20305 = vmatprep.mubr.f32.mxu0 %v25537_v12 }
 0x852   :  { %20306 = vmatmul.mubr.f32.gmra.mrb[90].mxu0 %v25530_v50 }
 0x853   :  { %20308 = vmatprep.mubr.f32.mxu0 %v25559_v61 }
 0x856   :  { %20309 = vmatmul.mubr.f32.gmra.mrb[92].mxu0 %v25552_v59 }
 0x857   :  { %20311 = vmatprep.mubr.f32.mxu0 %v25580_v48 }
 0x85a   :  { %20312 = vmatmul.mubr.f32.gmra.mrb[94].mxu0 %v25573_v63 }
 0x85b   :  { %20316 = vmatprep.mubr.f32.mxu0 %v25433_v37 }
 0x85e   :  { %20317 = vmatmul.mubr.f32.vlgmr.msra.gmra.mrb[80].mxu0 %v25429_v43 }
 0x85f   :  { %20319 = vmatprep.mubr.f32.mxu0 %v25448_v23 }
 0x862   :  { %20320 = vmatmul.mubr.f32.gmra.mrb[82].mxu0 %v25444_v51 }
 0x863   :  { %20322 = vmatprep.mubr.f32.mxu0 %v25469_v57 }
 0x866   :  { %20323 = vmatmul.mubr.f32.gmra.mrb[84].mxu0 %v25465_v49 }
 0x867   :  { %20325 = vmatprep.mubr.f32.mxu0 %v25491_v39 }
 0x86a   :  { %20326 = vmatmul.mubr.f32.gmra.mrb[86].mxu0 %v25484_v2 }
 0x86b   :  { %20328 = vmatprep.mubr.f32.mxu0 %v25515_v58 }
 0x86e   :  { %20329 = vmatmul.mubr.f32.gmra.mrb[88].mxu0 %v25508_v32 }
 0x86f   :  { %20331 = vmatprep.mubr.f32.mxu0 %v25537_v12 }
 0x872   :  { %20332 = vmatmul.mubr.f32.gmra.mrb[90].mxu0 %v25530_v50 }
 0x873   :  { %20334 = vmatprep.mubr.f32.mxu0 %v25559_v61 }
 0x876   :  { %20335 = vmatmul.mubr.f32.gmra.mrb[92].mxu0 %v25552_v59 }
 0x877   :  { %20337 = vmatprep.mubr.f32.mxu0 %v25580_v48 }
 0x87a   :  { %20338 = vmatmul.mubr.f32.gmra.mrb[94].mxu0 %v25573_v63 }
 0x931   :  { %v20318_v52 = vpop.f32.mrb[80].mxu0 }
 0x932   :  { %v20444_v62 = vadd.f32 %v25705_v53, %v20318_v52  ;;  %v16326_v43 = vpop.f32.mrb[81].mxu0  ;;  %v25761_v52 = vpop.permute.xlu0 %16480 }
 0x933   :  { %v20445_v37 = vadd.f32 %v25705_v53, %v16326_v43 }
 0x934   :  { %v16421_v19 = vmax.f32 %v20444_v62, 0.0  ;;  %v16519_v62 = vpop.permute.xlu1 %16518 }
 0x935   :  { %v16420_v56 = vmax.f32 %v20445_v37, 0.0  ;;  %v20321_v21 = vpop.f32.mrb[82].mxu0 }
 0x936   :  { %v20446_v51 = vadd.f32 %v25705_v53, %v20321_v21  ;;  %16582 = vrot.lane.b32.xlu1 %v16421_v19, %s21672_s1  ;;  %v16338_v23 = vpop.f32.mrb[83].mxu0  ;;  %v16517_v43 = vpop.permute.xlu0 %16516 }
 0x937   :  { %v20447_v4 = vadd.f32 %v25705_v53, %v16338_v23  ;;  %16580 = vrot.lane.b32.xlu0 %v16420_v56, %s21672_s1 }
 0x938   :  { %v16423_v25 = vmax.f32 %v20446_v51, 0.0  ;;  %v16523_v37 = vpop.permute.xlu1 %16522 }
 0x939   :  { %v16422_v28 = vmax.f32 %v20447_v4, 0.0  ;;  %v20324_v49 = vpop.f32.mrb[84].mxu0 }
 0x93a   :  { %v20448_v57 = vadd.f32 %v25705_v53, %v20324_v49  ;;  %16586 = vrot.lane.b32.xlu1 %v16423_v25, %s21672_s1  ;;  %v16350_v27 = vpop.f32.mrb[85].mxu0  ;;  %v16521_v19 = vpop.permute.xlu0 %16520 }
 0x93b   :  { %v20449_v60 = vadd.f32 %v25705_v53, %v16350_v27  ;;  %16584 = vrot.lane.b32.xlu0 %v16422_v28, %s21672_s1 }
 0x93c   :  { %v16425_v44 = vmax.f32 %v20448_v57, 0.0  ;;  %v16527_v56 = vpop.permute.xlu1 %16526 }
 0x93d   :  { %v16424_v30 = vmax.f32 %v20449_v60, 0.0  ;;  %v20327_v2 = vpop.f32.mrb[86].mxu0  ;;  %v27104_v60 = vld [vmem:[#allocation186_spill] sm:$0xff] }
 0x93e   :  { %v20450_v39 = vadd.f32 %v25705_v53, %v20327_v2  ;;  %16590 = vrot.lane.b32.xlu1 %v16425_v44, %s21672_s1  ;;  %v16362_v41 = vpop.f32.mrb[87].mxu0  ;;  %v16525_v21 = vpop.permute.xlu0 %16524  ;;  %v20396_v44 = vadd.f32 %v25705_v53, %v27104_v60 }
 0x93f   :  { %v20451_v5 = vadd.f32 %v25705_v53, %v16362_v41  ;;  %16588 = vrot.lane.b32.xlu0 %v16424_v30, %s21672_s1  ;;  %v27105_v30 = vld [vmem:[#allocation188_spill] sm:$0xff] }
 0x940   :  { %v16427_v1 = vmax.f32 %v20450_v39, 0.0  ;;  %v25763_v51 = vpop.permute.xlu1 %16530  ;;  %v20397_v2 = vadd.f32 %v25705_v53, %v27105_v30  ;;  %v12956_v41 = vmax.f32 %v20396_v44, 0.0 }
 0x941   :  { %v16426_v10 = vmax.f32 %v20451_v5, 0.0  ;;  %v20330_v32 = vpop.f32.mrb[88].mxu0  ;;  %v27106_v5 = vld [vmem:[#allocation190_spill] sm:$0xff] }
 0x942   :  { %v20452_v58 = vadd.f32 %v25705_v53, %v20330_v32  ;;  %16594 = vrot.lane.b32.xlu1 %v16427_v1, %s21672_s1  ;;  %v16374_v38 = vpop.f32.mrb[89].mxu0  ;;  %v25765_v23 = vpop.permute.xlu0 %16528  ;;  %v20398_v1 = vadd.f32 %v25705_v53, %v27106_v5  ;;  %v12955_v32 = vmax.f32 %v20397_v2, 0.0 }
 0x943   :  { %v20453_v20 = vadd.f32 %v25705_v53, %v16374_v38  ;;  %16592 = vrot.lane.b32.xlu0 %v16426_v10, %s21672_s1 }
 0x944   :  { %v16429_v29 = vmax.f32 %v20452_v58, 0.0  ;;  %v25767_v4 = vpop.permute.xlu1 %16534  ;;  %v27107_v58 = vld [vmem:[#allocation192_spill] sm:$0xff] }
 0x945   :  { %v16428_v24 = vmax.f32 %v20453_v20, 0.0  ;;  %v20333_v50 = vpop.f32.mrb[90].mxu0  ;;  %v20399_v38 = vadd.f32 %v25705_v53, %v27107_v58  ;;  %v16630_v20 = vsel %vm16628_vm4, %v12956_v41, %v16455_v42  ;;  %v27112_v41 = vld [vmem:[#allocation3_spill] sm:$0xff] }
 0x946   :  { %v20454_v12 = vadd.f32 %v25705_v53, %v20333_v50  ;;  %16598 = vrot.lane.b32.xlu1 %v16429_v29, %s21672_s1  ;;  %v16386_v8 = vpop.f32.mrb[91].mxu0  ;;  %v25769_v25 = vpop.permute.xlu0 %16532  ;;  %v16629_v29 = vsel %vm16628_vm4, %v12955_v32, %v16453_v14  ;;  %v20404_v5 = vadd.f32 %v25705_v53, %v27112_v41 }
 0x947   :  { %v20455_v46 = vadd.f32 %v25705_v53, %v16386_v8  ;;  %16596 = vrot.lane.b32.xlu0 %v16428_v24, %s21672_s1  ;;  %v16646_v24 = vsel %vm57_vm0, %v16630_v20, %v16519_v62  ;;  %v27108_v8 = vld [vmem:[#allocation193_spill] sm:$0xff] }
 0x948   :  { %v16431_v13 = vmax.f32 %v20454_v12, 0.0  ;;  %v25771_v28 = vpop.permute.xlu1 %16538  ;;  %v12958_v12 = vmax.f32 %v20398_v1, 0.0 }
 0x949   :  { %v16430_v18 = vmax.f32 %v20455_v46, 0.0  ;;  %v20336_v59 = vpop.f32.mrb[92].mxu0  ;;  %v20400_v46 = vadd.f32 %v25705_v53, %v27108_v8 }
 0x94a   :  { %v20456_v61 = vadd.f32 %v25705_v53, %v20336_v59  ;;  %16602 = vrot.lane.b32.xlu1 %v16431_v13, %s21672_s1  ;;  %v16398_v47 = vpop.f32.mrb[93].mxu0  ;;  %v25773_v49 = vpop.permute.xlu0 %16536  ;;  %v16645_v13 = vsel %vm57_vm0, %v16629_v29, %v16517_v43  ;;  %v27111_v43 = vld [vmem:[#allocation9_spill] sm:$0xff] }
 0x94b   :  { %v20457_v40 = vadd.f32 %v25705_v53, %v16398_v47  ;;  %16600 = vrot.lane.b32.xlu0 %v16430_v18, %s21672_s1  ;;  %v27109_v47 = vld [vmem:[#allocation194_spill] sm:$0xff]  ;;  %v20403_v60 = vadd.f32 %v25705_v53, %v27111_v43 }
 0x94c   :  { %v16433_v22 = vmax.f32 %v20456_v61, 0.0  ;;  %v25775_v57 = vpop.permute.xlu1 %16542  ;;  %v12957_v61 = vmax.f32 %v20399_v38, 0.0  ;;  %v27113_v38 = vld [vmem:[#allocation15_spill] sm:$0xff] }
 0x94d   :  { %v16432_v63 = vmax.f32 %v20457_v40, 0.0  ;;  %v20339_v35 = vpop.f32.mrb[94].mxu0  ;;  %v20401_v40 = vadd.f32 %v25705_v53, %v27109_v47  ;;  %v12961_v58 = vmax.f32 %v20403_v60, 0.0  ;;  %v20405_v20 = vadd.f32 %v25705_v53, %v27113_v38 }
 0x94e   :  { %v20458_v31 = vadd.f32 %v25705_v53, %v20339_v35  ;;  %16606 = vrot.lane.b32.xlu1 %v16433_v22, %s21672_s1  ;;  %v16410_v16 = vpop.f32.mrb[95].mxu0  ;;  %v25777_v27 = vpop.permute.xlu0 %16540  ;;  %v16632_v22 = vsel %vm16628_vm4, %v12958_v12, %v16459_v3  ;;  %v16631_v14 = vsel %vm16628_vm4, %v12957_v61, %v16457_v15  ;;  %v27114_v12 = vld [vmem:[#allocation148_spill] sm:$0xff] }
 0x94f   :  { %v20459_v48 = vadd.f32 %v25705_v53, %v16410_v16  ;;  %16604 = vrot.lane.b32.xlu0 %v16432_v63, %s21672_s1  ;;  %v16648_v63 = vsel %vm57_vm0, %v16632_v22, %v16523_v37  ;;  %v27110_v16 = vld [vmem:[#allocation130_spill] sm:$0xff]  ;;  %v12959_v3 = vmax.f32 %v20401_v40, 0.0  ;;  %v20406_v8 = vadd.f32 %v25705_v53, %v27114_v12  ;;  %v27116_v22 = vld [vmem:[#allocation152_spill] sm:$0xff] }
 0x950   :  { %v16435_v11 = vmax.f32 %v20458_v31, 0.0  ;;  %v25783_v39 = vpop.permute.xlu1 %16546  ;;  %v12960_v31 = vmax.f32 %v20400_v46, 0.0 }
 0x951   :  { %v16434_v36 = vmax.f32 %v20459_v48, 0.0  ;;  %v20402_v48 = vadd.f32 %v25705_v53, %v27110_v16  ;;  %v27117_v16 = vld [vmem:[#allocation154_spill] sm:$0xff] }
 0x952   :  { %16610 = vrot.lane.b32.xlu1 %v16435_v11, %s21672_s1  ;;  %v25787_v10 = vpop.permute.xlu0 %16544  ;;  %v16647_v11 = vsel %vm57_vm0, %v16631_v14, %v16521_v19  ;;  %v16634_v37 = vsel %vm16628_vm4, %v12960_v31, %v25739_v26  ;;  %v16633_v19 = vsel %vm16628_vm4, %v12959_v3, %v25741_v33  ;;  %v20408_v14 = vadd.f32 %v25705_v53, %v27116_v22  ;;  %v27118_v3 = vld [vmem:[#allocation158_spill] sm:$0xff] }
 0x953   :  { %16608 = vrot.lane.b32.xlu0 %v16434_v36, %s21672_s1  ;;  %v16650_v44 = vsel %vm57_vm0, %v16634_v37, %v16527_v56  ;;  %v12962_v2 = vmax.f32 %v20402_v48, 0.0  ;;  %v16649_v1 = vsel %vm57_vm0, %v16633_v19, %v16525_v21  ;;  %v16635_v21 = vsel %vm16628_vm4, %v12961_v58, %v25745_v9  ;;  %v27119_v19 = vld [vmem:[#allocation159_spill] sm:$0xff] }
 0x954   :  { %v16651_v46 = vsel %vm57_vm0, %v16635_v21, %v25765_v23  ;;  %v20409_v48 = vadd.f32 %v25705_v53, %v27117_v16  ;;  %v20410_v43 = vadd.f32 %v25705_v53, %v27118_v3 }
 0x955   :  { %v16636_v56 = vsel %vm16628_vm4, %v12962_v2, %v25743_v7 }
 0x956   :  { %v16652_v29 = vsel %vm57_vm0, %v16636_v56, %v25763_v51  ;;  %v12967_v37 = vmax.f32 %v20409_v48, 0.0  ;;  %v12970_v2 = vmax.f32 %v20410_v43, 0.0 }
 0x9a8   :  { %v16583_v50 = vpop.permute.xlu1 %16582 }
 0x9a9   :  { %v16663_v18 = vsel %vm16661_vm5, %v16646_v24, %v16583_v50  ;;  %v16581_v59 = vpop.permute.xlu0 %16580  ;;  %v12964_v50 = vmax.f32 %v20404_v5, 0.0 }
 0x9aa   :  { %16680 = vst.msk [vmem:[%s25958_s9 + $0x8] sm:$0xff] %vm16678_vm6, %v16663_v18  ;;  %v16662_v42 = vsel %vm16661_vm5, %v16645_v13, %v16581_v59  ;;  %v12963_v18 = vmax.f32 %v20405_v20, 0.0  ;;  %v27115_v59 = vld [vmem:[#allocation18_spill] sm:$0xff] }
 0x9ab   :  { %16679 = vst.msk [vmem:[%s25958_s9] sm:$0xff] %vm16678_vm6, %v16662_v42  ;;  %v20407_v61 = vadd.f32 %v25705_v53, %v27115_v59  ;;  %v16638_v51 = vsel %vm16628_vm4, %v12964_v50, %v25747_v0  ;;  %v12966_v42 = vmax.f32 %v20406_v8, 0.0 }
 0x9ac   :  { %v16587_v35 = vpop.permute.xlu1 %16586  ;;  %v16637_v23 = vsel %vm16628_vm4, %v12963_v18, %v25749_v6  ;;  %v16654_v47 = vsel %vm57_vm0, %v16638_v51, %v25767_v4 }
 0x9ad   :  { %v16665_v36 = vsel %vm16661_vm5, %v16648_v63, %v16587_v35  ;;  %v16585_v62 = vpop.permute.xlu0 %16584  ;;  %v16653_v63 = vsel %vm57_vm0, %v16637_v23, %v25769_v25  ;;  %v12965_v31 = vmax.f32 %v20407_v61, 0.0  ;;  %v16640_v4 = vsel %vm16628_vm4, %v12966_v42, %v25751_v45 }
 0x9ae   :  { %16682 = vst.msk [vmem:[%s25958_s9 + $0x18] sm:$0xff] %vm16678_vm6, %v16665_v36  ;;  %v16664_v15 = vsel %vm16661_vm5, %v16647_v11, %v16585_v62  ;;  %v16656_v11 = vsel %vm57_vm0, %v16640_v4, %v25771_v28  ;;  %v12968_v62 = vmax.f32 %v20408_v14, 0.0 }
 0x9af   :  { %16681 = vst.msk [vmem:[%s25958_s9 + $0x10] sm:$0xff] %vm16678_vm6, %v16664_v15  ;;  %v16639_v25 = vsel %vm16628_vm4, %v12965_v31, %v25753_v17 }
 0x9b0   :  { %v16591_v30 = vpop.permute.xlu1 %16590  ;;  %v16655_v60 = vsel %vm57_vm0, %v16639_v25, %v25773_v49  ;;  %v16642_v28 = vsel %vm16628_vm4, %v12968_v62, %v25755_v34  ;;  %v16641_v49 = vsel %vm16628_vm4, %v12967_v37, %v25757_v54  ;;  %v16644_v54 = vsel %vm16628_vm4, %v12970_v2, %v25759_v55 }
 0x9b1   :  { %v16667_v32 = vsel %vm16661_vm5, %v16650_v44, %v16591_v30  ;;  %v16589_v26 = vpop.permute.xlu0 %16588  ;;  %v20411_v44 = vadd.f32 %v25705_v53, %v27119_v19  ;;  %v16658_v53 = vsel %vm57_vm0, %v16642_v28, %v25775_v57  ;;  %v16657_v41 = vsel %vm57_vm0, %v16641_v49, %v25777_v27 }
 0x9b2   :  { %16684 = vst.msk [vmem:[%s25958_s9 + $0x28] sm:$0xff] %vm16678_vm6, %v16667_v32  ;;  %v16666_v33 = vsel %vm16661_vm5, %v16649_v1, %v16589_v26  ;;  %v16660_v27 = vsel %vm57_vm0, %v16644_v54, %v25783_v39 }
 0x9b3   :  { %16683 = vst.msk [vmem:[%s25958_s9 + $0x20] sm:$0xff] %vm16678_vm6, %v16666_v33  ;;  %v12969_v34 = vmax.f32 %v20411_v44, 0.0 }
 0x9b4   :  { %v16595_v24 = vpop.permute.xlu1 %16594 }
 0x9b5   :  { %v16669_v7 = vsel %vm16661_vm5, %v16652_v29, %v16595_v24  ;;  %v16593_v13 = vpop.permute.xlu0 %16592  ;;  %v16643_v57 = vsel %vm16628_vm4, %v12969_v34, %v25761_v52 }
 0x9b6   :  { %16686 = vst.msk [vmem:[%s25958_s9 + $0x38] sm:$0xff] %vm16678_vm6, %v16669_v7  ;;  %v16668_v9 = vsel %vm16661_vm5, %v16651_v46, %v16593_v13  ;;  %v16659_v58 = vsel %vm57_vm0, %v16643_v57, %v25787_v10 }
 0x9b7   :  { %16685 = vst.msk [vmem:[%s25958_s9 + $0x30] sm:$0xff] %vm16678_vm6, %v16668_v9 }
 0x9b8   :  { %v16599_v40 = vpop.permute.xlu1 %16598 }
 0x9b9   :  { %v16671_v0 = vsel %vm16661_vm5, %v16654_v47, %v16599_v40  ;;  %v16597_v35 = vpop.permute.xlu0 %16596 }
 0x9ba   :  { %16688 = vst.msk [vmem:[%s25958_s9 + $0x48] sm:$0xff] %vm16678_vm6, %v16671_v0  ;;  %v16670_v6 = vsel %vm16661_vm5, %v16653_v63, %v16597_v35 }
 0x9bb   :  { %16687 = vst.msk [vmem:[%s25958_s9 + $0x40] sm:$0xff] %vm16678_vm6, %v16670_v6 }
 0x9bc   :  { %v16603_v36 = vpop.permute.xlu1 %16602 }
 0x9bd   :  { %v16673_v45 = vsel %vm16661_vm5, %v16656_v11, %v16603_v36  ;;  %v16601_v15 = vpop.permute.xlu0 %16600 }
 0x9be   :  { %16690 = vst.msk [vmem:[%s25958_s9 + $0x58] sm:$0xff] %vm16678_vm6, %v16673_v45  ;;  %v16672_v17 = vsel %vm16661_vm5, %v16655_v60, %v16601_v15 }
 0x9bf   :  { %16689 = vst.msk [vmem:[%s25958_s9 + $0x50] sm:$0xff] %vm16678_vm6, %v16672_v17 }
 0x9c0   :  { %v16607_v30 = vpop.permute.xlu1 %16606 }
 0x9c1   :  { %v16675_v5 = vsel %vm16661_vm5, %v16658_v53, %v16607_v30  ;;  %v16605_v1 = vpop.permute.xlu0 %16604 }
 0x9c2   :  { %16692 = vst.msk [vmem:[%s25958_s9 + $0x68] sm:$0xff] %vm16678_vm6, %v16675_v5  ;;  %v16674_v32 = vsel %vm16661_vm5, %v16657_v41, %v16605_v1 }
 0x9c3   :  { %16691 = vst.msk [vmem:[%s25958_s9 + $0x60] sm:$0xff] %vm16678_vm6, %v16674_v32 }
 0x9c4   :  { %v16611_v26 = vpop.permute.xlu1 %16610 }
 0x9c5   :  { %v16677_v38 = vsel %vm16661_vm5, %v16660_v27, %v16611_v26  ;;  %v16609_v20 = vpop.permute.xlu0 %16608 }
 0x9c6   :  { %16694 = vst.msk [vmem:[%s25958_s9 + $0x78] sm:$0xff] %vm16678_vm6, %v16677_v38  ;;  %v16676_v55 = vsel %vm16661_vm5, %v16659_v58, %v16609_v20 }
 0x9c7   :  { %16693 = vst.msk [vmem:[%s25958_s9 + $0x70] sm:$0xff] %vm16678_vm6, %v16676_v55 }

</bundles_post_ra>
